<compile_context>
chip_gen: v7x
topology: tpu7x:2x2x1
jax: 0.10.0
libtpu: 0.0.40
codegen_flags: <defaults>
</compile_context>

<pallas_src>
import math
from functools import partial

import numpy as np
import jax
import jax.numpy as jnp
from jax.experimental import pallas as pl
from jax.experimental.pallas import tpu as pltpu


# ----------------------------- DDPM schedule ------------------------------
def cosine_beta_schedule(timesteps, s=0.008):
    steps = timesteps + 1
    x = np.linspace(0, steps, steps)
    alphas_cumprod = np.cos((x / steps + s) / (1 + s) * np.pi * 0.5) ** 2
    alphas_cumprod = alphas_cumprod / alphas_cumprod[0]
    betas = 1 - alphas_cumprod[1:] / alphas_cumprod[:-1]
    return np.clip(betas, a_min=0, a_max=0.999)


# ------------------------------ fused kernel --------------------------------
def _ddpm_fused_kernel(a_ref, s_ref, x_ref, n_ref, tb_ref, w1_ref,
                       w2_ref, b2_ref, loss_ref, xpad_ref, hpad_ref, acc_ref,
                       *, H, W, C, hidden, BB, inv_total):
    HW = H * W
    M = BB * HW
    g = pl.program_id(0)
    last = pl.num_programs(0) - 1

    @pl.when(g == 0)
    def _init():
        acc_ref[0] = jnp.float32(0.0)
        acc_ref[1] = jnp.float32(0.0)
        # Zero padded scratches ONCE: 1-wide borders stay zero for all grid
        # steps; interiors are fully overwritten every step below.
        xpad_ref[...] = jnp.zeros_like(xpad_ref)
        hpad_ref[...] = jnp.zeros_like(hpad_ref)

    # ---- q_sample: x_noisy = sqrt(ab[t]) * x + sqrt(1-ab[t]) * eps ----------
    # Per-image coefficients arrive as (BB,1) VMEM blocks; broadcast over the
    # whole chunk in one shot and write straight into the zero-padded conv
    # input scratch (never round-tripped to HBM).
    a_b = a_ref[...].reshape(BB, 1, 1, 1)
    s_b = s_ref[...].reshape(BB, 1, 1, 1)
    xpad_ref[:, 1:H + 1, 1:W + 1, :] = a_b * x_ref[...] + s_b * n_ref[...]

    # ---- conv1: 3x3, C -> hidden, as 9 accumulating matmuls (bf16 in, f32 acc)
    h = jnp.zeros((M, hidden), jnp.float32)
    for tap in range(9):
        dy, dx = tap // 3, tap % 3
        xs = xpad_ref[:, dy:dy + H, dx:dx + W, :].reshape(M, C)
        h = h + jnp.dot(xs.astype(jnp.bfloat16), w1_ref[tap],
                        preferred_element_type=jnp.float32)

    # conv bias is pre-folded into the per-image time bias (wrapper); SiLU here
    h = h.reshape(BB, HW, hidden) + tb_ref[...][:, None, :]
    h = h * jax.nn.sigmoid(h)
    hpad_ref[:, 1:H + 1, 1:W + 1, :] = h.reshape(BB, H, W, hidden)

    # ---- conv2: 3x3, hidden -> C --------------------------------------------
    recon = jnp.zeros((M, C), jnp.float32)
    for tap in range(9):
        dy, dx = tap // 3, tap % 3
        hs = hpad_ref[:, dy:dy + H, dx:dx + W, :].reshape(M, hidden)
        recon = recon + jnp.dot(hs.astype(jnp.bfloat16), w2_ref[tap],
                                preferred_element_type=jnp.float32)
    recon = recon + b2_ref[...]

    # ---- loss partial sums vs. epsilon (recon stays in VMEM) -----------------
    d = recon - n_ref[...].reshape(M, C)
    acc_ref[0] = acc_ref[0] + jnp.sum(d * d)
    acc_ref[1] = acc_ref[1] + jnp.sum(jnp.abs(d))

    @pl.when(g == last)
    def _finalize():
        loss_ref[0, 0] = acc_ref[0] * inv_total      # mean squared error
        loss_ref[0, 1] = acc_ref[1] * inv_total      # mean absolute error


def fused_p_losses(x_nhwc, noise_nhwc, a, s, tbias, w1, w2, b2):
    B, H, W, C = x_nhwc.shape
    hidden = w1.shape[-1]
    BB = B if B <= 8 else 8                      # batch chunk per grid step
    assert B % BB == 0
    n_chunks = B // BB
    inv_total = 1.0 / float(B * C * H * W)

    kernel = partial(_ddpm_fused_kernel, H=H, W=W, C=C, hidden=hidden,
                     BB=BB, inv_total=inv_total)

    sums = pl.pallas_call(
        kernel,
        grid=(n_chunks,),
        in_specs=[
            pl.BlockSpec((BB, 1), lambda g: (g, 0)),               # sqrt(ab[t])
            pl.BlockSpec((BB, 1), lambda g: (g, 0)),               # sqrt(1-ab[t])
            pl.BlockSpec((BB, H, W, C), lambda g: (g, 0, 0, 0)),   # x    NHWC
            pl.BlockSpec((BB, H, W, C), lambda g: (g, 0, 0, 0)),   # eps  NHWC
            pl.BlockSpec((BB, hidden), lambda g: (g, 0)),          # time bias (+b1)
            pl.BlockSpec((9, C, hidden), lambda g: (0, 0, 0)),     # w1 (bf16)
            pl.BlockSpec((9, hidden, C), lambda g: (0, 0, 0)),     # w2 (bf16)
            pl.BlockSpec((1, C), lambda g: (0, 0)),                # b2
        ],
        out_specs=pl.BlockSpec(memory_space=pltpu.SMEM),
        out_shape=jax.ShapeDtypeStruct((1, 2), jnp.float32),
        scratch_shapes=[
            pltpu.VMEM((BB, H + 2, W + 2, C), jnp.float32),        # padded x_noisy
            pltpu.VMEM((BB, H + 2, W + 2, hidden), jnp.float32),   # padded hidden
            pltpu.SMEM((2,), jnp.float32),                         # loss accumulators
        ],
        compiler_params=pltpu.CompilerParams(
            dimension_semantics=("arbitrary",)),   # loss carries across steps
    )(a, s, x_nhwc, noise_nhwc, tbias, w1, w2, b2)
    return sums[0, 0], sums[0, 1]


# ------------------------------ JAX glue -----------------------------------
def timestep_embedding(t, dim):
    half = dim // 2
    freqs = jnp.exp(-math.log(10000.0) * jnp.arange(half, dtype=jnp.float32) / half)
    args = t.astype(jnp.float32)[:, None] * freqs[None, :]
    return jnp.concatenate([jnp.sin(args), jnp.cos(args)], axis=-1)


class DDPMNetPallas:
    def __init__(self, num_timesteps, in_channels, image_size, hidden=32,
                 loss_type="l2", seed=42):
        self.num_timesteps = num_timesteps
        self.channels = in_channels
        self.image_size = image_size
        self.hidden = hidden
        self.loss_type = loss_type

        betas = cosine_beta_schedule(num_timesteps)
        alphas = 1.0 - betas
        alphas_cumprod = np.cumprod(alphas, axis=0)
        self.sqrt_alphas_cumprod = jnp.asarray(
            np.sqrt(alphas_cumprod), dtype=jnp.float32)
        self.sqrt_one_minus_alphas_cumprod = jnp.asarray(
            np.sqrt(1.0 - alphas_cumprod), dtype=jnp.float32)

        # surrogate denoiser params; conv weights laid out (9 taps, Cin, Cout)
        # in bf16 for the MXU, biases in f32.
        k1, k2, k3 = jax.random.split(jax.random.PRNGKey(seed), 3)
        C, Hd = in_channels, hidden
        self.w1 = (jax.random.normal(k1, (9, C, Hd), jnp.float32)
                   / math.sqrt(C * 9)).astype(jnp.bfloat16)
        self.b1 = jnp.zeros((1, Hd), jnp.float32)
        self.w2 = (jax.random.normal(k2, (9, Hd, C), jnp.float32)
                   / math.sqrt(Hd * 9)).astype(jnp.bfloat16)
        self.b2 = jnp.zeros((1, C), jnp.float32)
        self.wt = jax.random.normal(k3, (Hd, Hd), jnp.float32) / math.sqrt(Hd)
        self.bt = jnp.zeros((Hd,), jnp.float32)

    def p_losses(self, x_start, t, noise):
        B, C, H, W = x_start.shape
        a = self.sqrt_alphas_cumprod[t][:, None]                 # (B,1)
        s = self.sqrt_one_minus_alphas_cumprod[t][:, None]       # (B,1)

        # tiny time-conditioning MLP (glue, negligible compute); conv1 bias
        # folded in here so the kernel only needs one per-image bias vector.
        temb = timestep_embedding(t, self.hidden)
        tbias = jax.nn.silu(temb @ self.wt + self.bt) + self.b1  # (B, hidden)

        # layout glue: NHWC for the in-kernel conv matmuls (loss is layout-invariant)
        x_nhwc = jnp.transpose(x_start.astype(jnp.float32), (0, 2, 3, 1))
        n_nhwc = jnp.transpose(noise.astype(jnp.float32), (0, 2, 3, 1))

        mse, mae = fused_p_losses(x_nhwc, n_nhwc, a, s, tbias,
                                  self.w1, self.w2, self.b2)
        if self.loss_type == "l2":
            return mse
        elif self.loss_type == "l1":
            return mae
        else:
            raise NotImplementedError()

    def forward(self, x, key):
        B, C, H, W = x.shape
        assert H == self.image_size and W == self.image_size, \
            f"height and width of image must be {self.image_size}"
        kt, kn = jax.random.split(key)
        t = jax.random.randint(kt, (B,), 0, self.num_timesteps)
        noise = jax.random.normal(kn, x.shape, dtype=jnp.float32)
        return self.p_losses(x, t, noise)


if __name__ == "__main__":
    key = jax.random.PRNGKey(0)
    B, C, H, W = 2, 4, 16, 16
    kx, kfwd = jax.random.split(key)
    x = jax.random.normal(kx, (B, C, H, W), dtype=jnp.float32)

    net = DDPMNetPallas(num_timesteps=100, in_channels=C, image_size=H,
                        hidden=32, loss_type="l2")
    loss = net.forward(x, kfwd)
    jax.block_until_ready(loss)
    assert loss.shape == () and bool(jnp.isfinite(loss))
    print("KERNEL_OK")
</pallas_src>

<mosaic_0001>
module attributes {stable_mosaic.version = 11 : i64} {
  func.func @_ddpm_fused_kernel(%arg0: i32, %arg1: memref<2x1xf32, #tpu.memory_space<vmem>>, %arg2: memref<2x1xf32, #tpu.memory_space<vmem>>, %arg3: memref<2x16x16x4xf32, #tpu.memory_space<vmem>>, %arg4: memref<2x16x16x4xf32, #tpu.memory_space<vmem>>, %arg5: memref<2x32xf32, #tpu.memory_space<vmem>>, %arg6: memref<9x4x32xbf16, #tpu.memory_space<vmem>>, %arg7: memref<9x32x4xbf16, #tpu.memory_space<vmem>>, %arg8: memref<1x4xf32, #tpu.memory_space<vmem>>, %arg9: memref<1x2xf32, #tpu.memory_space<smem>>, %arg10: memref<2x18x18x4xf32, #tpu.memory_space<vmem>>, %arg11: memref<2x18x18x32xf32, #tpu.memory_space<vmem>>, %arg12: memref<2xf32, #tpu.memory_space<smem>>) attributes {dimension_semantics = [#tpu.dimension_semantics<arbitrary>], iteration_bounds = array<i64: 1>, scalar_prefetch = 0 : i64, scratch_operands = 3 : i64, tpu.core_type = #tpu.core_type<tc>, window_params = [{transform_indices = @transform_0, window_bounds = array<i64: 2, 1>}, {transform_indices = @transform_1, window_bounds = array<i64: 2, 1>}, {transform_indices = @transform_2, window_bounds = array<i64: 2, 16, 16, 4>}, {transform_indices = @transform_3, window_bounds = array<i64: 2, 16, 16, 4>}, {transform_indices = @transform_4, window_bounds = array<i64: 2, 32>}, {pipeline_mode = #tpu.pipeline_mode<synchronous>, transform_indices = @transform_5, window_bounds = array<i64: 9, 4, 32>}, {pipeline_mode = #tpu.pipeline_mode<synchronous>, transform_indices = @transform_6, window_bounds = array<i64: 9, 32, 4>}, {pipeline_mode = #tpu.pipeline_mode<synchronous>, transform_indices = @transform_7, window_bounds = array<i64: 1, 4>}, {transform_indices = @transform_8, window_bounds = array<i64: 1, 2>}]} {
    %c0_i32 = arith.constant 0 : i32
    %0 = arith.cmpi eq, %arg0, %c0_i32 : i32
    %1 = arith.extui %0 : i1 to i32
    %c0_i32_0 = arith.constant 0 : i32
    %2 = arith.cmpi ne, %1, %c0_i32_0 : i32
    scf.if %2 {
      %cst_174 = arith.constant 0.000000e+00 : f32
      %c0_175 = arith.constant 0 : index
      %181 = memref.load %arg12[%c0_175] : memref<2xf32, #tpu.memory_space<smem>>
      memref.store %cst_174, %arg12[%c0_175] : memref<2xf32, #tpu.memory_space<smem>>
      %cst_176 = arith.constant 0.000000e+00 : f32
      %c1_177 = arith.constant 1 : index
      %182 = memref.load %arg12[%c1_177] : memref<2xf32, #tpu.memory_space<smem>>
      memref.store %cst_176, %arg12[%c1_177] : memref<2xf32, #tpu.memory_space<smem>>
      %cst_178 = arith.constant 0.000000e+00 : f32
      %183 = vector.broadcast %cst_178 : f32 to vector<2x18x18x4xf32>
      %c0_179 = arith.constant 0 : index
      %c0_180 = arith.constant 0 : index
      %c0_181 = arith.constant 0 : index
      %c0_182 = arith.constant 0 : index
      %184 = vector.load %arg10[%c0_179, %c0_180, %c0_181, %c0_182] : memref<2x18x18x4xf32, #tpu.memory_space<vmem>>, vector<2x18x18x4xf32>
      tpu.vector_store %arg10[%c0_179, %c0_180, %c0_181, %c0_182], %183 {strides = array<i32>} : memref<2x18x18x4xf32, #tpu.memory_space<vmem>>, vector<2x18x18x4xf32>,
      %cst_183 = arith.constant 0.000000e+00 : f32
      %185 = vector.broadcast %cst_183 : f32 to vector<2x18x18x32xf32>
      %c0_184 = arith.constant 0 : index
      %c0_185 = arith.constant 0 : index
      %c0_186 = arith.constant 0 : index
      %c0_187 = arith.constant 0 : index
      %186 = vector.load %arg11[%c0_184, %c0_185, %c0_186, %c0_187] : memref<2x18x18x32xf32, #tpu.memory_space<vmem>>, vector<2x18x18x32xf32>
      tpu.vector_store %arg11[%c0_184, %c0_185, %c0_186, %c0_187], %185 {strides = array<i32>} : memref<2x18x18x32xf32, #tpu.memory_space<vmem>>, vector<2x18x18x32xf32>,
    } else {
    }
    %c0 = arith.constant 0 : index
    %c0_1 = arith.constant 0 : index
    %3 = vector.load %arg1[%c0, %c0_1] : memref<2x1xf32, #tpu.memory_space<vmem>>, vector<2x1xf32>
    %4 = vector.shape_cast %3 : vector<2x1xf32> to vector<2x1x1x1xf32>
    %c0_2 = arith.constant 0 : index
    %c0_3 = arith.constant 0 : index
    %5 = vector.load %arg2[%c0_2, %c0_3] : memref<2x1xf32, #tpu.memory_space<vmem>>, vector<2x1xf32>
    %6 = vector.shape_cast %5 : vector<2x1xf32> to vector<2x1x1x1xf32>
    %c0_4 = arith.constant 0 : index
    %c0_5 = arith.constant 0 : index
    %c0_6 = arith.constant 0 : index
    %c0_7 = arith.constant 0 : index
    %7 = vector.load %arg3[%c0_4, %c0_5, %c0_6, %c0_7] : memref<2x16x16x4xf32, #tpu.memory_space<vmem>>, vector<2x16x16x4xf32>
    %8 = vector.broadcast %4 : vector<2x1x1x1xf32> to vector<2x16x16x4xf32>
    %9 = arith.mulf %8, %7 : vector<2x16x16x4xf32>
    %c0_8 = arith.constant 0 : index
    %c0_9 = arith.constant 0 : index
    %c0_10 = arith.constant 0 : index
    %c0_11 = arith.constant 0 : index
    %10 = vector.load %arg4[%c0_8, %c0_9, %c0_10, %c0_11] : memref<2x16x16x4xf32, #tpu.memory_space<vmem>>, vector<2x16x16x4xf32>
    %11 = vector.broadcast %6 : vector<2x1x1x1xf32> to vector<2x16x16x4xf32>
    %12 = arith.mulf %11, %10 : vector<2x16x16x4xf32>
    %13 = arith.addf %9, %12 : vector<2x16x16x4xf32>
    %c0_12 = arith.constant 0 : index
    %c1 = arith.constant 1 : index
    %c1_13 = arith.constant 1 : index
    %c0_14 = arith.constant 0 : index
    %14 = vector.load %arg10[%c0_12, %c1, %c1_13, %c0_14] : memref<2x18x18x4xf32, #tpu.memory_space<vmem>>, vector<2x16x16x4xf32>
    tpu.vector_store %arg10[%c0_12, %c1, %c1_13, %c0_14], %13 {strides = array<i32>} : memref<2x18x18x4xf32, #tpu.memory_space<vmem>>, vector<2x16x16x4xf32>,
    %cst = arith.constant 0.000000e+00 : f32
    %15 = vector.broadcast %cst : f32 to vector<512x32xf32>
    %c0_15 = arith.constant 0 : index
    %c0_16 = arith.constant 0 : index
    %c0_17 = arith.constant 0 : index
    %c0_18 = arith.constant 0 : index
    %16 = vector.load %arg10[%c0_15, %c0_16, %c0_17, %c0_18] : memref<2x18x18x4xf32, #tpu.memory_space<vmem>>, vector<2x16x16x4xf32>
    %17 = vector.shape_cast %16 : vector<2x16x16x4xf32> to vector<512x4xf32>
    %18 = arith.truncf %17 : vector<512x4xf32> to vector<512x4xbf16>
    %c0_19 = arith.constant 0 : index
    %c0_20 = arith.constant 0 : index
    %c0_21 = arith.constant 0 : index
    %19 = vector.load %arg6[%c0_19, %c0_20, %c0_21] : memref<9x4x32xbf16, #tpu.memory_space<vmem>>, vector<1x4x32xbf16>
    %20 = vector.shape_cast %19 : vector<1x4x32xbf16> to vector<4x32xbf16>
    %cst_22 = arith.constant dense<0.000000e+00> : vector<512x32xf32>
    %21 = tpu.matmul %18, %20, %cst_22 {dimension_numbers = #tpu.dot_dimension_numbers<[1], [0], [0], [1], [0, 0, 1, 1], [], []>} : vector<512x4xbf16>, vector<4x32xbf16>, vector<512x32xf32> -> vector<512x32xf32>
    %22 = arith.addf %15, %21 : vector<512x32xf32>
    %c0_23 = arith.constant 0 : index
    %c0_24 = arith.constant 0 : index
    %c1_25 = arith.constant 1 : index
    %c0_26 = arith.constant 0 : index
    %23 = vector.load %arg10[%c0_23, %c0_24, %c1_25, %c0_26] : memref<2x18x18x4xf32, #tpu.memory_space<vmem>>, vector<2x16x16x4xf32>
    %24 = vector.shape_cast %23 : vector<2x16x16x4xf32> to vector<512x4xf32>
    %25 = arith.truncf %24 : vector<512x4xf32> to vector<512x4xbf16>
    %c1_27 = arith.constant 1 : index
    %c0_28 = arith.constant 0 : index
    %c0_29 = arith.constant 0 : index
    %26 = vector.load %arg6[%c1_27, %c0_28, %c0_29] : memref<9x4x32xbf16, #tpu.memory_space<vmem>>, vector<1x4x32xbf16>
    %27 = vector.shape_cast %26 : vector<1x4x32xbf16> to vector<4x32xbf16>
    %cst_30 = arith.constant dense<0.000000e+00> : vector<512x32xf32>
    %28 = tpu.matmul %25, %27, %cst_30 {dimension_numbers = #tpu.dot_dimension_numbers<[1], [0], [0], [1], [0, 0, 1, 1], [], []>} : vector<512x4xbf16>, vector<4x32xbf16>, vector<512x32xf32> -> vector<512x32xf32>
    %29 = arith.addf %22, %28 : vector<512x32xf32>
    %c0_31 = arith.constant 0 : index
    %c0_32 = arith.constant 0 : index
    %c2 = arith.constant 2 : index
    %c0_33 = arith.constant 0 : index
    %30 = vector.load %arg10[%c0_31, %c0_32, %c2, %c0_33] : memref<2x18x18x4xf32, #tpu.memory_space<vmem>>, vector<2x16x16x4xf32>
    %31 = vector.shape_cast %30 : vector<2x16x16x4xf32> to vector<512x4xf32>
    %32 = arith.truncf %31 : vector<512x4xf32> to vector<512x4xbf16>
    %c2_34 = arith.constant 2 : index
    %c0_35 = arith.constant 0 : index
    %c0_36 = arith.constant 0 : index
    %33 = vector.load %arg6[%c2_34, %c0_35, %c0_36] : memref<9x4x32xbf16, #tpu.memory_space<vmem>>, vector<1x4x32xbf16>
    %34 = vector.shape_cast %33 : vector<1x4x32xbf16> to vector<4x32xbf16>
    %cst_37 = arith.constant dense<0.000000e+00> : vector<512x32xf32>
    %35 = tpu.matmul %32, %34, %cst_37 {dimension_numbers = #tpu.dot_dimension_numbers<[1], [0], [0], [1], [0, 0, 1, 1], [], []>} : vector<512x4xbf16>, vector<4x32xbf16>, vector<512x32xf32> -> vector<512x32xf32>
    %36 = arith.addf %29, %35 : vector<512x32xf32>
    %c0_38 = arith.constant 0 : index
    %c1_39 = arith.constant 1 : index
    %c0_40 = arith.constant 0 : index
    %c0_41 = arith.constant 0 : index
    %37 = vector.load %arg10[%c0_38, %c1_39, %c0_40, %c0_41] : memref<2x18x18x4xf32, #tpu.memory_space<vmem>>, vector<2x16x16x4xf32>
    %38 = vector.shape_cast %37 : vector<2x16x16x4xf32> to vector<512x4xf32>
    %39 = arith.truncf %38 : vector<512x4xf32> to vector<512x4xbf16>
    %c3 = arith.constant 3 : index
    %c0_42 = arith.constant 0 : index
    %c0_43 = arith.constant 0 : index
    %40 = vector.load %arg6[%c3, %c0_42, %c0_43] : memref<9x4x32xbf16, #tpu.memory_space<vmem>>, vector<1x4x32xbf16>
    %41 = vector.shape_cast %40 : vector<1x4x32xbf16> to vector<4x32xbf16>
    %cst_44 = arith.constant dense<0.000000e+00> : vector<512x32xf32>
    %42 = tpu.matmul %39, %41, %cst_44 {dimension_numbers = #tpu.dot_dimension_numbers<[1], [0], [0], [1], [0, 0, 1, 1], [], []>} : vector<512x4xbf16>, vector<4x32xbf16>, vector<512x32xf32> -> vector<512x32xf32>
    %43 = arith.addf %36, %42 : vector<512x32xf32>
    %c0_45 = arith.constant 0 : index
    %c1_46 = arith.constant 1 : index
    %c1_47 = arith.constant 1 : index
    %c0_48 = arith.constant 0 : index
    %44 = vector.load %arg10[%c0_45, %c1_46, %c1_47, %c0_48] : memref<2x18x18x4xf32, #tpu.memory_space<vmem>>, vector<2x16x16x4xf32>
    %45 = vector.shape_cast %44 : vector<2x16x16x4xf32> to vector<512x4xf32>
    %46 = arith.truncf %45 : vector<512x4xf32> to vector<512x4xbf16>
    %c4 = arith.constant 4 : index
    %c0_49 = arith.constant 0 : index
    %c0_50 = arith.constant 0 : index
    %47 = vector.load %arg6[%c4, %c0_49, %c0_50] : memref<9x4x32xbf16, #tpu.memory_space<vmem>>, vector<1x4x32xbf16>
    %48 = vector.shape_cast %47 : vector<1x4x32xbf16> to vector<4x32xbf16>
    %cst_51 = arith.constant dense<0.000000e+00> : vector<512x32xf32>
    %49 = tpu.matmul %46, %48, %cst_51 {dimension_numbers = #tpu.dot_dimension_numbers<[1], [0], [0], [1], [0, 0, 1, 1], [], []>} : vector<512x4xbf16>, vector<4x32xbf16>, vector<512x32xf32> -> vector<512x32xf32>
    %50 = arith.addf %43, %49 : vector<512x32xf32>
    %c0_52 = arith.constant 0 : index
    %c1_53 = arith.constant 1 : index
    %c2_54 = arith.constant 2 : index
    %c0_55 = arith.constant 0 : index
    %51 = vector.load %arg10[%c0_52, %c1_53, %c2_54, %c0_55] : memref<2x18x18x4xf32, #tpu.memory_space<vmem>>, vector<2x16x16x4xf32>
    %52 = vector.shape_cast %51 : vector<2x16x16x4xf32> to vector<512x4xf32>
    %53 = arith.truncf %52 : vector<512x4xf32> to vector<512x4xbf16>
    %c5 = arith.constant 5 : index
    %c0_56 = arith.constant 0 : index
    %c0_57 = arith.constant 0 : index
    %54 = vector.load %arg6[%c5, %c0_56, %c0_57] : memref<9x4x32xbf16, #tpu.memory_space<vmem>>, vector<1x4x32xbf16>
    %55 = vector.shape_cast %54 : vector<1x4x32xbf16> to vector<4x32xbf16>
    %cst_58 = arith.constant dense<0.000000e+00> : vector<512x32xf32>
    %56 = tpu.matmul %53, %55, %cst_58 {dimension_numbers = #tpu.dot_dimension_numbers<[1], [0], [0], [1], [0, 0, 1, 1], [], []>} : vector<512x4xbf16>, vector<4x32xbf16>, vector<512x32xf32> -> vector<512x32xf32>
    %57 = arith.addf %50, %56 : vector<512x32xf32>
    %c0_59 = arith.constant 0 : index
    %c2_60 = arith.constant 2 : index
    %c0_61 = arith.constant 0 : index
    %c0_62 = arith.constant 0 : index
    %58 = vector.load %arg10[%c0_59, %c2_60, %c0_61, %c0_62] : memref<2x18x18x4xf32, #tpu.memory_space<vmem>>, vector<2x16x16x4xf32>
    %59 = vector.shape_cast %58 : vector<2x16x16x4xf32> to vector<512x4xf32>
    %60 = arith.truncf %59 : vector<512x4xf32> to vector<512x4xbf16>
    %c6 = arith.constant 6 : index
    %c0_63 = arith.constant 0 : index
    %c0_64 = arith.constant 0 : index
    %61 = vector.load %arg6[%c6, %c0_63, %c0_64] : memref<9x4x32xbf16, #tpu.memory_space<vmem>>, vector<1x4x32xbf16>
    %62 = vector.shape_cast %61 : vector<1x4x32xbf16> to vector<4x32xbf16>
    %cst_65 = arith.constant dense<0.000000e+00> : vector<512x32xf32>
    %63 = tpu.matmul %60, %62, %cst_65 {dimension_numbers = #tpu.dot_dimension_numbers<[1], [0], [0], [1], [0, 0, 1, 1], [], []>} : vector<512x4xbf16>, vector<4x32xbf16>, vector<512x32xf32> -> vector<512x32xf32>
    %64 = arith.addf %57, %63 : vector<512x32xf32>
    %c0_66 = arith.constant 0 : index
    %c2_67 = arith.constant 2 : index
    %c1_68 = arith.constant 1 : index
    %c0_69 = arith.constant 0 : index
    %65 = vector.load %arg10[%c0_66, %c2_67, %c1_68, %c0_69] : memref<2x18x18x4xf32, #tpu.memory_space<vmem>>, vector<2x16x16x4xf32>
    %66 = vector.shape_cast %65 : vector<2x16x16x4xf32> to vector<512x4xf32>
    %67 = arith.truncf %66 : vector<512x4xf32> to vector<512x4xbf16>
    %c7 = arith.constant 7 : index
    %c0_70 = arith.constant 0 : index
    %c0_71 = arith.constant 0 : index
    %68 = vector.load %arg6[%c7, %c0_70, %c0_71] : memref<9x4x32xbf16, #tpu.memory_space<vmem>>, vector<1x4x32xbf16>
    %69 = vector.shape_cast %68 : vector<1x4x32xbf16> to vector<4x32xbf16>
    %cst_72 = arith.constant dense<0.000000e+00> : vector<512x32xf32>
    %70 = tpu.matmul %67, %69, %cst_72 {dimension_numbers = #tpu.dot_dimension_numbers<[1], [0], [0], [1], [0, 0, 1, 1], [], []>} : vector<512x4xbf16>, vector<4x32xbf16>, vector<512x32xf32> -> vector<512x32xf32>
    %71 = arith.addf %64, %70 : vector<512x32xf32>
    %c0_73 = arith.constant 0 : index
    %c2_74 = arith.constant 2 : index
    %c2_75 = arith.constant 2 : index
    %c0_76 = arith.constant 0 : index
    %72 = vector.load %arg10[%c0_73, %c2_74, %c2_75, %c0_76] : memref<2x18x18x4xf32, #tpu.memory_space<vmem>>, vector<2x16x16x4xf32>
    %73 = vector.shape_cast %72 : vector<2x16x16x4xf32> to vector<512x4xf32>
    %74 = arith.truncf %73 : vector<512x4xf32> to vector<512x4xbf16>
    %c8 = arith.constant 8 : index
    %c0_77 = arith.constant 0 : index
    %c0_78 = arith.constant 0 : index
    %75 = vector.load %arg6[%c8, %c0_77, %c0_78] : memref<9x4x32xbf16, #tpu.memory_space<vmem>>, vector<1x4x32xbf16>
    %76 = vector.shape_cast %75 : vector<1x4x32xbf16> to vector<4x32xbf16>
    %cst_79 = arith.constant dense<0.000000e+00> : vector<512x32xf32>
    %77 = tpu.matmul %74, %76, %cst_79 {dimension_numbers = #tpu.dot_dimension_numbers<[1], [0], [0], [1], [0, 0, 1, 1], [], []>} : vector<512x4xbf16>, vector<4x32xbf16>, vector<512x32xf32> -> vector<512x32xf32>
    %78 = arith.addf %71, %77 : vector<512x32xf32>
    %79 = vector.shape_cast %78 : vector<512x32xf32> to vector<2x256x32xf32>
    %c0_80 = arith.constant 0 : index
    %c0_81 = arith.constant 0 : index
    %80 = vector.load %arg5[%c0_80, %c0_81] : memref<2x32xf32, #tpu.memory_space<vmem>>, vector<2x32xf32>
    %81 = vector.shape_cast %80 : vector<2x32xf32> to vector<2x1x32xf32>
    %82 = vector.broadcast %81 : vector<2x1x32xf32> to vector<2x256x32xf32>
    %83 = arith.addf %79, %82 : vector<2x256x32xf32>
    %84 = arith.negf %83 : vector<2x256x32xf32>
    %85 = math.exp %84 : vector<2x256x32xf32>
    %cst_82 = arith.constant 1.000000e+00 : f32
    %86 = vector.broadcast %cst_82 : f32 to vector<2x256x32xf32>
    %87 = arith.addf %86, %85 : vector<2x256x32xf32>
    %88 = arith.divf %86, %87 : vector<2x256x32xf32>
    %89 = arith.mulf %83, %88 : vector<2x256x32xf32>
    %90 = vector.shape_cast %89 : vector<2x256x32xf32> to vector<2x16x16x32xf32>
    %c0_83 = arith.constant 0 : index
    %c1_84 = arith.constant 1 : index
    %c1_85 = arith.constant 1 : index
    %c0_86 = arith.constant 0 : index
    %91 = vector.load %arg11[%c0_83, %c1_84, %c1_85, %c0_86] : memref<2x18x18x32xf32, #tpu.memory_space<vmem>>, vector<2x16x16x32xf32>
    tpu.vector_store %arg11[%c0_83, %c1_84, %c1_85, %c0_86], %90 {strides = array<i32>} : memref<2x18x18x32xf32, #tpu.memory_space<vmem>>, vector<2x16x16x32xf32>,
    %cst_87 = arith.constant 0.000000e+00 : f32
    %92 = vector.broadcast %cst_87 : f32 to vector<512x4xf32>
    %c0_88 = arith.constant 0 : index
    %c0_89 = arith.constant 0 : index
    %c0_90 = arith.constant 0 : index
    %c0_91 = arith.constant 0 : index
    %93 = vector.load %arg11[%c0_88, %c0_89, %c0_90, %c0_91] : memref<2x18x18x32xf32, #tpu.memory_space<vmem>>, vector<2x16x16x32xf32>
    %94 = vector.shape_cast %93 : vector<2x16x16x32xf32> to vector<512x32xf32>
    %95 = arith.truncf %94 : vector<512x32xf32> to vector<512x32xbf16>
    %c0_92 = arith.constant 0 : index
    %c0_93 = arith.constant 0 : index
    %c0_94 = arith.constant 0 : index
    %96 = vector.load %arg7[%c0_92, %c0_93, %c0_94] : memref<9x32x4xbf16, #tpu.memory_space<vmem>>, vector<1x32x4xbf16>
    %97 = vector.shape_cast %96 : vector<1x32x4xbf16> to vector<32x4xbf16>
    %cst_95 = arith.constant dense<0.000000e+00> : vector<512x4xf32>
    %98 = tpu.matmul %95, %97, %cst_95 {dimension_numbers = #tpu.dot_dimension_numbers<[1], [0], [0], [1], [0, 0, 1, 1], [], []>} : vector<512x32xbf16>, vector<32x4xbf16>, vector<512x4xf32> -> vector<512x4xf32>
    %99 = arith.addf %92, %98 : vector<512x4xf32>
    %c0_96 = arith.constant 0 : index
    %c0_97 = arith.constant 0 : index
    %c1_98 = arith.constant 1 : index
    %c0_99 = arith.constant 0 : index
    %100 = vector.load %arg11[%c0_96, %c0_97, %c1_98, %c0_99] : memref<2x18x18x32xf32, #tpu.memory_space<vmem>>, vector<2x16x16x32xf32>
    %101 = vector.shape_cast %100 : vector<2x16x16x32xf32> to vector<512x32xf32>
    %102 = arith.truncf %101 : vector<512x32xf32> to vector<512x32xbf16>
    %c1_100 = arith.constant 1 : index
    %c0_101 = arith.constant 0 : index
    %c0_102 = arith.constant 0 : index
    %103 = vector.load %arg7[%c1_100, %c0_101, %c0_102] : memref<9x32x4xbf16, #tpu.memory_space<vmem>>, vector<1x32x4xbf16>
    %104 = vector.shape_cast %103 : vector<1x32x4xbf16> to vector<32x4xbf16>
    %cst_103 = arith.constant dense<0.000000e+00> : vector<512x4xf32>
    %105 = tpu.matmul %102, %104, %cst_103 {dimension_numbers = #tpu.dot_dimension_numbers<[1], [0], [0], [1], [0, 0, 1, 1], [], []>} : vector<512x32xbf16>, vector<32x4xbf16>, vector<512x4xf32> -> vector<512x4xf32>
    %106 = arith.addf %99, %105 : vector<512x4xf32>
    %c0_104 = arith.constant 0 : index
    %c0_105 = arith.constant 0 : index
    %c2_106 = arith.constant 2 : index
    %c0_107 = arith.constant 0 : index
    %107 = vector.load %arg11[%c0_104, %c0_105, %c2_106, %c0_107] : memref<2x18x18x32xf32, #tpu.memory_space<vmem>>, vector<2x16x16x32xf32>
    %108 = vector.shape_cast %107 : vector<2x16x16x32xf32> to vector<512x32xf32>
    %109 = arith.truncf %108 : vector<512x32xf32> to vector<512x32xbf16>
    %c2_108 = arith.constant 2 : index
    %c0_109 = arith.constant 0 : index
    %c0_110 = arith.constant 0 : index
    %110 = vector.load %arg7[%c2_108, %c0_109, %c0_110] : memref<9x32x4xbf16, #tpu.memory_space<vmem>>, vector<1x32x4xbf16>
    %111 = vector.shape_cast %110 : vector<1x32x4xbf16> to vector<32x4xbf16>
    %cst_111 = arith.constant dense<0.000000e+00> : vector<512x4xf32>
    %112 = tpu.matmul %109, %111, %cst_111 {dimension_numbers = #tpu.dot_dimension_numbers<[1], [0], [0], [1], [0, 0, 1, 1], [], []>} : vector<512x32xbf16>, vector<32x4xbf16>, vector<512x4xf32> -> vector<512x4xf32>
    %113 = arith.addf %106, %112 : vector<512x4xf32>
    %c0_112 = arith.constant 0 : index
    %c1_113 = arith.constant 1 : index
    %c0_114 = arith.constant 0 : index
    %c0_115 = arith.constant 0 : index
    %114 = vector.load %arg11[%c0_112, %c1_113, %c0_114, %c0_115] : memref<2x18x18x32xf32, #tpu.memory_space<vmem>>, vector<2x16x16x32xf32>
    %115 = vector.shape_cast %114 : vector<2x16x16x32xf32> to vector<512x32xf32>
    %116 = arith.truncf %115 : vector<512x32xf32> to vector<512x32xbf16>
    %c3_116 = arith.constant 3 : index
    %c0_117 = arith.constant 0 : index
    %c0_118 = arith.constant 0 : index
    %117 = vector.load %arg7[%c3_116, %c0_117, %c0_118] : memref<9x32x4xbf16, #tpu.memory_space<vmem>>, vector<1x32x4xbf16>
    %118 = vector.shape_cast %117 : vector<1x32x4xbf16> to vector<32x4xbf16>
    %cst_119 = arith.constant dense<0.000000e+00> : vector<512x4xf32>
    %119 = tpu.matmul %116, %118, %cst_119 {dimension_numbers = #tpu.dot_dimension_numbers<[1], [0], [0], [1], [0, 0, 1, 1], [], []>} : vector<512x32xbf16>, vector<32x4xbf16>, vector<512x4xf32> -> vector<512x4xf32>
    %120 = arith.addf %113, %119 : vector<512x4xf32>
    %c0_120 = arith.constant 0 : index
    %c1_121 = arith.constant 1 : index
    %c1_122 = arith.constant 1 : index
    %c0_123 = arith.constant 0 : index
    %121 = vector.load %arg11[%c0_120, %c1_121, %c1_122, %c0_123] : memref<2x18x18x32xf32, #tpu.memory_space<vmem>>, vector<2x16x16x32xf32>
    %122 = vector.shape_cast %121 : vector<2x16x16x32xf32> to vector<512x32xf32>
    %123 = arith.truncf %122 : vector<512x32xf32> to vector<512x32xbf16>
    %c4_124 = arith.constant 4 : index
    %c0_125 = arith.constant 0 : index
    %c0_126 = arith.constant 0 : index
    %124 = vector.load %arg7[%c4_124, %c0_125, %c0_126] : memref<9x32x4xbf16, #tpu.memory_space<vmem>>, vector<1x32x4xbf16>
    %125 = vector.shape_cast %124 : vector<1x32x4xbf16> to vector<32x4xbf16>
    %cst_127 = arith.constant dense<0.000000e+00> : vector<512x4xf32>
    %126 = tpu.matmul %123, %125, %cst_127 {dimension_numbers = #tpu.dot_dimension_numbers<[1], [0], [0], [1], [0, 0, 1, 1], [], []>} : vector<512x32xbf16>, vector<32x4xbf16>, vector<512x4xf32> -> vector<512x4xf32>
    %127 = arith.addf %120, %126 : vector<512x4xf32>
    %c0_128 = arith.constant 0 : index
    %c1_129 = arith.constant 1 : index
    %c2_130 = arith.constant 2 : index
    %c0_131 = arith.constant 0 : index
    %128 = vector.load %arg11[%c0_128, %c1_129, %c2_130, %c0_131] : memref<2x18x18x32xf32, #tpu.memory_space<vmem>>, vector<2x16x16x32xf32>
    %129 = vector.shape_cast %128 : vector<2x16x16x32xf32> to vector<512x32xf32>
    %130 = arith.truncf %129 : vector<512x32xf32> to vector<512x32xbf16>
    %c5_132 = arith.constant 5 : index
    %c0_133 = arith.constant 0 : index
    %c0_134 = arith.constant 0 : index
    %131 = vector.load %arg7[%c5_132, %c0_133, %c0_134] : memref<9x32x4xbf16, #tpu.memory_space<vmem>>, vector<1x32x4xbf16>
    %132 = vector.shape_cast %131 : vector<1x32x4xbf16> to vector<32x4xbf16>
    %cst_135 = arith.constant dense<0.000000e+00> : vector<512x4xf32>
    %133 = tpu.matmul %130, %132, %cst_135 {dimension_numbers = #tpu.dot_dimension_numbers<[1], [0], [0], [1], [0, 0, 1, 1], [], []>} : vector<512x32xbf16>, vector<32x4xbf16>, vector<512x4xf32> -> vector<512x4xf32>
    %134 = arith.addf %127, %133 : vector<512x4xf32>
    %c0_136 = arith.constant 0 : index
    %c2_137 = arith.constant 2 : index
    %c0_138 = arith.constant 0 : index
    %c0_139 = arith.constant 0 : index
    %135 = vector.load %arg11[%c0_136, %c2_137, %c0_138, %c0_139] : memref<2x18x18x32xf32, #tpu.memory_space<vmem>>, vector<2x16x16x32xf32>
    %136 = vector.shape_cast %135 : vector<2x16x16x32xf32> to vector<512x32xf32>
    %137 = arith.truncf %136 : vector<512x32xf32> to vector<512x32xbf16>
    %c6_140 = arith.constant 6 : index
    %c0_141 = arith.constant 0 : index
    %c0_142 = arith.constant 0 : index
    %138 = vector.load %arg7[%c6_140, %c0_141, %c0_142] : memref<9x32x4xbf16, #tpu.memory_space<vmem>>, vector<1x32x4xbf16>
    %139 = vector.shape_cast %138 : vector<1x32x4xbf16> to vector<32x4xbf16>
    %cst_143 = arith.constant dense<0.000000e+00> : vector<512x4xf32>
    %140 = tpu.matmul %137, %139, %cst_143 {dimension_numbers = #tpu.dot_dimension_numbers<[1], [0], [0], [1], [0, 0, 1, 1], [], []>} : vector<512x32xbf16>, vector<32x4xbf16>, vector<512x4xf32> -> vector<512x4xf32>
    %141 = arith.addf %134, %140 : vector<512x4xf32>
    %c0_144 = arith.constant 0 : index
    %c2_145 = arith.constant 2 : index
    %c1_146 = arith.constant 1 : index
    %c0_147 = arith.constant 0 : index
    %142 = vector.load %arg11[%c0_144, %c2_145, %c1_146, %c0_147] : memref<2x18x18x32xf32, #tpu.memory_space<vmem>>, vector<2x16x16x32xf32>
    %143 = vector.shape_cast %142 : vector<2x16x16x32xf32> to vector<512x32xf32>
    %144 = arith.truncf %143 : vector<512x32xf32> to vector<512x32xbf16>
    %c7_148 = arith.constant 7 : index
    %c0_149 = arith.constant 0 : index
    %c0_150 = arith.constant 0 : index
    %145 = vector.load %arg7[%c7_148, %c0_149, %c0_150] : memref<9x32x4xbf16, #tpu.memory_space<vmem>>, vector<1x32x4xbf16>
    %146 = vector.shape_cast %145 : vector<1x32x4xbf16> to vector<32x4xbf16>
    %cst_151 = arith.constant dense<0.000000e+00> : vector<512x4xf32>
    %147 = tpu.matmul %144, %146, %cst_151 {dimension_numbers = #tpu.dot_dimension_numbers<[1], [0], [0], [1], [0, 0, 1, 1], [], []>} : vector<512x32xbf16>, vector<32x4xbf16>, vector<512x4xf32> -> vector<512x4xf32>
    %148 = arith.addf %141, %147 : vector<512x4xf32>
    %c0_152 = arith.constant 0 : index
    %c2_153 = arith.constant 2 : index
    %c2_154 = arith.constant 2 : index
    %c0_155 = arith.constant 0 : index
    %149 = vector.load %arg11[%c0_152, %c2_153, %c2_154, %c0_155] : memref<2x18x18x32xf32, #tpu.memory_space<vmem>>, vector<2x16x16x32xf32>
    %150 = vector.shape_cast %149 : vector<2x16x16x32xf32> to vector<512x32xf32>
    %151 = arith.truncf %150 : vector<512x32xf32> to vector<512x32xbf16>
    %c8_156 = arith.constant 8 : index
    %c0_157 = arith.constant 0 : index
    %c0_158 = arith.constant 0 : index
    %152 = vector.load %arg7[%c8_156, %c0_157, %c0_158] : memref<9x32x4xbf16, #tpu.memory_space<vmem>>, vector<1x32x4xbf16>
    %153 = vector.shape_cast %152 : vector<1x32x4xbf16> to vector<32x4xbf16>
    %cst_159 = arith.constant dense<0.000000e+00> : vector<512x4xf32>
    %154 = tpu.matmul %151, %153, %cst_159 {dimension_numbers = #tpu.dot_dimension_numbers<[1], [0], [0], [1], [0, 0, 1, 1], [], []>} : vector<512x32xbf16>, vector<32x4xbf16>, vector<512x4xf32> -> vector<512x4xf32>
    %155 = arith.addf %148, %154 : vector<512x4xf32>
    %c0_160 = arith.constant 0 : index
    %c0_161 = arith.constant 0 : index
    %156 = vector.load %arg8[%c0_160, %c0_161] : memref<1x4xf32, #tpu.memory_space<vmem>>, vector<1x4xf32>
    %157 = vector.broadcast %156 : vector<1x4xf32> to vector<512x4xf32>
    %158 = arith.addf %155, %157 : vector<512x4xf32>
    %c0_162 = arith.constant 0 : index
    %c0_163 = arith.constant 0 : index
    %c0_164 = arith.constant 0 : index
    %c0_165 = arith.constant 0 : index
    %159 = vector.load %arg4[%c0_162, %c0_163, %c0_164, %c0_165] : memref<2x16x16x4xf32, #tpu.memory_space<vmem>>, vector<2x16x16x4xf32>
    %160 = vector.shape_cast %159 : vector<2x16x16x4xf32> to vector<512x4xf32>
    %161 = arith.subf %158, %160 : vector<512x4xf32>
    %c0_166 = arith.constant 0 : index
    %162 = memref.load %arg12[%c0_166] : memref<2xf32, #tpu.memory_space<smem>>
    %163 = arith.mulf %161, %161 : vector<512x4xf32>
    %164 = vector.shape_cast %163 : vector<512x4xf32> to vector<1x512x4xf32>
    %cst_167 = arith.constant dense<0.000000e+00> : vector<1xf32>
    %165 = vector.multi_reduction <add>, %164, %cst_167 [1, 2] : vector<1x512x4xf32> to vector<1xf32>
    %166 = vector.shape_cast %165 : vector<1xf32> to vector<1x1x1xf32>
    %167 = vector.extract %166[0, 0, 0] : f32 from vector<1x1x1xf32>
    %168 = arith.addf %162, %167 : f32
    %c0_168 = arith.constant 0 : index
    %169 = memref.load %arg12[%c0_168] : memref<2xf32, #tpu.memory_space<smem>>
    memref.store %168, %arg12[%c0_168] : memref<2xf32, #tpu.memory_space<smem>>
    %c1_169 = arith.constant 1 : index
    %170 = memref.load %arg12[%c1_169] : memref<2xf32, #tpu.memory_space<smem>>
    %171 = math.absf %161 : vector<512x4xf32>
    %172 = vector.shape_cast %171 : vector<512x4xf32> to vector<1x512x4xf32>
    %cst_170 = arith.constant dense<0.000000e+00> : vector<1xf32>
    %173 = vector.multi_reduction <add>, %172, %cst_170 [1, 2] : vector<1x512x4xf32> to vector<1xf32>
    %174 = vector.shape_cast %173 : vector<1xf32> to vector<1x1x1xf32>
    %175 = vector.extract %174[0, 0, 0] : f32 from vector<1x1x1xf32>
    %176 = arith.addf %170, %175 : f32
    %c1_171 = arith.constant 1 : index
    %177 = memref.load %arg12[%c1_171] : memref<2xf32, #tpu.memory_space<smem>>
    memref.store %176, %arg12[%c1_171] : memref<2xf32, #tpu.memory_space<smem>>
    %c0_i32_172 = arith.constant 0 : i32
    %178 = arith.cmpi eq, %arg0, %c0_i32_172 : i32
    %179 = arith.extui %178 : i1 to i32
    %c0_i32_173 = arith.constant 0 : i32
    %180 = arith.cmpi ne, %179, %c0_i32_173 : i32
    scf.if %180 {
      %c0_174 = arith.constant 0 : index
      %181 = memref.load %arg12[%c0_174] : memref<2xf32, #tpu.memory_space<smem>>
      %cst_175 = arith.constant 4.8828125E-4 : f32
      %182 = arith.mulf %181, %cst_175 : f32
      %c0_176 = arith.constant 0 : index
      %c0_177 = arith.constant 0 : index
      %183 = memref.load %arg9[%c0_176, %c0_177] : memref<1x2xf32, #tpu.memory_space<smem>>
      memref.store %182, %arg9[%c0_176, %c0_177] : memref<1x2xf32, #tpu.memory_space<smem>>
      %c1_178 = arith.constant 1 : index
      %184 = memref.load %arg12[%c1_178] : memref<2xf32, #tpu.memory_space<smem>>
      %cst_179 = arith.constant 4.8828125E-4 : f32
      %185 = arith.mulf %184, %cst_179 : f32
      %c0_180 = arith.constant 0 : index
      %c1_181 = arith.constant 1 : index
      %186 = memref.load %arg9[%c0_180, %c1_181] : memref<1x2xf32, #tpu.memory_space<smem>>
      memref.store %185, %arg9[%c0_180, %c1_181] : memref<1x2xf32, #tpu.memory_space<smem>>
    } else {
    }
    return
  }
  func.func @transform_0(%arg0: i32) -> (i32, i32) {
    %c0_i32 = arith.constant 0 : i32
    %c0_i32_0 = arith.constant 0 : i32
    return %arg0, %c0_i32 : i32, i32
  }
  func.func @transform_1(%arg0: i32) -> (i32, i32) {
    %c0_i32 = arith.constant 0 : i32
    %c0_i32_0 = arith.constant 0 : i32
    return %arg0, %c0_i32 : i32, i32
  }
  func.func @transform_2(%arg0: i32) -> (i32, i32, i32, i32) {
    %c0_i32 = arith.constant 0 : i32
    %c0_i32_0 = arith.constant 0 : i32
    %c0_i32_1 = arith.constant 0 : i32
    %c0_i32_2 = arith.constant 0 : i32
    return %arg0, %c0_i32, %c0_i32_0, %c0_i32_1 : i32, i32, i32, i32
  }
  func.func @transform_3(%arg0: i32) -> (i32, i32, i32, i32) {
    %c0_i32 = arith.constant 0 : i32
    %c0_i32_0 = arith.constant 0 : i32
    %c0_i32_1 = arith.constant 0 : i32
    %c0_i32_2 = arith.constant 0 : i32
    return %arg0, %c0_i32, %c0_i32_0, %c0_i32_1 : i32, i32, i32, i32
  }
  func.func @transform_4(%arg0: i32) -> (i32, i32) {
    %c0_i32 = arith.constant 0 : i32
    %c0_i32_0 = arith.constant 0 : i32
    return %arg0, %c0_i32 : i32, i32
  }
  func.func @transform_5(%arg0: i32) -> (i32, i32, i32) {
    %c0_i32 = arith.constant 0 : i32
    %c0_i32_0 = arith.constant 0 : i32
    %c0_i32_1 = arith.constant 0 : i32
    %c0_i32_2 = arith.constant 0 : i32
    return %c0_i32, %c0_i32_0, %c0_i32_1 : i32, i32, i32
  }
  func.func @transform_6(%arg0: i32) -> (i32, i32, i32) {
    %c0_i32 = arith.constant 0 : i32
    %c0_i32_0 = arith.constant 0 : i32
    %c0_i32_1 = arith.constant 0 : i32
    %c0_i32_2 = arith.constant 0 : i32
    return %c0_i32, %c0_i32_0, %c0_i32_1 : i32, i32, i32
  }
  func.func @transform_7(%arg0: i32) -> (i32, i32) {
    %c0_i32 = arith.constant 0 : i32
    %c0_i32_0 = arith.constant 0 : i32
    %c0_i32_1 = arith.constant 0 : i32
    return %c0_i32, %c0_i32_0 : i32, i32
  }
  func.func @transform_8(%arg0: i32) -> (i32, i32) {
    %c0_i32 = arith.constant 0 : i32
    %c0_i32_0 = arith.constant 0 : i32
    %c0_i32_1 = arith.constant 0 : i32
    return %c0_i32, %c0_i32_0 : i32, i32
  }
}

</mosaic_0001>

<bundles_post_ra>
// kernel: tpu_custom_call.1
= control target key start
LH: loop header
LB: loop body
LE: loop exit
PB: predicated region body
PF: predicated region fallthrough
CT: control target
= control target key end

     0   :  { %v272_v0 = vlaneseq  ;;  %v15565_v1 = vmov 0   ;;  %v15566_v4 = vmov 1966171168   ;;  %vm1016_vm0 = vcmask 1041408   ;;  %s18924_s0 = inlined_call_operand.vmem [shape: f32[2,1], index: 0, kind: input, shape index: {}]   ;;  %s18925_s1 = inlined_call_operand.vmem [shape: f32[2,1], index: 1, kind: input, shape index: {}]   ;;  %s18926_s2 = inlined_call_operand.vmem [shape: f32[2,16,16,4], index: 2, kind: input, shape index: {}]   ;;  %s18927_s3 = inlined_call_operand.vmem [shape: f32[2,16,16,4], index: 3, kind: input, shape index: {}]   ;;  %s18928_s4 = inlined_call_operand.vmem [shape: f32[2,32], index: 4, kind: input, shape index: {}]   ;;  %s18929_s5 = inlined_call_operand.vmem [shape: bf16[9,4,32], index: 5, kind: input, shape index: {}]   ;;  %s18930_s6 = inlined_call_operand.vmem [shape: bf16[9,32,4], index: 6, kind: input, shape index: {}]   ;;  %s18931_s7 = inlined_call_operand.vmem [shape: f32[1,4], index: 7, kind: input, shape index: {}]   ;;  %s18932_s8 = inlined_call_operand.hbm [shape: f32[1,2], index: 8, kind: output, shape index: {}]  }
   0x1   :  { %15275 = vset.pattern.permute.xlu0 %v15565_v1  ;;  %v12019_v2 = vld.sshfl [vmem:[%s18928_s4] sm:$0x11 pattern:$0x75316420]  ;;  %15276 = vset.pattern.permute.xlu1 %v15565_v1  ;;  %v270_v5 = vunpack.c.l.s4 %v15566_v4  ;;  %v11723_v26 = vld [vmem:[%s18929_s5 + $0x2] sm:$0x3] }
   0x2   :  { %v11721_v3 = vld.sshfl [vmem:[%s18924_s0] sm:$0x11 pattern:$0x75316420]  ;;  %v273_v6 = vshrl.u32 %v272_v0, 7  ;;  %v5557_v10 = vcombine.high %v12019_v2, %v12019_v2  ;;  %vm39_vm1 = vcmask 31744   ;;  %15258 = vmatprep.subr.msk.bf16.mxu0 %vm1016_vm0, %v11723_v26 }
   0x3   :  { %v11722_v7 = vld.sshfl [vmem:[%s18925_s1] sm:$0x11 pattern:$0x75316420]  ;;  %v271_v8 = vunpack.c.0.s8 %v270_v5  ;;  %v268_v11 = vcombine.high %v11721_v3, %v11721_v3  ;;  %vm42_vm2 = vcmask 25600   ;;  %v15643_v27 = vsel %vm1016_vm0, %v11723_v26, 0 }
   0x4   :  { %v15623_v9 = vsub.s32 0, %v273_v6  ;;  %v292_v12 = vcombine.high %v11722_v7, %v11722_v7  ;;  %v18933_v28 = vmov 0.0   ;;  %v15864_v29 = vld [vmem:[%s18929_s5] sm:$0x3]  ;;  %13029 = vmatpush3.bf16.msra.mxu0 %v15643_v27 }
   0x5   :  { %v274_v13 = vsub.s32 %v271_v8, %v273_v6  ;;  %40 = vst.msk [vmem:[#allocation2] sm:$0xff] %vm39_vm1, %v18933_v28  ;;  %41 = vst.msk [vmem:[#allocation2 + $0x8] sm:$0xff] %vm39_vm1, %v18933_v28  ;;  %15259 = vmatprep.subr.msk.bf16.mxu0 %vm1016_vm0, %v15864_v29 }
   0x6   :  { %43 = vst.msk [vmem:[#allocation2 + $0x10] sm:$0x3] %vm42_vm2, %v18933_v28  ;;  %46 = vst.msk [vmem:[#allocation2 + $0x28] sm:$0x3] %vm42_vm2, %v18933_v28 }
   0x7   :  { %v275_v14 = vrot.slane %v11721_v3, %v274_v13  ;;  %v5564_v15 = vrot.slane %v12019_v2, %v274_v13  ;;  %v5571_v16 = vrot.slane %v5557_v10, %v274_v13  ;;  %v299_v17 = vrot.slane %v11722_v7, %v274_v13  ;;  %44 = vst.msk [vmem:[#allocation2 + $0x18] sm:$0xff] %vm39_vm1, %v18933_v28 }
   0x8   :  { %v282_v18 = vrot.slane %v268_v11, %v274_v13  ;;  %v15625_v19 = vrot.slane %v292_v12, %v274_v13  ;;  %45 = vst.msk [vmem:[#allocation2 + $0x20] sm:$0xff] %vm39_vm1, %v18933_v28  ;;  %47 = vst.msk [vmem:[#allocation2 + $0x30] sm:$0xff] %vm39_vm1, %v18933_v28 }
   0x9   :  { %v374_v20 = vrot.slane %v275_v14, %v15623_v9  ;;  %v15629_v21 = vrot.slane %v5564_v15, %v15623_v9  ;;  %v15632_v22 = vrot.slane %v5571_v16, %v15623_v9  ;;  %v518_v24 = vrot.slane %v299_v17, %v15623_v9  ;;  %48 = vst.msk [vmem:[#allocation2 + $0x38] sm:$0xff] %vm39_vm1, %v18933_v28 }
   0xa   :  { %v378_v23 = vrot.slane %v282_v18, %v15623_v9  ;;  %v522_v25 = vrot.slane %v15625_v19, %v15623_v9  ;;  %49 = vst.msk [vmem:[#allocation2 + $0x40] sm:$0x3] %vm42_vm2, %v18933_v28  ;;  %52 = vst.msk [vmem:[#allocation2 + $0x58] sm:$0x3] %vm42_vm2, %v18933_v28 }
   0xb   :  { %18949 = vst [vmem:[#allocation8_spill] sm:$0xff] %v15629_v21  ;;  %18950 = vst [vmem:[#allocation9_spill] sm:$0xff] %v15632_v22  ;;  %380 = vperm.xlu0 %15275, %v374_v20  }
   0xc   :  { %384 = vperm.xlu1 %15276, %v378_v23   ;;  %50 = vst.msk [vmem:[#allocation2 + $0x48] sm:$0xff] %vm39_vm1, %v18933_v28  ;;  %51 = vst.msk [vmem:[#allocation2 + $0x50] sm:$0xff] %vm39_vm1, %v18933_v28  ;;  %v822_v30 = vld [vmem:[#allocation2 + $0x1] sm:$0xff] }
   0xd   :  { %53 = vst.msk [vmem:[#allocation2 + $0x60] sm:$0xff] %vm39_vm1, %v18933_v28  ;;  %54 = vst.msk [vmem:[#allocation2 + $0x68] sm:$0xff] %vm39_vm1, %v18933_v28  ;;  %v823_v31 = vld [vmem:[#allocation2 + $0x9] sm:$0xff] }
   0xe   :  { %55 = vst.msk [vmem:[#allocation2 + $0x70] sm:$0x3] %vm42_vm2, %v18933_v28  ;;  %58 = vst.msk [vmem:[#allocation2 + $0x88] sm:$0x3] %vm42_vm2, %v18933_v28  ;;  %v886_v32 = vpack.c.bf16 %v823_v31, %v822_v30 }
   0xf   :  { %524 = vperm.xlu0 %15275, %v518_v24   ;;  %56 = vst.msk [vmem:[#allocation2 + $0x78] sm:$0xff] %vm39_vm1, %v18933_v28  ;;  %57 = vst.msk [vmem:[#allocation2 + $0x80] sm:$0xff] %vm39_vm1, %v18933_v28 }
  0x10   :  { %59 = vst.msk [vmem:[#allocation2 + $0x90] sm:$0xff] %vm39_vm1, %v18933_v28  ;;  %60 = vst.msk [vmem:[#allocation2 + $0x98] sm:$0xff] %vm39_vm1, %v18933_v28  ;;  %528 = vperm.xlu1 %15276, %v522_v25   ;;  %13030 = vmatprep.mubr.msk.bf16.mxu0 %vm39_vm1, %v886_v32 }
  0x11   :  { %61 = vst.msk [vmem:[#allocation2 + $0xa0] sm:$0x3] %vm42_vm2, %v18933_v28  ;;  %64 = vst.msk [vmem:[#allocation2 + $0xb8] sm:$0x3] %vm42_vm2, %v18933_v28 }
  0x12   :  { %62 = vst.msk [vmem:[#allocation2 + $0xa8] sm:$0xff] %vm39_vm1, %v18933_v28  ;;  %63 = vst.msk [vmem:[#allocation2 + $0xb0] sm:$0xff] %vm39_vm1, %v18933_v28 }
  0x13   :  { %65 = vst.msk [vmem:[#allocation2 + $0xc0] sm:$0xff] %vm39_vm1, %v18933_v28  ;;  %66 = vst.msk [vmem:[#allocation2 + $0xc8] sm:$0xff] %vm39_vm1, %v18933_v28 }
  0x14   :  { %67 = vst.msk [vmem:[#allocation2 + $0xd0] sm:$0x3] %vm42_vm2, %v18933_v28  ;;  %70 = vst.msk [vmem:[#allocation2 + $0xe8] sm:$0x3] %vm42_vm2, %v18933_v28 }
  0x15   :  { %68 = vst.msk [vmem:[#allocation2 + $0xd8] sm:$0xff] %vm39_vm1, %v18933_v28  ;;  %69 = vst.msk [vmem:[#allocation2 + $0xe0] sm:$0xff] %vm39_vm1, %v18933_v28 }
  0x16   :  { %71 = vst.msk [vmem:[#allocation2 + $0xf0] sm:$0xff] %vm39_vm1, %v18933_v28  ;;  %72 = vst.msk [vmem:[#allocation2 + $0xf8] sm:$0xff] %vm39_vm1, %v18933_v28 }
  0x17   :  { %73 = vst.msk [vmem:[#allocation2 + $0x100] sm:$0x3] %vm42_vm2, %v18933_v28  ;;  %76 = vst.msk [vmem:[#allocation2 + $0x118] sm:$0x3] %vm42_vm2, %v18933_v28 }
  0x18   :  { %74 = vst.msk [vmem:[#allocation2 + $0x108] sm:$0xff] %vm39_vm1, %v18933_v28  ;;  %75 = vst.msk [vmem:[#allocation2 + $0x110] sm:$0xff] %vm39_vm1, %v18933_v28 }
  0x19   :  { %77 = vst.msk [vmem:[#allocation2 + $0x120] sm:$0xff] %vm39_vm1, %v18933_v28  ;;  %78 = vst.msk [vmem:[#allocation2 + $0x128] sm:$0xff] %vm39_vm1, %v18933_v28 }
  0x1a   :  { %79 = vst.msk [vmem:[#allocation2 + $0x130] sm:$0x3] %vm42_vm2, %v18933_v28  ;;  %82 = vst.msk [vmem:[#allocation2 + $0x148] sm:$0x3] %vm42_vm2, %v18933_v28 }
  0x1b   :  { %80 = vst.msk [vmem:[#allocation2 + $0x138] sm:$0xff] %vm39_vm1, %v18933_v28  ;;  %81 = vst.msk [vmem:[#allocation2 + $0x140] sm:$0xff] %vm39_vm1, %v18933_v28 }
  0x1c   :  { %83 = vst.msk [vmem:[#allocation2 + $0x150] sm:$0xff] %vm39_vm1, %v18933_v28  ;;  %84 = vst.msk [vmem:[#allocation2 + $0x158] sm:$0xff] %vm39_vm1, %v18933_v28 }
  0x1d   :  { %85 = vst.msk [vmem:[#allocation2 + $0x160] sm:$0x3] %vm42_vm2, %v18933_v28  ;;  %88 = vst.msk [vmem:[#allocation2 + $0x178] sm:$0x3] %vm42_vm2, %v18933_v28 }
  0x1e   :  { %86 = vst.msk [vmem:[#allocation2 + $0x168] sm:$0xff] %vm39_vm1, %v18933_v28  ;;  %87 = vst.msk [vmem:[#allocation2 + $0x170] sm:$0xff] %vm39_vm1, %v18933_v28 }
  0x1f   :  { %89 = vst.msk [vmem:[#allocation2 + $0x180] sm:$0xff] %vm39_vm1, %v18933_v28  ;;  %90 = vst.msk [vmem:[#allocation2 + $0x188] sm:$0xff] %vm39_vm1, %v18933_v28 }
  0x20   :  { %91 = vst.msk [vmem:[#allocation2 + $0x190] sm:$0x3] %vm42_vm2, %v18933_v28  ;;  %94 = vst.msk [vmem:[#allocation2 + $0x1a8] sm:$0x3] %vm42_vm2, %v18933_v28 }
  0x21   :  { %92 = vst.msk [vmem:[#allocation2 + $0x198] sm:$0xff] %vm39_vm1, %v18933_v28  ;;  %93 = vst.msk [vmem:[#allocation2 + $0x1a0] sm:$0xff] %vm39_vm1, %v18933_v28 }
  0x22   :  { %95 = vst.msk [vmem:[#allocation2 + $0x1b0] sm:$0xff] %vm39_vm1, %v18933_v28  ;;  %96 = vst.msk [vmem:[#allocation2 + $0x1b8] sm:$0xff] %vm39_vm1, %v18933_v28 }
  0x23   :  { %97 = vst.msk [vmem:[#allocation2 + $0x1c0] sm:$0x3] %vm42_vm2, %v18933_v28  ;;  %100 = vst.msk [vmem:[#allocation2 + $0x1d8] sm:$0x3] %vm42_vm2, %v18933_v28 }
  0x24   :  { %98 = vst.msk [vmem:[#allocation2 + $0x1c8] sm:$0xff] %vm39_vm1, %v18933_v28  ;;  %99 = vst.msk [vmem:[#allocation2 + $0x1d0] sm:$0xff] %vm39_vm1, %v18933_v28 }
  0x25   :  { %101 = vst.msk [vmem:[#allocation2 + $0x1e0] sm:$0xff] %vm39_vm1, %v18933_v28  ;;  %102 = vst.msk [vmem:[#allocation2 + $0x1e8] sm:$0xff] %vm39_vm1, %v18933_v28 }
  0x26   :  { %103 = vst.msk [vmem:[#allocation2 + $0x1f0] sm:$0x3] %vm42_vm2, %v18933_v28  ;;  %106 = vst.msk [vmem:[#allocation2 + $0x208] sm:$0x3] %vm42_vm2, %v18933_v28 }
  0x27   :  { %104 = vst.msk [vmem:[#allocation2 + $0x1f8] sm:$0xff] %vm39_vm1, %v18933_v28  ;;  %105 = vst.msk [vmem:[#allocation2 + $0x200] sm:$0xff] %vm39_vm1, %v18933_v28 }
  0x28   :  { %107 = vst.msk [vmem:[#allocation2 + $0x210] sm:$0xff] %vm39_vm1, %v18933_v28  ;;  %108 = vst.msk [vmem:[#allocation2 + $0x218] sm:$0xff] %vm39_vm1, %v18933_v28 }
  0x29   :  { %109 = vst.msk [vmem:[#allocation2 + $0x220] sm:$0x3] %vm42_vm2, %v18933_v28  ;;  %112 = vst.msk [vmem:[#allocation2 + $0x238] sm:$0x3] %vm42_vm2, %v18933_v28 }
  0x2a   :  { %110 = vst.msk [vmem:[#allocation2 + $0x228] sm:$0xff] %vm39_vm1, %v18933_v28  ;;  %111 = vst.msk [vmem:[#allocation2 + $0x230] sm:$0xff] %vm39_vm1, %v18933_v28 }
  0x2b   :  { %113 = vst.msk [vmem:[#allocation2 + $0x240] sm:$0xff] %vm39_vm1, %v18933_v28  ;;  %114 = vst.msk [vmem:[#allocation2 + $0x248] sm:$0xff] %vm39_vm1, %v18933_v28 }
  0x2c   :  { %115 = vst.msk [vmem:[#allocation2 + $0x250] sm:$0x3] %vm42_vm2, %v18933_v28  ;;  %118 = vst.msk [vmem:[#allocation2 + $0x268] sm:$0x3] %vm42_vm2, %v18933_v28 }
  0x2d   :  { %116 = vst.msk [vmem:[#allocation2 + $0x258] sm:$0xff] %vm39_vm1, %v18933_v28  ;;  %117 = vst.msk [vmem:[#allocation2 + $0x260] sm:$0xff] %vm39_vm1, %v18933_v28 }
  0x2e   :  { %119 = vst.msk [vmem:[#allocation2 + $0x270] sm:$0xff] %vm39_vm1, %v18933_v28  ;;  %120 = vst.msk [vmem:[#allocation2 + $0x278] sm:$0xff] %vm39_vm1, %v18933_v28 }
  0x2f   :  { %121 = vst.msk [vmem:[#allocation2 + $0x280] sm:$0x3] %vm42_vm2, %v18933_v28  ;;  %124 = vst.msk [vmem:[#allocation2 + $0x298] sm:$0x3] %vm42_vm2, %v18933_v28 }
  0x30   :  { %122 = vst.msk [vmem:[#allocation2 + $0x288] sm:$0xff] %vm39_vm1, %v18933_v28  ;;  %123 = vst.msk [vmem:[#allocation2 + $0x290] sm:$0xff] %vm39_vm1, %v18933_v28 }
  0x31   :  { %125 = vst.msk [vmem:[#allocation2 + $0x2a0] sm:$0xff] %vm39_vm1, %v18933_v28  ;;  %126 = vst.msk [vmem:[#allocation2 + $0x2a8] sm:$0xff] %vm39_vm1, %v18933_v28 }
  0x32   :  { %127 = vst.msk [vmem:[#allocation2 + $0x2b0] sm:$0x3] %vm42_vm2, %v18933_v28  ;;  %130 = vst.msk [vmem:[#allocation2 + $0x2c8] sm:$0x3] %vm42_vm2, %v18933_v28 }
  0x33   :  { %128 = vst.msk [vmem:[#allocation2 + $0x2b8] sm:$0xff] %vm39_vm1, %v18933_v28  ;;  %129 = vst.msk [vmem:[#allocation2 + $0x2c0] sm:$0xff] %vm39_vm1, %v18933_v28 }
  0x34   :  { %131 = vst.msk [vmem:[#allocation2 + $0x2d0] sm:$0xff] %vm39_vm1, %v18933_v28  ;;  %132 = vst.msk [vmem:[#allocation2 + $0x2d8] sm:$0xff] %vm39_vm1, %v18933_v28 }
  0x35   :  { %133 = vst.msk [vmem:[#allocation2 + $0x2e0] sm:$0x3] %vm42_vm2, %v18933_v28  ;;  %136 = vst.msk [vmem:[#allocation2 + $0x2f8] sm:$0x3] %vm42_vm2, %v18933_v28 }
  0x36   :  { %134 = vst.msk [vmem:[#allocation2 + $0x2e8] sm:$0xff] %vm39_vm1, %v18933_v28  ;;  %135 = vst.msk [vmem:[#allocation2 + $0x2f0] sm:$0xff] %vm39_vm1, %v18933_v28 }
  0x37   :  { %137 = vst.msk [vmem:[#allocation2 + $0x300] sm:$0xff] %vm39_vm1, %v18933_v28  ;;  %138 = vst.msk [vmem:[#allocation2 + $0x308] sm:$0xff] %vm39_vm1, %v18933_v28 }
  0x38   :  { %139 = vst.msk [vmem:[#allocation2 + $0x310] sm:$0x3] %vm42_vm2, %v18933_v28  ;;  %142 = vst.msk [vmem:[#allocation2 + $0x328] sm:$0x3] %vm42_vm2, %v18933_v28 }
  0x39   :  { %140 = vst.msk [vmem:[#allocation2 + $0x318] sm:$0xff] %vm39_vm1, %v18933_v28  ;;  %141 = vst.msk [vmem:[#allocation2 + $0x320] sm:$0xff] %vm39_vm1, %v18933_v28 }
  0x3a   :  { %143 = vst.msk [vmem:[#allocation2 + $0x330] sm:$0xff] %vm39_vm1, %v18933_v28  ;;  %144 = vst.msk [vmem:[#allocation2 + $0x338] sm:$0xff] %vm39_vm1, %v18933_v28 }
  0x3b   :  { %145 = vst.msk [vmem:[#allocation2 + $0x340] sm:$0x3] %vm42_vm2, %v18933_v28  ;;  %148 = vst.msk [vmem:[#allocation2 + $0x358] sm:$0x3] %vm42_vm2, %v18933_v28 }
  0x3c   :  { %146 = vst.msk [vmem:[#allocation2 + $0x348] sm:$0xff] %vm39_vm1, %v18933_v28  ;;  %147 = vst.msk [vmem:[#allocation2 + $0x350] sm:$0xff] %vm39_vm1, %v18933_v28 }
  0x3d   :  { %13 = vsyncpa [#allocation6], 0  ;;  %v307_v33 = vld [vmem:[%s18926_s2] sm:$0xff]  ;;  %v308_v34 = vld [vmem:[%s18926_s2 + $0x8] sm:$0xff]  ;;  %vm149_vm3 = vcmask 261120   ;;  %vm152_vm4 = vcmask 254976  }
  0x3e   :  { %v309_v35 = vld [vmem:[%s18926_s2 + $0x10] sm:$0xff]  ;;  %v310_v36 = vld [vmem:[%s18926_s2 + $0x18] sm:$0xff]  ;;  %v311_v37 = vld [vmem:[%s18926_s2 + $0x20] sm:$0xff]  ;;  %s15553_s12 = scalar_lea.hbm %s18932_s8, 16 }
  0x3f   :  { %v312_v38 = vld [vmem:[%s18926_s2 + $0x28] sm:$0xff]  ;;  %v313_v39 = vld [vmem:[%s18926_s2 + $0x30] sm:$0xff]  ;;  %v314_v40 = vld [vmem:[%s18926_s2 + $0x38] sm:$0xff]  ;;  %p15554_p0 = scmp.ne.s32.totalorder %s18932_s8, %s15553_s12  ;;  %p15557_p1 = scmp.lt.u32.totalorder %s15553_s12, %s18932_s8 }
  0x40   :  { %v315_v41 = vld [vmem:[%s18926_s2 + $0x40] sm:$0xff]  ;;  %v316_v42 = vld [vmem:[%s18926_s2 + $0x48] sm:$0xff]  ;;  %v317_v46 = vld [vmem:[%s18926_s2 + $0x50] sm:$0xff] }
  0x41   :  { %v451_v44 = vld [vmem:[%s18927_s3] sm:$0xff]  ;;  %v452_v45 = vld [vmem:[%s18927_s3 + $0x8] sm:$0xff]  ;;  %v318_v47 = vld [vmem:[%s18926_s2 + $0x58] sm:$0xff]  ;;  %p15559_p2 = pnand %p15557_p1, %p15554_p0 }
  0x42   :  { %v319_v48 = vld [vmem:[%s18926_s2 + $0x60] sm:$0xff]  ;;  %v320_v53 = vld [vmem:[%s18926_s2 + $0x68] sm:$0xff]  ;;  %v321_v54 = vld [vmem:[%s18926_s2 + $0x70] sm:$0xff] }
  0x43   :  { %v322_v55 = vld [vmem:[%s18926_s2 + $0x78] sm:$0xff]  ;;  %v453_v56 = vld [vmem:[%s18927_s3 + $0x10] sm:$0xff]  ;;  %v455_v60 = vld [vmem:[%s18927_s3 + $0x20] sm:$0xff] }
  0x44   :  { %v454_v57 = vld [vmem:[%s18927_s3 + $0x18] sm:$0xff]  ;;  %v456_v63 = vld [vmem:[%s18927_s3 + $0x28] sm:$0xff]  ;;  %v457_v0 = vld [vmem:[%s18927_s3 + $0x30] sm:$0xff] }
  0x45   :  { %v458_v1 = vld [vmem:[%s18927_s3 + $0x38] sm:$0xff]  ;;  %v459_v15 = vld [vmem:[%s18927_s3 + $0x40] sm:$0xff]  ;;  %v460_v16 = vld [vmem:[%s18927_s3 + $0x48] sm:$0xff] }
  0x46   :  { %v461_v23 = vld [vmem:[%s18927_s3 + $0x50] sm:$0xff]  ;;  %v462_v24 = vld [vmem:[%s18927_s3 + $0x58] sm:$0xff]  ;;  %v463_v25 = vld [vmem:[%s18927_s3 + $0x60] sm:$0xff] }
  0x47   :  { %v464_v32 = vld [vmem:[%s18927_s3 + $0x68] sm:$0xff] }
  0x8a   :  { %v15903_v43 = vpop.permute.xlu0 %380 }
  0x8b   :  { %v387_v49 = vmul.f32 %v15903_v43, %v307_v33  ;;  %v388_v50 = vmul.f32 %v15903_v43, %v308_v34  ;;  %v389_v51 = vmul.f32 %v15903_v43, %v309_v35  ;;  %v390_v52 = vmul.f32 %v15903_v43, %v310_v36  ;;  %v465_v33 = vld [vmem:[%s18927_s3 + $0x70] sm:$0xff]  ;;  %v466_v34 = vld [vmem:[%s18927_s3 + $0x78] sm:$0xff] }
  0x8c   :  { %v391_v58 = vmul.f32 %v15903_v43, %v311_v37  ;;  %v392_v59 = vmul.f32 %v15903_v43, %v312_v38  ;;  %v393_v61 = vmul.f32 %v15903_v43, %v313_v39  ;;  %v394_v62 = vmul.f32 %v15903_v43, %v314_v40 }
  0x8d   :  { %v395_v2 = vmul.f32 %v15903_v43, %v315_v41  ;;  %v396_v3 = vmul.f32 %v15903_v43, %v316_v42  ;;  %v397_v4 = vmul.f32 %v15903_v43, %v317_v46  ;;  %v398_v5 = vmul.f32 %v15903_v43, %v318_v47 }
  0x8e   :  { %v15959_v6 = vpop.permute.xlu0 %524  ;;  %v399_v7 = vmul.f32 %v15903_v43, %v319_v48  ;;  %v400_v8 = vmul.f32 %v15903_v43, %v320_v53  ;;  %v401_v9 = vmul.f32 %v15903_v43, %v321_v54  ;;  %v402_v10 = vmul.f32 %v15903_v43, %v322_v55 }
  0x8f   :  { %v531_v11 = vmul.f32 %v15959_v6, %v451_v44  ;;  %v532_v12 = vmul.f32 %v15959_v6, %v452_v45  ;;  %v533_v13 = vmul.f32 %v15959_v6, %v453_v56  ;;  %v534_v14 = vmul.f32 %v15959_v6, %v454_v57  ;;  %v323_v44 = vld [vmem:[%s18926_s2 + $0x80] sm:$0xff]  ;;  %v324_v45 = vld [vmem:[%s18926_s2 + $0x88] sm:$0xff]  ;;  %v326_v57 = vld [vmem:[%s18926_s2 + $0x98] sm:$0xff] }
  0x90   :  { %v535_v17 = vmul.f32 %v15959_v6, %v455_v60  ;;  %v536_v18 = vmul.f32 %v15959_v6, %v456_v63  ;;  %v537_v19 = vmul.f32 %v15959_v6, %v457_v0  ;;  %v538_v20 = vmul.f32 %v15959_v6, %v458_v1  ;;  %v327_v0 = vld [vmem:[%s18926_s2 + $0xa0] sm:$0xff]  ;;  %v328_v1 = vld [vmem:[%s18926_s2 + $0xa8] sm:$0xff] }
  0x91   :  { %v595_v26 = vadd.f32 %v531_v11, %v387_v49  ;;  %v596_v27 = vadd.f32 %v532_v12, %v388_v50  ;;  %v597_v30 = vadd.f32 %v533_v13, %v389_v51  ;;  %v598_v31 = vadd.f32 %v534_v14, %v390_v52  ;;  %v467_v50 = vld [vmem:[%s18927_s3 + $0x80] sm:$0xff]  ;;  %v468_v51 = vld [vmem:[%s18927_s3 + $0x88] sm:$0xff]  ;;  %v325_v52 = vld [vmem:[%s18926_s2 + $0x90] sm:$0xff] }
  0x92   :  { %v599_v35 = vadd.f32 %v535_v17, %v391_v58  ;;  %v600_v36 = vadd.f32 %v536_v18, %v392_v59  ;;  %v601_v37 = vadd.f32 %v537_v19, %v393_v61  ;;  %v602_v38 = vadd.f32 %v538_v20, %v394_v62  ;;  %v469_v58 = vld [vmem:[%s18927_s3 + $0x90] sm:$0xff]  ;;  %v470_v59 = vld [vmem:[%s18927_s3 + $0x98] sm:$0xff] }
  0x93   :  { %661 = vst.msk [vmem:[#allocation2 + $0x19] sm:$0xff] %vm39_vm1, %v595_v26  ;;  %662 = vst.msk [vmem:[#allocation2 + $0x21] sm:$0xff] %vm39_vm1, %v596_v27  ;;  %v539_v39 = vmul.f32 %v15959_v6, %v459_v15  ;;  %v540_v40 = vmul.f32 %v15959_v6, %v460_v16  ;;  %v541_v41 = vmul.f32 %v15959_v6, %v461_v23  ;;  %v329_v13 = vld [vmem:[%s18926_s2 + $0xb0] sm:$0xff]  ;;  %v330_v14 = vld [vmem:[%s18926_s2 + $0xb8] sm:$0xff] }
  0x94   :  { %663 = vst.msk [vmem:[#allocation2 + $0x31] sm:$0xff] %vm39_vm1, %v597_v30  ;;  %664 = vst.msk [vmem:[#allocation2 + $0x39] sm:$0xff] %vm39_vm1, %v598_v31  ;;  %v542_v42 = vmul.f32 %v15959_v6, %v462_v24  ;;  %v543_v46 = vmul.f32 %v15959_v6, %v463_v25  ;;  %v544_v47 = vmul.f32 %v15959_v6, %v464_v32  ;;  %v473_v15 = vld [vmem:[%s18927_s3 + $0xb0] sm:$0xff]  ;;  %v474_v20 = vld [vmem:[%s18927_s3 + $0xb8] sm:$0xff] }
  0x95   :  { %665 = vst.msk [vmem:[#allocation2 + $0x49] sm:$0xff] %vm39_vm1, %v599_v35  ;;  %666 = vst.msk [vmem:[#allocation2 + $0x51] sm:$0xff] %vm39_vm1, %v600_v36  ;;  %v545_v48 = vmul.f32 %v15959_v6, %v465_v33  ;;  %v546_v49 = vmul.f32 %v15959_v6, %v466_v34  ;;  %v603_v53 = vadd.f32 %v539_v39, %v395_v2  ;;  %v331_v23 = vld [vmem:[%s18926_s2 + $0xc0] sm:$0xff]  ;;  %v332_v24 = vld [vmem:[%s18926_s2 + $0xc8] sm:$0xff]  ;;  %v1406_v35 = vsel %vm1016_vm0, %v15864_v29, 0 }
  0x96   :  { %667 = vst.msk [vmem:[#allocation2 + $0x61] sm:$0xff] %vm39_vm1, %v601_v37  ;;  %668 = vst.msk [vmem:[#allocation2 + $0x69] sm:$0xff] %vm39_vm1, %v602_v38  ;;  %v604_v54 = vadd.f32 %v540_v40, %v396_v3  ;;  %v605_v55 = vadd.f32 %v541_v41, %v397_v4  ;;  %v606_v56 = vadd.f32 %v542_v42, %v398_v5  ;;  %v16091_v37 = vpop.permute.xlu1 %384  ;;  %v475_v40 = vld [vmem:[%s18927_s3 + $0xc0] sm:$0xff]  ;;  %v476_v41 = vld [vmem:[%s18927_s3 + $0xc8] sm:$0xff] }
  0x97   :  { %v607_v60 = vadd.f32 %v543_v46, %v399_v7  ;;  %v608_v61 = vadd.f32 %v544_v47, %v400_v8  ;;  %v609_v62 = vadd.f32 %v545_v48, %v401_v9  ;;  %v610_v63 = vadd.f32 %v546_v49, %v402_v10  ;;  %669 = vst.msk [vmem:[#allocation2 + $0x79] sm:$0xff] %vm39_vm1, %v603_v53  ;;  %v471_v7 = vld [vmem:[%s18927_s3 + $0xa0] sm:$0xff]  ;;  %v472_v8 = vld [vmem:[%s18927_s3 + $0xa8] sm:$0xff] }
  0x98   :  { %670 = vst.msk [vmem:[#allocation2 + $0x81] sm:$0xff] %vm39_vm1, %v604_v54  ;;  %671 = vst.msk [vmem:[#allocation2 + $0x91] sm:$0xff] %vm39_vm1, %v605_v55  ;;  %v403_v2 = vmul.f32 %v15903_v43, %v323_v44  ;;  %v404_v3 = vmul.f32 %v15903_v43, %v324_v45  ;;  %v547_v4 = vmul.f32 %v15959_v6, %v467_v50  ;;  %v333_v45 = vld [vmem:[%s18926_s2 + $0xd0] sm:$0xff]  ;;  %v16109_v46 = vld [vmem:[%s18929_s5 + $0x4] sm:$0x3] }
  0x99   :  { %672 = vst.msk [vmem:[#allocation2 + $0x99] sm:$0xff] %vm39_vm1, %v606_v56  ;;  %v548_v5 = vmul.f32 %v15959_v6, %v468_v51  ;;  %673 = vst.msk [vmem:[#allocation2 + $0xa9] sm:$0xff] %vm39_vm1, %v607_v60  ;;  %v405_v9 = vmul.f32 %v15903_v43, %v325_v52  ;;  %v406_v10 = vmul.f32 %v15903_v43, %v326_v57  ;;  %v334_v51 = vld [vmem:[%s18926_s2 + $0xd8] sm:$0xff]  ;;  %v335_v52 = vld [vmem:[%s18926_s2 + $0xe0] sm:$0xff] }
  0x9a   :  { %674 = vst.msk [vmem:[#allocation2 + $0xb1] sm:$0xff] %vm39_vm1, %v608_v61  ;;  %675 = vst.msk [vmem:[#allocation2 + $0xc1] sm:$0xff] %vm39_vm1, %v609_v62  ;;  %v549_v11 = vmul.f32 %v15959_v6, %v469_v58  ;;  %v550_v12 = vmul.f32 %v15959_v6, %v470_v59  ;;  %v611_v16 = vadd.f32 %v547_v4, %v403_v2  ;;  %v824_v25 = vld [vmem:[#allocation2 + $0x19] sm:$0xff]  ;;  %v825_v26 = vld [vmem:[#allocation2 + $0x21] sm:$0xff] }
  0x9b   :  { %676 = vst.msk [vmem:[#allocation2 + $0xc9] sm:$0xff] %vm39_vm1, %v610_v63  ;;  %v612_v17 = vadd.f32 %v548_v5, %v404_v3  ;;  %v407_v18 = vmul.f32 %v15903_v43, %v327_v0  ;;  %v408_v19 = vmul.f32 %v15903_v43, %v328_v1  ;;  %v826_v27 = vld [vmem:[#allocation2 + $0x31] sm:$0xff]  ;;  %v551_v32 = vmul.f32 %v15959_v6, %v471_v7  ;;  %v827_v36 = vld [vmem:[#allocation2 + $0x39] sm:$0xff]  ;;  %v479_v59 = vld [vmem:[%s18927_s3 + $0xe0] sm:$0xff] }
  0x9c   :  { %v613_v30 = vadd.f32 %v549_v11, %v405_v9  ;;  %v614_v31 = vadd.f32 %v550_v12, %v406_v10  ;;  %v552_v33 = vmul.f32 %v15959_v6, %v472_v8  ;;  %v887_v34 = vpack.c.bf16 %v825_v26, %v824_v25  ;;  %677 = vst.msk [vmem:[#allocation2 + $0xd9] sm:$0xff] %vm39_vm1, %v611_v16  ;;  %v336_v53 = vld [vmem:[%s18926_s2 + $0xe8] sm:$0xff]  ;;  %v477_v57 = vld [vmem:[%s18927_s3 + $0xd0] sm:$0xff]  ;;  %v478_v58 = vld [vmem:[%s18927_s3 + $0xd8] sm:$0xff]  ;;  %v16156_v9 = vpop.permute.xlu1 %528 }
  0x9d   :  { %678 = vst.msk [vmem:[#allocation2 + $0xe1] sm:$0xff] %vm39_vm1, %v612_v17  ;;  %v409_v38 = vmul.f32 %v15903_v43, %v329_v13  ;;  %v553_v39 = vmul.f32 %v15959_v6, %v473_v15  ;;  %v888_v29 = vpack.c.bf16 %v827_v36, %v826_v27  ;;  %v615_v42 = vadd.f32 %v551_v32, %v407_v18  ;;  %v480_v61 = vld [vmem:[%s18927_s3 + $0xe8] sm:$0xff]  ;;  %v339_v62 = vld [vmem:[%s18926_s2 + $0x100] sm:$0xff] }
  0x9e   :  { %679 = vst.msk [vmem:[#allocation2 + $0xf1] sm:$0xff] %vm39_vm1, %v613_v30  ;;  %680 = vst.msk [vmem:[#allocation2 + $0xf9] sm:$0xff] %vm39_vm1, %v614_v31  ;;  %v616_v44 = vadd.f32 %v552_v33, %v408_v19  ;;  %13031 = vmatmul.mubr.msk.bf16.vlgmr.msra.gmra.mrb[0].mxu0 %vm39_vm1, %v887_v34  ;;  %v410_v47 = vmul.f32 %v15903_v43, %v330_v14  ;;  %v554_v48 = vmul.f32 %v15959_v6, %v474_v20  ;;  %v340_v63 = vld [vmem:[%s18926_s2 + $0x108] sm:$0xff]  ;;  %v483_v5 = vld [vmem:[%s18927_s3 + $0x100] sm:$0xff] }
  0x9f   :  { %v617_v49 = vadd.f32 %v553_v39, %v409_v38  ;;  %v411_v50 = vmul.f32 %v15903_v43, %v331_v23  ;;  %13095 = vmatpush3.bf16.msra.mxu0 %v1406_v35  ;;  %13034 = vmatprep.mubr.msk.bf16.mxu0 %vm39_vm1, %v888_v29  ;;  %681 = vst.msk [vmem:[#allocation2 + $0x109] sm:$0xff] %vm39_vm1, %v615_v42  ;;  %v828_v0 = vld [vmem:[#allocation2 + $0x49] sm:$0xff]  ;;  %v829_v1 = vld [vmem:[#allocation2 + $0x51] sm:$0xff]  ;;  %v830_v7 = vld [vmem:[#allocation2 + $0x61] sm:$0xff] }
  0xa0   :  { %682 = vst.msk [vmem:[#allocation2 + $0x111] sm:$0xff] %vm39_vm1, %v616_v44  ;;  %v412_v54 = vmul.f32 %v15903_v43, %v332_v24  ;;  %v555_v55 = vmul.f32 %v15959_v6, %v475_v40  ;;  %v556_v56 = vmul.f32 %v15959_v6, %v476_v41  ;;  %v618_v60 = vadd.f32 %v554_v48, %v410_v47  ;;  %v831_v8 = vld [vmem:[#allocation2 + $0x69] sm:$0xff]  ;;  %v341_v19 = vld [vmem:[%s18926_s2 + $0x110] sm:$0xff]  ;;  %v342_v20 = vld [vmem:[%s18926_s2 + $0x118] sm:$0xff] }
  0xa1   :  { %683 = vst.msk [vmem:[#allocation2 + $0x121] sm:$0xff] %vm39_vm1, %v617_v49  ;;  %15260 = vmatprep.subr.msk.bf16.mxu0 %vm1016_vm0, %v16109_v46  ;;  %v413_v4 = vmul.f32 %v15903_v43, %v333_v45  ;;  %v414_v10 = vmul.f32 %v15903_v43, %v334_v51  ;;  %v557_v11 = vmul.f32 %v15959_v6, %v477_v57  ;;  %v484_v14 = vld [vmem:[%s18927_s3 + $0x108] sm:$0xff]  ;;  %v485_v23 = vld [vmem:[%s18927_s3 + $0x110] sm:$0xff]  ;;  %v486_v30 = vld [vmem:[%s18927_s3 + $0x118] sm:$0xff] }
  0xa2   :  { %v619_v2 = vadd.f32 %v555_v55, %v411_v50  ;;  %v620_v3 = vadd.f32 %v556_v56, %v412_v54  ;;  %684 = vst.msk [vmem:[#allocation2 + $0x129] sm:$0xff] %vm39_vm1, %v618_v60  ;;  %v558_v12 = vmul.f32 %v15959_v6, %v478_v58  ;;  %v415_v13 = vmul.f32 %v15903_v43, %v335_v52  ;;  %v343_v31 = vld [vmem:[%s18926_s2 + $0x120] sm:$0xff]  ;;  %v344_v32 = vld [vmem:[%s18926_s2 + $0x128] sm:$0xff]  ;;  %v345_v40 = vld [vmem:[%s18926_s2 + $0x130] sm:$0xff] }
  0xa3   :  { %v416_v15 = vmul.f32 %v15903_v43, %v336_v53  ;;  %v559_v16 = vmul.f32 %v15959_v6, %v479_v59  ;;  %v560_v17 = vmul.f32 %v15959_v6, %v480_v61  ;;  %v419_v18 = vmul.f32 %v16091_v37, %v339_v62  ;;  %v487_v38 = vld [vmem:[%s18927_s3 + $0x120] sm:$0xff]  ;;  %v488_v39 = vld [vmem:[%s18927_s3 + $0x128] sm:$0xff]  ;;  %v346_v45 = vld [vmem:[%s18926_s2 + $0x138] sm:$0xff] }
  0xa4   :  { %685 = vst.msk [vmem:[#allocation2 + $0x139] sm:$0xff] %vm39_vm1, %v619_v2  ;;  %686 = vst.msk [vmem:[#allocation2 + $0x141] sm:$0xff] %vm39_vm1, %v620_v3  ;;  %v889_v24 = vpack.c.bf16 %v829_v1, %v828_v0  ;;  %v621_v25 = vadd.f32 %v557_v11, %v413_v4  ;;  %v622_v26 = vadd.f32 %v558_v12, %v414_v10  ;;  %v489_v47 = vld [vmem:[%s18927_s3 + $0x130] sm:$0xff]  ;;  %v490_v48 = vld [vmem:[%s18927_s3 + $0x138] sm:$0xff] }
  0xa5   :  { %v420_v27 = vmul.f32 %v16091_v37, %v340_v63  ;;  %v890_v33 = vpack.c.bf16 %v831_v8, %v830_v7  ;;  %v623_v34 = vadd.f32 %v559_v16, %v415_v13  ;;  %v624_v35 = vadd.f32 %v560_v17, %v416_v15  ;;  %v832_v49 = vld [vmem:[#allocation2 + $0x79] sm:$0xff]  ;;  %v833_v50 = vld [vmem:[#allocation2 + $0x81] sm:$0xff]  ;;  %v834_v55 = vld [vmem:[#allocation2 + $0x91] sm:$0xff] }
  0xa6   :  { %v563_v36 = vmul.f32 %v16156_v9, %v483_v5  ;;  %13035 = vmatmul.mubr.msk.bf16.gmra.mrb[4].mxu0 %vm39_vm1, %v889_v24  ;;  %687 = vst.msk [vmem:[#allocation2 + $0x151] sm:$0xff] %vm39_vm1, %v621_v25  ;;  %688 = vst.msk [vmem:[#allocation2 + $0x159] sm:$0xff] %vm39_vm1, %v622_v26  ;;  %v564_v41 = vmul.f32 %v16156_v9, %v484_v14  ;;  %v421_v29 = vmul.f32 %v16091_v37, %v341_v19  ;;  %v347_v54 = vld [vmem:[%s18926_s2 + $0x140] sm:$0xff]  ;;  %v835_v56 = vld [vmem:[#allocation2 + $0x99] sm:$0xff] }
  0xa7   :  { %v422_v42 = vmul.f32 %v16091_v37, %v342_v20  ;;  %v565_v44 = vmul.f32 %v16156_v9, %v485_v23  ;;  %13038 = vmatprep.mubr.msk.bf16.mxu0 %vm39_vm1, %v890_v33  ;;  %689 = vst.msk [vmem:[#allocation2 + $0x169] sm:$0xff] %vm39_vm1, %v623_v34  ;;  %690 = vst.msk [vmem:[#allocation2 + $0x171] sm:$0xff] %vm39_vm1, %v624_v35  ;;  %v566_v52 = vmul.f32 %v16156_v9, %v486_v30  ;;  %v348_v61 = vld [vmem:[%s18926_s2 + $0x148] sm:$0xff]  ;;  %v491_v2 = vld [vmem:[%s18927_s3 + $0x140] sm:$0xff] }
  0xa8   :  { %v627_v51 = vadd.f32 %v563_v36, %v419_v18  ;;  %v423_v53 = vmul.f32 %v16091_v37, %v343_v31  ;;  %v628_v57 = vadd.f32 %v564_v41, %v420_v27  ;;  %v424_v59 = vmul.f32 %v16091_v37, %v344_v32  ;;  %v492_v3 = vld [vmem:[%s18927_s3 + $0x148] sm:$0xff]  ;;  %v349_v4 = vld [vmem:[%s18926_s2 + $0x150] sm:$0xff]  ;;  %v350_v11 = vld [vmem:[%s18926_s2 + $0x158] sm:$0xff] }
  0xa9   :  { %v629_v58 = vadd.f32 %v565_v44, %v421_v29  ;;  %v567_v60 = vmul.f32 %v16156_v9, %v487_v38  ;;  %v630_v62 = vadd.f32 %v566_v52, %v422_v42  ;;  %v568_v63 = vmul.f32 %v16156_v9, %v488_v39  ;;  %v493_v12 = vld [vmem:[%s18927_s3 + $0x150] sm:$0xff]  ;;  %v494_v13 = vld [vmem:[%s18927_s3 + $0x158] sm:$0xff]  ;;  %v351_v18 = vld [vmem:[%s18926_s2 + $0x160] sm:$0xff] }
  0xaa   :  { %693 = vst.msk [vmem:[#allocation2 + $0x1c9] sm:$0xff] %vm39_vm1, %v627_v51  ;;  %v425_v0 = vmul.f32 %v16091_v37, %v345_v40  ;;  %v426_v1 = vmul.f32 %v16091_v37, %v346_v45  ;;  %v891_v5 = vpack.c.bf16 %v833_v50, %v832_v49  ;;  %694 = vst.msk [vmem:[#allocation2 + $0x1d1] sm:$0xff] %vm39_vm1, %v628_v57  ;;  %v352_v25 = vld [vmem:[%s18926_s2 + $0x168] sm:$0xff]  ;;  %v495_v26 = vld [vmem:[%s18927_s3 + $0x160] sm:$0xff] }
  0xab   :  { %695 = vst.msk [vmem:[#allocation2 + $0x1e1] sm:$0xff] %vm39_vm1, %v629_v58  ;;  %v631_v7 = vadd.f32 %v567_v60, %v423_v53  ;;  %v569_v8 = vmul.f32 %v16156_v9, %v489_v47  ;;  %v570_v10 = vmul.f32 %v16156_v9, %v490_v48  ;;  %v892_v14 = vpack.c.bf16 %v835_v56, %v834_v55  ;;  %v496_v27 = vld [vmem:[%s18927_s3 + $0x168] sm:$0xff]  ;;  %v353_v34 = vld [vmem:[%s18926_s2 + $0x170] sm:$0xff]  ;;  %v354_v35 = vld [vmem:[%s18926_s2 + $0x178] sm:$0xff] }
  0xac   :  { %696 = vst.msk [vmem:[#allocation2 + $0x1e9] sm:$0xff] %vm39_vm1, %v630_v62  ;;  %v632_v15 = vadd.f32 %v568_v63, %v424_v59  ;;  %v427_v16 = vmul.f32 %v16091_v37, %v347_v54  ;;  %v428_v17 = vmul.f32 %v16091_v37, %v348_v61  ;;  %v571_v23 = vmul.f32 %v16156_v9, %v491_v2  ;;  %v497_v36 = vld [vmem:[%s18927_s3 + $0x170] sm:$0xff]  ;;  %v498_v41 = vld [vmem:[%s18927_s3 + $0x178] sm:$0xff]  ;;  %v355_v29 = vld [vmem:[%s18926_s2 + $0x180] sm:$0xff] }
  0xad   :  { %697 = vst.msk [vmem:[#allocation2 + $0x1f9] sm:$0xff] %vm39_vm1, %v631_v7  ;;  %v633_v19 = vadd.f32 %v569_v8, %v425_v0  ;;  %v634_v20 = vadd.f32 %v570_v10, %v426_v1  ;;  %v572_v24 = vmul.f32 %v16156_v9, %v492_v3  ;;  %v429_v30 = vmul.f32 %v16091_v37, %v349_v4  ;;  %v356_v42 = vld [vmem:[%s18926_s2 + $0x188] sm:$0xff]  ;;  %v499_v48 = vld [vmem:[%s18927_s3 + $0x180] sm:$0xff]  ;;  %v357_v56 = vld [vmem:[%s18926_s2 + $0x190] sm:$0xff] }
  0xae   :  { %698 = vst.msk [vmem:[#allocation2 + $0x201] sm:$0xff] %vm39_vm1, %v632_v15  ;;  %v430_v31 = vmul.f32 %v16091_v37, %v350_v11  ;;  %v573_v32 = vmul.f32 %v16156_v9, %v493_v12  ;;  %v574_v33 = vmul.f32 %v16156_v9, %v494_v13  ;;  %13039 = vmatmul.mubr.msk.bf16.gmra.mrb[8].mxu0 %vm39_vm1, %v891_v5  ;;  %v500_v49 = vld [vmem:[%s18927_s3 + $0x188] sm:$0xff]  ;;  %v358_v61 = vld [vmem:[%s18926_s2 + $0x198] sm:$0xff]  ;;  %v501_v62 = vld [vmem:[%s18927_s3 + $0x190] sm:$0xff] }
  0xaf   :  { %699 = vst.msk [vmem:[#allocation2 + $0x211] sm:$0xff] %vm39_vm1, %v633_v19  ;;  %700 = vst.msk [vmem:[#allocation2 + $0x219] sm:$0xff] %vm39_vm1, %v634_v20  ;;  %v635_v38 = vadd.f32 %v571_v23, %v427_v16  ;;  %v636_v39 = vadd.f32 %v572_v24, %v428_v17  ;;  %v431_v40 = vmul.f32 %v16091_v37, %v351_v18  ;;  %13042 = vmatprep.mubr.msk.bf16.mxu0 %vm39_vm1, %v892_v14  ;;  %v836_v50 = vld [vmem:[#allocation2 + $0xa9] sm:$0xff]  ;;  %v837_v51 = vld [vmem:[#allocation2 + $0xb1] sm:$0xff] }
  0xb0   :  { %v637_v44 = vadd.f32 %v573_v32, %v429_v30  ;;  %v638_v45 = vadd.f32 %v574_v33, %v430_v31  ;;  %v432_v47 = vmul.f32 %v16091_v37, %v352_v25  ;;  %v575_v52 = vmul.f32 %v16156_v9, %v495_v26  ;;  %v502_v63 = vld [vmem:[%s18927_s3 + $0x198] sm:$0xff]  ;;  %v839_v1 = vld [vmem:[#allocation2 + $0xc9] sm:$0xff]  ;;  %v361_v19 = vld [vmem:[%s18926_s2 + $0x1b0] sm:$0xff] }
  0xb1   :  { %701 = vst.msk [vmem:[#allocation2 + $0x229] sm:$0xff] %vm39_vm1, %v635_v38  ;;  %702 = vst.msk [vmem:[#allocation2 + $0x231] sm:$0xff] %vm39_vm1, %v636_v39  ;;  %v576_v53 = vmul.f32 %v16156_v9, %v496_v27  ;;  %v433_v54 = vmul.f32 %v16091_v37, %v353_v34  ;;  %v434_v55 = vmul.f32 %v16091_v37, %v354_v35  ;;  %v838_v0 = vld [vmem:[#allocation2 + $0xc1] sm:$0xff]  ;;  %v360_v12 = vld [vmem:[%s18926_s2 + $0x1a8] sm:$0xff] }
  0xb2   :  { %703 = vst.msk [vmem:[#allocation2 + $0x241] sm:$0xff] %vm39_vm1, %v637_v44  ;;  %704 = vst.msk [vmem:[#allocation2 + $0x249] sm:$0xff] %vm39_vm1, %v638_v45  ;;  %v577_v57 = vmul.f32 %v16156_v9, %v497_v36  ;;  %v578_v58 = vmul.f32 %v16156_v9, %v498_v41  ;;  %v435_v59 = vmul.f32 %v16091_v37, %v355_v29  ;;  %v359_v5 = vld [vmem:[%s18926_s2 + $0x1a0] sm:$0xff]  ;;  %v504_v18 = vld [vmem:[%s18927_s3 + $0x1a8] sm:$0xff] }
  0xb3   :  { %v436_v60 = vmul.f32 %v16091_v37, %v356_v42  ;;  %v639_v2 = vadd.f32 %v575_v52, %v431_v40  ;;  %v640_v3 = vadd.f32 %v576_v53, %v432_v47  ;;  %v579_v4 = vmul.f32 %v16156_v9, %v499_v48  ;;  %v503_v13 = vld [vmem:[%s18927_s3 + $0x1a0] sm:$0xff]  ;;  %v362_v20 = vld [vmem:[%s18926_s2 + $0x1b8] sm:$0xff]  ;;  %v505_v27 = vld [vmem:[%s18927_s3 + $0x1b0] sm:$0xff] }
  0xb4   :  { %v893_v7 = vpack.c.bf16 %v837_v51, %v836_v50  ;;  %v641_v8 = vadd.f32 %v577_v57, %v433_v54  ;;  %v642_v10 = vadd.f32 %v578_v58, %v434_v55  ;;  %v580_v11 = vmul.f32 %v16156_v9, %v500_v49  ;;  %v506_v30 = vld [vmem:[%s18927_s3 + $0x1b8] sm:$0xff]  ;;  %v363_v34 = vld [vmem:[%s18926_s2 + $0x1c0] sm:$0xff]  ;;  %v364_v35 = vld [vmem:[%s18926_s2 + $0x1c8] sm:$0xff] }
  0xb5   :  { %705 = vst.msk [vmem:[#allocation2 + $0x259] sm:$0xff] %vm39_vm1, %v639_v2  ;;  %706 = vst.msk [vmem:[#allocation2 + $0x261] sm:$0xff] %vm39_vm1, %v640_v3  ;;  %v643_v14 = vadd.f32 %v579_v4, %v435_v59  ;;  %v437_v15 = vmul.f32 %v16091_v37, %v357_v56  ;;  %v438_v16 = vmul.f32 %v16091_v37, %v358_v61  ;;  %v507_v41 = vld [vmem:[%s18927_s3 + $0x1c0] sm:$0xff]  ;;  %v508_v29 = vld [vmem:[%s18927_s3 + $0x1c8] sm:$0xff] }
  0xb6   :  { %v581_v17 = vmul.f32 %v16156_v9, %v501_v62  ;;  %v894_v23 = vpack.c.bf16 %v839_v1, %v838_v0  ;;  %707 = vst.msk [vmem:[#allocation2 + $0x271] sm:$0xff] %vm39_vm1, %v641_v8  ;;  %708 = vst.msk [vmem:[#allocation2 + $0x279] sm:$0xff] %vm39_vm1, %v642_v10  ;;  %v644_v24 = vadd.f32 %v580_v11, %v436_v60  ;;  %13043 = vmatmul.mubr.msk.bf16.gmra.mrb[12].mxu0 %vm39_vm1, %v893_v7  ;;  %v365_v42 = vld [vmem:[%s18926_s2 + $0x1d0] sm:$0xff]  ;;  %v366_v48 = vld [vmem:[%s18926_s2 + $0x1d8] sm:$0xff] }
  0xb7   :  { %v582_v25 = vmul.f32 %v16156_v9, %v502_v63  ;;  %v439_v26 = vmul.f32 %v16091_v37, %v359_v5  ;;  %709 = vst.msk [vmem:[#allocation2 + $0x289] sm:$0xff] %vm39_vm1, %v643_v14  ;;  %v440_v32 = vmul.f32 %v16091_v37, %v360_v12  ;;  %v583_v33 = vmul.f32 %v16156_v9, %v503_v13  ;;  %v509_v49 = vld [vmem:[%s18927_s3 + $0x1d0] sm:$0xff]  ;;  %v510_v50 = vld [vmem:[%s18927_s3 + $0x1d8] sm:$0xff]  ;;  %v367_v56 = vld [vmem:[%s18926_s2 + $0x1e0] sm:$0xff] }
  0xb8   :  { %v645_v31 = vadd.f32 %v581_v17, %v437_v15  ;;  %13046 = vmatprep.mubr.msk.bf16.mxu0 %vm39_vm1, %v894_v23  ;;  %710 = vst.msk [vmem:[#allocation2 + $0x291] sm:$0xff] %vm39_vm1, %v644_v24  ;;  %v584_v38 = vmul.f32 %v16156_v9, %v504_v18  ;;  %v441_v39 = vmul.f32 %v16091_v37, %v361_v19  ;;  %v840_v51 = vld [vmem:[#allocation2 + $0xd9] sm:$0xff]  ;;  %v841_v52 = vld [vmem:[#allocation2 + $0xe1] sm:$0xff]  ;;  %v842_v57 = vld [vmem:[#allocation2 + $0xf1] sm:$0xff] }
  0xb9   :  { %v646_v36 = vadd.f32 %v582_v25, %v438_v16  ;;  %v442_v40 = vmul.f32 %v16091_v37, %v362_v20  ;;  %v647_v44 = vadd.f32 %v583_v33, %v439_v26  ;;  %v585_v45 = vmul.f32 %v16156_v9, %v505_v27  ;;  %v843_v58 = vld [vmem:[#allocation2 + $0xf9] sm:$0xff]  ;;  %v368_v63 = vld [vmem:[%s18926_s2 + $0x1e8] sm:$0xff]  ;;  %v511_v4 = vld [vmem:[%s18927_s3 + $0x1e0] sm:$0xff] }
  0xba   :  { %711 = vst.msk [vmem:[#allocation2 + $0x2a1] sm:$0xff] %vm39_vm1, %v645_v31  ;;  %v586_v47 = vmul.f32 %v16156_v9, %v506_v30  ;;  %v648_v53 = vadd.f32 %v584_v38, %v440_v32  ;;  %v443_v54 = vmul.f32 %v16091_v37, %v363_v34  ;;  %v444_v55 = vmul.f32 %v16091_v37, %v364_v35  ;;  %v512_v5 = vld [vmem:[%s18927_s3 + $0x1e8] sm:$0xff]  ;;  %v846_v24 = vld [vmem:[#allocation2 + $0x121] sm:$0xff]  ;;  %v337_v30 = vld [vmem:[%s18926_s2 + $0xf0] sm:$0xff] }
  0xbb   :  { %712 = vst.msk [vmem:[#allocation2 + $0x2a9] sm:$0xff] %vm39_vm1, %v646_v36  ;;  %713 = vst.msk [vmem:[#allocation2 + $0x2b9] sm:$0xff] %vm39_vm1, %v647_v44  ;;  %v649_v59 = vadd.f32 %v585_v45, %v441_v39  ;;  %v587_v61 = vmul.f32 %v16156_v9, %v507_v41  ;;  %v588_v62 = vmul.f32 %v16156_v9, %v508_v29  ;;  %v844_v20 = vld [vmem:[#allocation2 + $0x109] sm:$0xff]  ;;  %v845_v23 = vld [vmem:[#allocation2 + $0x111] sm:$0xff] }
  0xbc   :  { %v650_v60 = vadd.f32 %v586_v47, %v442_v40  ;;  %714 = vst.msk [vmem:[#allocation2 + $0x2c1] sm:$0xff] %vm39_vm1, %v648_v53  ;;  %v445_v0 = vmul.f32 %v16091_v37, %v365_v42  ;;  %v446_v1 = vmul.f32 %v16091_v37, %v366_v48  ;;  %v589_v2 = vmul.f32 %v16156_v9, %v509_v49  ;;  %v847_v25 = vld [vmem:[#allocation2 + $0x129] sm:$0xff]  ;;  %v338_v31 = vld [vmem:[%s18926_s2 + $0xf8] sm:$0xff]  ;;  %v481_v34 = vld [vmem:[%s18927_s3 + $0xf0] sm:$0xff] }
  0xbd   :  { %v590_v3 = vmul.f32 %v16156_v9, %v510_v50  ;;  %v895_v7 = vpack.c.bf16 %v841_v52, %v840_v51  ;;  %715 = vst.msk [vmem:[#allocation2 + $0x2d1] sm:$0xff] %vm39_vm1, %v649_v59  ;;  %v651_v8 = vadd.f32 %v587_v61, %v443_v54  ;;  %v652_v10 = vadd.f32 %v588_v62, %v444_v55  ;;  %v848_v32 = vld [vmem:[#allocation2 + $0x139] sm:$0xff]  ;;  %v849_v33 = vld [vmem:[#allocation2 + $0x141] sm:$0xff]  ;;  %v850_v39 = vld [vmem:[#allocation2 + $0x151] sm:$0xff] }
  0xbe   :  { %716 = vst.msk [vmem:[#allocation2 + $0x2d9] sm:$0xff] %vm39_vm1, %v650_v60  ;;  %v447_v11 = vmul.f32 %v16091_v37, %v367_v56  ;;  %v896_v12 = vpack.c.bf16 %v843_v58, %v842_v57  ;;  %v653_v13 = vadd.f32 %v589_v2, %v445_v0  ;;  %v448_v15 = vmul.f32 %v16091_v37, %v368_v63  ;;  %v482_v35 = vld [vmem:[%s18927_s3 + $0xf8] sm:$0xff]  ;;  %v369_v36 = vld [vmem:[%s18926_s2 + $0x1f0] sm:$0xff]  ;;  %v852_v58 = vld [vmem:[#allocation2 + $0x169] sm:$0xff] }
  0xbf   :  { %v654_v14 = vadd.f32 %v590_v3, %v446_v1  ;;  %13047 = vmatmul.mubr.msk.bf16.gmra.mrb[16].mxu0 %vm39_vm1, %v895_v7  ;;  %717 = vst.msk [vmem:[#allocation2 + $0x2e9] sm:$0xff] %vm39_vm1, %v651_v8  ;;  %718 = vst.msk [vmem:[#allocation2 + $0x2f1] sm:$0xff] %vm39_vm1, %v652_v10  ;;  %v591_v16 = vmul.f32 %v16156_v9, %v511_v4  ;;  %v592_v17 = vmul.f32 %v16156_v9, %v512_v5  ;;  %v370_v38 = vld [vmem:[%s18926_s2 + $0x1f8] sm:$0xff]  ;;  %v513_v41 = vld [vmem:[%s18927_s3 + $0x1f0] sm:$0xff] }
  0xc0   :  { %13050 = vmatprep.mubr.msk.bf16.mxu0 %vm39_vm1, %v896_v12  ;;  %719 = vst.msk [vmem:[#allocation2 + $0x301] sm:$0xff] %vm39_vm1, %v653_v13  ;;  %v897_v26 = vpack.c.bf16 %v845_v23, %v844_v20  ;;  %v898_v27 = vpack.c.bf16 %v847_v25, %v846_v24  ;;  %v851_v40 = vld [vmem:[#allocation2 + $0x159] sm:$0xff]  ;;  %v899_v29 = vpack.c.bf16 %v849_v33, %v848_v32  ;;  %v854_v56 = vld [vmem:[#allocation2 + $0x1b1] sm:$0xff]  ;;  %v858_v62 = vld [vmem:[#allocation2 + $0x1e1] sm:$0xff] }
  0xc1   :  { %720 = vst.msk [vmem:[#allocation2 + $0x309] sm:$0xff] %vm39_vm1, %v654_v14  ;;  %v655_v18 = vadd.f32 %v591_v16, %v447_v11  ;;  %v656_v19 = vadd.f32 %v592_v17, %v448_v15  ;;  %v417_v42 = vmul.f32 %v15903_v43, %v337_v30  ;;  %v514_v44 = vld [vmem:[%s18927_s3 + $0x1f8] sm:$0xff]  ;;  %v418_v45 = vmul.f32 %v15903_v43, %v338_v31  ;;  %v857_v61 = vld [vmem:[#allocation2 + $0x1d1] sm:$0xff]  ;;  %v859_v63 = vld [vmem:[#allocation2 + $0x1e9] sm:$0xff] }
  0xc2   :  { %v561_v47 = vmul.f32 %v15959_v6, %v481_v34  ;;  %v562_v48 = vmul.f32 %v15959_v6, %v482_v35  ;;  %v449_v49 = vmul.f32 %v16091_v37, %v369_v36  ;;  %v900_v50 = vpack.c.bf16 %v851_v40, %v850_v39  ;;  %v855_v57 = vld [vmem:[#allocation2 + $0x1b9] sm:$0xff]  ;;  %v861_v3 = vld [vmem:[#allocation2 + $0x201] sm:$0xff]  ;;  %v862_v4 = vld [vmem:[#allocation2 + $0x211] sm:$0xff] }
  0xc3   :  { %721 = vst.msk [vmem:[#allocation2 + $0x319] sm:$0xff] %vm39_vm1, %v655_v18  ;;  %722 = vst.msk [vmem:[#allocation2 + $0x321] sm:$0xff] %vm39_vm1, %v656_v19  ;;  %v450_v51 = vmul.f32 %v16091_v37, %v370_v38  ;;  %v593_v52 = vmul.f32 %v16156_v9, %v513_v41  ;;  %v594_v55 = vmul.f32 %v16156_v9, %v514_v44  ;;  %v853_v37 = vld [vmem:[#allocation2 + $0x171] sm:$0xff]  ;;  %v856_v9 = vld [vmem:[#allocation2 + $0x1c9] sm:$0xff] }
  0xc4   :  { %v625_v53 = vadd.f32 %v561_v47, %v417_v42  ;;  %v626_v54 = vadd.f32 %v562_v48, %v418_v45  ;;  %v902_v59 = vpack.c.bf16 %v855_v57, %v854_v56  ;;  %v901_v60 = vpack.c.bf16 %v853_v37, %v852_v58  ;;  %v860_v2 = vld [vmem:[#allocation2 + $0x1f9] sm:$0xff]  ;;  %v864_v10 = vld [vmem:[#allocation2 + $0x229] sm:$0xff]  ;;  %v865_v11 = vld [vmem:[#allocation2 + $0x231] sm:$0xff] }
  0xc5   :  { %v657_v43 = vadd.f32 %v593_v52, %v449_v49  ;;  %v658_v6 = vadd.f32 %v594_v55, %v450_v51  ;;  %v903_v0 = vpack.c.bf16 %v857_v61, %v856_v9  ;;  %v904_v1 = vpack.c.bf16 %v859_v63, %v858_v62  ;;  %v863_v5 = vld [vmem:[#allocation2 + $0x219] sm:$0xff]  ;;  %v866_v12 = vld [vmem:[#allocation2 + $0x241] sm:$0xff]  ;;  %v867_v13 = vld [vmem:[#allocation2 + $0x249] sm:$0xff] }
  0xc6   :  { %691 = vst.msk [vmem:[#allocation2 + $0x181] sm:$0xff] %vm39_vm1, %v625_v53  ;;  %692 = vst.msk [vmem:[#allocation2 + $0x189] sm:$0xff] %vm39_vm1, %v626_v54  ;;  %v905_v7 = vpack.c.bf16 %v861_v3, %v860_v2  ;;  %v906_v8 = vpack.c.bf16 %v863_v5, %v862_v4  ;;  %v907_v14 = vpack.c.bf16 %v865_v11, %v864_v10  ;;  %v868_v16 = vld [vmem:[#allocation2 + $0x259] sm:$0xff]  ;;  %v869_v17 = vld [vmem:[#allocation2 + $0x261] sm:$0xff]  ;;  %v1892_v56 = vsel %vm1016_vm0, %v16109_v46, 0 }
  0xc7   :  { %13051 = vmatmul.mubr.msk.bf16.gmra.mrb[20].mxu0 %vm39_vm1, %v897_v26  ;;  %723 = vst.msk [vmem:[#allocation2 + $0x331] sm:$0xff] %vm39_vm1, %v657_v43  ;;  %724 = vst.msk [vmem:[#allocation2 + $0x339] sm:$0xff] %vm39_vm1, %v658_v6  ;;  %v908_v15 = vpack.c.bf16 %v867_v13, %v866_v12  ;;  %v870_v18 = vld [vmem:[#allocation2 + $0x271] sm:$0xff]  ;;  %v871_v19 = vld [vmem:[#allocation2 + $0x279] sm:$0xff]  ;;  %v909_v20 = vpack.c.bf16 %v869_v17, %v868_v16 }
  0xc8   :  { %13054 = vmatprep.mubr.msk.bf16.mxu0 %vm39_vm1, %v898_v27  ;;  %v910_v23 = vpack.c.bf16 %v871_v19, %v870_v18  ;;  %v872_v24 = vld [vmem:[#allocation2 + $0x289] sm:$0xff]  ;;  %v873_v25 = vld [vmem:[#allocation2 + $0x291] sm:$0xff]  ;;  %v874_v26 = vld [vmem:[#allocation2 + $0x2a1] sm:$0xff] }
  0xc9   :  { %v875_v27 = vld [vmem:[#allocation2 + $0x2a9] sm:$0xff]  ;;  %v911_v30 = vpack.c.bf16 %v873_v25, %v872_v24  ;;  %v876_v32 = vld [vmem:[#allocation2 + $0x2b9] sm:$0xff]  ;;  %v877_v33 = vld [vmem:[#allocation2 + $0x2c1] sm:$0xff] }
  0xca   :  { %v912_v31 = vpack.c.bf16 %v875_v27, %v874_v26  ;;  %v878_v34 = vld [vmem:[#allocation2 + $0x2d1] sm:$0xff]  ;;  %v879_v35 = vld [vmem:[#allocation2 + $0x2d9] sm:$0xff]  ;;  %v913_v36 = vpack.c.bf16 %v877_v33, %v876_v32  ;;  %v880_v39 = vld [vmem:[#allocation2 + $0x2e9] sm:$0xff] }
  0xcb   :  { %v914_v38 = vpack.c.bf16 %v879_v35, %v878_v34  ;;  %v881_v40 = vld [vmem:[#allocation2 + $0x2f1] sm:$0xff]  ;;  %v882_v41 = vld [vmem:[#allocation2 + $0x301] sm:$0xff]  ;;  %v884_v48 = vld [vmem:[#allocation2 + $0x319] sm:$0xff] }
  0xcc   :  { %v915_v42 = vpack.c.bf16 %v881_v40, %v880_v39  ;;  %v725_v45 = vld [vmem:[#allocation2] sm:$0xff]  ;;  %v726_v47 = vld [vmem:[#allocation2 + $0x8] sm:$0xff]  ;;  %v727_v52 = vld [vmem:[#allocation2 + $0x18] sm:$0xff] }
  0xcd   :  { %v885_v49 = vld [vmem:[#allocation2 + $0x321] sm:$0xff]  ;;  %v729_v54 = vld [vmem:[#allocation2 + $0x30] sm:$0xff]  ;;  %v730_v55 = vld [vmem:[#allocation2 + $0x38] sm:$0xff] }
  0xce   :  { %v917_v51 = vpack.c.bf16 %v885_v49, %v884_v48  ;;  %v728_v53 = vld [vmem:[#allocation2 + $0x20] sm:$0xff]  ;;  %v16502_v57 = vpack.c.bf16 %v730_v55, %v729_v54  ;;  %v16507_v6 = vld [vmem:[%s18929_s5 + $0x6] sm:$0x3]  ;;  %v732_v37 = vld [vmem:[#allocation2 + $0x50] sm:$0xff] }
  0xcf   :  { %13055 = vmatmul.mubr.msk.bf16.gmra.mrb[24].mxu0 %vm39_vm1, %v899_v29  ;;  %v883_v29 = vld [vmem:[#allocation2 + $0x309] sm:$0xff]  ;;  %v16498_v43 = vpack.c.bf16 %v728_v53, %v727_v52  ;;  %v733_v46 = vld [vmem:[#allocation2 + $0x60] sm:$0xff]  ;;  %v735_v61 = vld [vmem:[#allocation2 + $0x78] sm:$0xff] }
  0xd0   :  { %13058 = vmatprep.mubr.msk.bf16.mxu0 %vm39_vm1, %v900_v50  ;;  %v916_v44 = vpack.c.bf16 %v883_v29, %v882_v41  ;;  %v789_v50 = vpack.c.bf16 %v726_v47, %v725_v45  ;;  %v731_v58 = vld [vmem:[#allocation2 + $0x48] sm:$0xff]  ;;  %v736_v62 = vld [vmem:[#allocation2 + $0x80] sm:$0xff]  ;;  %v737_v63 = vld [vmem:[#allocation2 + $0x90] sm:$0xff] }
  0xd1   :  { %v739_v3 = vld [vmem:[#allocation2 + $0xa8] sm:$0xff]  ;;  %v740_v4 = vld [vmem:[#allocation2 + $0xb0] sm:$0xff]  ;;  %v741_v5 = vld [vmem:[#allocation2 + $0xc0] sm:$0xff] }
  0xd2   :  { %v743_v11 = vld [vmem:[#allocation2 + $0xd8] sm:$0xff]  ;;  %v744_v12 = vld [vmem:[#allocation2 + $0xe0] sm:$0xff]  ;;  %v745_v13 = vld [vmem:[#allocation2 + $0xf0] sm:$0xff] }
  0xd3   :  { %v747_v17 = vld [vmem:[#allocation2 + $0x108] sm:$0xff]  ;;  %v748_v18 = vld [vmem:[#allocation2 + $0x110] sm:$0xff]  ;;  %v749_v19 = vld [vmem:[#allocation2 + $0x120] sm:$0xff] }
  0xd4   :  { %v751_v25 = vld [vmem:[#allocation2 + $0x138] sm:$0xff]  ;;  %v752_v26 = vld [vmem:[#allocation2 + $0x140] sm:$0xff]  ;;  %v753_v27 = vld [vmem:[#allocation2 + $0x150] sm:$0xff] }
  0xd5   :  { %v757_v33 = vld [vmem:[#allocation2 + $0x1b0] sm:$0xff]  ;;  %v758_v34 = vld [vmem:[#allocation2 + $0x1b8] sm:$0xff]  ;;  %v755_v35 = vld [vmem:[#allocation2 + $0x168] sm:$0xff] }
  0xd6   :  { %v759_v40 = vld [vmem:[#allocation2 + $0x1c8] sm:$0xff]  ;;  %v760_v41 = vld [vmem:[#allocation2 + $0x1d0] sm:$0xff]  ;;  %v761_v29 = vld [vmem:[#allocation2 + $0x1e0] sm:$0xff] }
  0xd7   :  { %13059 = vmatmul.mubr.msk.bf16.gmra.mrb[28].mxu0 %vm39_vm1, %v901_v60  ;;  %v16515_v60 = vpack.c.bf16 %v732_v37, %v731_v58  ;;  %v763_v47 = vld [vmem:[#allocation2 + $0x1f8] sm:$0xff]  ;;  %v764_v48 = vld [vmem:[#allocation2 + $0x200] sm:$0xff]  ;;  %v765_v49 = vld [vmem:[#allocation2 + $0x210] sm:$0xff] }
  0xd8   :  { %13062 = vmatprep.mubr.msk.bf16.mxu0 %vm39_vm1, %v902_v59  ;;  %v734_v59 = vld [vmem:[#allocation2 + $0x68] sm:$0xff]  ;;  %v768_v54 = vld [vmem:[#allocation2 + $0x230] sm:$0xff]  ;;  %v769_v55 = vld [vmem:[#allocation2 + $0x240] sm:$0xff] }
  0xd9   :  { %v16517_v9 = vpack.c.bf16 %v734_v59, %v733_v46  ;;  %v767_v53 = vld [vmem:[#allocation2 + $0x228] sm:$0xff]  ;;  %v771_v46 = vld [vmem:[#allocation2 + $0x258] sm:$0xff]  ;;  %v772_v59 = vld [vmem:[#allocation2 + $0x260] sm:$0xff] }
  0xda   :  { %v16584_v58 = vpack.c.bf16 %v768_v54, %v767_v53  ;;  %v2442_v53 = vsel %vm1016_vm0, %v16507_v6, 0 }
  0xdf   :  { %13063 = vmatmul.mubr.msk.bf16.gmra.mrb[32].mxu0 %vm39_vm1, %v903_v0  ;;  %v738_v0 = vld [vmem:[#allocation2 + $0x98] sm:$0xff] }
  0xe0   :  { %13066 = vmatprep.mubr.msk.bf16.mxu0 %vm39_vm1, %v904_v1  ;;  %v16523_v1 = vpack.c.bf16 %v736_v62, %v735_v61  ;;  %v16525_v2 = vpack.c.bf16 %v738_v0, %v737_v63  ;;  %v773_v61 = vld [vmem:[#allocation2 + $0x270] sm:$0xff]  ;;  %v774_v62 = vld [vmem:[#allocation2 + $0x278] sm:$0xff]  ;;  %v16592_v63 = vpack.c.bf16 %v772_v59, %v771_v46 }
  0xe1   :  { %v16594_v0 = vpack.c.bf16 %v774_v62, %v773_v61  ;;  %v1704_v46 = vld [vmem:[#allocation2 + $0x52] sm:$0xff]  ;;  %v1706_v59 = vld [vmem:[#allocation2 + $0x6a] sm:$0xff] }
  0xe7   :  { %13067 = vmatmul.mubr.msk.bf16.gmra.mrb[36].mxu0 %vm39_vm1, %v905_v7  ;;  %v742_v7 = vld [vmem:[#allocation2 + $0xc8] sm:$0xff] }
  0xe8   :  { %13070 = vmatprep.mubr.msk.bf16.mxu0 %vm39_vm1, %v906_v8  ;;  %v16531_v8 = vpack.c.bf16 %v740_v4, %v739_v3  ;;  %v16533_v10 = vpack.c.bf16 %v742_v7, %v741_v5  ;;  %v775_v3 = vld [vmem:[#allocation2 + $0x288] sm:$0xff]  ;;  %v776_v4 = vld [vmem:[#allocation2 + $0x290] sm:$0xff]  ;;  %v777_v5 = vld [vmem:[#allocation2 + $0x2a0] sm:$0xff] }
  0xe9   :  { %v778_v7 = vld [vmem:[#allocation2 + $0x2a8] sm:$0xff] }
  0xef   :  { %13071 = vmatmul.mubr.msk.bf16.gmra.mrb[40].mxu0 %vm39_vm1, %v907_v14  ;;  %v746_v14 = vld [vmem:[#allocation2 + $0xf8] sm:$0xff] }
  0xf0   :  { %13074 = vmatprep.mubr.msk.bf16.mxu0 %vm39_vm1, %v908_v15  ;;  %v16539_v15 = vpack.c.bf16 %v744_v12, %v743_v11  ;;  %v16541_v16 = vpack.c.bf16 %v746_v14, %v745_v13  ;;  %v16600_v11 = vpack.c.bf16 %v776_v4, %v775_v3  ;;  %v16602_v12 = vpack.c.bf16 %v778_v7, %v777_v5  ;;  %v779_v13 = vld [vmem:[#allocation2 + $0x2b8] sm:$0xff]  ;;  %v780_v14 = vld [vmem:[#allocation2 + $0x2c0] sm:$0xff] }
  0xf1   :  { %v1707_v3 = vld [vmem:[#allocation2 + $0x7a] sm:$0xff]  ;;  %v1708_v4 = vld [vmem:[#allocation2 + $0x82] sm:$0xff]  ;;  %v1709_v5 = vld [vmem:[#allocation2 + $0x92] sm:$0xff] }
  0xf2   :  { %v1710_v7 = vld [vmem:[#allocation2 + $0x9a] sm:$0xff] }
  0xf7   :  { %13075 = vmatmul.mubr.msk.bf16.gmra.mrb[44].mxu0 %vm39_vm1, %v909_v20  ;;  %v750_v20 = vld [vmem:[#allocation2 + $0x128] sm:$0xff] }
  0xf8   :  { %13078 = vmatprep.mubr.msk.bf16.mxu0 %vm39_vm1, %v910_v23  ;;  %v16547_v23 = vpack.c.bf16 %v748_v18, %v747_v17  ;;  %v16549_v24 = vpack.c.bf16 %v750_v20, %v749_v19  ;;  %v781_v17 = vld [vmem:[#allocation2 + $0x2d0] sm:$0xff]  ;;  %v782_v18 = vld [vmem:[#allocation2 + $0x2d8] sm:$0xff]  ;;  %v16608_v19 = vpack.c.bf16 %v780_v14, %v779_v13  ;;  %v16654_v13 = vpack.c.bf16 %v1708_v4, %v1707_v3 }
  0xf9   :  { %v16610_v20 = vpack.c.bf16 %v782_v18, %v781_v17  ;;  %v16656_v14 = vpack.c.bf16 %v1710_v7, %v1709_v5  ;;  %v1711_v17 = vld [vmem:[#allocation2 + $0xaa] sm:$0xff]  ;;  %v1712_v18 = vld [vmem:[#allocation2 + $0xb2] sm:$0xff]  ;;  %v1726_v4 = vld [vmem:[#allocation2 + $0x15a] sm:$0xff] }
  0xfa   :  { %v1725_v3 = vld [vmem:[#allocation2 + $0x152] sm:$0xff] }
  0xfb   :  { %v16688_v7 = vpack.c.bf16 %v1726_v4, %v1725_v3  ;;  %v1737_v3 = vld [vmem:[#allocation2 + $0x212] sm:$0xff]  ;;  %v1738_v4 = vld [vmem:[#allocation2 + $0x21a] sm:$0xff] }
  0xff   :  { %13079 = vmatmul.mubr.msk.bf16.gmra.mrb[48].mxu0 %vm39_vm1, %v911_v30  ;;  %v754_v30 = vld [vmem:[#allocation2 + $0x158] sm:$0xff] }
 0x100   :  { %13082 = vmatprep.mubr.msk.bf16.mxu0 %vm39_vm1, %v912_v31  ;;  %v16555_v31 = vpack.c.bf16 %v752_v26, %v751_v25  ;;  %v16557_v32 = vpack.c.bf16 %v754_v30, %v753_v27  ;;  %v783_v25 = vld [vmem:[#allocation2 + $0x2e8] sm:$0xff]  ;;  %v784_v26 = vld [vmem:[#allocation2 + $0x2f0] sm:$0xff]  ;;  %v785_v27 = vld [vmem:[#allocation2 + $0x300] sm:$0xff] }
 0x101   :  { %v786_v30 = vld [vmem:[#allocation2 + $0x308] sm:$0xff] }
 0x107   :  { %13083 = vmatmul.mubr.msk.bf16.gmra.mrb[52].mxu0 %vm39_vm1, %v913_v36  ;;  %v756_v36 = vld [vmem:[#allocation2 + $0x170] sm:$0xff] }
 0x108   :  { %13086 = vmatprep.mubr.msk.bf16.mxu0 %vm39_vm1, %v914_v38  ;;  %v805_v38 = vpack.c.bf16 %v758_v34, %v757_v33  ;;  %v16563_v39 = vpack.c.bf16 %v756_v36, %v755_v35  ;;  %v16616_v33 = vpack.c.bf16 %v784_v26, %v783_v25  ;;  %v16618_v34 = vpack.c.bf16 %v786_v30, %v785_v27  ;;  %v1697_v35 = vld [vmem:[#allocation2 + $0x2] sm:$0xff]  ;;  %v1698_v36 = vld [vmem:[#allocation2 + $0xa] sm:$0xff] }
 0x109   :  { %v1713_v25 = vld [vmem:[#allocation2 + $0xc2] sm:$0xff]  ;;  %v1714_v26 = vld [vmem:[#allocation2 + $0xca] sm:$0xff]  ;;  %v16662_v27 = vpack.c.bf16 %v1712_v18, %v1711_v17  ;;  %v1729_v17 = vld [vmem:[#allocation2 + $0x1b2] sm:$0xff] }
 0x10a   :  { %v16664_v30 = vpack.c.bf16 %v1714_v26, %v1713_v25  ;;  %v1730_v18 = vld [vmem:[#allocation2 + $0x1ba] sm:$0xff]  ;;  %v1727_v25 = vld [vmem:[#allocation2 + $0x16a] sm:$0xff]  ;;  %v1728_v26 = vld [vmem:[#allocation2 + $0x172] sm:$0xff] }
 0x10f   :  { %13087 = vmatmul.mubr.msk.bf16.gmra.mrb[56].mxu0 %vm39_vm1, %v915_v42  ;;  %v762_v42 = vld [vmem:[#allocation2 + $0x1e8] sm:$0xff] }
 0x110   :  { %13090 = vmatprep.mubr.msk.bf16.mxu0 %vm39_vm1, %v916_v44  ;;  %v16568_v44 = vpack.c.bf16 %v760_v41, %v759_v40  ;;  %v16570_v45 = vpack.c.bf16 %v762_v42, %v761_v29  ;;  %v788_v40 = vld [vmem:[#allocation2 + $0x320] sm:$0xff]  ;;  %v1761_v41 = vpack.c.bf16 %v1698_v36, %v1697_v35 }
 0x111   :  { %v1699_v42 = vld [vmem:[#allocation2 + $0x1a] sm:$0xff]  ;;  %v1716_v36 = vld [vmem:[#allocation2 + $0xe2] sm:$0xff] }
 0x112   :  { %v1715_v35 = vld [vmem:[#allocation2 + $0xda] sm:$0xff] }
 0x117   :  { %13091 = vmatmul.mubr.msk.bf16.gmra.mrb[60].mxu0 %vm39_vm1, %v917_v51  ;;  %v16576_v51 = vpack.c.bf16 %v764_v48, %v763_v47  ;;  %v1700_v47 = vld [vmem:[#allocation2 + $0x22] sm:$0xff]  ;;  %v1701_v48 = vld [vmem:[#allocation2 + $0x32] sm:$0xff] }
 0x118   :  { %13096 = vmatprep.mubr.msk.bf16.mxu0 %vm39_vm1, %v789_v50  ;;  %v766_v50 = vld [vmem:[#allocation2 + $0x218] sm:$0xff] }
 0x119   :  { %v16578_v52 = vpack.c.bf16 %v766_v50, %v765_v49  ;;  %v1702_v49 = vld [vmem:[#allocation2 + $0x3a] sm:$0xff]  ;;  %v16629_v50 = vpack.c.bf16 %v1700_v47, %v1699_v42  ;;  %v1719_v47 = vld [vmem:[#allocation2 + $0x10a] sm:$0xff] }
 0x11a   :  { %v16633_v54 = vpack.c.bf16 %v1702_v49, %v1701_v48  ;;  %v1720_v48 = vld [vmem:[#allocation2 + $0x112] sm:$0xff]  ;;  %v1721_v49 = vld [vmem:[#allocation2 + $0x122] sm:$0xff] }
 0x11f   :  { %13097 = vmatmul.mubr.msk.bf16.vlgmr.msra.gmra.mrb[0].mxu0 %vm39_vm1, %v16498_v43 }
 0x120   :  { %13161 = vmatpush3.bf16.msra.mxu0 %v1892_v56  ;;  %13100 = vmatprep.mubr.msk.bf16.mxu0 %vm39_vm1, %v16502_v57  ;;  %v770_v56 = vld [vmem:[#allocation2 + $0x248] sm:$0xff] }
 0x121   :  { %15261 = vmatprep.subr.msk.bf16.mxu0 %vm1016_vm0, %v16507_v6  ;;  %v16586_v37 = vpack.c.bf16 %v770_v56, %v769_v55  ;;  %v16638_v55 = vld [vmem:[%s18929_s5 + $0x8] sm:$0x3]  ;;  %v1705_v6 = vld [vmem:[#allocation2 + $0x62] sm:$0xff] }
 0x122   :  { %v1703_v56 = vld [vmem:[#allocation2 + $0x4a] sm:$0xff]  ;;  %v16648_v62 = vpack.c.bf16 %v1706_v59, %v1705_v6  ;;  %v1723_v6 = vld [vmem:[#allocation2 + $0x13a] sm:$0xff]  ;;  %v1724_v59 = vld [vmem:[#allocation2 + $0x142] sm:$0xff] }
 0x123   :  { %v16646_v61 = vpack.c.bf16 %v1704_v46, %v1703_v56  ;;  %v16678_v56 = vpack.c.bf16 %v1720_v48, %v1719_v47  ;;  %v16686_v5 = vpack.c.bf16 %v1724_v59, %v1723_v6  ;;  %v1733_v47 = vld [vmem:[#allocation2 + $0x1e2] sm:$0xff]  ;;  %v1734_v48 = vld [vmem:[#allocation2 + $0x1ea] sm:$0xff]  ;;  %v1735_v6 = vld [vmem:[#allocation2 + $0x1fa] sm:$0xff] }
 0x124   :  { %v1736_v59 = vld [vmem:[#allocation2 + $0x202] sm:$0xff] }
 0x127   :  { %13101 = vmatmul.mubr.msk.bf16.gmra.mrb[4].mxu0 %vm39_vm1, %v16515_v60 }
 0x128   :  { %13104 = vmatprep.mubr.msk.bf16.mxu0 %vm39_vm1, %v16517_v9 }
 0x12f   :  { %13105 = vmatmul.mubr.msk.bf16.gmra.mrb[8].mxu0 %vm39_vm1, %v16523_v1 }
 0x130   :  { %13108 = vmatprep.mubr.msk.bf16.mxu0 %vm39_vm1, %v16525_v2 }
 0x137   :  { %13109 = vmatmul.mubr.msk.bf16.gmra.mrb[12].mxu0 %vm39_vm1, %v16531_v8 }
 0x138   :  { %13112 = vmatprep.mubr.msk.bf16.mxu0 %vm39_vm1, %v16533_v10 }
 0x13f   :  { %13113 = vmatmul.mubr.msk.bf16.gmra.mrb[16].mxu0 %vm39_vm1, %v16539_v15 }
 0x140   :  { %13116 = vmatprep.mubr.msk.bf16.mxu0 %vm39_vm1, %v16541_v16 }
 0x147   :  { %13117 = vmatmul.mubr.msk.bf16.gmra.mrb[20].mxu0 %vm39_vm1, %v16547_v23 }
 0x148   :  { %13120 = vmatprep.mubr.msk.bf16.mxu0 %vm39_vm1, %v16549_v24 }
 0x14f   :  { %13121 = vmatmul.mubr.msk.bf16.gmra.mrb[24].mxu0 %vm39_vm1, %v16555_v31 }
 0x150   :  { %13124 = vmatprep.mubr.msk.bf16.mxu0 %vm39_vm1, %v16557_v32 }
 0x157   :  { %13125 = vmatmul.mubr.msk.bf16.gmra.mrb[28].mxu0 %vm39_vm1, %v16563_v39 }
 0x158   :  { %13128 = vmatprep.mubr.msk.bf16.mxu0 %vm39_vm1, %v805_v38  ;;  %v787_v38 = vld [vmem:[#allocation2 + $0x318] sm:$0xff] }
 0x159   :  { %v16624_v29 = vpack.c.bf16 %v788_v40, %v787_v38  ;;  %v1717_v38 = vld [vmem:[#allocation2 + $0xf2] sm:$0xff]  ;;  %v1718_v40 = vld [vmem:[#allocation2 + $0xfa] sm:$0xff] }
 0x15a   :  { %v16672_v42 = vpack.c.bf16 %v1718_v40, %v1717_v38  ;;  %v1731_v38 = vld [vmem:[#allocation2 + $0x1ca] sm:$0xff]  ;;  %v1732_v40 = vld [vmem:[#allocation2 + $0x1d2] sm:$0xff] }
 0x15f   :  { %13129 = vmatmul.mubr.msk.bf16.gmra.mrb[32].mxu0 %vm39_vm1, %v16568_v44 }
 0x160   :  { %13132 = vmatprep.mubr.msk.bf16.mxu0 %vm39_vm1, %v16570_v45 }
 0x167   :  { %13133 = vmatmul.mubr.msk.bf16.gmra.mrb[36].mxu0 %vm39_vm1, %v16576_v51 }
 0x168   :  { %13136 = vmatprep.mubr.msk.bf16.mxu0 %vm39_vm1, %v16578_v52 }
 0x16f   :  { %13137 = vmatmul.mubr.msk.bf16.gmra.mrb[40].mxu0 %vm39_vm1, %v16584_v58 }
 0x170   :  { %13140 = vmatprep.mubr.msk.bf16.mxu0 %vm39_vm1, %v16586_v37 }
 0x177   :  { %13141 = vmatmul.mubr.msk.bf16.gmra.mrb[44].mxu0 %vm39_vm1, %v16592_v63 }
 0x178   :  { %13144 = vmatprep.mubr.msk.bf16.mxu0 %vm39_vm1, %v16594_v0 }
 0x17f   :  { %13145 = vmatmul.mubr.msk.bf16.gmra.mrb[48].mxu0 %vm39_vm1, %v16600_v11 }
 0x180   :  { %13148 = vmatprep.mubr.msk.bf16.mxu0 %vm39_vm1, %v16602_v12 }
 0x187   :  { %13149 = vmatmul.mubr.msk.bf16.gmra.mrb[52].mxu0 %vm39_vm1, %v16608_v19 }
 0x188   :  { %13152 = vmatprep.mubr.msk.bf16.mxu0 %vm39_vm1, %v16610_v20 }
 0x18f   :  { %13153 = vmatmul.mubr.msk.bf16.gmra.mrb[56].mxu0 %vm39_vm1, %v16616_v33 }
 0x190   :  { %13156 = vmatprep.mubr.msk.bf16.mxu0 %vm39_vm1, %v16618_v34 }
 0x197   :  { %13157 = vmatmul.mubr.msk.bf16.gmra.mrb[60].mxu0 %vm39_vm1, %v16624_v29 }
 0x198   :  { %13162 = vmatprep.mubr.msk.bf16.mxu0 %vm39_vm1, %v1761_v41  ;;  %v16670_v41 = vpack.c.bf16 %v1716_v36, %v1715_v35  ;;  %v1777_v35 = vpack.c.bf16 %v1730_v18, %v1729_v17  ;;  %v16694_v36 = vpack.c.bf16 %v1728_v26, %v1727_v25  ;;  %v16707_v17 = vpack.c.bf16 %v1736_v59, %v1735_v6  ;;  %v1739_v25 = vld [vmem:[#allocation2 + $0x22a] sm:$0xff]  ;;  %v1740_v26 = vld [vmem:[#allocation2 + $0x232] sm:$0xff]  ;;  %v1744_v6 = vld [vmem:[#allocation2 + $0x262] sm:$0xff] }
 0x199   :  { %v16709_v18 = vpack.c.bf16 %v1738_v4, %v1737_v3  ;;  %v1745_v59 = vld [vmem:[#allocation2 + $0x272] sm:$0xff]  ;;  %v1746_v3 = vld [vmem:[#allocation2 + $0x27a] sm:$0xff] }
 0x19a   :  { %v16725_v28 = vpack.c.bf16 %v1746_v3, %v1745_v59  ;;  %v1753_v59 = vld [vmem:[#allocation2 + $0x2d2] sm:$0xff]  ;;  %v1754_v3 = vld [vmem:[#allocation2 + $0x2da] sm:$0xff] }
 0x19c   :  { %18952 = vst [vmem:[#allocation11_spill] sm:$0xff] %v16725_v28 }
 0x19f   :  { %13163 = vmatmul.mubr.msk.bf16.vlgmr.msra.gmra.mrb[0].mxu0 %vm39_vm1, %v16629_v50 }
 0x1a0   :  { %13227 = vmatpush3.bf16.msra.mxu0 %v2442_v53  ;;  %13166 = vmatprep.mubr.msk.bf16.mxu0 %vm39_vm1, %v16633_v54  ;;  %v1722_v53 = vld [vmem:[#allocation2 + $0x12a] sm:$0xff] }
 0x1a1   :  { %15262 = vmatprep.subr.msk.bf16.mxu0 %vm1016_vm0, %v16638_v55  ;;  %v16680_v46 = vpack.c.bf16 %v1722_v53, %v1721_v49  ;;  %v16699_v49 = vpack.c.bf16 %v1732_v40, %v1731_v38  ;;  %v16701_v53 = vpack.c.bf16 %v1734_v48, %v1733_v47  ;;  %v1742_v38 = vld [vmem:[#allocation2 + $0x24a] sm:$0xff]  ;;  %v16715_v40 = vpack.c.bf16 %v1740_v26, %v1739_v25  ;;  %v1743_v48 = vld [vmem:[#allocation2 + $0x25a] sm:$0xff]  ;;  %v1748_v26 = vld [vmem:[#allocation2 + $0x292] sm:$0xff] }
 0x1a2   :  { %v16723_v4 = vpack.c.bf16 %v1744_v6, %v1743_v48  ;;  %v1747_v25 = vld [vmem:[#allocation2 + $0x28a] sm:$0xff]  ;;  %v1751_v48 = vld [vmem:[#allocation2 + $0x2ba] sm:$0xff]  ;;  %v1752_v6 = vld [vmem:[#allocation2 + $0x2c2] sm:$0xff] }
 0x1a3   :  { %v16731_v22 = vpack.c.bf16 %v1748_v26, %v1747_v25  ;;  %v1755_v25 = vld [vmem:[#allocation2 + $0x2ea] sm:$0xff]  ;;  %v1756_v26 = vld [vmem:[#allocation2 + $0x2f2] sm:$0xff] }
 0x1a4   :  { %18951 = vst [vmem:[#allocation10_spill] sm:$0xff] %v16723_v4 }
 0x1a5   :  { %18953 = vst [vmem:[#allocation12_spill] sm:$0xff] %v16731_v22 }
 0x1a7   :  { %13167 = vmatmul.mubr.msk.bf16.gmra.mrb[4].mxu0 %vm39_vm1, %v16646_v61 }
 0x1a8   :  { %13170 = vmatprep.mubr.msk.bf16.mxu0 %vm39_vm1, %v16648_v62 }
 0x1af   :  { %13171 = vmatmul.mubr.msk.bf16.gmra.mrb[8].mxu0 %vm39_vm1, %v16654_v13 }
 0x1b0   :  { %13174 = vmatprep.mubr.msk.bf16.mxu0 %vm39_vm1, %v16656_v14 }
 0x1b7   :  { %13175 = vmatmul.mubr.msk.bf16.gmra.mrb[12].mxu0 %vm39_vm1, %v16662_v27 }
 0x1b8   :  { %13178 = vmatprep.mubr.msk.bf16.mxu0 %vm39_vm1, %v16664_v30 }
 0x1bf   :  { %13179 = vmatmul.mubr.msk.bf16.gmra.mrb[16].mxu0 %vm39_vm1, %v16670_v41 }
 0x1c0   :  { %13182 = vmatprep.mubr.msk.bf16.mxu0 %vm39_vm1, %v16672_v42 }
 0x1c7   :  { %13183 = vmatmul.mubr.msk.bf16.gmra.mrb[20].mxu0 %vm39_vm1, %v16678_v56 }
 0x1c8   :  { %13186 = vmatprep.mubr.msk.bf16.mxu0 %vm39_vm1, %v16680_v46 }
 0x1cf   :  { %13187 = vmatmul.mubr.msk.bf16.gmra.mrb[24].mxu0 %vm39_vm1, %v16686_v5 }
 0x1d0   :  { %13190 = vmatprep.mubr.msk.bf16.mxu0 %vm39_vm1, %v16688_v7 }
 0x1d7   :  { %13191 = vmatmul.mubr.msk.bf16.gmra.mrb[28].mxu0 %vm39_vm1, %v16694_v36 }
 0x1d8   :  { %13194 = vmatprep.mubr.msk.bf16.mxu0 %vm39_vm1, %v1777_v35  ;;  %v1741_v35 = vld [vmem:[#allocation2 + $0x242] sm:$0xff] }
 0x1d9   :  { %v16717_v47 = vpack.c.bf16 %v1742_v38, %v1741_v35  ;;  %v1749_v35 = vld [vmem:[#allocation2 + $0x2a2] sm:$0xff]  ;;  %v1750_v38 = vld [vmem:[#allocation2 + $0x2aa] sm:$0xff] }
 0x1da   :  { %v16733_v21 = vpack.c.bf16 %v1750_v38, %v1749_v35  ;;  %v1757_v35 = vld [vmem:[#allocation2 + $0x302] sm:$0xff]  ;;  %v1758_v38 = vld [vmem:[#allocation2 + $0x30a] sm:$0xff] }
 0x1dc   :  { %18954 = vst [vmem:[#allocation13_spill] sm:$0xff] %v16733_v21 }
 0x1df   :  { %13195 = vmatmul.mubr.msk.bf16.gmra.mrb[32].mxu0 %vm39_vm1, %v16699_v49 }
 0x1e0   :  { %13198 = vmatprep.mubr.msk.bf16.mxu0 %vm39_vm1, %v16701_v53 }
 0x1e7   :  { %13199 = vmatmul.mubr.msk.bf16.gmra.mrb[36].mxu0 %vm39_vm1, %v16707_v17 }
 0x1e8   :  { %13202 = vmatprep.mubr.msk.bf16.mxu0 %vm39_vm1, %v16709_v18 }
 0x1ef   :  { %13203 = vmatmul.mubr.msk.bf16.gmra.mrb[40].mxu0 %vm39_vm1, %v16715_v40 }
 0x1f0   :  { %13206 = vmatprep.mubr.msk.bf16.mxu0 %vm39_vm1, %v16717_v47 }
 0x1f7   :  { %13207 = vmatmul.mubr.msk.bf16.gmra.mrb[44].mxu0 %vm39_vm1, %v16723_v4  ;;  %v16739_v4 = vpack.c.bf16 %v1752_v6, %v1751_v48  ;;  %v1759_v48 = vld [vmem:[#allocation2 + $0x31a] sm:$0xff]  ;;  %v1760_v6 = vld [vmem:[#allocation2 + $0x322] sm:$0xff] }
 0x1f8   :  { %13210 = vmatprep.mubr.msk.bf16.mxu0 %vm39_vm1, %v16725_v28  ;;  %v16741_v28 = vpack.c.bf16 %v1754_v3, %v1753_v59  ;;  %v16755_v59 = vpack.c.bf16 %v1760_v6, %v1759_v48  ;;  %v2992_v3 = vsel %vm1016_vm0, %v16638_v55, 0  ;;  %v2812_v55 = vld [vmem:[#allocation2 + $0xc9] sm:$0xff]  ;;  %v2815_v6 = vld [vmem:[#allocation2 + $0xf1] sm:$0xff] }
 0x1ff   :  { %13211 = vmatmul.mubr.msk.bf16.gmra.mrb[48].mxu0 %vm39_vm1, %v16731_v22  ;;  %v16747_v22 = vpack.c.bf16 %v1756_v26, %v1755_v25  ;;  %v11887_v25 = vld [vmem:[%s18929_s5 + $0xa] sm:$0x3]  ;;  %v2813_v26 = vld [vmem:[#allocation2 + $0xd9] sm:$0xff] }
 0x200   :  { %13214 = vmatprep.mubr.msk.bf16.mxu0 %vm39_vm1, %v16733_v21  ;;  %v16749_v21 = vpack.c.bf16 %v1758_v38, %v1757_v35  ;;  %v2814_v35 = vld [vmem:[#allocation2 + $0xe1] sm:$0xff] }
 0x201   :  { %v16868_v48 = vpack.c.bf16 %v2814_v35, %v2813_v26  ;;  %v2832_v26 = vld [vmem:[#allocation2 + $0x1e9] sm:$0xff]  ;;  %v2833_v35 = vld [vmem:[#allocation2 + $0x1f9] sm:$0xff] }
 0x207   :  { %13215 = vmatmul.mubr.msk.bf16.gmra.mrb[52].mxu0 %vm39_vm1, %v16739_v4 }
 0x208   :  { %13218 = vmatprep.mubr.msk.bf16.mxu0 %vm39_vm1, %v16741_v28 }
 0x20f   :  { %13219 = vmatmul.mubr.msk.bf16.gmra.mrb[56].mxu0 %vm39_vm1, %v16747_v22 }
 0x210   :  { %13222 = vmatprep.mubr.msk.bf16.mxu0 %vm39_vm1, %v16749_v21 }
 0x217   :  { %13223 = vmatmul.mubr.msk.bf16.gmra.mrb[60].mxu0 %vm39_vm1, %v16755_v59 }
 0x218   :  { %13228 = vmatprep.mubr.msk.bf16.mxu0 %vm39_vm1, %v16498_v43  ;;  %v2277_v43 = vld [vmem:[#allocation2 + $0x180] sm:$0xff] }
 0x21f   :  { %13229 = vmatmul.mubr.msk.bf16.vlgmr.msra.gmra.mrb[0].mxu0 %vm39_vm1, %v16502_v57  ;;  %v2278_v57 = vld [vmem:[#allocation2 + $0x188] sm:$0xff] }
 0x220   :  { %13293 = vmatpush3.bf16.msra.mxu0 %v2992_v3  ;;  %13232 = vmatprep.mubr.msk.bf16.mxu0 %vm39_vm1, %v16515_v60  ;;  %v16795_v60 = vpack.c.bf16 %v2278_v57, %v2277_v43  ;;  %v2816_v3 = vld [vmem:[#allocation2 + $0xf9] sm:$0xff]  ;;  %v2818_v43 = vld [vmem:[#allocation2 + $0x111] sm:$0xff] }
 0x221   :  { %15263 = vmatprep.subr.msk.bf16.mxu0 %vm1016_vm0, %v11887_v25  ;;  %v16874_v57 = vpack.c.bf16 %v2816_v3, %v2815_v6  ;;  %v2834_v6 = vld [vmem:[#allocation2 + $0x201] sm:$0xff] }
 0x227   :  { %13233 = vmatmul.mubr.msk.bf16.gmra.mrb[4].mxu0 %vm39_vm1, %v16517_v9  ;;  %v2309_v9 = vld [vmem:[#allocation2 + $0x330] sm:$0xff] }
 0x228   :  { %13236 = vmatprep.mubr.msk.bf16.mxu0 %vm39_vm1, %v16523_v1  ;;  %v2310_v1 = vld [vmem:[#allocation2 + $0x338] sm:$0xff] }
 0x22f   :  { %13237 = vmatmul.mubr.msk.bf16.gmra.mrb[8].mxu0 %vm39_vm1, %v16525_v2  ;;  %v2797_v2 = vld [vmem:[#allocation2 + $0x19] sm:$0xff] }
 0x230   :  { %13240 = vmatprep.mubr.msk.bf16.mxu0 %vm39_vm1, %v16531_v8  ;;  %v2798_v8 = vld [vmem:[#allocation2 + $0x21] sm:$0xff] }
 0x237   :  { %13241 = vmatmul.mubr.msk.bf16.gmra.mrb[12].mxu0 %vm39_vm1, %v16533_v10  ;;  %v16829_v10 = vpack.c.bf16 %v2310_v1, %v2309_v9  ;;  %v2819_v1 = vld [vmem:[#allocation2 + $0x121] sm:$0xff] }
 0x238   :  { %13244 = vmatprep.mubr.msk.bf16.mxu0 %vm39_vm1, %v16539_v15  ;;  %v2861_v15 = vpack.c.bf16 %v2798_v8, %v2797_v2  ;;  %v2820_v2 = vld [vmem:[#allocation2 + $0x129] sm:$0xff]  ;;  %v2821_v8 = vld [vmem:[#allocation2 + $0x139] sm:$0xff] }
 0x23f   :  { %13245 = vmatmul.mubr.msk.bf16.gmra.mrb[16].mxu0 %vm39_vm1, %v16541_v16  ;;  %v2799_v16 = vld [vmem:[#allocation2 + $0x31] sm:$0xff] }
 0x240   :  { %13248 = vmatprep.mubr.msk.bf16.mxu0 %vm39_vm1, %v16547_v23  ;;  %v2800_v23 = vld [vmem:[#allocation2 + $0x39] sm:$0xff] }
 0x247   :  { %13249 = vmatmul.mubr.msk.bf16.gmra.mrb[20].mxu0 %vm39_vm1, %v16549_v24  ;;  %v2801_v24 = vld [vmem:[#allocation2 + $0x49] sm:$0xff] }
 0x248   :  { %13252 = vmatprep.mubr.msk.bf16.mxu0 %vm39_vm1, %v16555_v31  ;;  %v2802_v31 = vld [vmem:[#allocation2 + $0x51] sm:$0xff] }
 0x24f   :  { %13253 = vmatmul.mubr.msk.bf16.gmra.mrb[24].mxu0 %vm39_vm1, %v16557_v32  ;;  %v16834_v32 = vpack.c.bf16 %v2800_v23, %v2799_v16  ;;  %v16882_v16 = vpack.c.bf16 %v2820_v2, %v2819_v1  ;;  %v2836_v1 = vld [vmem:[#allocation2 + $0x219] sm:$0xff]  ;;  %v2837_v2 = vld [vmem:[#allocation2 + $0x229] sm:$0xff] }
 0x250   :  { %13256 = vmatprep.mubr.msk.bf16.mxu0 %vm39_vm1, %v16563_v39  ;;  %v3542_v39 = vsel %vm1016_vm0, %v11887_v25, 0  ;;  %v2817_v25 = vld [vmem:[#allocation2 + $0x109] sm:$0xff] }
 0x251   :  { %v16876_v9 = vpack.c.bf16 %v2818_v43, %v2817_v25  ;;  %v16905_v25 = vpack.c.bf16 %v2834_v6, %v2833_v35  ;;  %v2835_v43 = vld [vmem:[#allocation2 + $0x211] sm:$0xff] }
 0x257   :  { %13257 = vmatmul.mubr.msk.bf16.gmra.mrb[28].mxu0 %vm39_vm1, %v16795_v60 }
 0x258   :  { %13260 = vmatprep.mubr.msk.bf16.mxu0 %vm39_vm1, %v16568_v44  ;;  %v16837_v44 = vpack.c.bf16 %v2802_v31, %v2801_v24  ;;  %v2823_v24 = vld [vmem:[#allocation2 + $0x151] sm:$0xff]  ;;  %v2824_v31 = vld [vmem:[#allocation2 + $0x159] sm:$0xff] }
 0x25f   :  { %13261 = vmatmul.mubr.msk.bf16.gmra.mrb[32].mxu0 %vm39_vm1, %v16570_v45  ;;  %v16842_v45 = vld [vmem:[%s18929_s5 + $0xc] sm:$0x3] }
 0x260   :  { %13264 = vmatprep.mubr.msk.bf16.mxu0 %vm39_vm1, %v16576_v51  ;;  %v2803_v51 = vld [vmem:[#allocation2 + $0x61] sm:$0xff] }
 0x267   :  { %13265 = vmatmul.mubr.msk.bf16.gmra.mrb[36].mxu0 %vm39_vm1, %v16578_v52  ;;  %v2804_v52 = vld [vmem:[#allocation2 + $0x69] sm:$0xff] }
 0x268   :  { %13268 = vmatprep.mubr.msk.bf16.mxu0 %vm39_vm1, %v16584_v58  ;;  %v2805_v58 = vld [vmem:[#allocation2 + $0x79] sm:$0xff] }
 0x26f   :  { %13269 = vmatmul.mubr.msk.bf16.gmra.mrb[40].mxu0 %vm39_vm1, %v16586_v37  ;;  %v2806_v37 = vld [vmem:[#allocation2 + $0x81] sm:$0xff] }
 0x270   :  { %13272 = vmatprep.mubr.msk.bf16.mxu0 %vm39_vm1, %v16592_v63  ;;  %v16850_v63 = vpack.c.bf16 %v2804_v52, %v2803_v51  ;;  %v2826_v51 = vld [vmem:[#allocation2 + $0x171] sm:$0xff]  ;;  %v16890_v52 = vpack.c.bf16 %v2824_v31, %v2823_v24  ;;  %v2839_v31 = vld [vmem:[#allocation2 + $0x241] sm:$0xff] }
 0x277   :  { %13273 = vmatmul.mubr.msk.bf16.gmra.mrb[44].mxu0 %vm39_vm1, %v16594_v0  ;;  %v16852_v0 = vpack.c.bf16 %v2806_v37, %v2805_v58  ;;  %v2827_v37 = vld [vmem:[#allocation2 + $0x181] sm:$0xff] }
 0x278   :  { %13276 = vmatprep.mubr.msk.bf16.mxu0 %vm39_vm1, %v16600_v11  ;;  %v2807_v11 = vld [vmem:[#allocation2 + $0x91] sm:$0xff] }
 0x27f   :  { %13277 = vmatmul.mubr.msk.bf16.gmra.mrb[48].mxu0 %vm39_vm1, %v16602_v12  ;;  %v2808_v12 = vld [vmem:[#allocation2 + $0x99] sm:$0xff] }
 0x280   :  { %13280 = vmatprep.mubr.msk.bf16.mxu0 %vm39_vm1, %v16608_v19  ;;  %v2809_v19 = vld [vmem:[#allocation2 + $0xa9] sm:$0xff] }
 0x287   :  { %13281 = vmatmul.mubr.msk.bf16.gmra.mrb[52].mxu0 %vm39_vm1, %v16610_v20  ;;  %v2810_v20 = vld [vmem:[#allocation2 + $0xb1] sm:$0xff] }
 0x288   :  { %13284 = vmatprep.mubr.msk.bf16.mxu0 %vm39_vm1, %v16616_v33  ;;  %v16858_v33 = vpack.c.bf16 %v2808_v12, %v2807_v11  ;;  %v2828_v11 = vld [vmem:[#allocation2 + $0x189] sm:$0xff] }
 0x289   :  { %v2829_v12 = vld [vmem:[#allocation2 + $0x1c9] sm:$0xff] }
 0x28f   :  { %13285 = vmatmul.mubr.msk.bf16.gmra.mrb[56].mxu0 %vm39_vm1, %v16618_v34  ;;  %v16860_v34 = vpack.c.bf16 %v2810_v20, %v2809_v19  ;;  %v2830_v19 = vld [vmem:[#allocation2 + $0x1d1] sm:$0xff]  ;;  %v16898_v20 = vpack.c.bf16 %v2828_v11, %v2827_v37  ;;  %v2842_v37 = vld [vmem:[#allocation2 + $0x261] sm:$0xff] }
 0x290   :  { %13288 = vmatprep.mubr.msk.bf16.mxu0 %vm39_vm1, %v16624_v29  ;;  %v2811_v29 = vld [vmem:[#allocation2 + $0xc1] sm:$0xff] }
 0x291   :  { %v16866_v38 = vpack.c.bf16 %v2812_v55, %v2811_v29  ;;  %v2877_v29 = vpack.c.bf16 %v2830_v19, %v2829_v12  ;;  %v2831_v55 = vld [vmem:[#allocation2 + $0x1e1] sm:$0xff]  ;;  %v2843_v19 = vld [vmem:[#allocation2 + $0x271] sm:$0xff] }
 0x292   :  { %v16903_v3 = vpack.c.bf16 %v2832_v26, %v2831_v55  ;;  %v2845_v55 = vld [vmem:[#allocation2 + $0x289] sm:$0xff]  ;;  %v2846_v26 = vld [vmem:[#allocation2 + $0x291] sm:$0xff] }
 0x293   :  { %v16929_v6 = vpack.c.bf16 %v2846_v26, %v2845_v55 }
 0x297   :  { %13289 = vmatmul.mubr.msk.bf16.gmra.mrb[60].mxu0 %vm39_vm1, %v16829_v10 }
 0x298   :  { %13294 = vmatprep.mubr.msk.bf16.mxu0 %vm39_vm1, %v2861_v15  ;;  %v2822_v15 = vld [vmem:[#allocation2 + $0x141] sm:$0xff] }
 0x299   :  { %v16884_v23 = vpack.c.bf16 %v2822_v15, %v2821_v8  ;;  %v2838_v8 = vld [vmem:[#allocation2 + $0x231] sm:$0xff]  ;;  %v16911_v15 = vpack.c.bf16 %v2836_v1, %v2835_v43  ;;  %v2847_v43 = vld [vmem:[#allocation2 + $0x2a1] sm:$0xff]  ;;  %v2848_v1 = vld [vmem:[#allocation2 + $0x2a9] sm:$0xff] }
 0x29a   :  { %v16913_v24 = vpack.c.bf16 %v2838_v8, %v2837_v2  ;;  %v2849_v2 = vld [vmem:[#allocation2 + $0x2b9] sm:$0xff]  ;;  %v2850_v8 = vld [vmem:[#allocation2 + $0x2c1] sm:$0xff] }
 0x29f   :  { %13295 = vmatmul.mubr.msk.bf16.vlgmr.msra.gmra.mrb[0].mxu0 %vm39_vm1, %v16834_v32 }
 0x2a0   :  { %13359 = vmatpush3.bf16.msra.mxu0 %v3542_v39  ;;  %13298 = vmatprep.mubr.msk.bf16.mxu0 %vm39_vm1, %v16837_v44  ;;  %v2825_v39 = vld [vmem:[#allocation2 + $0x169] sm:$0xff] }
 0x2a1   :  { %15264 = vmatprep.subr.msk.bf16.mxu0 %vm1016_vm0, %v16842_v45  ;;  %v16892_v58 = vpack.c.bf16 %v2826_v51, %v2825_v39  ;;  %v2840_v39 = vld [vmem:[#allocation2 + $0x249] sm:$0xff]  ;;  %v2841_v51 = vld [vmem:[#allocation2 + $0x259] sm:$0xff] }
 0x2a2   :  { %v16919_v11 = vpack.c.bf16 %v2840_v39, %v2839_v31  ;;  %v16921_v12 = vpack.c.bf16 %v2842_v37, %v2841_v51  ;;  %v16935_v31 = vpack.c.bf16 %v2848_v1, %v2847_v43  ;;  %v16937_v39 = vpack.c.bf16 %v2850_v8, %v2849_v2  ;;  %v2851_v51 = vld [vmem:[#allocation2 + $0x2d1] sm:$0xff]  ;;  %v2852_v37 = vld [vmem:[#allocation2 + $0x2d9] sm:$0xff]  ;;  %v2855_v43 = vld [vmem:[#allocation2 + $0x301] sm:$0xff] }
 0x2a3   :  { %v16943_v55 = vpack.c.bf16 %v2852_v37, %v2851_v51  ;;  %v2856_v1 = vld [vmem:[#allocation2 + $0x309] sm:$0xff]  ;;  %v2857_v2 = vld [vmem:[#allocation2 + $0x319] sm:$0xff]  ;;  %v2858_v8 = vld [vmem:[#allocation2 + $0x321] sm:$0xff] }
 0x2a4   :  { %18955 = vst [vmem:[#allocation14_spill] sm:$0xff] %v16935_v31  ;;  %18956 = vst [vmem:[#allocation15_spill] sm:$0xff] %v16937_v39  ;;  %v2859_v51 = vld [vmem:[#allocation2 + $0x331] sm:$0xff]  ;;  %v2860_v37 = vld [vmem:[#allocation2 + $0x339] sm:$0xff] }
 0x2a7   :  { %13299 = vmatmul.mubr.msk.bf16.gmra.mrb[4].mxu0 %vm39_vm1, %v16850_v63 }
 0x2a8   :  { %13302 = vmatprep.mubr.msk.bf16.mxu0 %vm39_vm1, %v16852_v0 }
 0x2af   :  { %13303 = vmatmul.mubr.msk.bf16.gmra.mrb[8].mxu0 %vm39_vm1, %v16858_v33 }
 0x2b0   :  { %13306 = vmatprep.mubr.msk.bf16.mxu0 %vm39_vm1, %v16860_v34 }
 0x2b7   :  { %13307 = vmatmul.mubr.msk.bf16.gmra.mrb[12].mxu0 %vm39_vm1, %v16866_v38 }
 0x2b8   :  { %13310 = vmatprep.mubr.msk.bf16.mxu0 %vm39_vm1, %v16868_v48 }
 0x2bf   :  { %13311 = vmatmul.mubr.msk.bf16.gmra.mrb[16].mxu0 %vm39_vm1, %v16874_v57 }
 0x2c0   :  { %13314 = vmatprep.mubr.msk.bf16.mxu0 %vm39_vm1, %v16876_v9 }
 0x2c7   :  { %13315 = vmatmul.mubr.msk.bf16.gmra.mrb[20].mxu0 %vm39_vm1, %v16882_v16 }
 0x2c8   :  { %13318 = vmatprep.mubr.msk.bf16.mxu0 %vm39_vm1, %v16884_v23 }
 0x2cf   :  { %13319 = vmatmul.mubr.msk.bf16.gmra.mrb[24].mxu0 %vm39_vm1, %v16890_v52 }
 0x2d0   :  { %13322 = vmatprep.mubr.msk.bf16.mxu0 %vm39_vm1, %v16892_v58 }
 0x2d7   :  { %13323 = vmatmul.mubr.msk.bf16.gmra.mrb[28].mxu0 %vm39_vm1, %v16898_v20 }
 0x2d8   :  { %13326 = vmatprep.mubr.msk.bf16.mxu0 %vm39_vm1, %v2877_v29  ;;  %v2844_v29 = vld [vmem:[#allocation2 + $0x279] sm:$0xff] }
 0x2d9   :  { %v16927_v35 = vpack.c.bf16 %v2844_v29, %v2843_v19  ;;  %v2853_v19 = vld [vmem:[#allocation2 + $0x2e9] sm:$0xff]  ;;  %v2854_v29 = vld [vmem:[#allocation2 + $0x2f1] sm:$0xff] }
 0x2da   :  { %v16945_v26 = vpack.c.bf16 %v2854_v29, %v2853_v19  ;;  %v16959_v19 = vpack.c.bf16 %v2860_v37, %v2859_v51  ;;  %v4093_v29 = vsel %vm1016_vm0, %v16842_v45, 0  ;;  %v3911_v51 = vld [vmem:[#allocation2 + $0xc8] sm:$0xff] }
 0x2df   :  { %13327 = vmatmul.mubr.msk.bf16.gmra.mrb[32].mxu0 %vm39_vm1, %v16903_v3 }
 0x2e0   :  { %13330 = vmatprep.mubr.msk.bf16.mxu0 %vm39_vm1, %v16905_v25 }
 0x2e7   :  { %13331 = vmatmul.mubr.msk.bf16.gmra.mrb[36].mxu0 %vm39_vm1, %v16911_v15 }
 0x2e8   :  { %13334 = vmatprep.mubr.msk.bf16.mxu0 %vm39_vm1, %v16913_v24 }
 0x2ef   :  { %13335 = vmatmul.mubr.msk.bf16.gmra.mrb[40].mxu0 %vm39_vm1, %v16919_v11 }
 0x2f0   :  { %13338 = vmatprep.mubr.msk.bf16.mxu0 %vm39_vm1, %v16921_v12 }
 0x2f7   :  { %13339 = vmatmul.mubr.msk.bf16.gmra.mrb[44].mxu0 %vm39_vm1, %v16927_v35 }
 0x2f8   :  { %13342 = vmatprep.mubr.msk.bf16.mxu0 %vm39_vm1, %v16929_v6 }
 0x2ff   :  { %13343 = vmatmul.mubr.msk.bf16.gmra.mrb[48].mxu0 %vm39_vm1, %v16935_v31  ;;  %v16951_v31 = vpack.c.bf16 %v2856_v1, %v2855_v43  ;;  %v11953_v43 = vld [vmem:[%s18929_s5 + $0xe] sm:$0x3]  ;;  %v3908_v1 = vld [vmem:[#allocation2 + $0xa8] sm:$0xff] }
 0x300   :  { %13346 = vmatprep.mubr.msk.bf16.mxu0 %vm39_vm1, %v16937_v39  ;;  %v16953_v39 = vpack.c.bf16 %v2858_v8, %v2857_v2  ;;  %v3909_v2 = vld [vmem:[#allocation2 + $0xb0] sm:$0xff]  ;;  %v3910_v8 = vld [vmem:[#allocation2 + $0xc0] sm:$0xff] }
 0x301   :  { %v3967_v37 = vpack.c.bf16 %v3909_v2, %v3908_v1  ;;  %v3931_v1 = vld [vmem:[#allocation2 + $0x1e8] sm:$0xff] }
 0x307   :  { %13347 = vmatmul.mubr.msk.bf16.gmra.mrb[52].mxu0 %vm39_vm1, %v16943_v55 }
 0x308   :  { %13350 = vmatprep.mubr.msk.bf16.mxu0 %vm39_vm1, %v16945_v26 }
 0x30f   :  { %13351 = vmatmul.mubr.msk.bf16.gmra.mrb[56].mxu0 %vm39_vm1, %v16951_v31 }
 0x310   :  { %13354 = vmatprep.mubr.msk.bf16.mxu0 %vm39_vm1, %v16953_v39 }
 0x317   :  { %13355 = vmatmul.mubr.msk.bf16.gmra.mrb[60].mxu0 %vm39_vm1, %v16959_v19 }
 0x318   :  { %13360 = vmatprep.mubr.msk.bf16.mxu0 %vm39_vm1, %v16629_v50  ;;  %v3377_v50 = vld [vmem:[#allocation2 + $0x182] sm:$0xff] }
 0x31f   :  { %13361 = vmatmul.mubr.msk.bf16.vlgmr.msra.gmra.mrb[0].mxu0 %vm39_vm1, %v16633_v54  ;;  %v3378_v54 = vld [vmem:[#allocation2 + $0x18a] sm:$0xff] }
 0x320   :  { %13425 = vmatpush3.bf16.msra.mxu0 %v4093_v29  ;;  %13364 = vmatprep.mubr.msk.bf16.mxu0 %vm39_vm1, %v16646_v61  ;;  %v16999_v61 = vpack.c.bf16 %v3378_v54, %v3377_v50  ;;  %v3968_v29 = vpack.c.bf16 %v3911_v51, %v3910_v8  ;;  %v3913_v50 = vld [vmem:[#allocation2 + $0xe0] sm:$0xff]  ;;  %v3914_v54 = vld [vmem:[#allocation2 + $0xf0] sm:$0xff]  ;;  %v3932_v8 = vld [vmem:[#allocation2 + $0x1f8] sm:$0xff] }
 0x321   :  { %15265 = vmatprep.subr.msk.bf16.mxu0 %vm1016_vm0, %v11953_v43  ;;  %v3933_v51 = vld [vmem:[#allocation2 + $0x200] sm:$0xff] }
 0x327   :  { %13365 = vmatmul.mubr.msk.bf16.gmra.mrb[4].mxu0 %vm39_vm1, %v16648_v62  ;;  %v18957_v62 = vld [vmem:[#allocation10_spill] sm:$0xff] }
 0x328   :  { %13368 = vmatprep.mubr.msk.bf16.mxu0 %vm39_vm1, %v16654_v13  ;;  %v18958_v13 = vld [vmem:[#allocation11_spill] sm:$0xff] }
 0x32f   :  { %13369 = vmatmul.mubr.msk.bf16.gmra.mrb[8].mxu0 %vm39_vm1, %v16656_v14  ;;  %v18959_v14 = vld [vmem:[#allocation12_spill] sm:$0xff] }
 0x330   :  { %13372 = vmatprep.mubr.msk.bf16.mxu0 %vm39_vm1, %v16662_v27  ;;  %v18960_v27 = vld [vmem:[#allocation13_spill] sm:$0xff] }
 0x337   :  { %13373 = vmatmul.mubr.msk.bf16.gmra.mrb[12].mxu0 %vm39_vm1, %v16664_v30  ;;  %v3409_v30 = vld [vmem:[#allocation2 + $0x332] sm:$0xff] }
 0x338   :  { %13376 = vmatprep.mubr.msk.bf16.mxu0 %vm39_vm1, %v16670_v41  ;;  %v3410_v41 = vld [vmem:[#allocation2 + $0x33a] sm:$0xff] }
 0x33f   :  { %13377 = vmatmul.mubr.msk.bf16.gmra.mrb[16].mxu0 %vm39_vm1, %v16672_v42  ;;  %v3898_v42 = vld [vmem:[#allocation2 + $0x30] sm:$0xff] }
 0x340   :  { %13380 = vmatprep.mubr.msk.bf16.mxu0 %vm39_vm1, %v16678_v56  ;;  %v3899_v56 = vld [vmem:[#allocation2 + $0x38] sm:$0xff] }
 0x347   :  { %13381 = vmatmul.mubr.msk.bf16.gmra.mrb[20].mxu0 %vm39_vm1, %v16680_v46  ;;  %v17033_v46 = vpack.c.bf16 %v3410_v41, %v3409_v30  ;;  %v3917_v30 = vld [vmem:[#allocation2 + $0x110] sm:$0xff]  ;;  %v3918_v41 = vld [vmem:[#allocation2 + $0x120] sm:$0xff] }
 0x348   :  { %13384 = vmatprep.mubr.msk.bf16.mxu0 %vm39_vm1, %v16686_v5  ;;  %v3962_v5 = vpack.c.bf16 %v3899_v56, %v3898_v42  ;;  %v3919_v42 = vld [vmem:[#allocation2 + $0x128] sm:$0xff] }
 0x34f   :  { %13385 = vmatmul.mubr.msk.bf16.gmra.mrb[24].mxu0 %vm39_vm1, %v16688_v7  ;;  %v3902_v7 = vld [vmem:[#allocation2 + $0x60] sm:$0xff] }
 0x350   :  { %13388 = vmatprep.mubr.msk.bf16.mxu0 %vm39_vm1, %v16694_v36  ;;  %v3903_v36 = vld [vmem:[#allocation2 + $0x68] sm:$0xff] }
 0x357   :  { %13389 = vmatmul.mubr.msk.bf16.gmra.mrb[28].mxu0 %vm39_vm1, %v16999_v61 }
 0x358   :  { %13392 = vmatprep.mubr.msk.bf16.mxu0 %vm39_vm1, %v16699_v49  ;;  %v4643_v49 = vsel %vm1016_vm0, %v11953_v43, 0  ;;  %v3912_v43 = vld [vmem:[#allocation2 + $0xd8] sm:$0xff] }
 0x35f   :  { %13393 = vmatmul.mubr.msk.bf16.gmra.mrb[32].mxu0 %vm39_vm1, %v16701_v53  ;;  %v3964_v53 = vpack.c.bf16 %v3903_v36, %v3902_v7  ;;  %v3922_v7 = vld [vmem:[#allocation2 + $0x150] sm:$0xff]  ;;  %v3923_v36 = vld [vmem:[#allocation2 + $0x158] sm:$0xff] }
 0x360   :  { %13396 = vmatprep.mubr.msk.bf16.mxu0 %vm39_vm1, %v16707_v17  ;;  %v17042_v17 = vld [vmem:[%s18929_s5 + $0x10] sm:$0x3] }
 0x367   :  { %13397 = vmatmul.mubr.msk.bf16.gmra.mrb[36].mxu0 %vm39_vm1, %v16709_v18  ;;  %v3904_v18 = vld [vmem:[#allocation2 + $0x78] sm:$0xff] }
 0x368   :  { %13400 = vmatprep.mubr.msk.bf16.mxu0 %vm39_vm1, %v16715_v40  ;;  %v3905_v40 = vld [vmem:[#allocation2 + $0x80] sm:$0xff] }
 0x36f   :  { %13401 = vmatmul.mubr.msk.bf16.gmra.mrb[40].mxu0 %vm39_vm1, %v16717_v47  ;;  %v3906_v47 = vld [vmem:[#allocation2 + $0x90] sm:$0xff] }
 0x370   :  { %13404 = vmatprep.mubr.msk.bf16.mxu0 %vm39_vm1, %v18957_v62  ;;  %v3915_v62 = vld [vmem:[#allocation2 + $0xf8] sm:$0xff] }
 0x377   :  { %13405 = vmatmul.mubr.msk.bf16.gmra.mrb[44].mxu0 %vm39_vm1, %v18958_v13  ;;  %v3969_v13 = vpack.c.bf16 %v3913_v50, %v3912_v43  ;;  %v3979_v43 = vpack.c.bf16 %v3933_v51, %v3932_v8  ;;  %v3954_v8 = vld [vmem:[#allocation2 + $0x300] sm:$0xff]  ;;  %v3955_v51 = vld [vmem:[#allocation2 + $0x308] sm:$0xff] }
 0x378   :  { %13408 = vmatprep.mubr.msk.bf16.mxu0 %vm39_vm1, %v18959_v14  ;;  %v3970_v14 = vpack.c.bf16 %v3915_v62, %v3914_v54  ;;  %v3937_v54 = vld [vmem:[#allocation2 + $0x230] sm:$0xff]  ;;  %v3938_v62 = vld [vmem:[#allocation2 + $0x240] sm:$0xff] }
 0x37f   :  { %13409 = vmatmul.mubr.msk.bf16.gmra.mrb[48].mxu0 %vm39_vm1, %v18960_v27  ;;  %v3916_v27 = vld [vmem:[#allocation2 + $0x108] sm:$0xff] }
 0x380   :  { %13412 = vmatprep.mubr.msk.bf16.mxu0 %vm39_vm1, %v16739_v4  ;;  %v3907_v4 = vld [vmem:[#allocation2 + $0x98] sm:$0xff]  ;;  %v3971_v56 = vpack.c.bf16 %v3917_v30, %v3916_v27 }
 0x381   :  { %v3966_v45 = vpack.c.bf16 %v3907_v4, %v3906_v47  ;;  %v3928_v47 = vld [vmem:[#allocation2 + $0x198] sm:$0xff]  ;;  %v3929_v4 = vld [vmem:[#allocation2 + $0x1a0] sm:$0xff] }
 0x382   :  { %v3940_v30 = vld [vmem:[#allocation2 + $0x258] sm:$0xff] }
 0x387   :  { %13413 = vmatmul.mubr.msk.bf16.gmra.mrb[52].mxu0 %vm39_vm1, %v16741_v28  ;;  %v3900_v28 = vld [vmem:[#allocation2 + $0x48] sm:$0xff] }
 0x388   :  { %13416 = vmatprep.mubr.msk.bf16.mxu0 %vm39_vm1, %v16747_v22  ;;  %v3901_v22 = vld [vmem:[#allocation2 + $0x50] sm:$0xff] }
 0x38f   :  { %13417 = vmatmul.mubr.msk.bf16.gmra.mrb[56].mxu0 %vm39_vm1, %v16749_v21  ;;  %v3963_v21 = vpack.c.bf16 %v3901_v22, %v3900_v28  ;;  %v3920_v28 = vld [vmem:[#allocation2 + $0x138] sm:$0xff]  ;;  %v3921_v22 = vld [vmem:[#allocation2 + $0x140] sm:$0xff] }
 0x390   :  { %13420 = vmatprep.mubr.msk.bf16.mxu0 %vm39_vm1, %v16755_v59  ;;  %v3965_v59 = vpack.c.bf16 %v3905_v40, %v3904_v18  ;;  %v3925_v18 = vld [vmem:[#allocation2 + $0x170] sm:$0xff] }
 0x397   :  { %13421 = vmatmul.mubr.msk.bf16.gmra.mrb[60].mxu0 %vm39_vm1, %v17033_v46 }
 0x398   :  { %13426 = vmatprep.mubr.msk.bf16.mxu0 %vm39_vm1, %v3962_v5  ;;  %v3972_v5 = vpack.c.bf16 %v3919_v42, %v3918_v41  ;;  %v3941_v41 = vld [vmem:[#allocation2 + $0x260] sm:$0xff]  ;;  %v3942_v42 = vld [vmem:[#allocation2 + $0x270] sm:$0xff] }
 0x39f   :  { %13427 = vmatmul.mubr.msk.bf16.vlgmr.msra.gmra.mrb[0].mxu0 %vm39_vm1, %v3963_v21  ;;  %v3973_v21 = vpack.c.bf16 %v3921_v22, %v3920_v28  ;;  %v3944_v22 = vld [vmem:[#allocation2 + $0x288] sm:$0xff] }
 0x3a0   :  { %13491 = vmatpush3.bf16.msra.mxu0 %v4643_v49  ;;  %13430 = vmatprep.mubr.msk.bf16.mxu0 %vm39_vm1, %v3964_v53  ;;  %v3974_v49 = vpack.c.bf16 %v3923_v36, %v3922_v7  ;;  %v3924_v53 = vld [vmem:[#allocation2 + $0x168] sm:$0xff]  ;;  %v3945_v7 = vld [vmem:[#allocation2 + $0x290] sm:$0xff]  ;;  %v3946_v36 = vld [vmem:[#allocation2 + $0x2a0] sm:$0xff] }
 0x3a1   :  { %15266 = vmatprep.subr.msk.bf16.mxu0 %vm1016_vm0, %v17042_v17  ;;  %v3975_v40 = vpack.c.bf16 %v3925_v18, %v3924_v53  ;;  %v3948_v18 = vld [vmem:[#allocation2 + $0x2b8] sm:$0xff] }
 0x3a7   :  { %13431 = vmatmul.mubr.msk.bf16.gmra.mrb[4].mxu0 %vm39_vm1, %v3965_v59  ;;  %v3977_v59 = vpack.c.bf16 %v3929_v4, %v3928_v47  ;;  %v3950_v47 = vld [vmem:[#allocation2 + $0x2d0] sm:$0xff]  ;;  %v3951_v4 = vld [vmem:[#allocation2 + $0x2d8] sm:$0xff] }
 0x3a8   :  { %13434 = vmatprep.mubr.msk.bf16.mxu0 %vm39_vm1, %v3966_v45  ;;  %v3930_v45 = vld [vmem:[#allocation2 + $0x1e0] sm:$0xff] }
 0x3a9   :  { %v3978_v2 = vpack.c.bf16 %v3931_v1, %v3930_v45  ;;  %v3988_v45 = vpack.c.bf16 %v3951_v4, %v3950_v47  ;;  %v3952_v1 = vld [vmem:[#allocation2 + $0x2e8] sm:$0xff]  ;;  %v5023_v47 = vld [vmem:[#allocation2 + $0x15a] sm:$0xff] }
 0x3af   :  { %13435 = vmatmul.mubr.msk.bf16.gmra.mrb[8].mxu0 %vm39_vm1, %v3967_v37  ;;  %v3934_v37 = vld [vmem:[#allocation2 + $0x210] sm:$0xff] }
 0x3b0   :  { %13438 = vmatprep.mubr.msk.bf16.mxu0 %vm39_vm1, %v3968_v29  ;;  %v3935_v29 = vld [vmem:[#allocation2 + $0x218] sm:$0xff] }
 0x3b1   :  { %v3980_v50 = vpack.c.bf16 %v3935_v29, %v3934_v37  ;;  %v3990_v29 = vpack.c.bf16 %v3955_v51, %v3954_v8  ;;  %v5028_v8 = vld [vmem:[#allocation2 + $0x19a] sm:$0xff]  ;;  %v5029_v51 = vld [vmem:[#allocation2 + $0x1a2] sm:$0xff] }
 0x3b7   :  { %13439 = vmatmul.mubr.msk.bf16.gmra.mrb[12].mxu0 %vm39_vm1, %v3969_v13  ;;  %v3939_v13 = vld [vmem:[#allocation2 + $0x248] sm:$0xff] }
 0x3b8   :  { %13442 = vmatprep.mubr.msk.bf16.mxu0 %vm39_vm1, %v3970_v14  ;;  %v3982_v27 = vpack.c.bf16 %v3939_v13, %v3938_v62  ;;  %v3961_v62 = vld [vmem:[#allocation2 + $0x350] sm:$0xff] }
 0x3bf   :  { %13443 = vmatmul.mubr.msk.bf16.gmra.mrb[16].mxu0 %vm39_vm1, %v3971_v56  ;;  %v3943_v56 = vld [vmem:[#allocation2 + $0x278] sm:$0xff] }
 0x3c0   :  { %13446 = vmatprep.mubr.msk.bf16.mxu0 %vm39_vm1, %v3972_v5  ;;  %v3983_v5 = vpack.c.bf16 %v3941_v41, %v3940_v30  ;;  %v3984_v28 = vpack.c.bf16 %v3943_v56, %v3942_v42  ;;  %v5013_v30 = vld [vmem:[#allocation2 + $0xe2] sm:$0xff]  ;;  %v5014_v41 = vld [vmem:[#allocation2 + $0xf2] sm:$0xff]  ;;  %v5015_v42 = vld [vmem:[#allocation2 + $0xfa] sm:$0xff] }
 0x3c7   :  { %13447 = vmatmul.mubr.msk.bf16.gmra.mrb[20].mxu0 %vm39_vm1, %v3973_v21  ;;  %v3947_v21 = vld [vmem:[#allocation2 + $0x2a8] sm:$0xff] }
 0x3c8   :  { %13450 = vmatprep.mubr.msk.bf16.mxu0 %vm39_vm1, %v3974_v49  ;;  %v3985_v49 = vpack.c.bf16 %v3945_v7, %v3944_v22  ;;  %v3986_v53 = vpack.c.bf16 %v3947_v21, %v3946_v36  ;;  %v5017_v22 = vld [vmem:[#allocation2 + $0x112] sm:$0xff]  ;;  %v5018_v7 = vld [vmem:[#allocation2 + $0x122] sm:$0xff]  ;;  %v5019_v36 = vld [vmem:[#allocation2 + $0x12a] sm:$0xff] }
 0x3cf   :  { %13451 = vmatmul.mubr.msk.bf16.gmra.mrb[24].mxu0 %vm39_vm1, %v3975_v40  ;;  %v3949_v40 = vld [vmem:[#allocation2 + $0x2c0] sm:$0xff] }
 0x3d0   :  { %13454 = vmatprep.mubr.msk.bf16.mxu0 %vm39_vm1, %v16795_v60  ;;  %v3936_v60 = vld [vmem:[#allocation2 + $0x228] sm:$0xff] }
 0x3d1   :  { %v3981_v14 = vpack.c.bf16 %v3937_v54, %v3936_v60  ;;  %v3960_v54 = vld [vmem:[#allocation2 + $0x348] sm:$0xff] }
 0x3d2   :  { %v3993_v13 = vpack.c.bf16 %v3961_v62, %v3960_v54  ;;  %v5033_v54 = vld [vmem:[#allocation2 + $0x202] sm:$0xff]  ;;  %v5034_v62 = vld [vmem:[#allocation2 + $0x212] sm:$0xff] }
 0x3d7   :  { %13455 = vmatmul.mubr.msk.bf16.gmra.mrb[28].mxu0 %vm39_vm1, %v3977_v59  ;;  %v3987_v59 = vpack.c.bf16 %v3949_v40, %v3948_v18  ;;  %v5021_v18 = vld [vmem:[#allocation2 + $0x142] sm:$0xff]  ;;  %v5022_v40 = vld [vmem:[#allocation2 + $0x152] sm:$0xff] }
 0x3d8   :  { %13458 = vmatprep.mubr.msk.bf16.mxu0 %vm39_vm1, %v3978_v2  ;;  %v3953_v2 = vld [vmem:[#allocation2 + $0x2f0] sm:$0xff] }
 0x3d9   :  { %v3989_v37 = vpack.c.bf16 %v3953_v2, %v3952_v1  ;;  %v5025_v1 = vld [vmem:[#allocation2 + $0x172] sm:$0xff] }
 0x3df   :  { %13459 = vmatmul.mubr.msk.bf16.gmra.mrb[32].mxu0 %vm39_vm1, %v3979_v43  ;;  %v3956_v43 = vld [vmem:[#allocation2 + $0x318] sm:$0xff] }
 0x3e0   :  { %13462 = vmatprep.mubr.msk.bf16.mxu0 %vm39_vm1, %v3980_v50  ;;  %v3957_v50 = vld [vmem:[#allocation2 + $0x320] sm:$0xff] }
 0x3e1   :  { %v3991_v60 = vpack.c.bf16 %v3957_v50, %v3956_v43  ;;  %v5031_v43 = vld [vmem:[#allocation2 + $0x1ea] sm:$0xff] }
 0x3e7   :  { %13463 = vmatmul.mubr.msk.bf16.gmra.mrb[36].mxu0 %vm39_vm1, %v3981_v14  ;;  %v5193_v14 = vsel %vm1016_vm0, %v17042_v17, 0 }
 0x3e8   :  { %13466 = vmatprep.mubr.msk.bf16.mxu0 %vm39_vm1, %v3982_v27  ;;  %v5012_v27 = vld [vmem:[#allocation2 + $0xda] sm:$0xff] }
 0x3e9   :  { %v5069_v56 = vpack.c.bf16 %v5013_v30, %v5012_v27  ;;  %v5056_v30 = vld [vmem:[#allocation2 + $0x31a] sm:$0xff] }
 0x3ef   :  { %13467 = vmatmul.mubr.msk.bf16.gmra.mrb[40].mxu0 %vm39_vm1, %v3983_v5  ;;  %v5070_v5 = vpack.c.bf16 %v5015_v42, %v5014_v41  ;;  %v5057_v41 = vld [vmem:[#allocation2 + $0x322] sm:$0xff] }
 0x3f0   :  { %13470 = vmatprep.mubr.msk.bf16.mxu0 %vm39_vm1, %v3984_v28  ;;  %v5016_v28 = vld [vmem:[#allocation2 + $0x10a] sm:$0xff]  ;;  %v5091_v42 = vpack.c.bf16 %v5057_v41, %v5056_v30 }
 0x3f1   :  { %v5071_v21 = vpack.c.bf16 %v5017_v22, %v5016_v28  ;;  %v15278_v22 = vld [vmem:[%s18930_s6 + $0x18] sm:$0xff]  }
 0x3f7   :  { %13471 = vmatmul.mubr.msk.bf16.gmra.mrb[44].mxu0 %vm39_vm1, %v3985_v49  ;;  %v5072_v49 = vpack.c.bf16 %v5019_v36, %v5018_v7 }
 0x3f8   :  { %13474 = vmatprep.mubr.msk.bf16.mxu0 %vm39_vm1, %v3986_v53  ;;  %v5020_v53 = vld [vmem:[#allocation2 + $0x13a] sm:$0xff] }
 0x3f9   :  { %v5073_v4 = vpack.c.bf16 %v5021_v18, %v5020_v53  ;;  %v18964_v53 = vld [vmem:[#allocation8_spill] sm:$0xff] }
 0x3ff   :  { %13475 = vmatmul.mubr.msk.bf16.gmra.mrb[48].mxu0 %vm39_vm1, %v3987_v59  ;;  %v5074_v59 = vpack.c.bf16 %v5023_v47, %v5022_v40 }
 0x400   :  { %13478 = vmatprep.mubr.msk.bf16.mxu0 %vm39_vm1, %v3988_v45  ;;  %v5024_v45 = vld [vmem:[#allocation2 + $0x16a] sm:$0xff] }
 0x401   :  { %v5075_v2 = vpack.c.bf16 %v5025_v1, %v5024_v45 }
 0x407   :  { %13479 = vmatmul.mubr.msk.bf16.gmra.mrb[52].mxu0 %vm39_vm1, %v3989_v37  ;;  %v5077_v37 = vpack.c.bf16 %v5029_v51, %v5028_v8 }
 0x408   :  { %13482 = vmatprep.mubr.msk.bf16.mxu0 %vm39_vm1, %v3990_v29  ;;  %v5030_v29 = vld [vmem:[#allocation2 + $0x1e2] sm:$0xff] }
 0x409   :  { %v5078_v50 = vpack.c.bf16 %v5031_v43, %v5030_v29 }
 0x40f   :  { %13483 = vmatmul.mubr.msk.bf16.gmra.mrb[56].mxu0 %vm39_vm1, %v3991_v60  ;;  %v5032_v60 = vld [vmem:[#allocation2 + $0x1fa] sm:$0xff] }
 0x410   :  { %13486 = vmatprep.mubr.msk.bf16.mxu0 %vm39_vm1, %v16829_v10  ;;  %v4478_v10 = vld [vmem:[#allocation2 + $0x199] sm:$0xff] }
 0x417   :  { %13487 = vmatmul.mubr.msk.bf16.gmra.mrb[60].mxu0 %vm39_vm1, %v3993_v13  ;;  %v5035_v13 = vld [vmem:[#allocation2 + $0x21a] sm:$0xff] }
 0x418   :  { %13492 = vmatprep.mubr.msk.bf16.mxu0 %vm39_vm1, %v16834_v32  ;;  %v4479_v32 = vld [vmem:[#allocation2 + $0x1a1] sm:$0xff] }
 0x41f   :  { %13493 = vmatmul.mubr.msk.bf16.vlgmr.msra.gmra.mrb[0].mxu0 %vm39_vm1, %v16837_v44  ;;  %v4527_v44 = vpack.c.bf16 %v4479_v32, %v4478_v10  ;;  %v5080_v10 = vpack.c.bf16 %v5035_v13, %v5034_v62  ;;  %v5037_v32 = vld [vmem:[#allocation2 + $0x232] sm:$0xff] }
 0x420   :  { %13557 = vmatpush3.bf16.msra.mxu0 %v5193_v14  ;;  %13496 = vmatprep.mubr.msk.bf16.mxu0 %vm39_vm1, %v16850_v63  ;;  %v18961_v63 = vld [vmem:[#allocation14_spill] sm:$0xff]  ;;  %v5079_v14 = vpack.c.bf16 %v5033_v54, %v5032_v60 }
 0x427   :  { %13497 = vmatmul.mubr.msk.bf16.gmra.mrb[4].mxu0 %vm39_vm1, %v16852_v0  ;;  %v18962_v0 = vld [vmem:[#allocation15_spill] sm:$0xff] }
 0x428   :  { %13500 = vmatprep.mubr.msk.bf16.mxu0 %vm39_vm1, %v16858_v33  ;;  %v4510_v33 = vld [vmem:[#allocation2 + $0x349] sm:$0xff] }
 0x42f   :  { %13501 = vmatmul.mubr.msk.bf16.gmra.mrb[8].mxu0 %vm39_vm1, %v16860_v34  ;;  %v4511_v34 = vld [vmem:[#allocation2 + $0x351] sm:$0xff] }
 0x430   :  { %13504 = vmatprep.mubr.msk.bf16.mxu0 %vm39_vm1, %v16866_v38  ;;  %v4543_v38 = vpack.c.bf16 %v4511_v34, %v4510_v33  ;;  %v5040_v34 = vld [vmem:[#allocation2 + $0x25a] sm:$0xff] }
 0x437   :  { %13505 = vmatmul.mubr.msk.bf16.gmra.mrb[12].mxu0 %vm39_vm1, %v16868_v48  ;;  %v4998_v48 = vld [vmem:[#allocation2 + $0x32] sm:$0xff] }
 0x438   :  { %13508 = vmatprep.mubr.msk.bf16.mxu0 %vm39_vm1, %v16874_v57  ;;  %v4999_v57 = vld [vmem:[#allocation2 + $0x3a] sm:$0xff] }
 0x43f   :  { %13509 = vmatmul.mubr.msk.bf16.gmra.mrb[16].mxu0 %vm39_vm1, %v16876_v9  ;;  %v5062_v9 = vpack.c.bf16 %v4999_v57, %v4998_v48  ;;  %v5042_v48 = vld [vmem:[#allocation2 + $0x272] sm:$0xff]  ;;  %v5043_v57 = vld [vmem:[#allocation2 + $0x27a] sm:$0xff] }
 0x440   :  { %13512 = vmatprep.mubr.msk.bf16.mxu0 %vm39_vm1, %v16882_v16  ;;  %v18963_v16 = vmov 0.0  }
 0x441   :  { %157 = vst.msk [vmem:[#allocation3 + $0x30] sm:$0xff] %vm149_vm3, %v18963_v16  ;;  %158 = vst.msk [vmem:[#allocation3 + $0x38] sm:$0xff] %vm149_vm3, %v18963_v16 }
 0x442   :  { %150 = vst.msk [vmem:[#allocation3] sm:$0xff] %vm149_vm3, %v18963_v16  ;;  %151 = vst.msk [vmem:[#allocation3 + $0x8] sm:$0xff] %vm149_vm3, %v18963_v16 }
 0x443   :  { %154 = vst.msk [vmem:[#allocation3 + $0x18] sm:$0xff] %vm149_vm3, %v18963_v16  ;;  %155 = vst.msk [vmem:[#allocation3 + $0x20] sm:$0xff] %vm149_vm3, %v18963_v16 }
 0x444   :  { %160 = vst.msk [vmem:[#allocation3 + $0x48] sm:$0xff] %vm149_vm3, %v18963_v16  ;;  %161 = vst.msk [vmem:[#allocation3 + $0x50] sm:$0xff] %vm149_vm3, %v18963_v16 }
 0x445   :  { %163 = vst.msk [vmem:[#allocation3 + $0x60] sm:$0xff] %vm149_vm3, %v18963_v16  ;;  %164 = vst.msk [vmem:[#allocation3 + $0x68] sm:$0xff] %vm149_vm3, %v18963_v16 }
 0x446   :  { %166 = vst.msk [vmem:[#allocation3 + $0x78] sm:$0xff] %vm149_vm3, %v18963_v16  ;;  %167 = vst.msk [vmem:[#allocation3 + $0x80] sm:$0xff] %vm149_vm3, %v18963_v16 }
 0x447   :  { %13513 = vmatmul.mubr.msk.bf16.gmra.mrb[20].mxu0 %vm39_vm1, %v16884_v23  ;;  %169 = vst.msk [vmem:[#allocation3 + $0x90] sm:$0xff] %vm149_vm3, %v18963_v16  ;;  %170 = vst.msk [vmem:[#allocation3 + $0x98] sm:$0xff] %vm149_vm3, %v18963_v16  ;;  %v5000_v23 = vld [vmem:[#allocation2 + $0x4a] sm:$0xff] }
 0x448   :  { %13516 = vmatprep.mubr.msk.bf16.mxu0 %vm39_vm1, %v16890_v52  ;;  %172 = vst.msk [vmem:[#allocation3 + $0xa8] sm:$0xff] %vm149_vm3, %v18963_v16  ;;  %173 = vst.msk [vmem:[#allocation3 + $0xb0] sm:$0xff] %vm149_vm3, %v18963_v16  ;;  %v5001_v52 = vld [vmem:[#allocation2 + $0x52] sm:$0xff] }
 0x449   :  { %175 = vst.msk [vmem:[#allocation3 + $0xc0] sm:$0xff] %vm149_vm3, %v18963_v16  ;;  %176 = vst.msk [vmem:[#allocation3 + $0xc8] sm:$0xff] %vm149_vm3, %v18963_v16  ;;  %v6260_v7 = vld [vmem:[#allocation3 + $0x1] sm:$0xff] }
 0x44a   :  { %178 = vst.msk [vmem:[#allocation3 + $0xd8] sm:$0xff] %vm149_vm3, %v18963_v16  ;;  %179 = vst.msk [vmem:[#allocation3 + $0xe0] sm:$0xff] %vm149_vm3, %v18963_v16 }
 0x44b   :  { %181 = vst.msk [vmem:[#allocation3 + $0xf0] sm:$0xff] %vm149_vm3, %v18963_v16  ;;  %182 = vst.msk [vmem:[#allocation3 + $0xf8] sm:$0xff] %vm149_vm3, %v18963_v16 }
 0x44c   :  { %184 = vst.msk [vmem:[#allocation3 + $0x108] sm:$0xff] %vm149_vm3, %v18963_v16  ;;  %185 = vst.msk [vmem:[#allocation3 + $0x110] sm:$0xff] %vm149_vm3, %v18963_v16 }
 0x44d   :  { %187 = vst.msk [vmem:[#allocation3 + $0x120] sm:$0xff] %vm149_vm3, %v18963_v16  ;;  %188 = vst.msk [vmem:[#allocation3 + $0x128] sm:$0xff] %vm149_vm3, %v18963_v16 }
 0x44e   :  { %190 = vst.msk [vmem:[#allocation3 + $0x138] sm:$0xff] %vm149_vm3, %v18963_v16  ;;  %191 = vst.msk [vmem:[#allocation3 + $0x140] sm:$0xff] %vm149_vm3, %v18963_v16 }
 0x44f   :  { %13517 = vmatmul.mubr.msk.bf16.gmra.mrb[24].mxu0 %vm39_vm1, %v16892_v58  ;;  %193 = vst.msk [vmem:[#allocation3 + $0x150] sm:$0xff] %vm149_vm3, %v18963_v16  ;;  %194 = vst.msk [vmem:[#allocation3 + $0x158] sm:$0xff] %vm149_vm3, %v18963_v16  ;;  %v5002_v58 = vld [vmem:[#allocation2 + $0x62] sm:$0xff] }
 0x450   :  { %13520 = vmatprep.mubr.msk.bf16.mxu0 %vm39_vm1, %v16898_v20  ;;  %196 = vst.msk [vmem:[#allocation3 + $0x168] sm:$0xff] %vm149_vm3, %v18963_v16  ;;  %197 = vst.msk [vmem:[#allocation3 + $0x170] sm:$0xff] %vm149_vm3, %v18963_v16  ;;  %v5003_v20 = vld [vmem:[#allocation2 + $0x6a] sm:$0xff] }
 0x451   :  { %199 = vst.msk [vmem:[#allocation3 + $0x180] sm:$0xff] %vm149_vm3, %v18963_v16  ;;  %200 = vst.msk [vmem:[#allocation3 + $0x188] sm:$0xff] %vm149_vm3, %v18963_v16 }
 0x452   :  { %202 = vst.msk [vmem:[#allocation3 + $0x198] sm:$0xff] %vm149_vm3, %v18963_v16  ;;  %203 = vst.msk [vmem:[#allocation3 + $0x1a0] sm:$0xff] %vm149_vm3, %v18963_v16 }
 0x453   :  { %205 = vst.msk [vmem:[#allocation3 + $0x1b0] sm:$0xff] %vm149_vm3, %v18963_v16  ;;  %206 = vst.msk [vmem:[#allocation3 + $0x1b8] sm:$0xff] %vm149_vm3, %v18963_v16 }
 0x454   :  { %208 = vst.msk [vmem:[#allocation3 + $0x1c8] sm:$0xff] %vm149_vm3, %v18963_v16  ;;  %209 = vst.msk [vmem:[#allocation3 + $0x1d0] sm:$0xff] %vm149_vm3, %v18963_v16 }
 0x455   :  { %211 = vst.msk [vmem:[#allocation3 + $0x1e0] sm:$0xff] %vm149_vm3, %v18963_v16  ;;  %212 = vst.msk [vmem:[#allocation3 + $0x1e8] sm:$0xff] %vm149_vm3, %v18963_v16 }
 0x456   :  { %214 = vst.msk [vmem:[#allocation3 + $0x1f8] sm:$0xff] %vm149_vm3, %v18963_v16  ;;  %215 = vst.msk [vmem:[#allocation3 + $0x200] sm:$0xff] %vm149_vm3, %v18963_v16 }
 0x457   :  { %13521 = vmatmul.mubr.msk.bf16.gmra.mrb[28].mxu0 %vm39_vm1, %v4527_v44  ;;  %217 = vst.msk [vmem:[#allocation3 + $0x210] sm:$0xff] %vm149_vm3, %v18963_v16  ;;  %218 = vst.msk [vmem:[#allocation3 + $0x218] sm:$0xff] %vm149_vm3, %v18963_v16  ;;  %v5038_v44 = vld [vmem:[#allocation2 + $0x242] sm:$0xff] }
 0x458   :  { %13524 = vmatprep.mubr.msk.bf16.mxu0 %vm39_vm1, %v16903_v3  ;;  %220 = vst.msk [vmem:[#allocation3 + $0x228] sm:$0xff] %vm149_vm3, %v18963_v16  ;;  %221 = vst.msk [vmem:[#allocation3 + $0x230] sm:$0xff] %vm149_vm3, %v18963_v16  ;;  %v5063_v3 = vpack.c.bf16 %v5001_v52, %v5000_v23  ;;  %v5084_v23 = vpack.c.bf16 %v5043_v57, %v5042_v48  ;;  %v5044_v52 = vld [vmem:[#allocation2 + $0x28a] sm:$0xff] }
 0x459   :  { %223 = vst.msk [vmem:[#allocation3 + $0x240] sm:$0xff] %vm149_vm3, %v18963_v16  ;;  %224 = vst.msk [vmem:[#allocation3 + $0x248] sm:$0xff] %vm149_vm3, %v18963_v16 }
 0x45a   :  { %226 = vst.msk [vmem:[#allocation3 + $0x258] sm:$0xff] %vm149_vm3, %v18963_v16  ;;  %227 = vst.msk [vmem:[#allocation3 + $0x260] sm:$0xff] %vm149_vm3, %v18963_v16 }
 0x45b   :  { %229 = vst.msk [vmem:[#allocation3 + $0x270] sm:$0xff] %vm149_vm3, %v18963_v16  ;;  %230 = vst.msk [vmem:[#allocation3 + $0x278] sm:$0xff] %vm149_vm3, %v18963_v16 }
 0x45c   :  { %232 = vst.msk [vmem:[#allocation3 + $0x288] sm:$0xff] %vm149_vm3, %v18963_v16  ;;  %233 = vst.msk [vmem:[#allocation3 + $0x290] sm:$0xff] %vm149_vm3, %v18963_v16 }
 0x45d   :  { %235 = vst.msk [vmem:[#allocation3 + $0x2a0] sm:$0xff] %vm149_vm3, %v18963_v16  ;;  %236 = vst.msk [vmem:[#allocation3 + $0x2a8] sm:$0xff] %vm149_vm3, %v18963_v16 }
 0x45e   :  { %238 = vst.msk [vmem:[#allocation3 + $0x2b8] sm:$0xff] %vm149_vm3, %v18963_v16  ;;  %239 = vst.msk [vmem:[#allocation3 + $0x2c0] sm:$0xff] %vm149_vm3, %v18963_v16 }
 0x45f   :  { %13525 = vmatmul.mubr.msk.bf16.gmra.mrb[32].mxu0 %vm39_vm1, %v16905_v25  ;;  %241 = vst.msk [vmem:[#allocation3 + $0x2d0] sm:$0xff] %vm149_vm3, %v18963_v16  ;;  %242 = vst.msk [vmem:[#allocation3 + $0x2d8] sm:$0xff] %vm149_vm3, %v18963_v16  ;;  %v5064_v25 = vpack.c.bf16 %v5003_v20, %v5002_v58  ;;  %v5045_v58 = vld [vmem:[#allocation2 + $0x292] sm:$0xff]  ;;  %v5046_v20 = vld [vmem:[#allocation2 + $0x2a2] sm:$0xff] }
 0x460   :  { %13528 = vmatprep.mubr.msk.bf16.mxu0 %vm39_vm1, %v16911_v15  ;;  %244 = vst.msk [vmem:[#allocation3 + $0x2e8] sm:$0xff] %vm149_vm3, %v18963_v16  ;;  %245 = vst.msk [vmem:[#allocation3 + $0x2f0] sm:$0xff] %vm149_vm3, %v18963_v16  ;;  %v5004_v15 = vld [vmem:[#allocation2 + $0x7a] sm:$0xff] }
 0x461   :  { %247 = vst.msk [vmem:[#allocation3 + $0x300] sm:$0xff] %vm149_vm3, %v18963_v16  ;;  %248 = vst.msk [vmem:[#allocation3 + $0x308] sm:$0xff] %vm149_vm3, %v18963_v16 }
 0x462   :  { %250 = vst.msk [vmem:[#allocation3 + $0x318] sm:$0xff] %vm149_vm3, %v18963_v16  ;;  %251 = vst.msk [vmem:[#allocation3 + $0x320] sm:$0xff] %vm149_vm3, %v18963_v16 }
 0x463   :  { %253 = vst.msk [vmem:[#allocation3 + $0x330] sm:$0xff] %vm149_vm3, %v18963_v16  ;;  %254 = vst.msk [vmem:[#allocation3 + $0x338] sm:$0xff] %vm149_vm3, %v18963_v16 }
 0x464   :  { %256 = vst.msk [vmem:[#allocation3 + $0x348] sm:$0xff] %vm149_vm3, %v18963_v16  ;;  %257 = vst.msk [vmem:[#allocation3 + $0x350] sm:$0xff] %vm149_vm3, %v18963_v16 }
 0x465   :  { %159 = vst.msk [vmem:[#allocation3 + $0x40] sm:$0x3] %vm152_vm4, %v18963_v16  ;;  %153 = vst.msk [vmem:[#allocation3 + $0x10] sm:$0x3] %vm152_vm4, %v18963_v16 }
 0x466   :  { %156 = vst.msk [vmem:[#allocation3 + $0x28] sm:$0x3] %vm152_vm4, %v18963_v16  ;;  %162 = vst.msk [vmem:[#allocation3 + $0x58] sm:$0x3] %vm152_vm4, %v18963_v16 }
 0x467   :  { %13529 = vmatmul.mubr.msk.bf16.gmra.mrb[36].mxu0 %vm39_vm1, %v16913_v24  ;;  %v5005_v24 = vld [vmem:[#allocation2 + $0x82] sm:$0xff]  ;;  %165 = vst.msk [vmem:[#allocation3 + $0x70] sm:$0x3] %vm152_vm4, %v18963_v16  ;;  %168 = vst.msk [vmem:[#allocation3 + $0x88] sm:$0x3] %vm152_vm4, %v18963_v16 }
 0x468   :  { %13532 = vmatprep.mubr.msk.bf16.mxu0 %vm39_vm1, %v16919_v11  ;;  %v5006_v11 = vld [vmem:[#allocation2 + $0x92] sm:$0xff]  ;;  %171 = vst.msk [vmem:[#allocation3 + $0xa0] sm:$0x3] %vm152_vm4, %v18963_v16  ;;  %174 = vst.msk [vmem:[#allocation3 + $0xb8] sm:$0x3] %vm152_vm4, %v18963_v16 }
 0x469   :  { %177 = vst.msk [vmem:[#allocation3 + $0xd0] sm:$0x3] %vm152_vm4, %v18963_v16  ;;  %180 = vst.msk [vmem:[#allocation3 + $0xe8] sm:$0x3] %vm152_vm4, %v18963_v16 }
 0x46a   :  { %183 = vst.msk [vmem:[#allocation3 + $0x100] sm:$0x3] %vm152_vm4, %v18963_v16  ;;  %186 = vst.msk [vmem:[#allocation3 + $0x118] sm:$0x3] %vm152_vm4, %v18963_v16 }
 0x46b   :  { %189 = vst.msk [vmem:[#allocation3 + $0x130] sm:$0x3] %vm152_vm4, %v18963_v16  ;;  %192 = vst.msk [vmem:[#allocation3 + $0x148] sm:$0x3] %vm152_vm4, %v18963_v16 }
 0x46c   :  { %195 = vst.msk [vmem:[#allocation3 + $0x160] sm:$0x3] %vm152_vm4, %v18963_v16  ;;  %198 = vst.msk [vmem:[#allocation3 + $0x178] sm:$0x3] %vm152_vm4, %v18963_v16  ;;  %v6261_v36 = vld [vmem:[#allocation3 + $0x9] sm:$0xff] }
 0x46d   :  { %201 = vst.msk [vmem:[#allocation3 + $0x190] sm:$0x3] %vm152_vm4, %v18963_v16  ;;  %204 = vst.msk [vmem:[#allocation3 + $0x1a8] sm:$0x3] %vm152_vm4, %v18963_v16 }
 0x46e   :  { %207 = vst.msk [vmem:[#allocation3 + $0x1c0] sm:$0x3] %vm152_vm4, %v18963_v16  ;;  %210 = vst.msk [vmem:[#allocation3 + $0x1d8] sm:$0x3] %vm152_vm4, %v18963_v16 }
 0x46f   :  { %13533 = vmatmul.mubr.msk.bf16.gmra.mrb[40].mxu0 %vm39_vm1, %v16921_v12  ;;  %v5007_v12 = vld [vmem:[#allocation2 + $0x9a] sm:$0xff]  ;;  %213 = vst.msk [vmem:[#allocation3 + $0x1f0] sm:$0x3] %vm152_vm4, %v18963_v16  ;;  %216 = vst.msk [vmem:[#allocation3 + $0x208] sm:$0x3] %vm152_vm4, %v18963_v16 }
 0x470   :  { %13536 = vmatprep.mubr.msk.bf16.mxu0 %vm39_vm1, %v16927_v35  ;;  %v5065_v35 = vpack.c.bf16 %v5005_v24, %v5004_v15  ;;  %v5048_v24 = vld [vmem:[#allocation2 + $0x2ba] sm:$0xff]  ;;  %219 = vst.msk [vmem:[#allocation3 + $0x220] sm:$0x3] %vm152_vm4, %v18963_v16  ;;  %222 = vst.msk [vmem:[#allocation3 + $0x238] sm:$0x3] %vm152_vm4, %v18963_v16 }
 0x471   :  { %225 = vst.msk [vmem:[#allocation3 + $0x250] sm:$0x3] %vm152_vm4, %v18963_v16  ;;  %228 = vst.msk [vmem:[#allocation3 + $0x268] sm:$0x3] %vm152_vm4, %v18963_v16 }
 0x472   :  { %231 = vst.msk [vmem:[#allocation3 + $0x280] sm:$0x3] %vm152_vm4, %v18963_v16  ;;  %234 = vst.msk [vmem:[#allocation3 + $0x298] sm:$0x3] %vm152_vm4, %v18963_v16 }
 0x473   :  { %237 = vst.msk [vmem:[#allocation3 + $0x2b0] sm:$0x3] %vm152_vm4, %v18963_v16  ;;  %240 = vst.msk [vmem:[#allocation3 + $0x2c8] sm:$0x3] %vm152_vm4, %v18963_v16 }
 0x474   :  { %243 = vst.msk [vmem:[#allocation3 + $0x2e0] sm:$0x3] %vm152_vm4, %v18963_v16  ;;  %246 = vst.msk [vmem:[#allocation3 + $0x2f8] sm:$0x3] %vm152_vm4, %v18963_v16 }
 0x475   :  { %249 = vst.msk [vmem:[#allocation3 + $0x310] sm:$0x3] %vm152_vm4, %v18963_v16  ;;  %252 = vst.msk [vmem:[#allocation3 + $0x328] sm:$0x3] %vm152_vm4, %v18963_v16 }
 0x476   :  { %255 = vst.msk [vmem:[#allocation3 + $0x340] sm:$0x3] %vm152_vm4, %v18963_v16  ;;  %258 = vst.msk [vmem:[#allocation3 + $0x358] sm:$0x3] %vm152_vm4, %v18963_v16  ;;  %v17402_v16 = vld [vmem:[%s18930_s6] sm:$0xff]  }
 0x477   :  { %13537 = vmatmul.mubr.msk.bf16.gmra.mrb[44].mxu0 %vm39_vm1, %v16929_v6  ;;  %v5066_v6 = vpack.c.bf16 %v5007_v12, %v5006_v11  ;;  %v5049_v11 = vld [vmem:[#allocation2 + $0x2c2] sm:$0xff]  ;;  %v5050_v12 = vld [vmem:[#allocation2 + $0x2d2] sm:$0xff] }
 0x478   :  { %13540 = vmatprep.mubr.msk.bf16.mxu0 %vm39_vm1, %v18961_v63  ;;  %v5039_v63 = vld [vmem:[#allocation2 + $0x24a] sm:$0xff] }
 0x479   :  { %v5082_v33 = vpack.c.bf16 %v5039_v63, %v5038_v44 }
 0x47f   :  { %13541 = vmatmul.mubr.msk.bf16.gmra.mrb[48].mxu0 %vm39_vm1, %v18962_v0 }
 0x480   :  { %13544 = vmatprep.mubr.msk.bf16.mxu0 %vm39_vm1, %v16943_v55  ;;  %v5010_v55 = vld [vmem:[#allocation2 + $0xc2] sm:$0xff] }
 0x487   :  { %13545 = vmatmul.mubr.msk.bf16.gmra.mrb[52].mxu0 %vm39_vm1, %v16945_v26  ;;  %v5011_v26 = vld [vmem:[#allocation2 + $0xca] sm:$0xff] }
 0x488   :  { %13548 = vmatprep.mubr.msk.bf16.mxu0 %vm39_vm1, %v16951_v31  ;;  %v5008_v31 = vld [vmem:[#allocation2 + $0xaa] sm:$0xff]  ;;  %v5068_v17 = vpack.c.bf16 %v5011_v26, %v5010_v55  ;;  %v5053_v55 = vld [vmem:[#allocation2 + $0x2f2] sm:$0xff]  ;;  %v5054_v26 = vld [vmem:[#allocation2 + $0x302] sm:$0xff] }
 0x48f   :  { %13549 = vmatmul.mubr.msk.bf16.gmra.mrb[56].mxu0 %vm39_vm1, %v16953_v39  ;;  %v5009_v39 = vld [vmem:[#allocation2 + $0xb2] sm:$0xff] }
 0x490   :  { %13552 = vmatprep.mubr.msk.bf16.mxu0 %vm39_vm1, %v16959_v19  ;;  %v5067_v19 = vpack.c.bf16 %v5009_v39, %v5008_v31  ;;  %v5052_v39 = vld [vmem:[#allocation2 + $0x2ea] sm:$0xff] }
 0x497   :  { %13553 = vmatmul.mubr.msk.bf16.gmra.mrb[60].mxu0 %vm39_vm1, %v4543_v38  ;;  %v5041_v38 = vld [vmem:[#allocation2 + $0x262] sm:$0xff] }
 0x498   :  { %13558 = vmatprep.mubr.msk.bf16.mxu0 %vm39_vm1, %v5062_v9  ;;  %v5083_v9 = vpack.c.bf16 %v5041_v38, %v5040_v34 }
 0x49f   :  { %13559 = vmatmul.mubr.msk.bf16.vlgmr.msra.gmra.mrb[0].mxu0 %vm39_vm1, %v5063_v3  ;;  %v5047_v3 = vld [vmem:[#allocation2 + $0x2aa] sm:$0xff] }
 0x4a0   :  { %13562 = vmatprep.mubr.msk.bf16.mxu0 %vm39_vm1, %v5064_v25  ;;  %v5085_v25 = vpack.c.bf16 %v5045_v58, %v5044_v52  ;;  %v5086_v15 = vpack.c.bf16 %v5047_v3, %v5046_v20 }
 0x4a7   :  { %13563 = vmatmul.mubr.msk.bf16.gmra.mrb[4].mxu0 %vm39_vm1, %v5065_v35  ;;  %v5051_v35 = vld [vmem:[#allocation2 + $0x2da] sm:$0xff] }
 0x4a8   :  { %13566 = vmatprep.mubr.msk.bf16.mxu0 %vm39_vm1, %v5066_v6  ;;  %v5087_v6 = vpack.c.bf16 %v5049_v11, %v5048_v24  ;;  %v5088_v31 = vpack.c.bf16 %v5051_v35, %v5050_v12 }
 0x4af   :  { %13567 = vmatmul.mubr.msk.bf16.gmra.mrb[8].mxu0 %vm39_vm1, %v5067_v19  ;;  %v5055_v19 = vld [vmem:[#allocation2 + $0x30a] sm:$0xff] }
 0x4b0   :  { %13570 = vmatprep.mubr.msk.bf16.mxu0 %vm39_vm1, %v5068_v17  ;;  %v5089_v17 = vpack.c.bf16 %v5053_v55, %v5052_v39  ;;  %v5090_v27 = vpack.c.bf16 %v5055_v19, %v5054_v26 }
 0x4b7   :  { %13571 = vmatmul.mubr.msk.bf16.gmra.mrb[12].mxu0 %vm39_vm1, %v5069_v56  ;;  %v5060_v56 = vld [vmem:[#allocation2 + $0x34a] sm:$0xff] }
 0x4b8   :  { %13574 = vmatprep.mubr.msk.bf16.mxu0 %vm39_vm1, %v5070_v5  ;;  %v5061_v5 = vld [vmem:[#allocation2 + $0x352] sm:$0xff] }
 0x4b9   :  { %v5093_v28 = vpack.c.bf16 %v5061_v5, %v5060_v56 }
 0x4bf   :  { %13575 = vmatmul.mubr.msk.bf16.gmra.mrb[16].mxu0 %vm39_vm1, %v5071_v21  ;;  %v6324_v21 = vpack.c.bf16 %v6261_v36, %v6260_v7 }
 0x4c0   :  { %13578 = vmatprep.mubr.msk.bf16.mxu0 %vm39_vm1, %v5072_v49 }
 0x4c1   :  { %13626 = vmatprep.mubr.msk.bf16.mxu1 %vm149_vm3, %v6324_v21 }
 0x4c7   :  { %13579 = vmatmul.mubr.msk.bf16.gmra.mrb[20].mxu0 %vm39_vm1, %v5073_v4 }
 0x4c8   :  { %13582 = vmatprep.mubr.msk.bf16.mxu0 %vm39_vm1, %v5074_v59 }
 0x4cf   :  { %13583 = vmatmul.mubr.msk.bf16.gmra.mrb[24].mxu0 %vm39_vm1, %v5075_v2 }
 0x4d0   :  { %13586 = vmatprep.mubr.msk.bf16.mxu0 %vm39_vm1, %v16999_v61  ;;  %v5036_v61 = vld [vmem:[#allocation2 + $0x22a] sm:$0xff] }
 0x4d1   :  { %v5081_v0 = vpack.c.bf16 %v5037_v32, %v5036_v61 }
 0x4d7   :  { %13587 = vmatmul.mubr.msk.bf16.gmra.mrb[28].mxu0 %vm39_vm1, %v5077_v37 }
 0x4d8   :  { %13590 = vmatprep.mubr.msk.bf16.mxu0 %vm39_vm1, %v5078_v50 }
 0x4df   :  { %13591 = vmatmul.mubr.msk.bf16.gmra.mrb[32].mxu0 %vm39_vm1, %v5079_v14 }
 0x4e0   :  { %13594 = vmatprep.mubr.msk.bf16.mxu0 %vm39_vm1, %v5080_v10 }
 0x4e7   :  { %13595 = vmatmul.mubr.msk.bf16.gmra.mrb[36].mxu0 %vm39_vm1, %v5081_v0 }
 0x4e8   :  { %13598 = vmatprep.mubr.msk.bf16.mxu0 %vm39_vm1, %v5082_v33 }
 0x4ef   :  { %13599 = vmatmul.mubr.msk.bf16.gmra.mrb[40].mxu0 %vm39_vm1, %v5083_v9 }
 0x4f0   :  { %13602 = vmatprep.mubr.msk.bf16.mxu0 %vm39_vm1, %v5084_v23 }
 0x4f7   :  { %13603 = vmatmul.mubr.msk.bf16.gmra.mrb[44].mxu0 %vm39_vm1, %v5085_v25 }
 0x4f8   :  { %13606 = vmatprep.mubr.msk.bf16.mxu0 %vm39_vm1, %v5086_v15 }
 0x4ff   :  { %13607 = vmatmul.mubr.msk.bf16.gmra.mrb[48].mxu0 %vm39_vm1, %v5087_v6 }
 0x500   :  { %13610 = vmatprep.mubr.msk.bf16.mxu0 %vm39_vm1, %v5088_v31 }
 0x507   :  { %13611 = vmatmul.mubr.msk.bf16.gmra.mrb[52].mxu0 %vm39_vm1, %v5089_v17 }
 0x508   :  { %13614 = vmatprep.mubr.msk.bf16.mxu0 %vm39_vm1, %v5090_v27 }
 0x50f   :  { %13615 = vmatmul.mubr.msk.bf16.gmra.mrb[56].mxu0 %vm39_vm1, %v5091_v42 }
 0x510   :  { %13618 = vmatprep.mubr.msk.bf16.mxu0 %vm39_vm1, %v17033_v46  ;;  %v15277_v46 = vld [vmem:[%s18930_s6 + $0x10] sm:$0xff]  }
 0x511   :  { %13622 = vmatprep.subr.bf16.mxu1 %v15277_v46 }
 0x512   :  { %13623 = vmatpush3.bf16.msra.mxu1 %v15277_v46 }
 0x513   :  { %13624 = vmatprep.subr.bf16.mxu1 %v15278_v22 }
 0x516   :  { %13625 = vmatpush3.bf16.msra.mxu1 %v15278_v22 }
 0x517   :  { %13619 = vmatmul.mubr.msk.bf16.gmra.mrb[60].mxu0 %vm39_vm1, %v5093_v28  ;;  %13690 = vmatprep.subr.bf16.mxu1 %v17402_v16 }
 0x572   :  { %v13560_v49 = vpop.f32.mrb[0].mxu0 }
 0x573   :  { %v17407_v18 = vadd.f32 %v13560_v49, %v18964_v53  ;;  %v5229_v40 = vpop.f32.mrb[1].mxu0 }
 0x574   :  { %v17410_v47 = vadd.f32 %v18964_v53, %v5229_v40  ;;  %v13561_v4 = vpop.f32.mrb[2].mxu0 }
 0x575   :  { %v12022_v59 = vmul.f32 -1.442695, %v17407_v18  ;;  %v17414_v45 = vadd.f32 %v13561_v4, %v18964_v53  ;;  %v5232_v1 = vpop.f32.mrb[3].mxu0 }
 0x576   :  { %v12020_v2 = vmul.f32 -1.442695, %v17410_v47  ;;  %v17418_v8 = vadd.f32 %v18964_v53, %v5232_v1 }
 0x577   :  { %15295 = vpow2.f32 %v12022_v59  ;;  %v12023_v51 = vmul.f32 -1.442695, %v17414_v45 }
 0x578   :  { %15297 = vpow2.f32 %v12020_v2  ;;  %v12021_v37 = vmul.f32 -1.442695, %v17418_v8 }
 0x579   :  { %15299 = vpow2.f32 %v12023_v51 }
 0x57a   :  { %15301 = vpow2.f32 %v12021_v37  ;;  %v13564_v29 = vpop.f32.mrb[4].mxu0 }
 0x57b   :  { %v17423_v43 = vadd.f32 %v13564_v29, %v18964_v53  ;;  %v5245_v50 = vpop.f32.mrb[5].mxu0 }
 0x57c   :  { %v17426_v60 = vadd.f32 %v18964_v53, %v5245_v50  ;;  %v13565_v54 = vpop.f32.mrb[6].mxu0 }
 0x57d   :  { %v12026_v62 = vmul.f32 -1.442695, %v17423_v43  ;;  %v17430_v13 = vadd.f32 %v13565_v54, %v18964_v53  ;;  %v5248_v14 = vpop.f32.mrb[7].mxu0 }
 0x57e   :  { %v12024_v10 = vmul.f32 -1.442695, %v17426_v60  ;;  %v17434_v61 = vadd.f32 %v18964_v53, %v5248_v14 }
 0x57f   :  { %15303 = vpow2.f32 %v12026_v62  ;;  %v12027_v32 = vmul.f32 -1.442695, %v17430_v13 }
 0x580   :  { %15305 = vpow2.f32 %v12024_v10  ;;  %v12025_v44 = vmul.f32 -1.442695, %v17434_v61 }
 0x581   :  { %v15296_v63 = vpop.eup %15295  ;;  %15307 = vpow2.f32 %v12027_v32 }
 0x582   :  { %v15298_v0 = vpop.eup %15297  ;;  %v5840_v33 = vadd.f32 1.0, %v15296_v63  ;;  %15309 = vpow2.f32 %v12025_v44  ;;  %v13568_v34 = vpop.f32.mrb[8].mxu0 }
 0x583   :  { %v15300_v38 = vpop.eup %15299  ;;  %v5838_v48 = vadd.f32 1.0, %v15298_v0  ;;  %v17439_v57 = vadd.f32 %v13568_v34, %v18964_v53  ;;  %v5261_v9 = vpop.f32.mrb[9].mxu0 }
 0x584   :  { %v15302_v23 = vpop.eup %15301  ;;  %15311 = vrcp.f32 %v5840_v33  ;;  %v5841_v52 = vadd.f32 1.0, %v15300_v38  ;;  %v17442_v58 = vadd.f32 %v18964_v53, %v5261_v9  ;;  %v13569_v20 = vpop.f32.mrb[10].mxu0 }
 0x585   :  { %15313 = vrcp.f32 %v5838_v48  ;;  %v5839_v3 = vadd.f32 1.0, %v15302_v23  ;;  %v12030_v25 = vmul.f32 -1.442695, %v17439_v57  ;;  %v17446_v15 = vadd.f32 %v13569_v20, %v18964_v53  ;;  %v5264_v24 = vpop.f32.mrb[11].mxu0 }
 0x586   :  { %15315 = vrcp.f32 %v5841_v52  ;;  %v12028_v11 = vmul.f32 -1.442695, %v17442_v58  ;;  %v17450_v12 = vadd.f32 %v18964_v53, %v5264_v24 }
 0x587   :  { %15317 = vrcp.f32 %v5839_v3  ;;  %v12031_v35 = vmul.f32 -1.442695, %v17446_v15 }
 0x588   :  { %15319 = vpow2.f32 %v12030_v25  ;;  %v12029_v6 = vmul.f32 -1.442695, %v17450_v12 }
 0x589   :  { %v15304_v31 = vpop.eup %15303  ;;  %15321 = vpow2.f32 %v12028_v11 }
 0x58a   :  { %v15306_v39 = vpop.eup %15305  ;;  %v5844_v55 = vadd.f32 1.0, %v15304_v31  ;;  %15323 = vpow2.f32 %v12031_v35  ;;  %v13572_v26 = vpop.f32.mrb[12].mxu0 }
 0x58b   :  { %v15308_v19 = vpop.eup %15307  ;;  %v5842_v17 = vadd.f32 1.0, %v15306_v39  ;;  %15325 = vpow2.f32 %v12029_v6  ;;  %v17455_v27 = vadd.f32 %v13572_v26, %v18964_v53  ;;  %v5277_v30 = vpop.f32.mrb[13].mxu0 }
 0x58c   :  { %v15310_v41 = vpop.eup %15309  ;;  %15327 = vrcp.f32 %v5844_v55  ;;  %v5845_v42 = vadd.f32 1.0, %v15308_v19  ;;  %v17458_v56 = vadd.f32 %v18964_v53, %v5277_v30  ;;  %v13573_v5 = vpop.f32.mrb[14].mxu0 }
 0x58d   :  { %15329 = vrcp.f32 %v5842_v17  ;;  %v5843_v28 = vadd.f32 1.0, %v15310_v41  ;;  %v12034_v46 = vmul.f32 -1.442695, %v17455_v27  ;;  %v17462_v22 = vadd.f32 %v13573_v5, %v18964_v53  ;;  %v5280_v7 = vpop.f32.mrb[15].mxu0 }
 0x58e   :  { %v15312_v36 = vpop.eup %15311  ;;  %15331 = vrcp.f32 %v5845_v42  ;;  %v12032_v21 = vmul.f32 -1.442695, %v17458_v56  ;;  %v17466_v49 = vadd.f32 %v18964_v53, %v5280_v7 }
 0x58f   :  { %v15314_v40 = vpop.eup %15313  ;;  %v6032_v4 = vmul.f32 %v15312_v36, %v17407_v18  ;;  %15333 = vrcp.f32 %v5843_v28  ;;  %v12035_v59 = vmul.f32 -1.442695, %v17462_v22 }
 0x590   :  { %v15316_v1 = vpop.eup %15315  ;;  %v6030_v2 = vmul.f32 %v15314_v40, %v17410_v47  ;;  %15335 = vpow2.f32 %v12034_v46  ;;  %v12033_v51 = vmul.f32 -1.442695, %v17466_v49 }
 0x591   :  { %v15318_v37 = vpop.eup %15317  ;;  %6098 = vst.msk [vmem:[#allocation3 + $0x31] sm:$0xff] %vm149_vm3, %v6032_v4  ;;  %v6033_v29 = vmul.f32 %v15316_v1, %v17414_v45  ;;  %15337 = vpow2.f32 %v12032_v21  ;;  %v15280_v21 = vld [vmem:[%s18930_s6 + $0x8] sm:$0xff]  }
 0x592   :  { %v15320_v50 = vpop.eup %15319  ;;  %6096 = vst.msk [vmem:[#allocation3 + $0x19] sm:$0xff] %vm149_vm3, %v6030_v2  ;;  %v6031_v18 = vmul.f32 %v15318_v37, %v17418_v8  ;;  %15339 = vpow2.f32 %v12035_v59  ;;  %v13576_v54 = vpop.f32.mrb[16].mxu0 }
 0x593   :  { %v15322_v62 = vpop.eup %15321  ;;  %6099 = vst.msk [vmem:[#allocation3 + $0x39] sm:$0xff] %vm149_vm3, %v6033_v29  ;;  %v5848_v47 = vadd.f32 1.0, %v15320_v50  ;;  %15341 = vpow2.f32 %v12033_v51  ;;  %v17478_v14 = vadd.f32 %v13576_v54, %v18964_v53  ;;  %v5293_v10 = vpop.f32.mrb[17].mxu0 }
 0x594   :  { %v15324_v32 = vpop.eup %15323  ;;  %6097 = vst.msk [vmem:[#allocation3 + $0x21] sm:$0xff] %vm149_vm3, %v6031_v18  ;;  %v5846_v45 = vadd.f32 1.0, %v15322_v62  ;;  %v17482_v44 = vadd.f32 %v18964_v53, %v5293_v10  ;;  %v13577_v63 = vpop.f32.mrb[18].mxu0  ;;  %v15281_v10 = vld [vmem:[%s18930_s6 + $0x20] sm:$0xff]  }
 0x595   :  { %v15326_v8 = vpop.eup %15325  ;;  %15343 = vrcp.f32 %v5848_v47  ;;  %v5849_v0 = vadd.f32 1.0, %v15324_v32  ;;  %v12038_v33 = vmul.f32 -1.442695, %v17478_v14  ;;  %v17486_v34 = vadd.f32 %v13577_v63, %v18964_v53  ;;  %v5296_v38 = vpop.f32.mrb[19].mxu0 }
 0x596   :  { %v15328_v48 = vpop.eup %15327  ;;  %15345 = vrcp.f32 %v5846_v45  ;;  %v5847_v9 = vadd.f32 1.0, %v15326_v8  ;;  %v12036_v23 = vmul.f32 -1.442695, %v17482_v44  ;;  %v17490_v52 = vadd.f32 %v18964_v53, %v5296_v38 }
 0x597   :  { %v15330_v20 = vpop.eup %15329  ;;  %v6036_v3 = vmul.f32 %v15328_v48, %v17423_v43  ;;  %15347 = vrcp.f32 %v5849_v0  ;;  %v12039_v25 = vmul.f32 -1.442695, %v17486_v34 }
 0x598   :  { %v15332_v24 = vpop.eup %15331  ;;  %v6034_v11 = vmul.f32 %v15330_v20, %v17426_v60  ;;  %15349 = vrcp.f32 %v5847_v9  ;;  %v12037_v35 = vmul.f32 -1.442695, %v17490_v52  ;;  %v6264_v26 = vld [vmem:[#allocation3 + $0x31] sm:$0xff] }
 0x599   :  { %v15334_v6 = vpop.eup %15333  ;;  %6102 = vst.msk [vmem:[#allocation3 + $0x61] sm:$0xff] %vm149_vm3, %v6036_v3  ;;  %v6037_v31 = vmul.f32 %v15332_v24, %v17430_v13  ;;  %15351 = vpow2.f32 %v12038_v33  ;;  %v6262_v13 = vld [vmem:[#allocation3 + $0x19] sm:$0xff] }
 0x59a   :  { %v15336_v39 = vpop.eup %15335  ;;  %6100 = vst.msk [vmem:[#allocation3 + $0x49] sm:$0xff] %vm149_vm3, %v6034_v11  ;;  %v6035_v43 = vmul.f32 %v15334_v6, %v17434_v61  ;;  %15353 = vpow2.f32 %v12036_v23  ;;  %v13580_v55 = vpop.f32.mrb[20].mxu0  ;;  %v6265_v19 = vld [vmem:[#allocation3 + $0x39] sm:$0xff] }
 0x59b   :  { %v15338_v17 = vpop.eup %15337  ;;  %6103 = vst.msk [vmem:[#allocation3 + $0x69] sm:$0xff] %vm149_vm3, %v6037_v31  ;;  %v5852_v60 = vadd.f32 1.0, %v15336_v39  ;;  %15355 = vpow2.f32 %v12039_v25  ;;  %v17502_v30 = vadd.f32 %v13580_v55, %v18964_v53  ;;  %v5309_v41 = vpop.f32.mrb[21].mxu0  ;;  %v6263_v42 = vld [vmem:[#allocation3 + $0x21] sm:$0xff]  ;;  %v6326_v5 = vpack.c.bf16 %v6265_v19, %v6264_v26 }
 0x59c   :  { %v15340_v28 = vpop.eup %15339  ;;  %6101 = vst.msk [vmem:[#allocation3 + $0x51] sm:$0xff] %vm149_vm3, %v6035_v43  ;;  %v5850_v61 = vadd.f32 1.0, %v15338_v17  ;;  %15357 = vpow2.f32 %v12037_v35  ;;  %v17506_v46 = vadd.f32 %v18964_v53, %v5309_v41  ;;  %v13581_v7 = vpop.f32.mrb[22].mxu0  ;;  %v6325_v36 = vpack.c.bf16 %v6263_v42, %v6262_v13 }
 0x59d   :  { %v15342_v40 = vpop.eup %15341  ;;  %15359 = vrcp.f32 %v5852_v60  ;;  %v5853_v4 = vadd.f32 1.0, %v15340_v28  ;;  %v12042_v59 = vmul.f32 -1.442695, %v17502_v30  ;;  %v17513_v1 = vadd.f32 %v13581_v7, %v18964_v53  ;;  %v5312_v2 = vpop.f32.mrb[23].mxu0 }
 0x59e   :  { %15361 = vrcp.f32 %v5850_v61  ;;  %v5851_v51 = vadd.f32 1.0, %v15342_v40  ;;  %v12040_v37 = vmul.f32 -1.442695, %v17506_v46  ;;  %v17517_v29 = vadd.f32 %v18964_v53, %v5312_v2  ;;  %13627 = vmatmul.mubr.msk.bf16.vlgmr.msra.gmra.mrb[0].mxu1 %vm149_vm3, %v6325_v36 }
 0x59f   :  { %v15344_v50 = vpop.eup %15343  ;;  %15363 = vrcp.f32 %v5853_v4  ;;  %v12043_v18 = vmul.f32 -1.442695, %v17513_v1  ;;  %13691 = vmatpush3.bf16.msra.mxu1 %v17402_v16  ;;  %13630 = vmatprep.mubr.msk.bf16.mxu1 %vm149_vm3, %v6326_v5 }
 0x5a0   :  { %v15346_v54 = vpop.eup %15345  ;;  %v6040_v62 = vmul.f32 %v15344_v50, %v17439_v57  ;;  %15365 = vrcp.f32 %v5851_v51  ;;  %v12041_v47 = vmul.f32 -1.442695, %v17517_v29  ;;  %13692 = vmatprep.subr.bf16.mxu1 %v15280_v21  ;;  %v6268_v24 = vld [vmem:[#allocation3 + $0x61] sm:$0xff] }
 0x5a1   :  { %v15348_v32 = vpop.eup %15347  ;;  %v6038_v45 = vmul.f32 %v15346_v54, %v17442_v58  ;;  %15367 = vpow2.f32 %v12042_v59  ;;  %v6266_v58 = vld [vmem:[#allocation3 + $0x49] sm:$0xff] }
 0x5a2   :  { %v15350_v63 = vpop.eup %15349  ;;  %6106 = vst.msk [vmem:[#allocation3 + $0x91] sm:$0xff] %vm149_vm3, %v6040_v62  ;;  %v6041_v16 = vmul.f32 %v15348_v32, %v17446_v15  ;;  %15369 = vpow2.f32 %v12040_v37  ;;  %v13584_v8 = vpop.f32.mrb[24].mxu0  ;;  %v6269_v57 = vld [vmem:[#allocation3 + $0x69] sm:$0xff] }
 0x5a3   :  { %v15352_v0 = vpop.eup %15351  ;;  %6104 = vst.msk [vmem:[#allocation3 + $0x79] sm:$0xff] %vm149_vm3, %v6038_v45  ;;  %v6039_v33 = vmul.f32 %v15350_v63, %v17450_v12  ;;  %15371 = vpow2.f32 %v12043_v18  ;;  %v17534_v38 = vadd.f32 %v13584_v8, %v18964_v53  ;;  %v5325_v48 = vpop.f32.mrb[25].mxu0  ;;  %v6267_v9 = vld [vmem:[#allocation3 + $0x51] sm:$0xff]  ;;  %13693 = vmatpush3.bf16.msra.mxu1 %v15280_v21  ;;  %v6328_v31 = vpack.c.bf16 %v6269_v57, %v6268_v24 }
 0x5a4   :  { %v15354_v23 = vpop.eup %15353  ;;  %6107 = vst.msk [vmem:[#allocation3 + $0x99] sm:$0xff] %vm149_vm3, %v6041_v16  ;;  %v5856_v15 = vadd.f32 1.0, %v15352_v0  ;;  %15373 = vpow2.f32 %v12041_v47  ;;  %v17538_v20 = vadd.f32 %v18964_v53, %v5325_v48  ;;  %v13585_v3 = vpop.f32.mrb[26].mxu0  ;;  %v6327_v25 = vpack.c.bf16 %v6267_v9, %v6266_v58  ;;  %13758 = vmatprep.subr.bf16.mxu1 %v15281_v10 }
 0x5a5   :  { %v15356_v12 = vpop.eup %15355  ;;  %6105 = vst.msk [vmem:[#allocation3 + $0x81] sm:$0xff] %vm149_vm3, %v6039_v33  ;;  %v5854_v11 = vadd.f32 1.0, %v15354_v23  ;;  %v17542_v35 = vadd.f32 %v13585_v3, %v18964_v53  ;;  %v5328_v6 = vpop.f32.mrb[27].mxu0  ;;  %v12046_v55 = vmul.f32 -1.442695, %v17534_v38 }
 0x5a6   :  { %v15358_v39 = vpop.eup %15357  ;;  %15375 = vrcp.f32 %v5856_v15  ;;  %v5857_v43 = vadd.f32 1.0, %v15356_v12  ;;  %v17546_v26 = vadd.f32 %v18964_v53, %v5328_v6  ;;  %13631 = vmatmul.mubr.msk.bf16.gmra.mrb[4].mxu1 %vm149_vm3, %v6327_v25  ;;  %v12044_v60 = vmul.f32 -1.442695, %v17538_v20 }
 0x5a7   :  { %v15360_v19 = vpop.eup %15359  ;;  %15377 = vrcp.f32 %v5854_v11  ;;  %v5855_v17 = vadd.f32 1.0, %v15358_v39  ;;  %13634 = vmatprep.mubr.msk.bf16.mxu1 %vm149_vm3, %v6328_v31  ;;  %v12047_v42 = vmul.f32 -1.442695, %v17542_v35  ;;  %v18965_v11 = vld [vmem:[#allocation9_spill] sm:$0xff] }
 0x5a8   :  { %v15362_v41 = vpop.eup %15361  ;;  %v6044_v13 = vmul.f32 %v15360_v19, %v17455_v27  ;;  %15379 = vrcp.f32 %v5857_v43  ;;  %v12045_v61 = vmul.f32 -1.442695, %v17546_v26 }
 0x5a9   :  { %v15364_v5 = vpop.eup %15363  ;;  %v6042_v28 = vmul.f32 %v15362_v41, %v17458_v56  ;;  %15381 = vrcp.f32 %v5855_v17  ;;  %v6272_v0 = vld [vmem:[#allocation3 + $0x91] sm:$0xff] }
 0x5aa   :  { %v15366_v7 = vpop.eup %15365  ;;  %6110 = vst.msk [vmem:[#allocation3 + $0xc1] sm:$0xff] %vm149_vm3, %v6044_v13  ;;  %v6045_v36 = vmul.f32 %v15364_v5, %v17462_v22  ;;  %15383 = vpow2.f32 %v12046_v55  ;;  %v13588_v21 = vpop.f32.mrb[28].mxu0  ;;  %v6270_v63 = vld [vmem:[#allocation3 + $0x79] sm:$0xff] }
 0x5ab   :  { %v15368_v40 = vpop.eup %15367  ;;  %6108 = vst.msk [vmem:[#allocation3 + $0xa9] sm:$0xff] %vm149_vm3, %v6042_v28  ;;  %v6043_v27 = vmul.f32 %v15366_v7, %v17466_v49  ;;  %15385 = vpow2.f32 %v12044_v60  ;;  %v17560_v4 = vadd.f32 %v13588_v21, %v18964_v53  ;;  %v5341_v56 = vpop.f32.mrb[29].mxu0  ;;  %v6273_v62 = vld [vmem:[#allocation3 + $0x99] sm:$0xff] }
 0x5ac   :  { %v15370_v59 = vpop.eup %15369  ;;  %6111 = vst.msk [vmem:[#allocation3 + $0xc9] sm:$0xff] %vm149_vm3, %v6045_v36  ;;  %v5860_v2 = vadd.f32 1.0, %v15368_v40  ;;  %15387 = vpow2.f32 %v12047_v42  ;;  %v17564_v51 = vadd.f32 %v18964_v53, %v5341_v56  ;;  %v13589_v22 = vpop.f32.mrb[30].mxu0  ;;  %v6271_v37 = vld [vmem:[#allocation3 + $0x81] sm:$0xff]  ;;  %v6330_v58 = vpack.c.bf16 %v6273_v62, %v6272_v0 }
 0x5ad   :  { %v15372_v50 = vpop.eup %15371  ;;  %6109 = vst.msk [vmem:[#allocation3 + $0xb1] sm:$0xff] %vm149_vm3, %v6043_v27  ;;  %v5858_v18 = vadd.f32 1.0, %v15370_v59  ;;  %15389 = vpow2.f32 %v12045_v61  ;;  %v17568_v49 = vadd.f32 %v13589_v22, %v18964_v53  ;;  %v5344_v54 = vpop.f32.mrb[31].mxu0  ;;  %v12050_v32 = vmul.f32 -1.442695, %v17560_v4 }
 0x5ae   :  { %v15374_v47 = vpop.eup %15373  ;;  %15391 = vrcp.f32 %v5860_v2  ;;  %v5861_v10 = vadd.f32 1.0, %v15372_v50  ;;  %v17572_v45 = vadd.f32 %v18964_v53, %v5344_v54  ;;  %v12048_v8 = vmul.f32 -1.442695, %v17564_v51 }
 0x5af   :  { %15393 = vrcp.f32 %v5858_v18  ;;  %v5859_v16 = vadd.f32 1.0, %v15374_v47  ;;  %v6329_v57 = vpack.c.bf16 %v6271_v37, %v6270_v63  ;;  %v12051_v48 = vmul.f32 -1.442695, %v17568_v49 }
 0x5b0   :  { %v15376_v33 = vpop.eup %15375  ;;  %15395 = vrcp.f32 %v5861_v10  ;;  %v12049_v15 = vmul.f32 -1.442695, %v17572_v45 }
 0x5b1   :  { %v15378_v9 = vpop.eup %15377  ;;  %v6048_v23 = vmul.f32 %v15376_v33, %v17478_v14  ;;  %15397 = vrcp.f32 %v5859_v16  ;;  %13635 = vmatmul.mubr.msk.bf16.gmra.mrb[8].mxu1 %vm149_vm3, %v6329_v57  ;;  %v6276_v21 = vld [vmem:[#allocation3 + $0xc1] sm:$0xff] }
 0x5b2   :  { %v15380_v53 = vpop.eup %15379  ;;  %v6046_v3 = vmul.f32 %v15378_v9, %v17482_v44  ;;  %15399 = vpow2.f32 %v12050_v32  ;;  %13638 = vmatprep.mubr.msk.bf16.mxu1 %vm149_vm3, %v6330_v58  ;;  %v13592_v25 = vpop.f32.mrb[32].mxu0  ;;  %v6274_v41 = vld [vmem:[#allocation3 + $0xa9] sm:$0xff] }
 0x5b3   :  { %v15382_v24 = vpop.eup %15381  ;;  %6114 = vst.msk [vmem:[#allocation3 + $0xf1] sm:$0xff] %vm149_vm3, %v6048_v23  ;;  %v6049_v12 = vmul.f32 %v15380_v53, %v17486_v34  ;;  %15401 = vpow2.f32 %v12048_v8  ;;  %v17584_v14 = vadd.f32 %v13592_v25, %v18965_v11  ;;  %v5357_v6 = vpop.f32.mrb[33].mxu0  ;;  %v6277_v13 = vld [vmem:[#allocation3 + $0xc9] sm:$0xff] }
 0x5b4   :  { %v15384_v31 = vpop.eup %15383  ;;  %6112 = vst.msk [vmem:[#allocation3 + $0xd9] sm:$0xff] %vm149_vm3, %v6046_v3  ;;  %v6047_v39 = vmul.f32 %v15382_v24, %v17490_v52  ;;  %15403 = vpow2.f32 %v12051_v48  ;;  %v17589_v44 = vadd.f32 %v18965_v11, %v5357_v6  ;;  %v13593_v43 = vpop.f32.mrb[34].mxu0  ;;  %v6275_v55 = vld [vmem:[#allocation3 + $0xb1] sm:$0xff]  ;;  %v6332_v59 = vpack.c.bf16 %v6277_v13, %v6276_v21 }
 0x5b5   :  { %v15386_v19 = vpop.eup %15385  ;;  %6115 = vst.msk [vmem:[#allocation3 + $0xf9] sm:$0xff] %vm149_vm3, %v6049_v12  ;;  %v5864_v34 = vadd.f32 1.0, %v15384_v31  ;;  %15405 = vpow2.f32 %v12049_v15  ;;  %v17593_v17 = vadd.f32 %v13593_v43, %v18965_v11  ;;  %v5360_v60 = vpop.f32.mrb[35].mxu0  ;;  %v6331_v28 = vpack.c.bf16 %v6275_v55, %v6274_v41 }
 0x5b6   :  { %v15388_v42 = vpop.eup %15387  ;;  %6113 = vst.msk [vmem:[#allocation3 + $0xe1] sm:$0xff] %vm149_vm3, %v6047_v39  ;;  %v5862_v52 = vadd.f32 1.0, %v15386_v19  ;;  %v17597_v5 = vadd.f32 %v18965_v11, %v5360_v60  ;;  %v12054_v36 = vmul.f32 -1.442695, %v17584_v14  ;;  %v12052_v56 = vmul.f32 -1.442695, %v17589_v44 }
 0x5b7   :  { %v15390_v61 = vpop.eup %15389  ;;  %15407 = vrcp.f32 %v5864_v34  ;;  %v5865_v7 = vadd.f32 1.0, %v15388_v42  ;;  %v12055_v37 = vmul.f32 -1.442695, %v17593_v17 }
 0x5b8   :  { %v15392_v40 = vpop.eup %15391  ;;  %15409 = vrcp.f32 %v5862_v52  ;;  %v5863_v27 = vadd.f32 1.0, %v15390_v61  ;;  %v12053_v54 = vmul.f32 -1.442695, %v17597_v5 }
 0x5b9   :  { %v15394_v2 = vpop.eup %15393  ;;  %v6052_v22 = vmul.f32 %v15392_v40, %v17502_v30  ;;  %15411 = vrcp.f32 %v5865_v7  ;;  %13639 = vmatmul.mubr.msk.bf16.gmra.mrb[12].mxu1 %vm149_vm3, %v6331_v28 }
 0x5ba   :  { %v15396_v50 = vpop.eup %15395  ;;  %v6050_v18 = vmul.f32 %v15394_v2, %v17506_v46  ;;  %15413 = vrcp.f32 %v5863_v27  ;;  %13642 = vmatprep.mubr.msk.bf16.mxu1 %vm149_vm3, %v6332_v59  ;;  %v13596_v62 = vpop.f32.mrb[36].mxu0  ;;  %v6280_v12 = vld [vmem:[#allocation3 + $0xf1] sm:$0xff] }
 0x5bb   :  { %v15398_v47 = vpop.eup %15397  ;;  %6118 = vst.msk [vmem:[#allocation3 + $0x121] sm:$0xff] %vm149_vm3, %v6052_v22  ;;  %v6053_v10 = vmul.f32 %v15396_v50, %v17513_v1  ;;  %15415 = vpow2.f32 %v12054_v36  ;;  %v17610_v30 = vadd.f32 %v13596_v62, %v18965_v11  ;;  %v5373_v32 = vpop.f32.mrb[37].mxu0  ;;  %v6278_v15 = vld [vmem:[#allocation3 + $0xd9] sm:$0xff] }
 0x5bc   :  { %v15400_v63 = vpop.eup %15399  ;;  %6116 = vst.msk [vmem:[#allocation3 + $0x109] sm:$0xff] %vm149_vm3, %v6050_v18  ;;  %v6051_v46 = vmul.f32 %v15398_v47, %v17517_v29  ;;  %15417 = vpow2.f32 %v12052_v56  ;;  %v17615_v16 = vadd.f32 %v18965_v11, %v5373_v32  ;;  %v13597_v8 = vpop.f32.mrb[38].mxu0  ;;  %v6281_v58 = vld [vmem:[#allocation3 + $0xf9] sm:$0xff] }
 0x5bd   :  { %v15402_v57 = vpop.eup %15401  ;;  %6119 = vst.msk [vmem:[#allocation3 + $0x129] sm:$0xff] %vm149_vm3, %v6053_v10  ;;  %v5868_v0 = vadd.f32 1.0, %v15400_v63  ;;  %15419 = vpow2.f32 %v12055_v37  ;;  %v17619_v1 = vadd.f32 %v13597_v8, %v18965_v11  ;;  %v5376_v33 = vpop.f32.mrb[39].mxu0  ;;  %v6279_v48 = vld [vmem:[#allocation3 + $0xe1] sm:$0xff]  ;;  %v12058_v25 = vmul.f32 -1.442695, %v17610_v30 }
 0x5be   :  { %v15404_v9 = vpop.eup %15403  ;;  %6117 = vst.msk [vmem:[#allocation3 + $0x111] sm:$0xff] %vm149_vm3, %v6051_v46  ;;  %v5866_v29 = vadd.f32 1.0, %v15402_v57  ;;  %15421 = vpow2.f32 %v12053_v54  ;;  %v17623_v23 = vadd.f32 %v18965_v11, %v5376_v33  ;;  %v6333_v24 = vpack.c.bf16 %v6279_v48, %v6278_v15 }
 0x5bf   :  { %v15406_v53 = vpop.eup %15405  ;;  %15423 = vrcp.f32 %v5868_v0  ;;  %v5869_v3 = vadd.f32 1.0, %v15404_v9  ;;  %v12056_v31 = vmul.f32 -1.442695, %v17615_v16  ;;  %v6334_v39 = vpack.c.bf16 %v6281_v58, %v6280_v12 }
 0x5c0   :  { %15425 = vrcp.f32 %v5866_v29  ;;  %v5867_v6 = vadd.f32 1.0, %v15406_v53  ;;  %v12059_v55 = vmul.f32 -1.442695, %v17619_v1  ;;  %v12057_v60 = vmul.f32 -1.442695, %v17623_v23 }
 0x5c1   :  { %v15408_v43 = vpop.eup %15407  ;;  %15427 = vrcp.f32 %v5869_v3  ;;  %13643 = vmatmul.mubr.msk.bf16.gmra.mrb[16].mxu1 %vm149_vm3, %v6333_v24 }
 0x5c2   :  { %v15410_v19 = vpop.eup %15409  ;;  %v6056_v34 = vmul.f32 %v15408_v43, %v17534_v38  ;;  %15429 = vrcp.f32 %v5867_v6  ;;  %13646 = vmatprep.mubr.msk.bf16.mxu1 %vm149_vm3, %v6334_v39  ;;  %v13600_v41 = vpop.f32.mrb[40].mxu0  ;;  %v6284_v62 = vld [vmem:[#allocation3 + $0x121] sm:$0xff] }
 0x5c3   :  { %v15412_v13 = vpop.eup %15411  ;;  %v6054_v42 = vmul.f32 %v15410_v19, %v17538_v20  ;;  %15431 = vpow2.f32 %v12058_v25  ;;  %v17634_v52 = vadd.f32 %v13600_v41, %v18965_v11  ;;  %v5389_v28 = vpop.f32.mrb[41].mxu0  ;;  %v6282_v50 = vld [vmem:[#allocation3 + $0x109] sm:$0xff] }
 0x5c4   :  { %v15414_v61 = vpop.eup %15413  ;;  %6122 = vst.msk [vmem:[#allocation3 + $0x151] sm:$0xff] %vm149_vm3, %v6056_v34  ;;  %v6057_v7 = vmul.f32 %v15412_v13, %v17542_v35  ;;  %15433 = vpow2.f32 %v12056_v31  ;;  %v17639_v38 = vadd.f32 %v18965_v11, %v5389_v28  ;;  %v13601_v36 = vpop.f32.mrb[42].mxu0  ;;  %v6285_v2 = vld [vmem:[#allocation3 + $0x129] sm:$0xff] }
 0x5c5   :  { %v15416_v21 = vpop.eup %15415  ;;  %6120 = vst.msk [vmem:[#allocation3 + $0x139] sm:$0xff] %vm149_vm3, %v6054_v42  ;;  %v6055_v20 = vmul.f32 %v15414_v61, %v17546_v26  ;;  %15435 = vpow2.f32 %v12059_v55  ;;  %v12062_v40 = vmul.f32 -1.442695, %v17634_v52  ;;  %v17645_v27 = vadd.f32 %v13601_v36, %v18965_v11  ;;  %v5392_v56 = vpop.f32.mrb[43].mxu0  ;;  %v6283_v59 = vld [vmem:[#allocation3 + $0x111] sm:$0xff] }
 0x5c6   :  { %v15418_v35 = vpop.eup %15417  ;;  %6123 = vst.msk [vmem:[#allocation3 + $0x159] sm:$0xff] %vm149_vm3, %v6057_v7  ;;  %v5872_v22 = vadd.f32 1.0, %v15416_v21  ;;  %15437 = vpow2.f32 %v12057_v60  ;;  %v17649_v37 = vadd.f32 %v18965_v11, %v5392_v56  ;;  %v6335_v54 = vpack.c.bf16 %v6283_v59, %v6282_v50 }
 0x5c7   :  { %v15420_v18 = vpop.eup %15419  ;;  %6121 = vst.msk [vmem:[#allocation3 + $0x141] sm:$0xff] %vm149_vm3, %v6055_v20  ;;  %v5870_v26 = vadd.f32 1.0, %v15418_v35  ;;  %15439 = vpow2.f32 %v12062_v40  ;;  %v12060_v32 = vmul.f32 -1.442695, %v17639_v38  ;;  %v6336_v63 = vpack.c.bf16 %v6285_v2, %v6284_v62  ;;  %v6293_v62 = vld [vmem:[#allocation3 + $0x1b9] sm:$0xff] }
 0x5c8   :  { %v15422_v47 = vpop.eup %15421  ;;  %15441 = vrcp.f32 %v5872_v22  ;;  %v5873_v10 = vadd.f32 1.0, %v15420_v18  ;;  %v12063_v57 = vmul.f32 -1.442695, %v17645_v27  ;;  %v12061_v48 = vmul.f32 -1.442695, %v17649_v37 }
 0x5c9   :  { %v15424_v46 = vpop.eup %15423  ;;  %15443 = vrcp.f32 %v5870_v26  ;;  %v5871_v8 = vadd.f32 1.0, %v15422_v47  ;;  %13647 = vmatmul.mubr.msk.bf16.gmra.mrb[20].mxu1 %vm149_vm3, %v6335_v54  ;;  %v6292_v54 = vld [vmem:[#allocation3 + $0x1b1] sm:$0xff] }
 0x5ca   :  { %v15426_v0 = vpop.eup %15425  ;;  %v6060_v33 = vmul.f32 %v15424_v46, %v17560_v4  ;;  %15445 = vrcp.f32 %v5873_v10  ;;  %13650 = vmatprep.mubr.msk.bf16.mxu1 %vm149_vm3, %v6336_v63  ;;  %v13604_v58 = vpop.f32.mrb[44].mxu0 }
 0x5cb   :  { %v15428_v9 = vpop.eup %15427  ;;  %v6058_v29 = vmul.f32 %v15426_v0, %v17564_v51  ;;  %15447 = vrcp.f32 %v5871_v8  ;;  %v17660_v15 = vadd.f32 %v13604_v58, %v18965_v11  ;;  %v5405_v53 = vpop.f32.mrb[45].mxu0  ;;  %v6288_v42 = vld [vmem:[#allocation3 + $0x151] sm:$0xff] }
 0x5cc   :  { %v15430_v3 = vpop.eup %15429  ;;  %6126 = vst.msk [vmem:[#allocation3 + $0x181] sm:$0xff] %vm149_vm3, %v6060_v33  ;;  %v6061_v25 = vmul.f32 %v15428_v9, %v17568_v49  ;;  %15449 = vpow2.f32 %v12060_v32  ;;  %v17665_v4 = vadd.f32 %v18965_v11, %v5405_v53  ;;  %v13605_v24 = vpop.f32.mrb[46].mxu0  ;;  %v6286_v34 = vld [vmem:[#allocation3 + $0x139] sm:$0xff] }
 0x5cd   :  { %v15432_v12 = vpop.eup %15431  ;;  %6124 = vst.msk [vmem:[#allocation3 + $0x169] sm:$0xff] %vm149_vm3, %v6058_v29  ;;  %v6059_v51 = vmul.f32 %v15430_v3, %v17572_v45  ;;  %15451 = vpow2.f32 %v12063_v57  ;;  %v12066_v6 = vmul.f32 -1.442695, %v17660_v15  ;;  %v17671_v31 = vadd.f32 %v13605_v24, %v18965_v11  ;;  %v5408_v39 = vpop.f32.mrb[47].mxu0  ;;  %v6289_v43 = vld [vmem:[#allocation3 + $0x159] sm:$0xff] }
 0x5ce   :  { %v15434_v55 = vpop.eup %15433  ;;  %6127 = vst.msk [vmem:[#allocation3 + $0x189] sm:$0xff] %vm149_vm3, %v6061_v25  ;;  %v5876_v49 = vadd.f32 1.0, %v15432_v12  ;;  %15453 = vpow2.f32 %v12061_v48  ;;  %v17675_v19 = vadd.f32 %v18965_v11, %v5408_v39  ;;  %v6287_v60 = vld [vmem:[#allocation3 + $0x141] sm:$0xff]  ;;  %v6338_v7 = vpack.c.bf16 %v6289_v43, %v6288_v42 }
 0x5cf   :  { %v15436_v41 = vpop.eup %15435  ;;  %6125 = vst.msk [vmem:[#allocation3 + $0x171] sm:$0xff] %vm149_vm3, %v6059_v51  ;;  %v5874_v45 = vadd.f32 1.0, %v15434_v55  ;;  %15455 = vpow2.f32 %v12066_v6  ;;  %v6337_v13 = vpack.c.bf16 %v6287_v60, %v6286_v34  ;;  %v12064_v20 = vmul.f32 -1.442695, %v17665_v4 }
 0x5d0   :  { %v15438_v28 = vpop.eup %15437  ;;  %15457 = vrcp.f32 %v5876_v49  ;;  %v5877_v61 = vadd.f32 1.0, %v15436_v41  ;;  %v12067_v59 = vmul.f32 -1.442695, %v17671_v31  ;;  %v12065_v50 = vmul.f32 -1.442695, %v17675_v19 }
 0x5d1   :  { %v15440_v36 = vpop.eup %15439  ;;  %15459 = vrcp.f32 %v5874_v45  ;;  %v5875_v21 = vadd.f32 1.0, %v15438_v28  ;;  %13651 = vmatmul.mubr.msk.bf16.gmra.mrb[24].mxu1 %vm149_vm3, %v6337_v13  ;;  %v6340_v29 = vpack.c.bf16 %v6293_v62, %v6292_v54 }
 0x5d2   :  { %v15442_v40 = vpop.eup %15441  ;;  %15461 = vrcp.f32 %v5877_v61  ;;  %v5880_v56 = vadd.f32 1.0, %v15440_v36  ;;  %13654 = vmatprep.mubr.msk.bf16.mxu1 %vm149_vm3, %v6338_v7  ;;  %v13608_v2 = vpop.f32.mrb[48].mxu0 }
 0x5d3   :  { %v15444_v35 = vpop.eup %15443  ;;  %v6064_v22 = vmul.f32 %v15442_v40, %v17584_v14  ;;  %15463 = vrcp.f32 %v5875_v21  ;;  %v17685_v18 = vadd.f32 %v13608_v2, %v18965_v11  ;;  %v5421_v26 = vpop.f32.mrb[49].mxu0 }
 0x5d4   :  { %v15446_v47 = vpop.eup %15445  ;;  %v6062_v10 = vmul.f32 %v15444_v35, %v17589_v44  ;;  %15465 = vrcp.f32 %v5880_v56  ;;  %v17689_v32 = vadd.f32 %v18965_v11, %v5421_v26  ;;  %v13609_v63 = vpop.f32.mrb[50].mxu0  ;;  %v6290_v58 = vld [vmem:[#allocation3 + $0x169] sm:$0xff] }
 0x5d5   :  { %v15448_v46 = vpop.eup %15447  ;;  %6130 = vst.msk [vmem:[#allocation3 + $0x1e1] sm:$0xff] %vm149_vm3, %v6064_v22  ;;  %v6065_v14 = vmul.f32 %v15446_v47, %v17593_v17  ;;  %15467 = vpow2.f32 %v12064_v20  ;;  %v12070_v8 = vmul.f32 -1.442695, %v17685_v18  ;;  %v17695_v57 = vadd.f32 %v13609_v63, %v18965_v11  ;;  %v5424_v0 = vpop.f32.mrb[51].mxu0 }
 0x5d6   :  { %v15450_v33 = vpop.eup %15449  ;;  %6128 = vst.msk [vmem:[#allocation3 + $0x1c9] sm:$0xff] %vm149_vm3, %v6062_v10  ;;  %v6063_v44 = vmul.f32 %v15448_v46, %v17597_v5  ;;  %15469 = vpow2.f32 %v12067_v59  ;;  %v17700_v48 = vadd.f32 %v18965_v11, %v5424_v0  ;;  %v6291_v9 = vld [vmem:[#allocation3 + $0x171] sm:$0xff]  ;;  %v12068_v51 = vmul.f32 -1.442695, %v17689_v32 }
 0x5d7   :  { %v15452_v17 = vpop.eup %15451  ;;  %6131 = vst.msk [vmem:[#allocation3 + $0x1e9] sm:$0xff] %vm149_vm3, %v6065_v14  ;;  %v5878_v53 = vadd.f32 1.0, %v15450_v33  ;;  %15471 = vpow2.f32 %v12065_v50  ;;  %v6339_v3 = vpack.c.bf16 %v6291_v9, %v6290_v58  ;;  %v12071_v43 = vmul.f32 -1.442695, %v17695_v57 }
 0x5d8   :  { %v15454_v25 = vpop.eup %15453  ;;  %6129 = vst.msk [vmem:[#allocation3 + $0x1d1] sm:$0xff] %vm149_vm3, %v6063_v44  ;;  %v5881_v24 = vadd.f32 1.0, %v15452_v17  ;;  %15473 = vpow2.f32 %v12070_v8  ;;  %v12069_v60 = vmul.f32 -1.442695, %v17700_v48 }
 0x5d9   :  { %v15456_v12 = vpop.eup %15455  ;;  %15475 = vrcp.f32 %v5878_v53  ;;  %v5879_v5 = vadd.f32 1.0, %v15454_v25  ;;  %13655 = vmatmul.mubr.msk.bf16.gmra.mrb[28].mxu1 %vm149_vm3, %v6339_v3 }
 0x5da   :  { %v15458_v6 = vpop.eup %15457  ;;  %15477 = vrcp.f32 %v5881_v24  ;;  %v5884_v39 = vadd.f32 1.0, %v15456_v12  ;;  %v13612_v55 = vpop.f32.mrb[52].mxu0  ;;  %13658 = vmatprep.mubr.msk.bf16.mxu1 %vm149_vm3, %v6340_v29 }
 0x5db   :  { %v15460_v49 = vpop.eup %15459  ;;  %v6068_v34 = vmul.f32 %v15458_v6, %v17610_v30  ;;  %15479 = vrcp.f32 %v5879_v5  ;;  %v17711_v41 = vadd.f32 %v13612_v55, %v18965_v11  ;;  %v5437_v45 = vpop.f32.mrb[53].mxu0 }
 0x5dc   :  { %v15462_v13 = vpop.eup %15461  ;;  %v6066_v42 = vmul.f32 %v15460_v49, %v17615_v16  ;;  %15481 = vrcp.f32 %v5884_v39  ;;  %v17715_v28 = vadd.f32 %v18965_v11, %v5437_v45  ;;  %v13613_v61 = vpop.f32.mrb[54].mxu0  ;;  %v6296_v62 = vld [vmem:[#allocation3 + $0x1e1] sm:$0xff] }
 0x5dd   :  { %v15464_v7 = vpop.eup %15463  ;;  %6134 = vst.msk [vmem:[#allocation3 + $0x211] sm:$0xff] %vm149_vm3, %v6068_v34  ;;  %v6069_v30 = vmul.f32 %v15462_v13, %v17619_v1  ;;  %15483 = vpow2.f32 %v12068_v51  ;;  %v12074_v36 = vmul.f32 -1.442695, %v17711_v41  ;;  %v17721_v21 = vadd.f32 %v13613_v61, %v18965_v11  ;;  %v5440_v20 = vpop.f32.mrb[55].mxu0  ;;  %v6294_v22 = vld [vmem:[#allocation3 + $0x1c9] sm:$0xff] }
 0x5de   :  { %v15466_v40 = vpop.eup %15465  ;;  %6132 = vst.msk [vmem:[#allocation3 + $0x1f9] sm:$0xff] %vm149_vm3, %v6066_v42  ;;  %v6067_v16 = vmul.f32 %v15464_v7, %v17623_v23  ;;  %15485 = vpow2.f32 %v12071_v43  ;;  %v12072_v56 = vmul.f32 -1.442695, %v17715_v28  ;;  %v17727_v59 = vadd.f32 %v18965_v11, %v5440_v20  ;;  %v6297_v2 = vld [vmem:[#allocation3 + $0x1e9] sm:$0xff] }
 0x5df   :  { %v15468_v1 = vpop.eup %15467  ;;  %6135 = vst.msk [vmem:[#allocation3 + $0x219] sm:$0xff] %vm149_vm3, %v6069_v30  ;;  %v6072_v35 = vmul.f32 %v15466_v40, %v17634_v52  ;;  %15487 = vpow2.f32 %v12069_v60  ;;  %v6295_v50 = vld [vmem:[#allocation3 + $0x1d1] sm:$0xff]  ;;  %v6342_v63 = vpack.c.bf16 %v6297_v2, %v6296_v62  ;;  %v12075_v52 = vmul.f32 -1.442695, %v17721_v21 }
 0x5e0   :  { %v15470_v26 = vpop.eup %15469  ;;  %6133 = vst.msk [vmem:[#allocation3 + $0x201] sm:$0xff] %vm149_vm3, %v6067_v16  ;;  %v5882_v54 = vadd.f32 1.0, %v15468_v1  ;;  %15489 = vpow2.f32 %v12074_v36  ;;  %v6341_v23 = vpack.c.bf16 %v6295_v50, %v6294_v22  ;;  %v12073_v44 = vmul.f32 -1.442695, %v17727_v59 }
 0x5e1   :  { %v15472_v47 = vpop.eup %15471  ;;  %6138 = vst.msk [vmem:[#allocation3 + $0x241] sm:$0xff] %vm149_vm3, %v6072_v35  ;;  %v5885_v10 = vadd.f32 1.0, %v15470_v26  ;;  %15491 = vpow2.f32 %v12072_v56 }
 0x5e2   :  { %v15474_v46 = vpop.eup %15473  ;;  %15493 = vrcp.f32 %v5882_v54  ;;  %v5883_v14 = vadd.f32 1.0, %v15472_v47  ;;  %13659 = vmatmul.mubr.msk.bf16.gmra.mrb[32].mxu1 %vm149_vm3, %v6341_v23  ;;  %v13616_v8 = vpop.f32.mrb[56].mxu0 }
 0x5e3   :  { %v15476_v0 = vpop.eup %15475  ;;  %15495 = vrcp.f32 %v5885_v10  ;;  %v5888_v33 = vadd.f32 1.0, %v15474_v46  ;;  %13662 = vmatprep.mubr.msk.bf16.mxu1 %vm149_vm3, %v6342_v63  ;;  %v17738_v58 = vadd.f32 %v13616_v8, %v18965_v11  ;;  %v5453_v9 = vpop.f32.mrb[57].mxu0 }
 0x5e4   :  { %v15478_v29 = vpop.eup %15477  ;;  %v6070_v17 = vmul.f32 %v15476_v0, %v17639_v38  ;;  %15497 = vrcp.f32 %v5883_v14  ;;  %v17742_v53 = vadd.f32 %v18965_v11, %v5453_v9  ;;  %v13617_v3 = vpop.f32.mrb[58].mxu0  ;;  %v6300_v42 = vld [vmem:[#allocation3 + $0x211] sm:$0xff] }
 0x5e5   :  { %v15480_v25 = vpop.eup %15479  ;;  %v6073_v24 = vmul.f32 %v15478_v29, %v17645_v27  ;;  %15499 = vrcp.f32 %v5888_v33  ;;  %v12078_v12 = vmul.f32 -1.442695, %v17738_v58  ;;  %v17747_v5 = vadd.f32 %v13617_v3, %v18965_v11  ;;  %v5456_v51 = vpop.f32.mrb[59].mxu0  ;;  %v6298_v34 = vld [vmem:[#allocation3 + $0x1f9] sm:$0xff] }
 0x5e6   :  { %v15482_v6 = vpop.eup %15481  ;;  %6136 = vst.msk [vmem:[#allocation3 + $0x229] sm:$0xff] %vm149_vm3, %v6070_v17  ;;  %v6071_v38 = vmul.f32 %v15480_v25, %v17649_v37  ;;  %15501 = vpow2.f32 %v12075_v52  ;;  %v12076_v39 = vmul.f32 -1.442695, %v17742_v53  ;;  %v17753_v43 = vadd.f32 %v18965_v11, %v5456_v51  ;;  %v6301_v55 = vld [vmem:[#allocation3 + $0x219] sm:$0xff] }
 0x5e7   :  { %v15484_v27 = vpop.eup %15483  ;;  %6139 = vst.msk [vmem:[#allocation3 + $0x249] sm:$0xff] %vm149_vm3, %v6073_v24  ;;  %v6076_v49 = vmul.f32 %v15482_v6, %v17660_v15  ;;  %15503 = vpow2.f32 %v12073_v44  ;;  %v6299_v60 = vld [vmem:[#allocation3 + $0x201] sm:$0xff]  ;;  %v6344_v30 = vpack.c.bf16 %v6301_v55, %v6300_v42  ;;  %v12079_v56 = vmul.f32 -1.442695, %v17747_v5 }
 0x5e8   :  { %v15486_v45 = vpop.eup %15485  ;;  %6137 = vst.msk [vmem:[#allocation3 + $0x231] sm:$0xff] %vm149_vm3, %v6071_v38  ;;  %v5886_v13 = vadd.f32 1.0, %v15484_v27  ;;  %15505 = vpow2.f32 %v12078_v12  ;;  %v6343_v37 = vpack.c.bf16 %v6299_v60, %v6298_v34  ;;  %v12077_v50 = vmul.f32 -1.442695, %v17753_v43  ;;  %v6304_v3 = vld [vmem:[#allocation3 + $0x241] sm:$0xff] }
 0x5e9   :  { %v15488_v61 = vpop.eup %15487  ;;  %6142 = vst.msk [vmem:[#allocation3 + $0x271] sm:$0xff] %vm149_vm3, %v6076_v49  ;;  %v5889_v7 = vadd.f32 1.0, %v15486_v45  ;;  %15507 = vpow2.f32 %v12076_v39 }
 0x5ea   :  { %v15490_v36 = vpop.eup %15489  ;;  %15509 = vrcp.f32 %v5886_v13  ;;  %v5887_v20 = vadd.f32 1.0, %v15488_v61  ;;  %13663 = vmatmul.mubr.msk.bf16.gmra.mrb[36].mxu1 %vm149_vm3, %v6343_v37  ;;  %v13620_v15 = vpop.f32.mrb[60].mxu0 }
 0x5eb   :  { %v15492_v40 = vpop.eup %15491  ;;  %15511 = vrcp.f32 %v5889_v7  ;;  %v5892_v16 = vadd.f32 1.0, %v15490_v36  ;;  %13666 = vmatprep.mubr.msk.bf16.mxu1 %vm149_vm3, %v6344_v30  ;;  %v17763_v2 = vadd.f32 %v13620_v15, %v18965_v11  ;;  %v5469_v1 = vpop.f32.mrb[61].mxu0 }
 0x5ec   :  { %v15494_v35 = vpop.eup %15493  ;;  %15513 = vrcp.f32 %v5887_v20  ;;  %v5890_v22 = vadd.f32 1.0, %v15492_v40  ;;  %v17767_v26 = vadd.f32 %v18965_v11, %v5469_v1  ;;  %v13621_v54 = vpop.f32.mrb[62].mxu0 }
 0x5ed   :  { %v15496_v23 = vpop.eup %15495  ;;  %v6074_v62 = vmul.f32 %v15494_v35, %v17665_v4  ;;  %15515 = vrcp.f32 %v5892_v16  ;;  %v12082_v47 = vmul.f32 -1.442695, %v17763_v2  ;;  %v17772_v10 = vadd.f32 %v13621_v54, %v18965_v11  ;;  %v5472_v63 = vpop.f32.mrb[63].mxu0  ;;  %v6302_v44 = vld [vmem:[#allocation3 + $0x229] sm:$0xff] }
 0x5ee   :  { %v15498_v46 = vpop.eup %15497  ;;  %v6077_v14 = vmul.f32 %v15496_v23, %v17671_v31  ;;  %15517 = vrcp.f32 %v5890_v22  ;;  %v12080_v52 = vmul.f32 -1.442695, %v17767_v26  ;;  %v17777_v8 = vadd.f32 %v18965_v11, %v5472_v63  ;;  %v6305_v0 = vld [vmem:[#allocation3 + $0x249] sm:$0xff] }
 0x5ef   :  { %v15500_v33 = vpop.eup %15499  ;;  %6140 = vst.msk [vmem:[#allocation3 + $0x259] sm:$0xff] %vm149_vm3, %v6074_v62  ;;  %v6075_v4 = vmul.f32 %v15498_v46, %v17675_v19  ;;  %15519 = vpow2.f32 %v12079_v56  ;;  %v6303_v9 = vld [vmem:[#allocation3 + $0x231] sm:$0xff]  ;;  %v6346_v24 = vpack.c.bf16 %v6305_v0, %v6304_v3 }
 0x5f0   :  { %v15502_v29 = vpop.eup %15501  ;;  %6143 = vst.msk [vmem:[#allocation3 + $0x279] sm:$0xff] %vm149_vm3, %v6077_v14  ;;  %v6080_v31 = vmul.f32 %v15500_v33, %v17685_v18  ;;  %15521 = vpow2.f32 %v12077_v50  ;;  %v6345_v17 = vpack.c.bf16 %v6303_v9, %v6302_v44  ;;  %v12083_v18 = vmul.f32 -1.442695, %v17772_v10  ;;  %v6308_v20 = vld [vmem:[#allocation3 + $0x271] sm:$0xff] }
 0x5f1   :  { %v15504_v25 = vpop.eup %15503  ;;  %6141 = vst.msk [vmem:[#allocation3 + $0x261] sm:$0xff] %vm149_vm3, %v6075_v4  ;;  %v5893_v11 = vadd.f32 1.0, %v15502_v29  ;;  %15523 = vpow2.f32 %v12082_v47  ;;  %v12081_v55 = vmul.f32 -1.442695, %v17777_v8 }
 0x5f2   :  { %v15506_v12 = vpop.eup %15505  ;;  %6146 = vst.msk [vmem:[#allocation3 + $0x2a1] sm:$0xff] %vm149_vm3, %v6080_v31  ;;  %v5891_v19 = vadd.f32 1.0, %v15504_v25  ;;  %15525 = vpow2.f32 %v12080_v52  ;;  %13667 = vmatmul.mubr.msk.bf16.gmra.mrb[40].mxu1 %vm149_vm3, %v6345_v17 }
 0x5f3   :  { %v15508_v51 = vpop.eup %15507  ;;  %15527 = vrcp.f32 %v5893_v11  ;;  %v5896_v6 = vadd.f32 1.0, %v15506_v12  ;;  %13670 = vmatprep.mubr.msk.bf16.mxu1 %vm149_vm3, %v6346_v24 }
 0x5f4   :  { %v15510_v38 = vpop.eup %15509  ;;  %15529 = vrcp.f32 %v5891_v19  ;;  %v5894_v39 = vadd.f32 1.0, %v15508_v51 }
 0x5f5   :  { %v15512_v27 = vpop.eup %15511  ;;  %v6078_v49 = vmul.f32 %v15510_v38, %v17689_v32  ;;  %15531 = vrcp.f32 %v5896_v6 }
 0x5f6   :  { %v15514_v34 = vpop.eup %15513  ;;  %v6081_v60 = vmul.f32 %v15512_v27, %v17695_v57  ;;  %15533 = vrcp.f32 %v5894_v39  ;;  %v6306_v7 = vld [vmem:[#allocation3 + $0x259] sm:$0xff] }
 0x5f7   :  { %v15516_v45 = vpop.eup %15515  ;;  %6144 = vst.msk [vmem:[#allocation3 + $0x289] sm:$0xff] %vm149_vm3, %v6078_v49  ;;  %v6079_v13 = vmul.f32 %v15514_v34, %v17700_v48  ;;  %15535 = vpow2.f32 %v12083_v18  ;;  %v6309_v37 = vld [vmem:[#allocation3 + $0x279] sm:$0xff] }
 0x5f8   :  { %v15518_v42 = vpop.eup %15517  ;;  %6147 = vst.msk [vmem:[#allocation3 + $0x2a9] sm:$0xff] %vm149_vm3, %v6081_v60  ;;  %v6084_v61 = vmul.f32 %v15516_v45, %v17711_v41  ;;  %15537 = vpow2.f32 %v12081_v55  ;;  %v6307_v32 = vld [vmem:[#allocation3 + $0x261] sm:$0xff]  ;;  %v6348_v40 = vpack.c.bf16 %v6309_v37, %v6308_v20 }
 0x5f9   :  { %v15520_v30 = vpop.eup %15519  ;;  %6145 = vst.msk [vmem:[#allocation3 + $0x291] sm:$0xff] %vm149_vm3, %v6079_v13  ;;  %v6082_v57 = vmul.f32 %v15518_v42, %v17715_v28  ;;  %v6347_v36 = vpack.c.bf16 %v6307_v32, %v6306_v7  ;;  %v6160_v60 = vld [vmem:[#allocation3] sm:$0xff]  ;;  %v6161_v45 = vld [vmem:[#allocation3 + $0x8] sm:$0xff]  ;;  %v6162_v7 = vld [vmem:[#allocation3 + $0x18] sm:$0xff] }
 0x5fa   :  { %v15522_v15 = vpop.eup %15521  ;;  %6150 = vst.msk [vmem:[#allocation3 + $0x2d1] sm:$0xff] %vm149_vm3, %v6084_v61  ;;  %v5897_v48 = vadd.f32 1.0, %v15520_v30  ;;  %v6224_v37 = vpack.c.bf16 %v6161_v45, %v6160_v60  ;;  %v6163_v42 = vld [vmem:[#allocation3 + $0x20] sm:$0xff]  ;;  %v6165_v61 = vld [vmem:[#allocation3 + $0x38] sm:$0xff]  ;;  %v6164_v30 = vld [vmem:[#allocation3 + $0x30] sm:$0xff] }
 0x5fb   :  { %v15524_v16 = vpop.eup %15523  ;;  %6148 = vst.msk [vmem:[#allocation3 + $0x2b9] sm:$0xff] %vm149_vm3, %v6082_v57  ;;  %v5895_v56 = vadd.f32 1.0, %v15522_v15  ;;  %13671 = vmatmul.mubr.msk.bf16.gmra.mrb[44].mxu1 %vm149_vm3, %v6347_v36  ;;  %v17829_v32 = vpack.c.bf16 %v6163_v42, %v6162_v7  ;;  %v15282_v57 = vld [vmem:[%s18930_s6 + $0x28] sm:$0xff]   ;;  %v17834_v36 = vpack.c.bf16 %v6165_v61, %v6164_v30  ;;  %v15551_v20 = vld [vmem:[%s18930_s6 + $0x20] sm:$0xff]   ;;  %v17846_v15 = vld [vmem:[%s18930_s6 + $0x30] sm:$0xff]  }
 0x5fc   :  { %v15526_v41 = vpop.eup %15525  ;;  %15539 = vrcp.f32 %v5897_v48  ;;  %v5900_v1 = vadd.f32 1.0, %v15524_v16  ;;  %13674 = vmatprep.mubr.msk.bf16.mxu1 %vm149_vm3, %v6348_v40  ;;  %v6167_v48 = vld [vmem:[#allocation3 + $0x50] sm:$0xff]  ;;  %v6169_v40 = vld [vmem:[#allocation3 + $0x68] sm:$0xff]  ;;  %v6201_v60 = vld [vmem:[#allocation3 + $0x218] sm:$0xff] }
 0x5fd   :  { %v15528_v35 = vpop.eup %15527  ;;  %15541 = vrcp.f32 %v5895_v56  ;;  %v5898_v28 = vadd.f32 1.0, %v15526_v41  ;;  %v6166_v16 = vld [vmem:[#allocation3 + $0x48] sm:$0xff]  ;;  %v6168_v41 = vld [vmem:[#allocation3 + $0x60] sm:$0xff]  ;;  %v6198_v45 = vld [vmem:[#allocation3 + $0x1f8] sm:$0xff] }
 0x5fe   :  { %v15530_v22 = vpop.eup %15529  ;;  %v6085_v50 = vmul.f32 %v15528_v35, %v17721_v21  ;;  %15543 = vrcp.f32 %v5900_v1  ;;  %v6310_v46 = vld [vmem:[#allocation3 + $0x289] sm:$0xff]  ;;  %v6312_v21 = vld [vmem:[#allocation3 + $0x2a1] sm:$0xff]  ;;  %v17848_v56 = vpack.c.bf16 %v6167_v48, %v6166_v16  ;;  %v17851_v1 = vpack.c.bf16 %v6169_v40, %v6168_v41  ;;  %v6209_v48 = vld [vmem:[#allocation3 + $0x278] sm:$0xff] }
 0x5ff   :  { %v15532_v54 = vpop.eup %15531  ;;  %v6083_v23 = vmul.f32 %v15530_v22, %v17727_v59  ;;  %15545 = vrcp.f32 %v5898_v28  ;;  %v6313_v62 = vld [vmem:[#allocation3 + $0x2a9] sm:$0xff]  ;;  %v6171_v35 = vld [vmem:[#allocation3 + $0x80] sm:$0xff]  ;;  %v6173_v28 = vld [vmem:[#allocation3 + $0x98] sm:$0xff] }
 0x600   :  { %v15534_v47 = vpop.eup %15533  ;;  %6151 = vst.msk [vmem:[#allocation3 + $0x2d9] sm:$0xff] %vm149_vm3, %v6085_v50  ;;  %v6088_v63 = vmul.f32 %v15532_v54, %v17738_v58  ;;  %v6311_v14 = vld [vmem:[#allocation3 + $0x291] sm:$0xff]  ;;  %v6350_v44 = vpack.c.bf16 %v6313_v62, %v6312_v21  ;;  %v6205_v42 = vld [vmem:[#allocation3 + $0x248] sm:$0xff]  ;;  %v6204_v30 = vld [vmem:[#allocation3 + $0x240] sm:$0xff] }
 0x601   :  { %v15536_v52 = vpop.eup %15535  ;;  %6149 = vst.msk [vmem:[#allocation3 + $0x2c1] sm:$0xff] %vm149_vm3, %v6083_v23  ;;  %v6086_v0 = vmul.f32 %v15534_v47, %v17742_v53  ;;  %v6349_v33 = vpack.c.bf16 %v6311_v14, %v6310_v46  ;;  %v6316_v51 = vld [vmem:[#allocation3 + $0x2d1] sm:$0xff]  ;;  %v6177_v47 = vld [vmem:[#allocation3 + $0xc8] sm:$0xff]  ;;  %v6176_v14 = vld [vmem:[#allocation3 + $0xc0] sm:$0xff] }
 0x602   :  { %v15538_v4 = vpop.eup %15537  ;;  %6154 = vst.msk [vmem:[#allocation3 + $0x301] sm:$0xff] %vm149_vm3, %v6088_v63  ;;  %v5901_v59 = vadd.f32 1.0, %v15536_v52  ;;  %v6314_v25 = vld [vmem:[#allocation3 + $0x2b9] sm:$0xff]  ;;  %v6172_v54 = vld [vmem:[#allocation3 + $0x90] sm:$0xff]  ;;  %v6174_v63 = vld [vmem:[#allocation3 + $0xa8] sm:$0xff]  ;;  %v17867_v52 = vpack.c.bf16 %v6177_v47, %v6176_v14 }
 0x603   :  { %6152 = vst.msk [vmem:[#allocation3 + $0x2e9] sm:$0xff] %vm149_vm3, %v6086_v0  ;;  %v5899_v9 = vadd.f32 1.0, %v15538_v4  ;;  %13675 = vmatmul.mubr.msk.bf16.gmra.mrb[48].mxu1 %vm149_vm3, %v6349_v33  ;;  %v6170_v22 = vld [vmem:[#allocation3 + $0x78] sm:$0xff]  ;;  %v17859_v23 = vpack.c.bf16 %v6173_v28, %v6172_v54  ;;  %v6175_v62 = vld [vmem:[#allocation3 + $0xb0] sm:$0xff]  ;;  %v6179_v0 = vld [vmem:[#allocation3 + $0xe0] sm:$0xff] }
 0x604   :  { %15547 = vrcp.f32 %v5901_v59  ;;  %13678 = vmatprep.mubr.msk.bf16.mxu1 %vm149_vm3, %v6350_v44  ;;  %v17857_v50 = vpack.c.bf16 %v6171_v35, %v6170_v22  ;;  %v17865_v46 = vpack.c.bf16 %v6175_v62, %v6174_v63  ;;  %v6181_v33 = vld [vmem:[#allocation3 + $0xf8] sm:$0xff]  ;;  %v6180_v59 = vld [vmem:[#allocation3 + $0xf0] sm:$0xff]  ;;  %v6202_v61 = vld [vmem:[#allocation3 + $0x228] sm:$0xff] }
 0x605   :  { %15549 = vrcp.f32 %v5899_v9  ;;  %v6178_v21 = vld [vmem:[#allocation3 + $0xd8] sm:$0xff]  ;;  %v17875_v44 = vpack.c.bf16 %v6181_v33, %v6180_v59  ;;  %v6183_v9 = vld [vmem:[#allocation3 + $0x110] sm:$0xff]  ;;  %v6213_v22 = vld [vmem:[#allocation3 + $0x2a8] sm:$0xff] }
 0x606   :  { %v15540_v58 = vpop.eup %15539  ;;  %v17873_v4 = vpack.c.bf16 %v6179_v0, %v6178_v21  ;;  %v6206_v40 = vld [vmem:[#allocation3 + $0x258] sm:$0xff]  ;;  %v6208_v41 = vld [vmem:[#allocation3 + $0x270] sm:$0xff]  ;;  %v6210_v54 = vld [vmem:[#allocation3 + $0x288] sm:$0xff] }
 0x607   :  { %v15542_v29 = vpop.eup %15541  ;;  %v6089_v53 = vmul.f32 %v15540_v58, %v17747_v5  ;;  %v6317_v31 = vld [vmem:[#allocation3 + $0x2d9] sm:$0xff]  ;;  %v6185_v58 = vld [vmem:[#allocation3 + $0x128] sm:$0xff]  ;;  %v17928_v35 = vpack.c.bf16 %v6209_v48, %v6208_v41  ;;  %v6211_v28 = vld [vmem:[#allocation3 + $0x290] sm:$0xff] }
 0x608   :  { %v15544_v17 = vpop.eup %15543  ;;  %v6087_v3 = vmul.f32 %v15542_v29, %v17753_v43  ;;  %v6315_v11 = vld [vmem:[#allocation3 + $0x2c1] sm:$0xff]  ;;  %v6352_v18 = vpack.c.bf16 %v6317_v31, %v6316_v51  ;;  %v6192_v51 = vld [vmem:[#allocation3 + $0x1b0] sm:$0xff]  ;;  %v17934_v62 = vpack.c.bf16 %v6211_v28, %v6210_v54  ;;  %v6217_v0 = vld [vmem:[#allocation3 + $0x2d8] sm:$0xff] }
 0x609   :  { %v15546_v24 = vpop.eup %15545  ;;  %6155 = vst.msk [vmem:[#allocation3 + $0x309] sm:$0xff] %vm149_vm3, %v6089_v53  ;;  %v6092_v12 = vmul.f32 %v15544_v17, %v17763_v2  ;;  %v6351_v19 = vpack.c.bf16 %v6315_v11, %v6314_v25  ;;  %v6320_v49 = vld [vmem:[#allocation3 + $0x301] sm:$0xff]  ;;  %v6189_v25 = vld [vmem:[#allocation3 + $0x158] sm:$0xff]  ;;  %v6216_v59 = vld [vmem:[#allocation3 + $0x2d0] sm:$0xff] }
 0x60a   :  { %6153 = vst.msk [vmem:[#allocation3 + $0x2f1] sm:$0xff] %vm149_vm3, %v6087_v3  ;;  %v6090_v6 = vmul.f32 %v15546_v24, %v17767_v26  ;;  %v6318_v55 = vld [vmem:[#allocation3 + $0x2e9] sm:$0xff]  ;;  %v6184_v31 = vld [vmem:[#allocation3 + $0x120] sm:$0xff]  ;;  %v6186_v11 = vld [vmem:[#allocation3 + $0x138] sm:$0xff] }
 0x60b   :  { %6158 = vst.msk [vmem:[#allocation3 + $0x331] sm:$0xff] %vm149_vm3, %v6092_v12  ;;  %13679 = vmatmul.mubr.msk.bf16.gmra.mrb[52].mxu1 %vm149_vm3, %v6351_v19  ;;  %v6182_v29 = vld [vmem:[#allocation3 + $0x108] sm:$0xff]  ;;  %v17883_v17 = vpack.c.bf16 %v6185_v58, %v6184_v31  ;;  %v6187_v3 = vld [vmem:[#allocation3 + $0x140] sm:$0xff]  ;;  %v6188_v12 = vld [vmem:[#allocation3 + $0x150] sm:$0xff] }
 0x60c   :  { %6156 = vst.msk [vmem:[#allocation3 + $0x319] sm:$0xff] %vm149_vm3, %v6090_v6  ;;  %13682 = vmatprep.mubr.msk.bf16.mxu1 %vm149_vm3, %v6352_v18  ;;  %v17881_v53 = vpack.c.bf16 %v6183_v9, %v6182_v29  ;;  %v17889_v24 = vpack.c.bf16 %v6187_v3, %v6186_v11  ;;  %v17891_v19 = vpack.c.bf16 %v6189_v25, %v6188_v12  ;;  %v6193_v6 = vld [vmem:[#allocation3 + $0x1b8] sm:$0xff]  ;;  %v6191_v18 = vld [vmem:[#allocation3 + $0x170] sm:$0xff]  ;;  %v6212_v47 = vld [vmem:[#allocation3 + $0x2a0] sm:$0xff] }
 0x60d   :  { %v17936_v63 = vpack.c.bf16 %v6213_v22, %v6212_v47  ;;  %v6215_v14 = vld [vmem:[#allocation3 + $0x2c0] sm:$0xff]  ;;  %v6214_v33 = vld [vmem:[#allocation3 + $0x2b8] sm:$0xff]  ;;  %v17944_v9 = vpack.c.bf16 %v6217_v0, %v6216_v59  ;;  %v6218_v31 = vld [vmem:[#allocation3 + $0x2e8] sm:$0xff] }
 0x60e   :  { %v15548_v5 = vpop.eup %15547  ;;  %v17942_v21 = vpack.c.bf16 %v6215_v14, %v6214_v33  ;;  %v6220_v25 = vld [vmem:[#allocation3 + $0x300] sm:$0xff]  ;;  %v7167_v41 = vld [vmem:[#allocation3 + $0x92] sm:$0xff]  ;;  %v7169_v47 = vld [vmem:[#allocation3 + $0xaa] sm:$0xff] }
 0x60f   :  { %v15550_v43 = vpop.eup %15549  ;;  %v6093_v38 = vmul.f32 %v15548_v5, %v17772_v10  ;;  %v6190_v5 = vld [vmem:[#allocation3 + $0x168] sm:$0xff]  ;;  %v7168_v28 = vld [vmem:[#allocation3 + $0x9a] sm:$0xff]  ;;  %v7170_v14 = vld [vmem:[#allocation3 + $0xb2] sm:$0xff] }
 0x610   :  { %v6091_v2 = vmul.f32 %v15550_v43, %v17777_v8  ;;  %v6321_v39 = vld [vmem:[#allocation3 + $0x309] sm:$0xff]  ;;  %v6240_v43 = vpack.c.bf16 %v6193_v6, %v6192_v51  ;;  %v17991_v54 = vpack.c.bf16 %v7168_v28, %v7167_v41  ;;  %v17997_v59 = vpack.c.bf16 %v7170_v14, %v7169_v47  ;;  %v7188_v41 = vld [vmem:[#allocation3 + $0x1ba] sm:$0xff]  ;;  %v7186_v47 = vld [vmem:[#allocation3 + $0x172] sm:$0xff] }
 0x611   :  { %6159 = vst.msk [vmem:[#allocation3 + $0x339] sm:$0xff] %vm149_vm3, %v6093_v38  ;;  %v6319_v26 = vld [vmem:[#allocation3 + $0x2f1] sm:$0xff]  ;;  %v6354_v34 = vpack.c.bf16 %v6321_v39, %v6320_v49  ;;  %v17897_v38 = vpack.c.bf16 %v6191_v18, %v6190_v5  ;;  %v6197_v39 = vld [vmem:[#allocation3 + $0x1e8] sm:$0xff] }
 0x612   :  { %6157 = vst.msk [vmem:[#allocation3 + $0x321] sm:$0xff] %vm149_vm3, %v6091_v2  ;;  %v6353_v27 = vpack.c.bf16 %v6319_v26, %v6318_v55  ;;  %v6195_v2 = vld [vmem:[#allocation3 + $0x1d0] sm:$0xff]  ;;  %v6194_v55 = vld [vmem:[#allocation3 + $0x1c8] sm:$0xff] }
 0x613   :  { %v6322_v13 = vld [vmem:[#allocation3 + $0x319] sm:$0xff]  ;;  %v17902_v26 = vpack.c.bf16 %v6195_v2, %v6194_v55  ;;  %v6219_v58 = vld [vmem:[#allocation3 + $0x2f0] sm:$0xff]  ;;  %v6221_v29 = vld [vmem:[#allocation3 + $0x308] sm:$0xff] }
 0x614   :  { %13683 = vmatmul.mubr.msk.bf16.gmra.mrb[56].mxu1 %vm149_vm3, %v6353_v27  ;;  %v6196_v27 = vld [vmem:[#allocation3 + $0x1e0] sm:$0xff]  ;;  %v17950_v3 = vpack.c.bf16 %v6219_v58, %v6218_v31  ;;  %v17952_v11 = vpack.c.bf16 %v6221_v29, %v6220_v25  ;;  %v7156_v51 = vld [vmem:[#allocation3 + $0xa] sm:$0xff]  ;;  %v6222_v18 = vld [vmem:[#allocation3 + $0x318] sm:$0xff] }
 0x615   :  { %13686 = vmatprep.mubr.msk.bf16.mxu1 %vm149_vm3, %v6354_v34  ;;  %v17904_v49 = vpack.c.bf16 %v6197_v39, %v6196_v27  ;;  %v6199_v34 = vld [vmem:[#allocation3 + $0x200] sm:$0xff]  ;;  %v7159_v55 = vld [vmem:[#allocation3 + $0x32] sm:$0xff]  ;;  %v7172_v33 = vld [vmem:[#allocation3 + $0xca] sm:$0xff] }
 0x616   :  { %v7155_v12 = vld [vmem:[#allocation3 + $0x2] sm:$0xff]  ;;  %v7157_v2 = vld [vmem:[#allocation3 + $0x1a] sm:$0xff]  ;;  %v7175_v25 = vld [vmem:[#allocation3 + $0xf2] sm:$0xff] }
 0x617   :  { %v7219_v5 = vpack.c.bf16 %v7156_v51, %v7155_v12  ;;  %v7158_v39 = vld [vmem:[#allocation3 + $0x22] sm:$0xff]  ;;  %v7160_v27 = vld [vmem:[#allocation3 + $0x3a] sm:$0xff]  ;;  %v7185_v28 = vld [vmem:[#allocation3 + $0x16a] sm:$0xff] }
 0x618   :  { %v7171_v0 = vld [vmem:[#allocation3 + $0xc2] sm:$0xff]  ;;  %v7173_v29 = vld [vmem:[#allocation3 + $0xda] sm:$0xff] }
 0x619   :  { %v6323_v10 = vld [vmem:[#allocation3 + $0x321] sm:$0xff]  ;;  %v17999_v58 = vpack.c.bf16 %v7172_v33, %v7171_v0  ;;  %v18029_v0 = vpack.c.bf16 %v7186_v47, %v7185_v28  ;;  %v7189_v33 = vld [vmem:[#allocation3 + $0x1ca] sm:$0xff] }
 0x61a   :  { %v6355_v8 = vpack.c.bf16 %v6323_v10, %v6322_v13  ;;  %v17910_v13 = vpack.c.bf16 %v6199_v34, %v6198_v45  ;;  %v6200_v10 = vld [vmem:[#allocation3 + $0x210] sm:$0xff]  ;;  %v6223_v6 = vld [vmem:[#allocation3 + $0x320] sm:$0xff]  ;;  %v17963_v34 = vpack.c.bf16 %v7158_v39, %v7157_v2  ;;  %v17968_v45 = vpack.c.bf16 %v7160_v27, %v7159_v55 }
 0x61b   :  { %v7174_v31 = vld [vmem:[#allocation3 + $0xe2] sm:$0xff]  ;;  %v7176_v12 = vld [vmem:[#allocation3 + $0xfa] sm:$0xff]  ;;  %v7180_v39 = vld [vmem:[#allocation3 + $0x12a] sm:$0xff] }
 0x61c   :  { %13687 = vmatmul.mubr.msk.bf16.gmra.mrb[60].mxu1 %vm149_vm3, %v6355_v8  ;;  %v6203_v8 = vld [vmem:[#allocation3 + $0x230] sm:$0xff]  ;;  %v18005_v51 = vpack.c.bf16 %v7174_v31, %v7173_v29  ;;  %v7179_v2 = vld [vmem:[#allocation3 + $0x122] sm:$0xff] }
 0x61d   :  { %13694 = vmatprep.mubr.msk.bf16.mxu1 %vm149_vm3, %v6224_v37  ;;  %v17912_v37 = vpack.c.bf16 %v6201_v60, %v6200_v10  ;;  %v17918_v7 = vpack.c.bf16 %v6203_v8, %v6202_v61  ;;  %v15284_v60 = vld [vmem:[%s18930_s6 + $0x38] sm:$0xff]   ;;  %v17978_v10 = vld [vmem:[%s18930_s6 + $0x40] sm:$0xff]   ;;  %v18015_v27 = vpack.c.bf16 %v7180_v39, %v7179_v2  ;;  %v7190_v29 = vld [vmem:[#allocation3 + $0x1d2] sm:$0xff] }
 0x61e   :  { %v7161_v8 = vld [vmem:[#allocation3 + $0x4a] sm:$0xff]  ;;  %v7163_v61 = vld [vmem:[#allocation3 + $0x62] sm:$0xff]  ;;  %v7195_v39 = vld [vmem:[#allocation3 + $0x212] sm:$0xff] }
 0x61f   :  { %v7191_v31 = vld [vmem:[#allocation3 + $0x1e2] sm:$0xff]  ;;  %v7200_v28 = vld [vmem:[#allocation3 + $0x24a] sm:$0xff] }
 0x620   :  { %v7194_v2 = vld [vmem:[#allocation3 + $0x202] sm:$0xff] }
 0x624   :  { %13695 = vmatmul.mubr.msk.bf16.vlgmr.msra.gmra.mrb[0].mxu1 %vm149_vm3, %v17829_v32 }
 0x625   :  { %13759 = vmatpush3.bf16.msra.mxu1 %v15551_v20  ;;  %13698 = vmatprep.mubr.msk.bf16.mxu1 %vm149_vm3, %v17834_v36  ;;  %v6207_v20 = vld [vmem:[#allocation3 + $0x260] sm:$0xff] }
 0x626   :  { %13760 = vmatprep.subr.bf16.mxu1 %v15282_v57  ;;  %v17926_v16 = vpack.c.bf16 %v6207_v20, %v6206_v40  ;;  %v7166_v40 = vld [vmem:[#allocation3 + $0x82] sm:$0xff] }
 0x629   :  { %13761 = vmatpush3.bf16.msra.mxu1 %v15282_v57  ;;  %v17920_v57 = vpack.c.bf16 %v6205_v42, %v6204_v30  ;;  %v7162_v42 = vld [vmem:[#allocation3 + $0x52] sm:$0xff]  ;;  %v7164_v30 = vld [vmem:[#allocation3 + $0x6a] sm:$0xff] }
 0x62a   :  { %13826 = vmatprep.subr.bf16.mxu1 %v17846_v15  ;;  %v17980_v20 = vpack.c.bf16 %v7162_v42, %v7161_v8  ;;  %v17983_v48 = vpack.c.bf16 %v7164_v30, %v7163_v61  ;;  %v7182_v8 = vld [vmem:[#allocation3 + $0x142] sm:$0xff]  ;;  %v7183_v42 = vld [vmem:[#allocation3 + $0x152] sm:$0xff]  ;;  %v7184_v61 = vld [vmem:[#allocation3 + $0x15a] sm:$0xff] }
 0x62c   :  { %13699 = vmatmul.mubr.msk.bf16.gmra.mrb[4].mxu1 %vm149_vm3, %v17848_v56 }
 0x62d   :  { %13702 = vmatprep.mubr.msk.bf16.mxu1 %vm149_vm3, %v17851_v1 }
 0x634   :  { %13703 = vmatmul.mubr.msk.bf16.gmra.mrb[8].mxu1 %vm149_vm3, %v17857_v50 }
 0x635   :  { %13706 = vmatprep.mubr.msk.bf16.mxu1 %vm149_vm3, %v17859_v23 }
 0x63c   :  { %13707 = vmatmul.mubr.msk.bf16.gmra.mrb[12].mxu1 %vm149_vm3, %v17865_v46 }
 0x63d   :  { %13710 = vmatprep.mubr.msk.bf16.mxu1 %vm149_vm3, %v17867_v52 }
 0x644   :  { %13711 = vmatmul.mubr.msk.bf16.gmra.mrb[16].mxu1 %vm149_vm3, %v17873_v4 }
 0x645   :  { %13714 = vmatprep.mubr.msk.bf16.mxu1 %vm149_vm3, %v17875_v44 }
 0x64c   :  { %13715 = vmatmul.mubr.msk.bf16.gmra.mrb[20].mxu1 %vm149_vm3, %v17881_v53 }
 0x64d   :  { %13718 = vmatprep.mubr.msk.bf16.mxu1 %vm149_vm3, %v17883_v17 }
 0x654   :  { %13719 = vmatmul.mubr.msk.bf16.gmra.mrb[24].mxu1 %vm149_vm3, %v17889_v24 }
 0x655   :  { %13722 = vmatprep.mubr.msk.bf16.mxu1 %vm149_vm3, %v17891_v19 }
 0x65c   :  { %13723 = vmatmul.mubr.msk.bf16.gmra.mrb[28].mxu1 %vm149_vm3, %v17897_v38 }
 0x65d   :  { %13726 = vmatprep.mubr.msk.bf16.mxu1 %vm149_vm3, %v6240_v43  ;;  %v17958_v43 = vpack.c.bf16 %v6223_v6, %v6222_v18  ;;  %v18007_v6 = vpack.c.bf16 %v7176_v12, %v7175_v25  ;;  %v7177_v18 = vld [vmem:[#allocation3 + $0x10a] sm:$0xff]  ;;  %v18034_v12 = vpack.c.bf16 %v7190_v29, %v7189_v33  ;;  %v7201_v33 = vld [vmem:[#allocation3 + $0x25a] sm:$0xff]  ;;  %v7202_v29 = vld [vmem:[#allocation3 + $0x262] sm:$0xff] }
 0x65e   :  { %v7192_v25 = vld [vmem:[#allocation3 + $0x1ea] sm:$0xff] }
 0x664   :  { %13727 = vmatmul.mubr.msk.bf16.gmra.mrb[32].mxu1 %vm149_vm3, %v17902_v26 }
 0x665   :  { %13730 = vmatprep.mubr.msk.bf16.mxu1 %vm149_vm3, %v17904_v49 }
 0x66c   :  { %13731 = vmatmul.mubr.msk.bf16.gmra.mrb[36].mxu1 %vm149_vm3, %v17910_v13 }
 0x66d   :  { %13734 = vmatprep.mubr.msk.bf16.mxu1 %vm149_vm3, %v17912_v37 }
 0x674   :  { %13735 = vmatmul.mubr.msk.bf16.gmra.mrb[40].mxu1 %vm149_vm3, %v17918_v7 }
 0x675   :  { %13738 = vmatprep.mubr.msk.bf16.mxu1 %vm149_vm3, %v17920_v57 }
 0x67c   :  { %13739 = vmatmul.mubr.msk.bf16.gmra.mrb[44].mxu1 %vm149_vm3, %v17926_v16 }
 0x67d   :  { %13742 = vmatprep.mubr.msk.bf16.mxu1 %vm149_vm3, %v17928_v35 }
 0x684   :  { %13743 = vmatmul.mubr.msk.bf16.gmra.mrb[48].mxu1 %vm149_vm3, %v17934_v62 }
 0x685   :  { %13746 = vmatprep.mubr.msk.bf16.mxu1 %vm149_vm3, %v17936_v63 }
 0x68c   :  { %13747 = vmatmul.mubr.msk.bf16.gmra.mrb[52].mxu1 %vm149_vm3, %v17942_v21 }
 0x68d   :  { %13750 = vmatprep.mubr.msk.bf16.mxu1 %vm149_vm3, %v17944_v9 }
 0x694   :  { %13751 = vmatmul.mubr.msk.bf16.gmra.mrb[56].mxu1 %vm149_vm3, %v17950_v3 }
 0x695   :  { %13754 = vmatprep.mubr.msk.bf16.mxu1 %vm149_vm3, %v17952_v11 }
 0x69c   :  { %13755 = vmatmul.mubr.msk.bf16.gmra.mrb[60].mxu1 %vm149_vm3, %v17958_v43 }
 0x69d   :  { %13762 = vmatprep.mubr.msk.bf16.mxu1 %vm149_vm3, %v7219_v5  ;;  %v7178_v5 = vld [vmem:[#allocation3 + $0x112] sm:$0xff] }
 0x69e   :  { %v18013_v55 = vpack.c.bf16 %v7178_v5, %v7177_v18  ;;  %v18036_v18 = vpack.c.bf16 %v7192_v25, %v7191_v31  ;;  %v7193_v5 = vld [vmem:[#allocation3 + $0x1fa] sm:$0xff]  ;;  %v7203_v31 = vld [vmem:[#allocation3 + $0x272] sm:$0xff] }
 0x69f   :  { %v7204_v25 = vld [vmem:[#allocation3 + $0x27a] sm:$0xff] }
 0x6a4   :  { %13763 = vmatmul.mubr.msk.bf16.vlgmr.msra.gmra.mrb[0].mxu1 %vm149_vm3, %v17963_v34 }
 0x6a5   :  { %13827 = vmatpush3.bf16.msra.mxu1 %v17846_v15  ;;  %13766 = vmatprep.mubr.msk.bf16.mxu1 %vm149_vm3, %v17968_v45  ;;  %v7165_v15 = vld [vmem:[#allocation3 + $0x7a] sm:$0xff] }
 0x6a6   :  { %13828 = vmatprep.subr.bf16.mxu1 %v15284_v60  ;;  %v17989_v22 = vpack.c.bf16 %v7166_v40, %v7165_v15  ;;  %v18023_v15 = vpack.c.bf16 %v7184_v61, %v7183_v42  ;;  %v7187_v40 = vld [vmem:[#allocation3 + $0x1b2] sm:$0xff]  ;;  %v7197_v61 = vld [vmem:[#allocation3 + $0x22a] sm:$0xff] }
 0x6a7   :  { %v7235_v14 = vpack.c.bf16 %v7188_v41, %v7187_v40  ;;  %v7198_v40 = vld [vmem:[#allocation3 + $0x232] sm:$0xff]  ;;  %v7199_v41 = vld [vmem:[#allocation3 + $0x242] sm:$0xff] }
 0x6a8   :  { %v18050_v47 = vpack.c.bf16 %v7198_v40, %v7197_v61  ;;  %v7207_v61 = vld [vmem:[#allocation3 + $0x2a2] sm:$0xff]  ;;  %v7208_v40 = vld [vmem:[#allocation3 + $0x2aa] sm:$0xff] }
 0x6a9   :  { %13829 = vmatpush3.bf16.msra.mxu1 %v15284_v60  ;;  %v7181_v60 = vld [vmem:[#allocation3 + $0x13a] sm:$0xff] }
 0x6aa   :  { %13894 = vmatprep.subr.bf16.mxu1 %v17978_v10  ;;  %v18021_v30 = vpack.c.bf16 %v7182_v8, %v7181_v60  ;;  %v7196_v60 = vld [vmem:[#allocation3 + $0x21a] sm:$0xff]  ;;  %v18042_v8 = vpack.c.bf16 %v7194_v2, %v7193_v5  ;;  %v18058_v5 = vpack.c.bf16 %v7202_v29, %v7201_v33  ;;  %v18060_v2 = vpack.c.bf16 %v7204_v25, %v7203_v31  ;;  %v7210_v29 = vld [vmem:[#allocation3 + $0x2c2] sm:$0xff]  ;;  %v7211_v31 = vld [vmem:[#allocation3 + $0x2d2] sm:$0xff] }
 0x6ab   :  { %v18044_v42 = vpack.c.bf16 %v7196_v60, %v7195_v39  ;;  %v7205_v39 = vld [vmem:[#allocation3 + $0x28a] sm:$0xff]  ;;  %v7206_v60 = vld [vmem:[#allocation3 + $0x292] sm:$0xff]  ;;  %v7209_v33 = vld [vmem:[#allocation3 + $0x2ba] sm:$0xff] }
 0x6ac   :  { %13767 = vmatmul.mubr.msk.bf16.gmra.mrb[4].mxu1 %vm149_vm3, %v17980_v20  ;;  %18966 = vst [vmem:[#allocation10_spill] sm:$0xff] %v18058_v5  ;;  %18967 = vst [vmem:[#allocation11_spill] sm:$0xff] %v18060_v2  ;;  %v7212_v25 = vld [vmem:[#allocation3 + $0x2da] sm:$0xff] }
 0x6ad   :  { %13770 = vmatprep.mubr.msk.bf16.mxu1 %vm149_vm3, %v17983_v48 }
 0x6b4   :  { %13771 = vmatmul.mubr.msk.bf16.gmra.mrb[8].mxu1 %vm149_vm3, %v17989_v22 }
 0x6b5   :  { %13774 = vmatprep.mubr.msk.bf16.mxu1 %vm149_vm3, %v17991_v54 }
 0x6bc   :  { %13775 = vmatmul.mubr.msk.bf16.gmra.mrb[12].mxu1 %vm149_vm3, %v17997_v59 }
 0x6bd   :  { %13778 = vmatprep.mubr.msk.bf16.mxu1 %vm149_vm3, %v17999_v58 }
 0x6c4   :  { %13779 = vmatmul.mubr.msk.bf16.gmra.mrb[16].mxu1 %vm149_vm3, %v18005_v51 }
 0x6c5   :  { %13782 = vmatprep.mubr.msk.bf16.mxu1 %vm149_vm3, %v18007_v6 }
 0x6cc   :  { %13783 = vmatmul.mubr.msk.bf16.gmra.mrb[20].mxu1 %vm149_vm3, %v18013_v55 }
 0x6cd   :  { %13786 = vmatprep.mubr.msk.bf16.mxu1 %vm149_vm3, %v18015_v27 }
 0x6d4   :  { %13787 = vmatmul.mubr.msk.bf16.gmra.mrb[24].mxu1 %vm149_vm3, %v18021_v30 }
 0x6d5   :  { %13790 = vmatprep.mubr.msk.bf16.mxu1 %vm149_vm3, %v18023_v15 }
 0x6dc   :  { %13791 = vmatmul.mubr.msk.bf16.gmra.mrb[28].mxu1 %vm149_vm3, %v18029_v0 }
 0x6dd   :  { %13794 = vmatprep.mubr.msk.bf16.mxu1 %vm149_vm3, %v7235_v14  ;;  %v18052_v14 = vpack.c.bf16 %v7200_v28, %v7199_v41  ;;  %v18066_v41 = vpack.c.bf16 %v7206_v60, %v7205_v39  ;;  %v18068_v28 = vpack.c.bf16 %v7208_v40, %v7207_v61  ;;  %v7213_v39 = vld [vmem:[#allocation3 + $0x2ea] sm:$0xff]  ;;  %v7214_v60 = vld [vmem:[#allocation3 + $0x2f2] sm:$0xff]  ;;  %v7215_v61 = vld [vmem:[#allocation3 + $0x302] sm:$0xff] }
 0x6de   :  { %v7216_v40 = vld [vmem:[#allocation3 + $0x30a] sm:$0xff] }
 0x6df   :  { %18968 = vst [vmem:[#allocation12_spill] sm:$0xff] %v18066_v41  ;;  %18969 = vst [vmem:[#allocation13_spill] sm:$0xff] %v18068_v28 }
 0x6e4   :  { %13795 = vmatmul.mubr.msk.bf16.gmra.mrb[32].mxu1 %vm149_vm3, %v18034_v12 }
 0x6e5   :  { %13798 = vmatprep.mubr.msk.bf16.mxu1 %vm149_vm3, %v18036_v18 }
 0x6ec   :  { %13799 = vmatmul.mubr.msk.bf16.gmra.mrb[36].mxu1 %vm149_vm3, %v18042_v8 }
 0x6ed   :  { %13802 = vmatprep.mubr.msk.bf16.mxu1 %vm149_vm3, %v18044_v42 }
 0x6f4   :  { %13803 = vmatmul.mubr.msk.bf16.gmra.mrb[40].mxu1 %vm149_vm3, %v18050_v47 }
 0x6f5   :  { %13806 = vmatprep.mubr.msk.bf16.mxu1 %vm149_vm3, %v18052_v14 }
 0x6fc   :  { %13807 = vmatmul.mubr.msk.bf16.gmra.mrb[44].mxu1 %vm149_vm3, %v18058_v5  ;;  %v18074_v5 = vpack.c.bf16 %v7210_v29, %v7209_v33  ;;  %v7217_v33 = vld [vmem:[#allocation3 + $0x31a] sm:$0xff]  ;;  %v7218_v29 = vld [vmem:[#allocation3 + $0x322] sm:$0xff] }
 0x6fd   :  { %13810 = vmatprep.mubr.msk.bf16.mxu1 %vm149_vm3, %v18060_v2  ;;  %v18076_v2 = vpack.c.bf16 %v7212_v25, %v7211_v31  ;;  %v18090_v31 = vpack.c.bf16 %v7218_v29, %v7217_v33  ;;  %v15286_v25 = vld [vmem:[%s18930_s6 + $0x48] sm:$0xff]   ;;  %v8298_v29 = vld [vmem:[#allocation3 + $0xf9] sm:$0xff] }
 0x704   :  { %13811 = vmatmul.mubr.msk.bf16.gmra.mrb[48].mxu1 %vm149_vm3, %v18066_v41  ;;  %v18082_v41 = vpack.c.bf16 %v7214_v60, %v7213_v39  ;;  %v15287_v39 = vld [vmem:[%s18930_s6 + $0x50] sm:$0xff]   ;;  %v8293_v60 = vld [vmem:[#allocation3 + $0xc1] sm:$0xff] }
 0x705   :  { %13814 = vmatprep.mubr.msk.bf16.mxu1 %vm149_vm3, %v18068_v28  ;;  %v18084_v28 = vpack.c.bf16 %v7216_v40, %v7215_v61  ;;  %v8295_v40 = vld [vmem:[#allocation3 + $0xd9] sm:$0xff] }
 0x70c   :  { %13815 = vmatmul.mubr.msk.bf16.gmra.mrb[52].mxu1 %vm149_vm3, %v18074_v5 }
 0x70d   :  { %13818 = vmatprep.mubr.msk.bf16.mxu1 %vm149_vm3, %v18076_v2 }
 0x714   :  { %13819 = vmatmul.mubr.msk.bf16.gmra.mrb[56].mxu1 %vm149_vm3, %v18082_v41 }
 0x715   :  { %13822 = vmatprep.mubr.msk.bf16.mxu1 %vm149_vm3, %v18084_v28 }
 0x71c   :  { %13823 = vmatmul.mubr.msk.bf16.gmra.mrb[60].mxu1 %vm149_vm3, %v18090_v31 }
 0x71d   :  { %13830 = vmatprep.mubr.msk.bf16.mxu1 %vm149_vm3, %v17829_v32  ;;  %v7748_v32 = vld [vmem:[#allocation3 + $0x188] sm:$0xff] }
 0x724   :  { %13831 = vmatmul.mubr.msk.bf16.vlgmr.msra.gmra.mrb[0].mxu1 %vm149_vm3, %v17834_v36  ;;  %v7747_v36 = vld [vmem:[#allocation3 + $0x180] sm:$0xff] }
 0x725   :  { %13895 = vmatpush3.bf16.msra.mxu1 %v17978_v10  ;;  %13834 = vmatprep.mubr.msk.bf16.mxu1 %vm149_vm3, %v17848_v56  ;;  %v18131_v56 = vpack.c.bf16 %v7748_v32, %v7747_v36  ;;  %v8296_v10 = vld [vmem:[#allocation3 + $0xe1] sm:$0xff]  ;;  %v8299_v36 = vld [vmem:[#allocation3 + $0x109] sm:$0xff] }
 0x726   :  { %13896 = vmatprep.subr.bf16.mxu1 %v15286_v25  ;;  %v18205_v33 = vpack.c.bf16 %v8296_v10, %v8295_v40  ;;  %v8314_v10 = vld [vmem:[#allocation3 + $0x1e9] sm:$0xff]  ;;  %v8313_v40 = vld [vmem:[#allocation3 + $0x1e1] sm:$0xff] }
 0x729   :  { %13897 = vmatpush3.bf16.msra.mxu1 %v15286_v25  ;;  %v8300_v25 = vld [vmem:[#allocation3 + $0x111] sm:$0xff] }
 0x72a   :  { %13962 = vmatprep.subr.bf16.mxu1 %v15287_v39 }
 0x72c   :  { %13835 = vmatmul.mubr.msk.bf16.gmra.mrb[4].mxu1 %vm149_vm3, %v17851_v1  ;;  %v7780_v1 = vld [vmem:[#allocation3 + $0x338] sm:$0xff] }
 0x72d   :  { %13838 = vmatprep.mubr.msk.bf16.mxu1 %vm149_vm3, %v17857_v50  ;;  %v8280_v50 = vld [vmem:[#allocation3 + $0x21] sm:$0xff] }
 0x734   :  { %13839 = vmatmul.mubr.msk.bf16.gmra.mrb[8].mxu1 %vm149_vm3, %v17859_v23  ;;  %v7779_v23 = vld [vmem:[#allocation3 + $0x330] sm:$0xff] }
 0x735   :  { %13842 = vmatprep.mubr.msk.bf16.mxu1 %vm149_vm3, %v17865_v46  ;;  %v18165_v46 = vpack.c.bf16 %v7780_v1, %v7779_v23  ;;  %v18213_v1 = vpack.c.bf16 %v8300_v25, %v8299_v36  ;;  %v8304_v23 = vld [vmem:[#allocation3 + $0x141] sm:$0xff]  ;;  %v8315_v25 = vld [vmem:[#allocation3 + $0x1f9] sm:$0xff] }
 0x736   :  { %v8318_v36 = vld [vmem:[#allocation3 + $0x219] sm:$0xff] }
 0x73c   :  { %13843 = vmatmul.mubr.msk.bf16.gmra.mrb[12].mxu1 %vm149_vm3, %v17867_v52  ;;  %v8279_v52 = vld [vmem:[#allocation3 + $0x19] sm:$0xff] }
 0x73d   :  { %13846 = vmatprep.mubr.msk.bf16.mxu1 %vm149_vm3, %v17873_v4  ;;  %v8343_v4 = vpack.c.bf16 %v8280_v50, %v8279_v52  ;;  %v8302_v50 = vld [vmem:[#allocation3 + $0x129] sm:$0xff]  ;;  %v8301_v52 = vld [vmem:[#allocation3 + $0x121] sm:$0xff] }
 0x744   :  { %13847 = vmatmul.mubr.msk.bf16.gmra.mrb[16].mxu1 %vm149_vm3, %v17875_v44  ;;  %v8282_v44 = vld [vmem:[#allocation3 + $0x39] sm:$0xff] }
 0x745   :  { %13850 = vmatprep.mubr.msk.bf16.mxu1 %vm149_vm3, %v17881_v53  ;;  %v8284_v53 = vld [vmem:[#allocation3 + $0x51] sm:$0xff] }
 0x74c   :  { %13851 = vmatmul.mubr.msk.bf16.gmra.mrb[20].mxu1 %vm149_vm3, %v17883_v17  ;;  %v8281_v17 = vld [vmem:[#allocation3 + $0x31] sm:$0xff] }
 0x74d   :  { %13854 = vmatprep.mubr.msk.bf16.mxu1 %vm149_vm3, %v17889_v24  ;;  %v18170_v24 = vpack.c.bf16 %v8282_v44, %v8281_v17  ;;  %v8303_v44 = vld [vmem:[#allocation3 + $0x139] sm:$0xff] }
 0x74e   :  { %v8306_v17 = vld [vmem:[#allocation3 + $0x159] sm:$0xff] }
 0x754   :  { %13855 = vmatmul.mubr.msk.bf16.gmra.mrb[24].mxu1 %vm149_vm3, %v17891_v19  ;;  %v8283_v19 = vld [vmem:[#allocation3 + $0x49] sm:$0xff] }
 0x755   :  { %13858 = vmatprep.mubr.msk.bf16.mxu1 %vm149_vm3, %v17897_v38  ;;  %v15288_v38 = vld [vmem:[%s18930_s6 + $0x58] sm:$0xff]  }
 0x75c   :  { %13859 = vmatmul.mubr.msk.bf16.gmra.mrb[28].mxu1 %vm149_vm3, %v18131_v56 }
 0x75d   :  { %13862 = vmatprep.mubr.msk.bf16.mxu1 %vm149_vm3, %v17902_v26  ;;  %v18175_v26 = vpack.c.bf16 %v8284_v53, %v8283_v19  ;;  %v18221_v53 = vpack.c.bf16 %v8304_v23, %v8303_v44  ;;  %v8308_v19 = vld [vmem:[#allocation3 + $0x171] sm:$0xff]  ;;  %v8319_v44 = vld [vmem:[#allocation3 + $0x229] sm:$0xff] }
 0x75e   :  { %v8317_v23 = vld [vmem:[#allocation3 + $0x211] sm:$0xff] }
 0x764   :  { %13863 = vmatmul.mubr.msk.bf16.gmra.mrb[32].mxu1 %vm149_vm3, %v17904_v49  ;;  %v18184_v49 = vld [vmem:[%s18930_s6 + $0x60] sm:$0xff]  }
 0x765   :  { %13866 = vmatprep.mubr.msk.bf16.mxu1 %vm149_vm3, %v17910_v13  ;;  %v8286_v13 = vld [vmem:[#allocation3 + $0x69] sm:$0xff] }
 0x76c   :  { %13867 = vmatmul.mubr.msk.bf16.gmra.mrb[36].mxu1 %vm149_vm3, %v17912_v37  ;;  %v8288_v37 = vld [vmem:[#allocation3 + $0x81] sm:$0xff] }
 0x76d   :  { %13870 = vmatprep.mubr.msk.bf16.mxu1 %vm149_vm3, %v17918_v7  ;;  %v8285_v7 = vld [vmem:[#allocation3 + $0x61] sm:$0xff] }
 0x774   :  { %13871 = vmatmul.mubr.msk.bf16.gmra.mrb[40].mxu1 %vm149_vm3, %v17920_v57  ;;  %v18186_v57 = vpack.c.bf16 %v8286_v13, %v8285_v7 }
 0x775   :  { %13874 = vmatprep.mubr.msk.bf16.mxu1 %vm149_vm3, %v17926_v16  ;;  %v8287_v16 = vld [vmem:[#allocation3 + $0x79] sm:$0xff] }
 0x77c   :  { %13875 = vmatmul.mubr.msk.bf16.gmra.mrb[44].mxu1 %vm149_vm3, %v17928_v35  ;;  %v18189_v35 = vpack.c.bf16 %v8288_v37, %v8287_v16  ;;  %v8307_v37 = vld [vmem:[#allocation3 + $0x169] sm:$0xff] }
 0x77d   :  { %13878 = vmatprep.mubr.msk.bf16.mxu1 %vm149_vm3, %v17934_v62  ;;  %v8290_v62 = vld [vmem:[#allocation3 + $0x99] sm:$0xff]  ;;  %v18229_v7 = vpack.c.bf16 %v8308_v19, %v8307_v37  ;;  %v8310_v16 = vld [vmem:[#allocation3 + $0x189] sm:$0xff]  ;;  %v8321_v37 = vld [vmem:[#allocation3 + $0x241] sm:$0xff] }
 0x77e   :  { %v8322_v19 = vld [vmem:[#allocation3 + $0x249] sm:$0xff] }
 0x784   :  { %13879 = vmatmul.mubr.msk.bf16.gmra.mrb[48].mxu1 %vm149_vm3, %v17936_v63  ;;  %v8292_v63 = vld [vmem:[#allocation3 + $0xb1] sm:$0xff] }
 0x785   :  { %13882 = vmatprep.mubr.msk.bf16.mxu1 %vm149_vm3, %v17942_v21  ;;  %v8289_v21 = vld [vmem:[#allocation3 + $0x91] sm:$0xff] }
 0x78c   :  { %13883 = vmatmul.mubr.msk.bf16.gmra.mrb[52].mxu1 %vm149_vm3, %v17944_v9  ;;  %v18195_v9 = vpack.c.bf16 %v8290_v62, %v8289_v21  ;;  %v8312_v62 = vld [vmem:[#allocation3 + $0x1d1] sm:$0xff] }
 0x78d   :  { %13886 = vmatprep.mubr.msk.bf16.mxu1 %vm149_vm3, %v17950_v3  ;;  %v8291_v3 = vld [vmem:[#allocation3 + $0xa9] sm:$0xff] }
 0x794   :  { %13887 = vmatmul.mubr.msk.bf16.gmra.mrb[56].mxu1 %vm149_vm3, %v17952_v11  ;;  %v18197_v11 = vpack.c.bf16 %v8292_v63, %v8291_v3  ;;  %v8309_v63 = vld [vmem:[#allocation3 + $0x181] sm:$0xff]  ;;  %v8311_v3 = vld [vmem:[#allocation3 + $0x1c9] sm:$0xff] }
 0x795   :  { %13890 = vmatprep.mubr.msk.bf16.mxu1 %vm149_vm3, %v17958_v43  ;;  %v8294_v43 = vld [vmem:[#allocation3 + $0xc9] sm:$0xff]  ;;  %v18235_v21 = vpack.c.bf16 %v8310_v16, %v8309_v63  ;;  %v18256_v16 = vpack.c.bf16 %v8322_v19, %v8321_v37  ;;  %v8331_v19 = vld [vmem:[#allocation3 + $0x2b9] sm:$0xff] }
 0x796   :  { %v18203_v61 = vpack.c.bf16 %v8294_v43, %v8293_v60  ;;  %v8359_v43 = vpack.c.bf16 %v8312_v62, %v8311_v3  ;;  %v8316_v60 = vld [vmem:[#allocation3 + $0x201] sm:$0xff]  ;;  %v8323_v62 = vld [vmem:[#allocation3 + $0x259] sm:$0xff] }
 0x797   :  { %v8326_v3 = vld [vmem:[#allocation3 + $0x279] sm:$0xff] }
 0x798   :  { %v8334_v37 = vld [vmem:[#allocation3 + $0x2d9] sm:$0xff] }
 0x79c   :  { %13891 = vmatmul.mubr.msk.bf16.gmra.mrb[60].mxu1 %vm149_vm3, %v18165_v46 }
 0x79d   :  { %13898 = vmatprep.mubr.msk.bf16.mxu1 %vm149_vm3, %v8343_v4  ;;  %v18219_v4 = vpack.c.bf16 %v8302_v50, %v8301_v52  ;;  %v8320_v50 = vld [vmem:[#allocation3 + $0x231] sm:$0xff]  ;;  %v18248_v52 = vpack.c.bf16 %v8318_v36, %v8317_v23  ;;  %v8330_v36 = vld [vmem:[#allocation3 + $0x2a9] sm:$0xff]  ;;  %v8329_v23 = vld [vmem:[#allocation3 + $0x2a1] sm:$0xff] }
 0x7a4   :  { %13899 = vmatmul.mubr.msk.bf16.vlgmr.msra.gmra.mrb[0].mxu1 %vm149_vm3, %v18170_v24 }
 0x7a5   :  { %13963 = vmatpush3.bf16.msra.mxu1 %v15287_v39  ;;  %13902 = vmatprep.mubr.msk.bf16.mxu1 %vm149_vm3, %v18175_v26  ;;  %v8297_v39 = vld [vmem:[#allocation3 + $0xf1] sm:$0xff] }
 0x7a6   :  { %13964 = vmatprep.subr.bf16.mxu1 %v15288_v38  ;;  %v18211_v32 = vpack.c.bf16 %v8298_v29, %v8297_v39  ;;  %v18240_v29 = vpack.c.bf16 %v8314_v10, %v8313_v40  ;;  %v18242_v39 = vpack.c.bf16 %v8316_v60, %v8315_v25  ;;  %v8325_v10 = vld [vmem:[#allocation3 + $0x271] sm:$0xff]  ;;  %v8327_v40 = vld [vmem:[#allocation3 + $0x289] sm:$0xff] }
 0x7a7   :  { %v18264_v60 = vpack.c.bf16 %v8326_v3, %v8325_v10  ;;  %v8333_v3 = vld [vmem:[#allocation3 + $0x2d1] sm:$0xff]  ;;  %v8335_v10 = vld [vmem:[#allocation3 + $0x2e9] sm:$0xff] }
 0x7a9   :  { %13965 = vmatpush3.bf16.msra.mxu1 %v15288_v38  ;;  %v8305_v38 = vld [vmem:[#allocation3 + $0x151] sm:$0xff] }
 0x7aa   :  { %14030 = vmatprep.subr.bf16.mxu1 %v18184_v49  ;;  %v18227_v13 = vpack.c.bf16 %v8306_v17, %v8305_v38  ;;  %v18250_v17 = vpack.c.bf16 %v8320_v50, %v8319_v44  ;;  %v8324_v38 = vld [vmem:[#allocation3 + $0x261] sm:$0xff]  ;;  %v18272_v44 = vpack.c.bf16 %v8330_v36, %v8329_v23  ;;  %v8338_v36 = vld [vmem:[#allocation3 + $0x309] sm:$0xff] }
 0x7ab   :  { %v18258_v63 = vpack.c.bf16 %v8324_v38, %v8323_v62  ;;  %v8332_v50 = vld [vmem:[#allocation3 + $0x2c1] sm:$0xff]  ;;  %v8336_v62 = vld [vmem:[#allocation3 + $0x2f1] sm:$0xff] }
 0x7ac   :  { %13903 = vmatmul.mubr.msk.bf16.gmra.mrb[4].mxu1 %vm149_vm3, %v18186_v57  ;;  %18970 = vst [vmem:[#allocation14_spill] sm:$0xff] %v18272_v44  ;;  %v18274_v38 = vpack.c.bf16 %v8332_v50, %v8331_v19  ;;  %v8340_v50 = vld [vmem:[#allocation3 + $0x321] sm:$0xff] }
 0x7ad   :  { %13906 = vmatprep.mubr.msk.bf16.mxu1 %vm149_vm3, %v18189_v35  ;;  %v8337_v23 = vld [vmem:[#allocation3 + $0x301] sm:$0xff] }
 0x7ae   :  { %18971 = vst [vmem:[#allocation15_spill] sm:$0xff] %v18274_v38  ;;  %v18288_v19 = vpack.c.bf16 %v8338_v36, %v8337_v23  ;;  %v9415_v36 = vld [vmem:[#allocation3 + $0xb0] sm:$0xff]  ;;  %v9414_v23 = vld [vmem:[#allocation3 + $0xa8] sm:$0xff] }
 0x7b4   :  { %13907 = vmatmul.mubr.msk.bf16.gmra.mrb[8].mxu1 %vm149_vm3, %v18195_v9 }
 0x7b5   :  { %13910 = vmatprep.mubr.msk.bf16.mxu1 %vm149_vm3, %v18197_v11 }
 0x7bc   :  { %13911 = vmatmul.mubr.msk.bf16.gmra.mrb[12].mxu1 %vm149_vm3, %v18203_v61 }
 0x7bd   :  { %13914 = vmatprep.mubr.msk.bf16.mxu1 %vm149_vm3, %v18205_v33 }
 0x7c4   :  { %13915 = vmatmul.mubr.msk.bf16.gmra.mrb[16].mxu1 %vm149_vm3, %v18211_v32 }
 0x7c5   :  { %13918 = vmatprep.mubr.msk.bf16.mxu1 %vm149_vm3, %v18213_v1 }
 0x7cc   :  { %13919 = vmatmul.mubr.msk.bf16.gmra.mrb[20].mxu1 %vm149_vm3, %v18219_v4 }
 0x7cd   :  { %13922 = vmatprep.mubr.msk.bf16.mxu1 %vm149_vm3, %v18221_v53 }
 0x7d4   :  { %13923 = vmatmul.mubr.msk.bf16.gmra.mrb[24].mxu1 %vm149_vm3, %v18227_v13 }
 0x7d5   :  { %13926 = vmatprep.mubr.msk.bf16.mxu1 %vm149_vm3, %v18229_v7 }
 0x7dc   :  { %13927 = vmatmul.mubr.msk.bf16.gmra.mrb[28].mxu1 %vm149_vm3, %v18235_v21 }
 0x7dd   :  { %13930 = vmatprep.mubr.msk.bf16.mxu1 %vm149_vm3, %v8359_v43  ;;  %v8328_v43 = vld [vmem:[#allocation3 + $0x291] sm:$0xff] }
 0x7de   :  { %v18266_v25 = vpack.c.bf16 %v8328_v43, %v8327_v40  ;;  %v18280_v43 = vpack.c.bf16 %v8334_v37, %v8333_v3  ;;  %v18282_v40 = vpack.c.bf16 %v8336_v62, %v8335_v10  ;;  %v8342_v37 = vld [vmem:[#allocation3 + $0x339] sm:$0xff]  ;;  %v8341_v62 = vld [vmem:[#allocation3 + $0x331] sm:$0xff] }
 0x7df   :  { %v18296_v3 = vpack.c.bf16 %v8342_v37, %v8341_v62  ;;  %v15291_v10 = vld [vmem:[%s18930_s6 + $0x70] sm:$0xff]   ;;  %v9473_v37 = vpack.c.bf16 %v9415_v36, %v9414_v23  ;;  %v9416_v62 = vld [vmem:[#allocation3 + $0xc0] sm:$0xff] }
 0x7e0   :  { %v9436_v36 = vld [vmem:[#allocation3 + $0x1e0] sm:$0xff] }
 0x7e1   :  { %v9439_v23 = vld [vmem:[#allocation3 + $0x200] sm:$0xff] }
 0x7e4   :  { %13931 = vmatmul.mubr.msk.bf16.gmra.mrb[32].mxu1 %vm149_vm3, %v18240_v29 }
 0x7e5   :  { %13934 = vmatprep.mubr.msk.bf16.mxu1 %vm149_vm3, %v18242_v39 }
 0x7ec   :  { %13935 = vmatmul.mubr.msk.bf16.gmra.mrb[36].mxu1 %vm149_vm3, %v18248_v52 }
 0x7ed   :  { %13938 = vmatprep.mubr.msk.bf16.mxu1 %vm149_vm3, %v18250_v17 }
 0x7f4   :  { %13939 = vmatmul.mubr.msk.bf16.gmra.mrb[40].mxu1 %vm149_vm3, %v18256_v16 }
 0x7f5   :  { %13942 = vmatprep.mubr.msk.bf16.mxu1 %vm149_vm3, %v18258_v63 }
 0x7fc   :  { %13943 = vmatmul.mubr.msk.bf16.gmra.mrb[44].mxu1 %vm149_vm3, %v18264_v60 }
 0x7fd   :  { %13946 = vmatprep.mubr.msk.bf16.mxu1 %vm149_vm3, %v18266_v25 }
 0x804   :  { %13947 = vmatmul.mubr.msk.bf16.gmra.mrb[48].mxu1 %vm149_vm3, %v18272_v44 }
 0x805   :  { %13950 = vmatprep.mubr.msk.bf16.mxu1 %vm149_vm3, %v18274_v38  ;;  %v8339_v38 = vld [vmem:[#allocation3 + $0x319] sm:$0xff] }
 0x806   :  { %v18290_v44 = vpack.c.bf16 %v8340_v50, %v8339_v38  ;;  %v15290_v38 = vld [vmem:[%s18930_s6 + $0x68] sm:$0xff]   ;;  %v9417_v50 = vld [vmem:[#allocation3 + $0xc8] sm:$0xff] }
 0x80c   :  { %13951 = vmatmul.mubr.msk.bf16.gmra.mrb[52].mxu1 %vm149_vm3, %v18280_v43 }
 0x80d   :  { %13954 = vmatprep.mubr.msk.bf16.mxu1 %vm149_vm3, %v18282_v40 }
 0x814   :  { %13955 = vmatmul.mubr.msk.bf16.gmra.mrb[56].mxu1 %vm149_vm3, %v18288_v19 }
 0x815   :  { %13958 = vmatprep.mubr.msk.bf16.mxu1 %vm149_vm3, %v18290_v44 }
 0x81c   :  { %13959 = vmatmul.mubr.msk.bf16.gmra.mrb[60].mxu1 %vm149_vm3, %v18296_v3 }
 0x81d   :  { %13966 = vmatprep.mubr.msk.bf16.mxu1 %vm149_vm3, %v17963_v34  ;;  %v8871_v34 = vld [vmem:[#allocation3 + $0x182] sm:$0xff] }
 0x824   :  { %13967 = vmatmul.mubr.msk.bf16.vlgmr.msra.gmra.mrb[0].mxu1 %vm149_vm3, %v17968_v45  ;;  %v8872_v45 = vld [vmem:[#allocation3 + $0x18a] sm:$0xff] }
 0x825   :  { %14031 = vmatpush3.bf16.msra.mxu1 %v18184_v49  ;;  %13970 = vmatprep.mubr.msk.bf16.mxu1 %vm149_vm3, %v17980_v20  ;;  %v18337_v20 = vpack.c.bf16 %v8872_v45, %v8871_v34  ;;  %v9421_v34 = vld [vmem:[#allocation3 + $0xf8] sm:$0xff] }
 0x826   :  { %14032 = vmatprep.subr.bf16.mxu1 %v15290_v38  ;;  %v9418_v45 = vld [vmem:[#allocation3 + $0xd8] sm:$0xff] }
 0x829   :  { %14033 = vmatpush3.bf16.msra.mxu1 %v15290_v38  ;;  %v9474_v38 = vpack.c.bf16 %v9417_v50, %v9416_v62  ;;  %v9438_v62 = vld [vmem:[#allocation3 + $0x1f8] sm:$0xff] }
 0x82a   :  { %14098 = vmatprep.subr.bf16.mxu1 %v15291_v10 }
 0x82c   :  { %13971 = vmatmul.mubr.msk.bf16.gmra.mrb[4].mxu1 %vm149_vm3, %v17983_v48  ;;  %v18972_v48 = vld [vmem:[#allocation10_spill] sm:$0xff] }
 0x82d   :  { %13974 = vmatprep.mubr.msk.bf16.mxu1 %vm149_vm3, %v17989_v22  ;;  %v18973_v22 = vld [vmem:[#allocation11_spill] sm:$0xff] }
 0x834   :  { %13975 = vmatmul.mubr.msk.bf16.gmra.mrb[8].mxu1 %vm149_vm3, %v17991_v54  ;;  %v18974_v54 = vld [vmem:[#allocation12_spill] sm:$0xff] }
 0x835   :  { %13978 = vmatprep.mubr.msk.bf16.mxu1 %vm149_vm3, %v17997_v59  ;;  %v18975_v59 = vld [vmem:[#allocation13_spill] sm:$0xff] }
 0x83c   :  { %13979 = vmatmul.mubr.msk.bf16.gmra.mrb[12].mxu1 %vm149_vm3, %v17999_v58  ;;  %v8903_v58 = vld [vmem:[#allocation3 + $0x332] sm:$0xff] }
 0x83d   :  { %13982 = vmatprep.mubr.msk.bf16.mxu1 %vm149_vm3, %v18005_v51  ;;  %v8904_v51 = vld [vmem:[#allocation3 + $0x33a] sm:$0xff] }
 0x844   :  { %13983 = vmatmul.mubr.msk.bf16.gmra.mrb[16].mxu1 %vm149_vm3, %v18007_v6  ;;  %v9405_v6 = vld [vmem:[#allocation3 + $0x38] sm:$0xff] }
 0x845   :  { %13986 = vmatprep.mubr.msk.bf16.mxu1 %vm149_vm3, %v18013_v55  ;;  %v18371_v55 = vpack.c.bf16 %v8904_v51, %v8903_v58  ;;  %v9425_v58 = vld [vmem:[#allocation3 + $0x128] sm:$0xff] }
 0x846   :  { %v9422_v51 = vld [vmem:[#allocation3 + $0x108] sm:$0xff] }
 0x84c   :  { %13987 = vmatmul.mubr.msk.bf16.gmra.mrb[20].mxu1 %vm149_vm3, %v18015_v27  ;;  %v9404_v27 = vld [vmem:[#allocation3 + $0x30] sm:$0xff] }
 0x84d   :  { %13990 = vmatprep.mubr.msk.bf16.mxu1 %vm149_vm3, %v18021_v30  ;;  %v9468_v30 = vpack.c.bf16 %v9405_v6, %v9404_v27  ;;  %v9424_v27 = vld [vmem:[#allocation3 + $0x120] sm:$0xff] }
 0x854   :  { %13991 = vmatmul.mubr.msk.bf16.gmra.mrb[24].mxu1 %vm149_vm3, %v18023_v15  ;;  %v9407_v15 = vld [vmem:[#allocation3 + $0x50] sm:$0xff] }
 0x855   :  { %13994 = vmatprep.mubr.msk.bf16.mxu1 %vm149_vm3, %v18029_v0  ;;  %v9409_v0 = vld [vmem:[#allocation3 + $0x68] sm:$0xff] }
 0x85c   :  { %13995 = vmatmul.mubr.msk.bf16.gmra.mrb[28].mxu1 %vm149_vm3, %v18337_v20 }
 0x85d   :  { %13998 = vmatprep.mubr.msk.bf16.mxu1 %vm149_vm3, %v18034_v12  ;;  %v9406_v12 = vld [vmem:[#allocation3 + $0x48] sm:$0xff] }
 0x864   :  { %13999 = vmatmul.mubr.msk.bf16.gmra.mrb[32].mxu1 %vm149_vm3, %v18036_v18  ;;  %v9469_v18 = vpack.c.bf16 %v9407_v15, %v9406_v12  ;;  %v9427_v15 = vld [vmem:[#allocation3 + $0x140] sm:$0xff]  ;;  %v9426_v12 = vld [vmem:[#allocation3 + $0x138] sm:$0xff] }
 0x865   :  { %14002 = vmatprep.mubr.msk.bf16.mxu1 %vm149_vm3, %v18042_v8  ;;  %v9408_v8 = vld [vmem:[#allocation3 + $0x60] sm:$0xff] }
 0x86c   :  { %14003 = vmatmul.mubr.msk.bf16.gmra.mrb[36].mxu1 %vm149_vm3, %v18044_v42  ;;  %v15292_v42 = vld [vmem:[%s18930_s6 + $0x78] sm:$0xff]  }
 0x86d   :  { %14006 = vmatprep.mubr.msk.bf16.mxu1 %vm149_vm3, %v18050_v47  ;;  %v9470_v47 = vpack.c.bf16 %v9409_v0, %v9408_v8  ;;  %v9429_v0 = vld [vmem:[#allocation3 + $0x158] sm:$0xff]  ;;  %v9428_v8 = vld [vmem:[#allocation3 + $0x150] sm:$0xff] }
 0x874   :  { %14007 = vmatmul.mubr.msk.bf16.gmra.mrb[40].mxu1 %vm149_vm3, %v18052_v14  ;;  %v18384_v14 = vld [vmem:[%s18930_s6 + $0x80] sm:$0xff]  }
 0x875   :  { %14010 = vmatprep.mubr.msk.bf16.mxu1 %vm149_vm3, %v18972_v48 }
 0x87c   :  { %14011 = vmatmul.mubr.msk.bf16.gmra.mrb[44].mxu1 %vm149_vm3, %v18973_v22  ;;  %v9420_v22 = vld [vmem:[#allocation3 + $0xf0] sm:$0xff] }
 0x87d   :  { %14014 = vmatprep.mubr.msk.bf16.mxu1 %vm149_vm3, %v18974_v54  ;;  %v9476_v54 = vpack.c.bf16 %v9421_v34, %v9420_v22 }
 0x884   :  { %14015 = vmatmul.mubr.msk.bf16.gmra.mrb[48].mxu1 %vm149_vm3, %v18975_v59  ;;  %v9423_v59 = vld [vmem:[#allocation3 + $0x110] sm:$0xff] }
 0x885   :  { %14018 = vmatprep.mubr.msk.bf16.mxu1 %vm149_vm3, %v18074_v5  ;;  %v9411_v5 = vld [vmem:[#allocation3 + $0x80] sm:$0xff]  ;;  %v9477_v6 = vpack.c.bf16 %v9423_v59, %v9422_v51  ;;  %v9449_v51 = vld [vmem:[#allocation3 + $0x278] sm:$0xff] }
 0x88c   :  { %14019 = vmatmul.mubr.msk.bf16.gmra.mrb[52].mxu1 %vm149_vm3, %v18076_v2  ;;  %v9413_v2 = vld [vmem:[#allocation3 + $0x98] sm:$0xff] }
 0x88d   :  { %14022 = vmatprep.mubr.msk.bf16.mxu1 %vm149_vm3, %v18082_v41  ;;  %v9410_v41 = vld [vmem:[#allocation3 + $0x78] sm:$0xff] }
 0x894   :  { %14023 = vmatmul.mubr.msk.bf16.gmra.mrb[56].mxu1 %vm149_vm3, %v18084_v28  ;;  %v9471_v28 = vpack.c.bf16 %v9411_v5, %v9410_v41  ;;  %v9430_v5 = vld [vmem:[#allocation3 + $0x168] sm:$0xff]  ;;  %v9434_v41 = vld [vmem:[#allocation3 + $0x198] sm:$0xff] }
 0x895   :  { %14026 = vmatprep.mubr.msk.bf16.mxu1 %vm149_vm3, %v18090_v31  ;;  %v9412_v31 = vld [vmem:[#allocation3 + $0x90] sm:$0xff] }
 0x896   :  { %v9472_v49 = vpack.c.bf16 %v9413_v2, %v9412_v31 }
 0x89c   :  { %14027 = vmatmul.mubr.msk.bf16.gmra.mrb[60].mxu1 %vm149_vm3, %v18371_v55 }
 0x89d   :  { %14034 = vmatprep.mubr.msk.bf16.mxu1 %vm149_vm3, %v9468_v30  ;;  %v9478_v30 = vpack.c.bf16 %v9425_v58, %v9424_v27  ;;  %v9447_v58 = vld [vmem:[#allocation3 + $0x260] sm:$0xff] }
 0x8a4   :  { %14035 = vmatmul.mubr.msk.bf16.vlgmr.msra.gmra.mrb[0].mxu1 %vm149_vm3, %v9469_v18  ;;  %v9479_v18 = vpack.c.bf16 %v9427_v15, %v9426_v12  ;;  %v9453_v12 = vld [vmem:[#allocation3 + $0x2a8] sm:$0xff] }
 0x8a5   :  { %14099 = vmatpush3.bf16.msra.mxu1 %v15291_v10  ;;  %14038 = vmatprep.mubr.msk.bf16.mxu1 %vm149_vm3, %v9470_v47  ;;  %v9419_v10 = vld [vmem:[#allocation3 + $0xe0] sm:$0xff]  ;;  %v9431_v47 = vld [vmem:[#allocation3 + $0x170] sm:$0xff] }
 0x8a6   :  { %14100 = vmatprep.subr.bf16.mxu1 %v15292_v42  ;;  %v9475_v48 = vpack.c.bf16 %v9419_v10, %v9418_v45  ;;  %v9481_v2 = vpack.c.bf16 %v9431_v47, %v9430_v5  ;;  %v9440_v10 = vld [vmem:[#allocation3 + $0x210] sm:$0xff]  ;;  %v9445_v45 = vld [vmem:[#allocation3 + $0x248] sm:$0xff]  ;;  %v9455_v5 = vld [vmem:[#allocation3 + $0x2c0] sm:$0xff] }
 0x8a9   :  { %14101 = vmatpush3.bf16.msra.mxu1 %v15292_v42  ;;  %v9480_v42 = vpack.c.bf16 %v9429_v0, %v9428_v8  ;;  %v9451_v0 = vld [vmem:[#allocation3 + $0x290] sm:$0xff] }
 0x8aa   :  { %14166 = vmatprep.subr.bf16.mxu1 %v18384_v14 }
 0x8ac   :  { %14039 = vmatmul.mubr.msk.bf16.gmra.mrb[4].mxu1 %vm149_vm3, %v9471_v28  ;;  %v9435_v28 = vld [vmem:[#allocation3 + $0x1a0] sm:$0xff] }
 0x8ad   :  { %14042 = vmatprep.mubr.msk.bf16.mxu1 %vm149_vm3, %v9472_v49  ;;  %v9483_v31 = vpack.c.bf16 %v9435_v28, %v9434_v41  ;;  %v9437_v49 = vld [vmem:[#allocation3 + $0x1e8] sm:$0xff]  ;;  %v9454_v41 = vld [vmem:[#allocation3 + $0x2b8] sm:$0xff] }
 0x8ae   :  { %v9484_v50 = vpack.c.bf16 %v9437_v49, %v9436_v36  ;;  %v9493_v28 = vpack.c.bf16 %v9455_v5, %v9454_v41  ;;  %v9459_v36 = vld [vmem:[#allocation3 + $0x2f0] sm:$0xff] }
 0x8af   :  { %v10552_v5 = vld [vmem:[#allocation3 + $0x152] sm:$0xff] }
 0x8b4   :  { %14043 = vmatmul.mubr.msk.bf16.gmra.mrb[8].mxu1 %vm149_vm3, %v9473_v37  ;;  %v9441_v37 = vld [vmem:[#allocation3 + $0x218] sm:$0xff] }
 0x8b5   :  { %14046 = vmatprep.mubr.msk.bf16.mxu1 %vm149_vm3, %v9474_v38  ;;  %v9485_v38 = vpack.c.bf16 %v9439_v23, %v9438_v62  ;;  %v9486_v34 = vpack.c.bf16 %v9441_v37, %v9440_v10  ;;  %v9458_v23 = vld [vmem:[#allocation3 + $0x2e8] sm:$0xff]  ;;  %v9460_v62 = vld [vmem:[#allocation3 + $0x300] sm:$0xff] }
 0x8b6   :  { %v9495_v37 = vpack.c.bf16 %v9459_v36, %v9458_v23  ;;  %v9463_v10 = vld [vmem:[#allocation3 + $0x320] sm:$0xff] }
 0x8b7   :  { %v10559_v23 = vld [vmem:[#allocation3 + $0x1a2] sm:$0xff] }
 0x8bc   :  { %14047 = vmatmul.mubr.msk.bf16.gmra.mrb[12].mxu1 %vm149_vm3, %v9475_v48  ;;  %v9442_v48 = vld [vmem:[#allocation3 + $0x228] sm:$0xff] }
 0x8bd   :  { %14050 = vmatprep.mubr.msk.bf16.mxu1 %vm149_vm3, %v9476_v54  ;;  %v9444_v54 = vld [vmem:[#allocation3 + $0x240] sm:$0xff] }
 0x8be   :  { %v9488_v59 = vpack.c.bf16 %v9445_v45, %v9444_v54  ;;  %v9466_v45 = vld [vmem:[#allocation3 + $0x348] sm:$0xff]  ;;  %v15294_v54 = vld [vmem:[%s18930_s6 + $0x88] sm:$0xff]  }
 0x8c4   :  { %14051 = vmatmul.mubr.msk.bf16.gmra.mrb[16].mxu1 %vm149_vm3, %v9477_v6  ;;  %v9446_v6 = vld [vmem:[#allocation3 + $0x258] sm:$0xff] }
 0x8c5   :  { %14054 = vmatprep.mubr.msk.bf16.mxu1 %vm149_vm3, %v9478_v30  ;;  %v9489_v27 = vpack.c.bf16 %v9447_v58, %v9446_v6  ;;  %v9448_v30 = vld [vmem:[#allocation3 + $0x270] sm:$0xff] }
 0x8c6   :  { %v9490_v15 = vpack.c.bf16 %v9449_v51, %v9448_v30  ;;  %v10544_v58 = vld [vmem:[#allocation3 + $0xf2] sm:$0xff]  ;;  %v10545_v51 = vld [vmem:[#allocation3 + $0xfa] sm:$0xff]  ;;  %v10546_v30 = vld [vmem:[#allocation3 + $0x10a] sm:$0xff] }
 0x8cc   :  { %14055 = vmatmul.mubr.msk.bf16.gmra.mrb[20].mxu1 %vm149_vm3, %v9479_v18  ;;  %v9450_v18 = vld [vmem:[#allocation3 + $0x288] sm:$0xff] }
 0x8cd   :  { %14058 = vmatprep.mubr.msk.bf16.mxu1 %vm149_vm3, %v9480_v42  ;;  %v9491_v8 = vpack.c.bf16 %v9451_v0, %v9450_v18  ;;  %v9452_v42 = vld [vmem:[#allocation3 + $0x2a0] sm:$0xff] }
 0x8ce   :  { %v9492_v47 = vpack.c.bf16 %v9453_v12, %v9452_v42  ;;  %v10548_v0 = vld [vmem:[#allocation3 + $0x122] sm:$0xff]  ;;  %v10549_v12 = vld [vmem:[#allocation3 + $0x12a] sm:$0xff]  ;;  %v10550_v42 = vld [vmem:[#allocation3 + $0x13a] sm:$0xff] }
 0x8d4   :  { %14059 = vmatmul.mubr.msk.bf16.gmra.mrb[24].mxu1 %vm149_vm3, %v9481_v2  ;;  %v9457_v2 = vld [vmem:[#allocation3 + $0x2d8] sm:$0xff] }
 0x8d5   :  { %14062 = vmatprep.mubr.msk.bf16.mxu1 %vm149_vm3, %v18131_v56  ;;  %v9443_v56 = vld [vmem:[#allocation3 + $0x230] sm:$0xff] }
 0x8d6   :  { %v9487_v22 = vpack.c.bf16 %v9443_v56, %v9442_v48  ;;  %v9467_v48 = vld [vmem:[#allocation3 + $0x350] sm:$0xff] }
 0x8dc   :  { %14063 = vmatmul.mubr.msk.bf16.gmra.mrb[28].mxu1 %vm149_vm3, %v9483_v31  ;;  %v9456_v31 = vld [vmem:[#allocation3 + $0x2d0] sm:$0xff] }
 0x8dd   :  { %14066 = vmatprep.mubr.msk.bf16.mxu1 %vm149_vm3, %v9484_v50  ;;  %v9494_v49 = vpack.c.bf16 %v9457_v2, %v9456_v31  ;;  %v9461_v50 = vld [vmem:[#allocation3 + $0x308] sm:$0xff]  ;;  %v10553_v2 = vld [vmem:[#allocation3 + $0x15a] sm:$0xff] }
 0x8de   :  { %v10554_v31 = vld [vmem:[#allocation3 + $0x16a] sm:$0xff] }
 0x8e4   :  { %14067 = vmatmul.mubr.msk.bf16.gmra.mrb[32].mxu1 %vm149_vm3, %v9485_v38  ;;  %v9496_v38 = vpack.c.bf16 %v9461_v50, %v9460_v62  ;;  %v10558_v50 = vld [vmem:[#allocation3 + $0x19a] sm:$0xff]  ;;  %v10560_v62 = vld [vmem:[#allocation3 + $0x1e2] sm:$0xff] }
 0x8e5   :  { %14070 = vmatprep.mubr.msk.bf16.mxu1 %vm149_vm3, %v9486_v34  ;;  %v9462_v34 = vld [vmem:[#allocation3 + $0x318] sm:$0xff] }
 0x8e6   :  { %v9497_v56 = vpack.c.bf16 %v9463_v10, %v9462_v34  ;;  %v10562_v34 = vld [vmem:[#allocation3 + $0x1fa] sm:$0xff] }
 0x8ec   :  { %14071 = vmatmul.mubr.msk.bf16.gmra.mrb[36].mxu1 %vm149_vm3, %v9487_v22  ;;  %v9499_v22 = vpack.c.bf16 %v9467_v48, %v9466_v45  ;;  %v10564_v45 = vld [vmem:[#allocation3 + $0x212] sm:$0xff]  ;;  %v10565_v48 = vld [vmem:[#allocation3 + $0x21a] sm:$0xff] }
 0x8ed   :  { %14074 = vmatprep.mubr.msk.bf16.mxu1 %vm149_vm3, %v9488_v59  ;;  %v10543_v59 = vld [vmem:[#allocation3 + $0xe2] sm:$0xff] }
 0x8f4   :  { %14075 = vmatmul.mubr.msk.bf16.gmra.mrb[40].mxu1 %vm149_vm3, %v9489_v27  ;;  %v10600_v27 = vpack.c.bf16 %v10545_v51, %v10544_v58  ;;  %v10590_v51 = vld [vmem:[#allocation3 + $0x34a] sm:$0xff] }
 0x8f5   :  { %14078 = vmatprep.mubr.msk.bf16.mxu1 %vm149_vm3, %v9490_v15  ;;  %v10547_v15 = vld [vmem:[#allocation3 + $0x112] sm:$0xff] }
 0x8f6   :  { %v10601_v18 = vpack.c.bf16 %v10547_v15, %v10546_v30  ;;  %v18521_v30 = vld [vmem:[%s18931_s7] ss:$0 sm:$0xff] }
 0x8fc   :  { %14079 = vmatmul.mubr.msk.bf16.gmra.mrb[44].mxu1 %vm149_vm3, %v9491_v8  ;;  %v10602_v8 = vpack.c.bf16 %v10549_v12, %v10548_v0  ;;  %v11163_v0 = vld [vmem:[%s18927_s3 + $0x10] sm:$0xff] }
 0x8fd   :  { %14082 = vmatprep.mubr.msk.bf16.mxu1 %vm149_vm3, %v9492_v47  ;;  %v10551_v47 = vld [vmem:[#allocation3 + $0x142] sm:$0xff] }
 0x8fe   :  { %v10603_v41 = vpack.c.bf16 %v10551_v47, %v10550_v42  ;;  %v11164_v47 = vld [vmem:[%s18927_s3 + $0x18] sm:$0xff] }
 0x904   :  { %14083 = vmatmul.mubr.msk.bf16.gmra.mrb[48].mxu1 %vm149_vm3, %v9493_v28  ;;  %v10604_v28 = vpack.c.bf16 %v10553_v2, %v10552_v5 }
 0x905   :  { %14086 = vmatprep.mubr.msk.bf16.mxu1 %vm149_vm3, %v9494_v49  ;;  %v10555_v49 = vld [vmem:[#allocation3 + $0x172] sm:$0xff] }
 0x906   :  { %v10605_v36 = vpack.c.bf16 %v10555_v49, %v10554_v31 }
 0x90c   :  { %14087 = vmatmul.mubr.msk.bf16.gmra.mrb[52].mxu1 %vm149_vm3, %v9495_v37  ;;  %v10607_v37 = vpack.c.bf16 %v10559_v23, %v10558_v50 }
 0x90d   :  { %14090 = vmatprep.mubr.msk.bf16.mxu1 %vm149_vm3, %v9496_v38  ;;  %v10561_v38 = vld [vmem:[#allocation3 + $0x1ea] sm:$0xff] }
 0x90e   :  { %v10608_v10 = vpack.c.bf16 %v10561_v38, %v10560_v62 }
 0x914   :  { %14091 = vmatmul.mubr.msk.bf16.gmra.mrb[56].mxu1 %vm149_vm3, %v9497_v56  ;;  %v10563_v56 = vld [vmem:[#allocation3 + $0x202] sm:$0xff] }
 0x915   :  { %14094 = vmatprep.mubr.msk.bf16.mxu1 %vm149_vm3, %v18165_v46  ;;  %v9996_v46 = vld [vmem:[#allocation3 + $0x199] sm:$0xff] }
 0x91c   :  { %14095 = vmatmul.mubr.msk.bf16.gmra.mrb[60].mxu1 %vm149_vm3, %v9499_v22  ;;  %v10609_v22 = vpack.c.bf16 %v10563_v56, %v10562_v34 }
 0x91d   :  { %14102 = vmatprep.mubr.msk.bf16.mxu1 %vm149_vm3, %v18170_v24  ;;  %v9997_v24 = vld [vmem:[#allocation3 + $0x1a1] sm:$0xff] }
 0x924   :  { %14103 = vmatmul.mubr.msk.bf16.vlgmr.msra.gmra.mrb[0].mxu1 %vm149_vm3, %v18175_v26  ;;  %v10045_v26 = vpack.c.bf16 %v9997_v24, %v9996_v46  ;;  %v10567_v46 = vld [vmem:[#allocation3 + $0x232] sm:$0xff]  ;;  %v10568_v24 = vld [vmem:[#allocation3 + $0x242] sm:$0xff] }
 0x925   :  { %14167 = vmatpush3.bf16.msra.mxu1 %v18384_v14  ;;  %14106 = vmatprep.mubr.msk.bf16.mxu1 %vm149_vm3, %v18186_v57  ;;  %v18976_v57 = vld [vmem:[#allocation14_spill] sm:$0xff]  ;;  %v10542_v14 = vld [vmem:[#allocation3 + $0xda] sm:$0xff] }
 0x926   :  { %14168 = vmatprep.subr.bf16.mxu1 %v15294_v54  ;;  %v10599_v6 = vpack.c.bf16 %v10543_v59, %v10542_v14  ;;  %v10586_v14 = vld [vmem:[#allocation3 + $0x31a] sm:$0xff]  ;;  %v10587_v59 = vld [vmem:[#allocation3 + $0x322] sm:$0xff] }
 0x927   :  { %v10621_v58 = vpack.c.bf16 %v10587_v59, %v10586_v14 }
 0x929   :  { %14169 = vmatpush3.bf16.msra.mxu1 %v15294_v54  ;;  %v10610_v54 = vpack.c.bf16 %v10565_v48, %v10564_v45 }
 0x92c   :  { %14107 = vmatmul.mubr.msk.bf16.gmra.mrb[4].mxu1 %vm149_vm3, %v18189_v35  ;;  %v18977_v35 = vld [vmem:[#allocation15_spill] sm:$0xff] }
 0x92d   :  { %14110 = vmatprep.mubr.msk.bf16.mxu1 %vm149_vm3, %v18195_v9  ;;  %v10028_v9 = vld [vmem:[#allocation3 + $0x349] sm:$0xff] }
 0x934   :  { %14111 = vmatmul.mubr.msk.bf16.gmra.mrb[8].mxu1 %vm149_vm3, %v18197_v11  ;;  %v10029_v11 = vld [vmem:[#allocation3 + $0x351] sm:$0xff] }
 0x935   :  { %14114 = vmatprep.mubr.msk.bf16.mxu1 %vm149_vm3, %v18203_v61  ;;  %v10061_v61 = vpack.c.bf16 %v10029_v11, %v10028_v9  ;;  %v10570_v9 = vld [vmem:[#allocation3 + $0x25a] sm:$0xff]  ;;  %v10571_v11 = vld [vmem:[#allocation3 + $0x262] sm:$0xff] }
 0x93c   :  { %14115 = vmatmul.mubr.msk.bf16.gmra.mrb[12].mxu1 %vm149_vm3, %v18205_v33  ;;  %v10528_v33 = vld [vmem:[#allocation3 + $0x32] sm:$0xff] }
 0x93d   :  { %14118 = vmatprep.mubr.msk.bf16.mxu1 %vm149_vm3, %v18211_v32  ;;  %v10529_v32 = vld [vmem:[#allocation3 + $0x3a] sm:$0xff] }
 0x944   :  { %14119 = vmatmul.mubr.msk.bf16.gmra.mrb[16].mxu1 %vm149_vm3, %v18213_v1  ;;  %v10592_v1 = vpack.c.bf16 %v10529_v32, %v10528_v33  ;;  %v10573_v33 = vld [vmem:[#allocation3 + $0x27a] sm:$0xff]  ;;  %v10613_v32 = vpack.c.bf16 %v10571_v11, %v10570_v9 }
 0x945   :  { %14122 = vmatprep.mubr.msk.bf16.mxu1 %vm149_vm3, %v18219_v4  ;;  %v10530_v4 = vld [vmem:[#allocation3 + $0x4a] sm:$0xff] }
 0x94c   :  { %14123 = vmatmul.mubr.msk.bf16.gmra.mrb[20].mxu1 %vm149_vm3, %v18221_v53  ;;  %v10531_v53 = vld [vmem:[#allocation3 + $0x52] sm:$0xff] }
 0x94d   :  { %14126 = vmatprep.mubr.msk.bf16.mxu1 %vm149_vm3, %v18227_v13  ;;  %v10532_v13 = vld [vmem:[#allocation3 + $0x62] sm:$0xff] }
 0x954   :  { %14127 = vmatmul.mubr.msk.bf16.gmra.mrb[24].mxu1 %vm149_vm3, %v18229_v7  ;;  %v10533_v7 = vld [vmem:[#allocation3 + $0x6a] sm:$0xff] }
 0x955   :  { %14130 = vmatprep.mubr.msk.bf16.mxu1 %vm149_vm3, %v18235_v21  ;;  %v10593_v21 = vpack.c.bf16 %v10531_v53, %v10530_v4  ;;  %v10574_v4 = vld [vmem:[#allocation3 + $0x28a] sm:$0xff]  ;;  %v10575_v53 = vld [vmem:[#allocation3 + $0x292] sm:$0xff] }
 0x95c   :  { %14131 = vmatmul.mubr.msk.bf16.gmra.mrb[28].mxu1 %vm149_vm3, %v10045_v26  ;;  %v10569_v26 = vld [vmem:[#allocation3 + $0x24a] sm:$0xff] }
 0x95d   :  { %14134 = vmatprep.mubr.msk.bf16.mxu1 %vm149_vm3, %v18240_v29  ;;  %v10594_v29 = vpack.c.bf16 %v10533_v7, %v10532_v13  ;;  %v10576_v13 = vld [vmem:[#allocation3 + $0x2a2] sm:$0xff]  ;;  %v10577_v7 = vld [vmem:[#allocation3 + $0x2aa] sm:$0xff] }
 0x964   :  { %14135 = vmatmul.mubr.msk.bf16.gmra.mrb[32].mxu1 %vm149_vm3, %v18242_v39  ;;  %v10534_v39 = vld [vmem:[#allocation3 + $0x7a] sm:$0xff] }
 0x965   :  { %14138 = vmatprep.mubr.msk.bf16.mxu1 %vm149_vm3, %v18248_v52  ;;  %v10535_v52 = vld [vmem:[#allocation3 + $0x82] sm:$0xff] }
 0x96c   :  { %14139 = vmatmul.mubr.msk.bf16.gmra.mrb[36].mxu1 %vm149_vm3, %v18250_v17  ;;  %v10536_v17 = vld [vmem:[#allocation3 + $0x92] sm:$0xff] }
 0x96d   :  { %14142 = vmatprep.mubr.msk.bf16.mxu1 %vm149_vm3, %v18256_v16  ;;  %v10537_v16 = vld [vmem:[#allocation3 + $0x9a] sm:$0xff] }
 0x974   :  { %14143 = vmatmul.mubr.msk.bf16.gmra.mrb[40].mxu1 %vm149_vm3, %v18258_v63  ;;  %v10595_v63 = vpack.c.bf16 %v10535_v52, %v10534_v39  ;;  %v10578_v39 = vld [vmem:[#allocation3 + $0x2ba] sm:$0xff]  ;;  %v10579_v52 = vld [vmem:[#allocation3 + $0x2c2] sm:$0xff] }
 0x975   :  { %14146 = vmatprep.mubr.msk.bf16.mxu1 %vm149_vm3, %v18264_v60  ;;  %v10596_v60 = vpack.c.bf16 %v10537_v16, %v10536_v17  ;;  %v10580_v17 = vld [vmem:[#allocation3 + $0x2d2] sm:$0xff]  ;;  %v10581_v16 = vld [vmem:[#allocation3 + $0x2da] sm:$0xff] }
 0x97c   :  { %14147 = vmatmul.mubr.msk.bf16.gmra.mrb[44].mxu1 %vm149_vm3, %v18266_v25  ;;  %v10538_v25 = vld [vmem:[#allocation3 + $0xaa] sm:$0xff] }
 0x97d   :  { %14150 = vmatprep.mubr.msk.bf16.mxu1 %vm149_vm3, %v18976_v57 }
 0x984   :  { %14151 = vmatmul.mubr.msk.bf16.gmra.mrb[48].mxu1 %vm149_vm3, %v18977_v35  ;;  %v10612_v35 = vpack.c.bf16 %v10569_v26, %v10568_v24  ;;  %v11165_v24 = vld [vmem:[%s18927_s3 + $0x20] sm:$0xff] }
 0x985   :  { %14154 = vmatprep.mubr.msk.bf16.mxu1 %vm149_vm3, %v18280_v43  ;;  %v10540_v43 = vld [vmem:[#allocation3 + $0xc2] sm:$0xff] }
 0x98c   :  { %14155 = vmatmul.mubr.msk.bf16.gmra.mrb[52].mxu1 %vm149_vm3, %v18282_v40  ;;  %v10541_v40 = vld [vmem:[#allocation3 + $0xca] sm:$0xff] }
 0x98d   :  { %14158 = vmatprep.mubr.msk.bf16.mxu1 %vm149_vm3, %v18288_v19 }
 0x994   :  { %14159 = vmatmul.mubr.msk.bf16.gmra.mrb[56].mxu1 %vm149_vm3, %v18290_v44  ;;  %v10539_v44 = vld [vmem:[#allocation3 + $0xb2] sm:$0xff] }
 0x995   :  { %14162 = vmatprep.mubr.msk.bf16.mxu1 %vm149_vm3, %v18296_v3  ;;  %v10597_v19 = vpack.c.bf16 %v10539_v44, %v10538_v25  ;;  %v10598_v3 = vpack.c.bf16 %v10541_v40, %v10540_v43  ;;  %v10582_v25 = vld [vmem:[#allocation3 + $0x2ea] sm:$0xff]  ;;  %v10583_v44 = vld [vmem:[#allocation3 + $0x2f2] sm:$0xff]  ;;  %v10584_v43 = vld [vmem:[#allocation3 + $0x302] sm:$0xff] }
 0x996   :  { %v10585_v40 = vld [vmem:[#allocation3 + $0x30a] sm:$0xff] }
 0x99c   :  { %14163 = vmatmul.mubr.msk.bf16.gmra.mrb[60].mxu1 %vm149_vm3, %v10061_v61  ;;  %v10572_v61 = vld [vmem:[#allocation3 + $0x272] sm:$0xff] }
 0x99d   :  { %14170 = vmatprep.mubr.msk.bf16.mxu1 %vm149_vm3, %v10592_v1  ;;  %v10614_v1 = vpack.c.bf16 %v10573_v33, %v10572_v61 }
 0x9a4   :  { %14171 = vmatmul.mubr.msk.bf16.vlgmr.msra.gmra.mrb[0].mxu1 %vm149_vm3, %v10593_v21  ;;  %v10615_v21 = vpack.c.bf16 %v10575_v53, %v10574_v4  ;;  %v11168_v4 = vld [vmem:[%s18927_s3 + $0x38] sm:$0xff] }
 0x9a5   :  { %14174 = vmatprep.mubr.msk.bf16.mxu1 %vm149_vm3, %v10594_v29  ;;  %v10616_v29 = vpack.c.bf16 %v10577_v7, %v10576_v13  ;;  %v11166_v13 = vld [vmem:[%s18927_s3 + $0x28] sm:$0xff] }
 0x9ac   :  { %14175 = vmatmul.mubr.msk.bf16.gmra.mrb[4].mxu1 %vm149_vm3, %v10595_v63  ;;  %v10617_v63 = vpack.c.bf16 %v10579_v52, %v10578_v39 }
 0x9ad   :  { %14178 = vmatprep.mubr.msk.bf16.mxu1 %vm149_vm3, %v10596_v60  ;;  %v10618_v60 = vpack.c.bf16 %v10581_v16, %v10580_v17 }
 0x9b4   :  { %14179 = vmatmul.mubr.msk.bf16.gmra.mrb[8].mxu1 %vm149_vm3, %v10597_v19  ;;  %v10619_v19 = vpack.c.bf16 %v10583_v44, %v10582_v25 }
 0x9b5   :  { %14182 = vmatprep.mubr.msk.bf16.mxu1 %vm149_vm3, %v10598_v3  ;;  %v10620_v3 = vpack.c.bf16 %v10585_v40, %v10584_v43 }
 0x9bc   :  { %14183 = vmatmul.mubr.msk.bf16.gmra.mrb[12].mxu1 %vm149_vm3, %v10599_v6  ;;  %v10591_v6 = vld [vmem:[#allocation3 + $0x352] sm:$0xff] }
 0x9bd   :  { %14186 = vmatprep.mubr.msk.bf16.mxu1 %vm149_vm3, %v10600_v27  ;;  %v10623_v27 = vpack.c.bf16 %v10591_v6, %v10590_v51 }
 0x9c4   :  { %14187 = vmatmul.mubr.msk.bf16.gmra.mrb[16].mxu1 %vm149_vm3, %v10601_v18 }
 0x9c5   :  { %14190 = vmatprep.mubr.msk.bf16.mxu1 %vm149_vm3, %v10602_v8 }
 0x9cc   :  { %14191 = vmatmul.mubr.msk.bf16.gmra.mrb[20].mxu1 %vm149_vm3, %v10603_v41 }
 0x9cd   :  { %14194 = vmatprep.mubr.msk.bf16.mxu1 %vm149_vm3, %v10604_v28  ;;  %v11162_v28 = vld [vmem:[%s18927_s3 + $0x8] sm:$0xff] }
 0x9d4   :  { %14195 = vmatmul.mubr.msk.bf16.gmra.mrb[24].mxu1 %vm149_vm3, %v10605_v36 }
 0x9d5   :  { %14198 = vmatprep.mubr.msk.bf16.mxu1 %vm149_vm3, %v18337_v20  ;;  %v10566_v20 = vld [vmem:[#allocation3 + $0x22a] sm:$0xff] }
 0x9d6   :  { %v10611_v57 = vpack.c.bf16 %v10567_v46, %v10566_v20  ;;  %v11167_v20 = vld [vmem:[%s18927_s3 + $0x30] sm:$0xff] }
 0x9dc   :  { %14199 = vmatmul.mubr.msk.bf16.gmra.mrb[28].mxu1 %vm149_vm3, %v10607_v37 }
 0x9dd   :  { %14202 = vmatprep.mubr.msk.bf16.mxu1 %vm149_vm3, %v10608_v10 }
 0x9e4   :  { %14203 = vmatmul.mubr.msk.bf16.gmra.mrb[32].mxu1 %vm149_vm3, %v10609_v22 }
 0x9e5   :  { %14206 = vmatprep.mubr.msk.bf16.mxu1 %vm149_vm3, %v10610_v54 }
 0x9ec   :  { %14207 = vmatmul.mubr.msk.bf16.gmra.mrb[36].mxu1 %vm149_vm3, %v10611_v57 }
 0x9ed   :  { %14210 = vmatprep.mubr.msk.bf16.mxu1 %vm149_vm3, %v10612_v35 }
 0x9f4   :  { %14211 = vmatmul.mubr.msk.bf16.gmra.mrb[40].mxu1 %vm149_vm3, %v10613_v32 }
 0x9f5   :  { %14214 = vmatprep.mubr.msk.bf16.mxu1 %vm149_vm3, %v10614_v1 }
 0x9fc   :  { %14215 = vmatmul.mubr.msk.bf16.gmra.mrb[44].mxu1 %vm149_vm3, %v10615_v21 }
 0x9fd   :  { %14218 = vmatprep.mubr.msk.bf16.mxu1 %vm149_vm3, %v10616_v29 }
 0xa04   :  { %14219 = vmatmul.mubr.msk.bf16.gmra.mrb[48].mxu1 %vm149_vm3, %v10617_v63 }
 0xa05   :  { %14222 = vmatprep.mubr.msk.bf16.mxu1 %vm149_vm3, %v10618_v60 }
 0xa0c   :  { %14223 = vmatmul.mubr.msk.bf16.gmra.mrb[52].mxu1 %vm149_vm3, %v10619_v19 }
 0xa0d   :  { %14226 = vmatprep.mubr.msk.bf16.mxu1 %vm149_vm3, %v10620_v3 }
 0xa14   :  { %14227 = vmatmul.mubr.msk.bf16.gmra.mrb[56].mxu1 %vm149_vm3, %v10621_v58 }
 0xa15   :  { %14230 = vmatprep.mubr.msk.bf16.mxu1 %vm149_vm3, %v18371_v55  ;;  %v11161_v55 = vld [vmem:[%s18927_s3] sm:$0xff] }
 0xa1c   :  { %14231 = vmatmul.mubr.msk.bf16.gmra.mrb[60].mxu1 %vm149_vm3, %v10623_v27 }
 0xa77   :  { %v14172_v15 = vpop.f32.mrb[0].mxu1 }
 0xa78   :  { %v11099_v12 = vadd.f32 %v14172_v15, %v18521_v30  ;;  %v10771_v18 = vpop.f32.mrb[1].mxu1 }
 0xa79   :  { %v11097_v8 = vadd.f32 %v18521_v30, %v10771_v18  ;;  %v14173_v42 = vpop.f32.mrb[2].mxu1  ;;  %v11169_v18 = vld [vmem:[%s18927_s3 + $0x40] sm:$0xff] }
 0xa7a   :  { %v11227_v5 = vsub.f32 %v11099_v12, %v11163_v0  ;;  %v11100_v2 = vadd.f32 %v14173_v42, %v18521_v30  ;;  %v10774_v41 = vpop.f32.mrb[3].mxu1  ;;  %v11171_v42 = vld [vmem:[%s18927_s3 + $0x50] sm:$0xff] }
 0xa7b   :  { %v11225_v31 = vsub.f32 %v11097_v8, %v11161_v55  ;;  %v11098_v49 = vadd.f32 %v18521_v30, %v10774_v41 }
 0xa7c   :  { %v11228_v36 = vsub.f32 %v11100_v2, %v11164_v47  ;;  %v11292_v62 = vmul.f32 %v11227_v5, %v11227_v5  ;;  %v11496_v38 = vand.u32 2147483647, %v11227_v5 }
 0xa7d   :  { %v11290_v50 = vmul.f32 %v11225_v31, %v11225_v31  ;;  %v11494_v23 = vand.u32 2147483647, %v11225_v31  ;;  %v11226_v37 = vsub.f32 %v11098_v49, %v11162_v28 }
 0xa7e   :  { %v11293_v48 = vmul.f32 %v11228_v36, %v11228_v36  ;;  %v11497_v22 = vand.u32 2147483647, %v11228_v36  ;;  %v11357_v61 = vsel %vm39_vm1, %v11292_v62, 0.0  ;;  %v11561_v7 = vsel %vm39_vm1, %v11496_v38, 0.0 }
 0xa7f   :  { %v11291_v10 = vmul.f32 %v11226_v37, %v11226_v37  ;;  %v11495_v34 = vand.u32 2147483647, %v11226_v37  ;;  %v14176_v56 = vpop.f32.mrb[4].mxu1  ;;  %v11354_v45 = vsel %vm39_vm1, %v11290_v50, 0.0  ;;  %v11558_v26 = vsel %vm39_vm1, %v11494_v23, 0.0  ;;  %v11172_v37 = vld [vmem:[%s18927_s3 + $0x58] sm:$0xff] }
 0xa80   :  { %v11103_v54 = vadd.f32 %v14176_v56, %v18521_v30  ;;  %v10787_v46 = vpop.f32.mrb[5].mxu1  ;;  %v11359_v52 = vsel %vm39_vm1, %v11293_v48, 0.0  ;;  %v11563_v17 = vsel %vm39_vm1, %v11497_v22, 0.0 }
 0xa81   :  { %v11355_v57 = vsel %vm39_vm1, %v11291_v10, 0.0  ;;  %v11559_v35 = vsel %vm39_vm1, %v11495_v34, 0.0  ;;  %v11101_v9 = vadd.f32 %v18521_v30, %v10787_v46  ;;  %v14177_v11 = vpop.f32.mrb[6].mxu1 }
 0xa82   :  { %v11356_v33 = vadd.f32 %v11355_v57, %v11354_v45  ;;  %v11560_v32 = vadd.f32 %v11559_v35, %v11558_v26  ;;  %v11104_v1 = vadd.f32 %v14177_v11, %v18521_v30  ;;  %v10790_v53 = vpop.f32.mrb[7].mxu1  ;;  %v11231_v21 = vsub.f32 %v11103_v54, %v11167_v20 }
 0xa83   :  { %v11229_v29 = vsub.f32 %v11101_v9, %v11165_v24  ;;  %v11102_v39 = vadd.f32 %v18521_v30, %v10790_v53  ;;  %v11170_v24 = vld [vmem:[%s18927_s3 + $0x48] sm:$0xff] }
 0xa84   :  { %v11358_v16 = vadd.f32 %v11357_v61, %v11356_v33  ;;  %v11562_v63 = vadd.f32 %v11561_v7, %v11560_v32  ;;  %v11232_v44 = vsub.f32 %v11104_v1, %v11168_v4  ;;  %v11296_v3 = vmul.f32 %v11231_v21, %v11231_v21  ;;  %v11173_v7 = vld [vmem:[%s18927_s3 + $0x60] sm:$0xff] }
 0xa85   :  { %v11294_v60 = vmul.f32 %v11229_v29, %v11229_v29  ;;  %v11498_v25 = vand.u32 2147483647, %v11229_v29  ;;  %v11230_v43 = vsub.f32 %v11102_v39, %v11166_v13  ;;  %v11500_v14 = vand.u32 2147483647, %v11231_v21  ;;  %v11175_v13 = vld [vmem:[%s18927_s3 + $0x70] sm:$0xff] }
 0xa86   :  { %v11360_v40 = vadd.f32 %v11359_v52, %v11358_v16  ;;  %v11564_v19 = vadd.f32 %v11563_v17, %v11562_v63  ;;  %v11297_v55 = vmul.f32 %v11232_v44, %v11232_v44  ;;  %v11501_v2 = vand.u32 2147483647, %v11232_v44 }
 0xa87   :  { %v11361_v59 = vsel %vm39_vm1, %v11294_v60, 0.0  ;;  %v11565_v58 = vsel %vm39_vm1, %v11498_v25, 0.0  ;;  %v14180_v51 = vpop.f32.mrb[8].mxu1  ;;  %v11295_v15 = vmul.f32 %v11230_v43, %v11230_v43  ;;  %v11499_v0 = vand.u32 2147483647, %v11230_v43 }
 0xa88   :  { %v11362_v6 = vadd.f32 %v11361_v59, %v11360_v40  ;;  %v11566_v27 = vadd.f32 %v11565_v58, %v11564_v19  ;;  %v10803_v12 = vpop.f32.mrb[9].mxu1  ;;  %v11107_v8 = vadd.f32 %v14180_v51, %v18521_v30  ;;  %v11365_v62 = vsel %vm39_vm1, %v11296_v3, 0.0  ;;  %v11176_v40 = vld [vmem:[%s18927_s3 + $0x78] sm:$0xff] }
 0xa89   :  { %v11105_v47 = vadd.f32 %v18521_v30, %v10803_v12  ;;  %v14181_v5 = vpop.f32.mrb[10].mxu1  ;;  %v11363_v41 = vsel %vm39_vm1, %v11295_v15, 0.0  ;;  %v11567_v28 = vsel %vm39_vm1, %v11499_v0, 0.0  ;;  %v11569_v38 = vsel %vm39_vm1, %v11500_v14, 0.0  ;;  %v11174_v15 = vld [vmem:[%s18927_s3 + $0x68] sm:$0xff] }
 0xa8a   :  { %v11108_v31 = vadd.f32 %v14181_v5, %v18521_v30  ;;  %v10806_v49 = vpop.f32.mrb[11].mxu1  ;;  %v11364_v36 = vadd.f32 %v11363_v41, %v11362_v6  ;;  %v11568_v50 = vadd.f32 %v11567_v28, %v11566_v27  ;;  %v11235_v10 = vsub.f32 %v11107_v8, %v11171_v42 }
 0xa8b   :  { %v11233_v23 = vsub.f32 %v11105_v47, %v11169_v18  ;;  %v11367_v34 = vsel %vm39_vm1, %v11297_v55, 0.0  ;;  %v11106_v48 = vadd.f32 %v18521_v30, %v10806_v49  ;;  %v11571_v22 = vsel %vm39_vm1, %v11501_v2, 0.0 }
 0xa8c   :  { %v11366_v56 = vadd.f32 %v11365_v62, %v11364_v36  ;;  %v11570_v45 = vadd.f32 %v11569_v38, %v11568_v50  ;;  %v11236_v46 = vsub.f32 %v11108_v31, %v11172_v37  ;;  %v11300_v9 = vmul.f32 %v11235_v10, %v11235_v10  ;;  %v11179_v50 = vld [vmem:[%s18927_s3 + $0x90] sm:$0xff] }
 0xa8d   :  { %v11298_v54 = vmul.f32 %v11233_v23, %v11233_v23  ;;  %v11502_v20 = vand.u32 2147483647, %v11233_v23  ;;  %v11234_v4 = vsub.f32 %v11106_v48, %v11170_v24  ;;  %v11504_v29 = vand.u32 2147483647, %v11235_v10  ;;  %v11177_v23 = vld [vmem:[%s18927_s3 + $0x80] sm:$0xff] }
 0xa8e   :  { %v11368_v26 = vadd.f32 %v11367_v34, %v11366_v56  ;;  %v11572_v57 = vadd.f32 %v11571_v22, %v11570_v45  ;;  %v11301_v39 = vmul.f32 %v11236_v46, %v11236_v46  ;;  %v11505_v16 = vand.u32 2147483647, %v11236_v46  ;;  %v11180_v56 = vld [vmem:[%s18927_s3 + $0x98] sm:$0xff] }
 0xa8f   :  { %v14184_v35 = vpop.f32.mrb[12].mxu1  ;;  %v11369_v11 = vsel %vm39_vm1, %v11298_v54, 0.0  ;;  %v11573_v61 = vsel %vm39_vm1, %v11502_v20, 0.0  ;;  %v11299_v63 = vmul.f32 %v11234_v4, %v11234_v4  ;;  %v11503_v60 = vand.u32 2147483647, %v11234_v4 }
 0xa90   :  { %v10819_v33 = vpop.f32.mrb[13].mxu1  ;;  %v11370_v32 = vadd.f32 %v11369_v11, %v11368_v26  ;;  %v11574_v1 = vadd.f32 %v11573_v61, %v11572_v57  ;;  %v11111_v53 = vadd.f32 %v14184_v35, %v18521_v30  ;;  %v11373_v19 = vsel %vm39_vm1, %v11300_v9, 0.0 }
 0xa91   :  { %v14185_v21 = vpop.f32.mrb[14].mxu1  ;;  %v11109_v52 = vadd.f32 %v18521_v30, %v10819_v33  ;;  %v11371_v3 = vsel %vm39_vm1, %v11299_v63, 0.0  ;;  %v11575_v14 = vsel %vm39_vm1, %v11503_v60, 0.0  ;;  %v11577_v0 = vsel %vm39_vm1, %v11504_v29, 0.0 }
 0xa92   :  { %v10822_v17 = vpop.f32.mrb[15].mxu1  ;;  %v11112_v25 = vadd.f32 %v14185_v21, %v18521_v30  ;;  %v11239_v44 = vsub.f32 %v11111_v53, %v11175_v13  ;;  %v11372_v58 = vadd.f32 %v11371_v3, %v11370_v32  ;;  %v11576_v51 = vadd.f32 %v11575_v14, %v11574_v1  ;;  %v11178_v53 = vld [vmem:[%s18927_s3 + $0x88] sm:$0xff]  ;;  %v11181_v3 = vld [vmem:[%s18927_s3 + $0xa0] sm:$0xff] }
 0xa93   :  { %v11237_v43 = vsub.f32 %v11109_v52, %v11173_v7  ;;  %v11110_v59 = vadd.f32 %v18521_v30, %v10822_v17  ;;  %v11375_v12 = vsel %vm39_vm1, %v11301_v39, 0.0  ;;  %v11579_v18 = vsel %vm39_vm1, %v11505_v16, 0.0 }
 0xa94   :  { %v11240_v55 = vsub.f32 %v11112_v25, %v11176_v40  ;;  %v11374_v42 = vadd.f32 %v11373_v19, %v11372_v58  ;;  %v11578_v47 = vadd.f32 %v11577_v0, %v11576_v51  ;;  %v11304_v5 = vmul.f32 %v11239_v44, %v11239_v44  ;;  %v11183_v19 = vld [vmem:[%s18927_s3 + $0xb0] sm:$0xff] }
 0xa95   :  { %v11302_v6 = vmul.f32 %v11237_v43, %v11237_v43  ;;  %v11506_v27 = vand.u32 2147483647, %v11237_v43  ;;  %v11508_v2 = vand.u32 2147483647, %v11239_v44  ;;  %v11238_v49 = vsub.f32 %v11110_v59, %v11174_v15 }
 0xa96   :  { %v11376_v62 = vadd.f32 %v11375_v12, %v11374_v42  ;;  %v11580_v38 = vadd.f32 %v11579_v18, %v11578_v47  ;;  %v11305_v48 = vmul.f32 %v11240_v55, %v11240_v55  ;;  %v11509_v22 = vand.u32 2147483647, %v11240_v55 }
 0xa97   :  { %v14188_v8 = vpop.f32.mrb[16].mxu1  ;;  %v11377_v28 = vsel %vm39_vm1, %v11302_v6, 0.0  ;;  %v11581_v31 = vsel %vm39_vm1, %v11506_v27, 0.0  ;;  %v11303_v54 = vmul.f32 %v11238_v49, %v11238_v49  ;;  %v11507_v20 = vand.u32 2147483647, %v11238_v49 }
 0xa98   :  { %v10835_v41 = vpop.f32.mrb[17].mxu1  ;;  %v11115_v36 = vadd.f32 %v14188_v8, %v18521_v30  ;;  %v11378_v46 = vadd.f32 %v11377_v28, %v11376_v62  ;;  %v11582_v24 = vadd.f32 %v11581_v31, %v11580_v38  ;;  %v11381_v13 = vsel %vm39_vm1, %v11304_v5, 0.0  ;;  %v11184_v5 = vld [vmem:[%s18927_s3 + $0xb8] sm:$0xff] }
 0xa99   :  { %v14189_v37 = vpop.f32.mrb[18].mxu1  ;;  %v11113_v10 = vadd.f32 %v18521_v30, %v10835_v41  ;;  %v11379_v35 = vsel %vm39_vm1, %v11303_v54, 0.0  ;;  %v11583_v9 = vsel %vm39_vm1, %v11507_v20, 0.0  ;;  %v11585_v7 = vsel %vm39_vm1, %v11508_v2, 0.0 }
 0xa9a   :  { %v11116_v34 = vadd.f32 %v14189_v37, %v18521_v30  ;;  %v10838_v45 = vpop.f32.mrb[19].mxu1  ;;  %v11243_v26 = vsub.f32 %v11115_v36, %v11179_v50  ;;  %v11380_v33 = vadd.f32 %v11379_v35, %v11378_v46  ;;  %v11584_v32 = vadd.f32 %v11583_v9, %v11582_v24  ;;  %v11182_v37 = vld [vmem:[%s18927_s3 + $0xa8] sm:$0xff]  ;;  %v11187_v35 = vld [vmem:[%s18927_s3 + $0xd0] sm:$0xff]  ;;  %v11185_v9 = vld [vmem:[%s18927_s3 + $0xc0] sm:$0xff] }
 0xa9b   :  { %v11241_v57 = vsub.f32 %v11113_v10, %v11177_v23  ;;  %v11114_v61 = vadd.f32 %v18521_v30, %v10838_v45  ;;  %v11383_v21 = vsel %vm39_vm1, %v11305_v48, 0.0  ;;  %v11587_v29 = vsel %vm39_vm1, %v11509_v22, 0.0 }
 0xa9c   :  { %v11244_v11 = vsub.f32 %v11116_v34, %v11180_v56  ;;  %v11382_v52 = vadd.f32 %v11381_v13, %v11380_v33  ;;  %v11586_v17 = vadd.f32 %v11585_v7, %v11584_v32  ;;  %v11308_v16 = vmul.f32 %v11243_v26, %v11243_v26 }
 0xa9d   :  { %v11306_v1 = vmul.f32 %v11241_v57, %v11241_v57  ;;  %v11510_v4 = vand.u32 2147483647, %v11241_v57  ;;  %v11512_v63 = vand.u32 2147483647, %v11243_v26  ;;  %v11242_v43 = vsub.f32 %v11114_v61, %v11178_v53 }
 0xa9e   :  { %v11384_v59 = vadd.f32 %v11383_v21, %v11382_v52  ;;  %v11588_v58 = vadd.f32 %v11587_v29, %v11586_v17  ;;  %v11309_v51 = vmul.f32 %v11244_v11, %v11244_v11  ;;  %v11513_v15 = vand.u32 2147483647, %v11244_v11 }
 0xa9f   :  { %v14192_v39 = vpop.f32.mrb[20].mxu1  ;;  %v11385_v25 = vsel %vm39_vm1, %v11306_v1, 0.0  ;;  %v11589_v44 = vsel %vm39_vm1, %v11510_v4, 0.0  ;;  %v11307_v0 = vmul.f32 %v11242_v43, %v11242_v43  ;;  %v11511_v12 = vand.u32 2147483647, %v11242_v43  ;;  %v11188_v4 = vld [vmem:[%s18927_s3 + $0xd8] sm:$0xff] }
 0xaa0   :  { %v10851_v60 = vpop.f32.mrb[21].mxu1  ;;  %v11119_v40 = vadd.f32 %v14192_v39, %v18521_v30  ;;  %v11386_v55 = vadd.f32 %v11385_v25, %v11384_v59  ;;  %v11590_v8 = vadd.f32 %v11589_v44, %v11588_v58  ;;  %v11389_v2 = vsel %vm39_vm1, %v11308_v16, 0.0 }
 0xaa1   :  { %v14193_v14 = vpop.f32.mrb[22].mxu1  ;;  %v11117_v6 = vadd.f32 %v18521_v30, %v10851_v60  ;;  %v11387_v41 = vsel %vm39_vm1, %v11307_v0, 0.0  ;;  %v11591_v28 = vsel %vm39_vm1, %v11511_v12, 0.0  ;;  %v11593_v62 = vsel %vm39_vm1, %v11512_v63, 0.0 }
 0xaa2   :  { %v10854_v27 = vpop.f32.mrb[23].mxu1  ;;  %v11120_v18 = vadd.f32 %v14193_v14, %v18521_v30  ;;  %v11247_v42 = vsub.f32 %v11119_v40, %v11183_v19  ;;  %v11388_v49 = vadd.f32 %v11387_v41, %v11386_v55  ;;  %v11592_v36 = vadd.f32 %v11591_v28, %v11590_v8  ;;  %v11186_v14 = vld [vmem:[%s18927_s3 + $0xc8] sm:$0xff]  ;;  %v11189_v41 = vld [vmem:[%s18927_s3 + $0xe0] sm:$0xff] }
 0xaa3   :  { %v11245_v47 = vsub.f32 %v11117_v6, %v11181_v3  ;;  %v11118_v31 = vadd.f32 %v18521_v30, %v10854_v27  ;;  %v11391_v38 = vsel %vm39_vm1, %v11309_v51, 0.0  ;;  %v11595_v10 = vsel %vm39_vm1, %v11513_v15, 0.0 }
 0xaa4   :  { %v11248_v34 = vsub.f32 %v11120_v18, %v11184_v5  ;;  %v11390_v45 = vadd.f32 %v11389_v2, %v11388_v49  ;;  %v11594_v48 = vadd.f32 %v11593_v62, %v11592_v36  ;;  %v11312_v22 = vmul.f32 %v11247_v42, %v11247_v42  ;;  %v11191_v2 = vld [vmem:[%s18927_s3 + $0xf0] sm:$0xff] }
 0xaa5   :  { %v11310_v50 = vmul.f32 %v11245_v47, %v11245_v47  ;;  %v11514_v23 = vand.u32 2147483647, %v11245_v47  ;;  %v11516_v54 = vand.u32 2147483647, %v11247_v42  ;;  %v11246_v26 = vsub.f32 %v11118_v31, %v11182_v37 }
 0xaa6   :  { %v11392_v61 = vadd.f32 %v11391_v38, %v11390_v45  ;;  %v11596_v33 = vadd.f32 %v11595_v10, %v11594_v48  ;;  %v11313_v13 = vmul.f32 %v11248_v34, %v11248_v34  ;;  %v11517_v7 = vand.u32 2147483647, %v11248_v34 }
 0xaa7   :  { %v14196_v56 = vpop.f32.mrb[24].mxu1  ;;  %v11393_v46 = vsel %vm39_vm1, %v11310_v50, 0.0  ;;  %v11597_v24 = vsel %vm39_vm1, %v11514_v23, 0.0  ;;  %v11311_v21 = vmul.f32 %v11246_v26, %v11246_v26  ;;  %v11515_v29 = vand.u32 2147483647, %v11246_v26 }
 0xaa8   :  { %v10867_v20 = vpop.f32.mrb[25].mxu1  ;;  %v11123_v57 = vadd.f32 %v14196_v56, %v18521_v30  ;;  %v11394_v39 = vadd.f32 %v11393_v46, %v11392_v61  ;;  %v11598_v52 = vadd.f32 %v11597_v24, %v11596_v33  ;;  %v11397_v59 = vsel %vm39_vm1, %v11312_v22, 0.0  ;;  %v11192_v22 = vld [vmem:[%s18927_s3 + $0xf8] sm:$0xff] }
 0xaa9   :  { %v14197_v11 = vpop.f32.mrb[26].mxu1  ;;  %v11121_v32 = vadd.f32 %v18521_v30, %v10867_v20  ;;  %v11395_v63 = vsel %vm39_vm1, %v11311_v21, 0.0  ;;  %v11599_v60 = vsel %vm39_vm1, %v11515_v29, 0.0  ;;  %v11601_v58 = vsel %vm39_vm1, %v11516_v54, 0.0 }
 0xaaa   :  { %v11124_v1 = vadd.f32 %v14197_v11, %v18521_v30  ;;  %v10870_v53 = vpop.f32.mrb[27].mxu1  ;;  %v11251_v17 = vsub.f32 %v11123_v57, %v11187_v35  ;;  %v11396_v43 = vadd.f32 %v11395_v63, %v11394_v39  ;;  %v11600_v40 = vadd.f32 %v11599_v60, %v11598_v52  ;;  %v11190_v11 = vld [vmem:[%s18927_s3 + $0xe8] sm:$0xff]  ;;  %v11195_v63 = vld [vmem:[%s18927_s3 + $0x110] sm:$0xff]  ;;  %v11193_v60 = vld [vmem:[%s18927_s3 + $0x100] sm:$0xff] }
 0xaab   :  { %v11249_v16 = vsub.f32 %v11121_v32, %v11185_v9  ;;  %v11122_v44 = vadd.f32 %v18521_v30, %v10870_v53  ;;  %v11399_v51 = vsel %vm39_vm1, %v11313_v13, 0.0  ;;  %v11603_v6 = vsel %vm39_vm1, %v11517_v7, 0.0 }
 0xaac   :  { %v11252_v25 = vsub.f32 %v11124_v1, %v11188_v4  ;;  %v11398_v15 = vadd.f32 %v11397_v59, %v11396_v43  ;;  %v11602_v0 = vadd.f32 %v11601_v58, %v11600_v40  ;;  %v11316_v12 = vmul.f32 %v11251_v17, %v11251_v17 }
 0xaad   :  { %v11314_v19 = vmul.f32 %v11249_v16, %v11249_v16  ;;  %v11518_v3 = vand.u32 2147483647, %v11249_v16  ;;  %v11520_v18 = vand.u32 2147483647, %v11251_v17  ;;  %v11250_v47 = vsub.f32 %v11122_v44, %v11186_v14 }
 0xaae   :  { %v11400_v31 = vadd.f32 %v11399_v51, %v11398_v15  ;;  %v11604_v49 = vadd.f32 %v11603_v6, %v11602_v0  ;;  %v11317_v36 = vmul.f32 %v11252_v25, %v11252_v25  ;;  %v11521_v37 = vand.u32 2147483647, %v11252_v25 }
 0xaaf   :  { %v14200_v27 = vpop.f32.mrb[28].mxu1  ;;  %v11401_v8 = vsel %vm39_vm1, %v11314_v19, 0.0  ;;  %v11605_v42 = vsel %vm39_vm1, %v11518_v3, 0.0  ;;  %v11315_v62 = vmul.f32 %v11250_v47, %v11250_v47  ;;  %v11519_v38 = vand.u32 2147483647, %v11250_v47  ;;  %v11196_v3 = vld [vmem:[%s18927_s3 + $0x118] sm:$0xff] }
 0xab0   :  { %v10883_v55 = vpop.f32.mrb[29].mxu1  ;;  %v11127_v5 = vadd.f32 %v14200_v27, %v18521_v30  ;;  %v11402_v34 = vadd.f32 %v11401_v8, %v11400_v31  ;;  %v11606_v56 = vadd.f32 %v11605_v42, %v11604_v49  ;;  %v11405_v54 = vsel %vm39_vm1, %v11316_v12, 0.0 }
 0xab1   :  { %v14201_v28 = vpop.f32.mrb[30].mxu1  ;;  %v11125_v50 = vadd.f32 %v18521_v30, %v10883_v55  ;;  %v11403_v20 = vsel %vm39_vm1, %v11315_v62, 0.0  ;;  %v11607_v46 = vsel %vm39_vm1, %v11519_v38, 0.0  ;;  %v11609_v61 = vsel %vm39_vm1, %v11520_v18, 0.0 }
 0xab2   :  { %v10886_v23 = vpop.f32.mrb[31].mxu1  ;;  %v11128_v10 = vadd.f32 %v14201_v28, %v18521_v30  ;;  %v11255_v45 = vsub.f32 %v11127_v5, %v11191_v2  ;;  %v11404_v26 = vadd.f32 %v11403_v20, %v11402_v34  ;;  %v11608_v57 = vadd.f32 %v11607_v46, %v11606_v56  ;;  %v11194_v28 = vld [vmem:[%s18927_s3 + $0x108] sm:$0xff]  ;;  %v11197_v20 = vld [vmem:[%s18927_s3 + $0x120] sm:$0xff] }
 0xab3   :  { %v11253_v48 = vsub.f32 %v11125_v50, %v11189_v41  ;;  %v11126_v24 = vadd.f32 %v18521_v30, %v10886_v23  ;;  %v11407_v33 = vsel %vm39_vm1, %v11317_v36, 0.0  ;;  %v11611_v32 = vsel %vm39_vm1, %v11521_v37, 0.0 }
 0xab4   :  { %v11256_v1 = vsub.f32 %v11128_v10, %v11192_v22  ;;  %v11406_v53 = vadd.f32 %v11405_v54, %v11404_v26  ;;  %v11610_v13 = vadd.f32 %v11609_v61, %v11608_v57  ;;  %v11320_v7 = vmul.f32 %v11255_v45, %v11255_v45  ;;  %v11199_v54 = vld [vmem:[%s18927_s3 + $0x130] sm:$0xff] }
 0xab5   :  { %v11318_v35 = vmul.f32 %v11253_v48, %v11253_v48  ;;  %v11522_v9 = vand.u32 2147483647, %v11253_v48  ;;  %v11524_v21 = vand.u32 2147483647, %v11255_v45  ;;  %v11254_v17 = vsub.f32 %v11126_v24, %v11190_v11 }
 0xab6   :  { %v11408_v44 = vadd.f32 %v11407_v33, %v11406_v53  ;;  %v11612_v43 = vadd.f32 %v11611_v32, %v11610_v13  ;;  %v11321_v59 = vmul.f32 %v11256_v1, %v11256_v1  ;;  %v11525_v58 = vand.u32 2147483647, %v11256_v1 }
 0xab7   :  { %v14204_v4 = vpop.f32.mrb[32].mxu1  ;;  %v11409_v39 = vsel %vm39_vm1, %v11318_v35, 0.0  ;;  %v11613_v52 = vsel %vm39_vm1, %v11522_v9, 0.0  ;;  %v11319_v51 = vmul.f32 %v11254_v17, %v11254_v17  ;;  %v11523_v6 = vand.u32 2147483647, %v11254_v17 }
 0xab8   :  { %v10899_v29 = vpop.f32.mrb[33].mxu1  ;;  %v11131_v16 = vadd.f32 %v14204_v4, %v18521_v30  ;;  %v11410_v27 = vadd.f32 %v11409_v39, %v11408_v44  ;;  %v11614_v15 = vadd.f32 %v11613_v52, %v11612_v43  ;;  %v11413_v31 = vsel %vm39_vm1, %v11320_v7, 0.0  ;;  %v11200_v7 = vld [vmem:[%s18927_s3 + $0x138] sm:$0xff] }
 0xab9   :  { %v14205_v25 = vpop.f32.mrb[34].mxu1  ;;  %v11129_v40 = vadd.f32 %v18521_v30, %v10899_v29  ;;  %v11411_v18 = vsel %vm39_vm1, %v11319_v51, 0.0  ;;  %v11615_v55 = vsel %vm39_vm1, %v11523_v6, 0.0  ;;  %v11617_v49 = vsel %vm39_vm1, %v11524_v21, 0.0 }
 0xaba   :  { %v11132_v19 = vadd.f32 %v14205_v25, %v18521_v30  ;;  %v10902_v14 = vpop.f32.mrb[35].mxu1  ;;  %v11259_v0 = vsub.f32 %v11131_v16, %v11195_v63  ;;  %v11412_v47 = vadd.f32 %v11411_v18, %v11410_v27  ;;  %v11616_v5 = vadd.f32 %v11615_v55, %v11614_v15  ;;  %v11198_v25 = vld [vmem:[%s18927_s3 + $0x128] sm:$0xff]  ;;  %v11203_v18 = vld [vmem:[%s18927_s3 + $0x150] sm:$0xff]  ;;  %v11201_v55 = vld [vmem:[%s18927_s3 + $0x140] sm:$0xff] }
 0xabb   :  { %v11257_v12 = vsub.f32 %v11129_v40, %v11193_v60  ;;  %v11130_v42 = vadd.f32 %v18521_v30, %v10902_v14  ;;  %v11415_v36 = vsel %vm39_vm1, %v11321_v59, 0.0  ;;  %v11619_v50 = vsel %vm39_vm1, %v11525_v58, 0.0 }
 0xabc   :  { %v11260_v8 = vsub.f32 %v11132_v19, %v11196_v3  ;;  %v11414_v37 = vadd.f32 %v11413_v31, %v11412_v47  ;;  %v11618_v62 = vadd.f32 %v11617_v49, %v11616_v5  ;;  %v11324_v38 = vmul.f32 %v11259_v0, %v11259_v0 }
 0xabd   :  { %v11322_v2 = vmul.f32 %v11257_v12, %v11257_v12  ;;  %v11526_v41 = vand.u32 2147483647, %v11257_v12  ;;  %v11528_v10 = vand.u32 2147483647, %v11259_v0  ;;  %v11258_v48 = vsub.f32 %v11130_v42, %v11194_v28 }
 0xabe   :  { %v11416_v24 = vadd.f32 %v11415_v36, %v11414_v37  ;;  %v11620_v26 = vadd.f32 %v11619_v50, %v11618_v62  ;;  %v11325_v57 = vmul.f32 %v11260_v8, %v11260_v8  ;;  %v11529_v11 = vand.u32 2147483647, %v11260_v8 }
 0xabf   :  { %v14208_v23 = vpop.f32.mrb[36].mxu1  ;;  %v11417_v56 = vsel %vm39_vm1, %v11322_v2, 0.0  ;;  %v11621_v45 = vsel %vm39_vm1, %v11526_v41, 0.0  ;;  %v11323_v61 = vmul.f32 %v11258_v48, %v11258_v48  ;;  %v11527_v33 = vand.u32 2147483647, %v11258_v48  ;;  %v11204_v41 = vld [vmem:[%s18927_s3 + $0x158] sm:$0xff] }
 0xac0   :  { %v10915_v34 = vpop.f32.mrb[37].mxu1  ;;  %v11135_v22 = vadd.f32 %v14208_v23, %v18521_v30  ;;  %v11418_v1 = vadd.f32 %v11417_v56, %v11416_v24  ;;  %v11622_v4 = vadd.f32 %v11621_v45, %v11620_v26  ;;  %v11421_v21 = vsel %vm39_vm1, %v11324_v38, 0.0 }
 0xac1   :  { %v14209_v46 = vpop.f32.mrb[38].mxu1  ;;  %v11133_v35 = vadd.f32 %v18521_v30, %v10915_v34  ;;  %v11419_v29 = vsel %vm39_vm1, %v11323_v61, 0.0  ;;  %v11623_v39 = vsel %vm39_vm1, %v11527_v33, 0.0  ;;  %v11625_v44 = vsel %vm39_vm1, %v11528_v10, 0.0 }
 0xac2   :  { %v10918_v9 = vpop.f32.mrb[39].mxu1  ;;  %v11136_v32 = vadd.f32 %v14209_v46, %v18521_v30  ;;  %v11263_v53 = vsub.f32 %v11135_v22, %v11199_v54  ;;  %v11420_v17 = vadd.f32 %v11419_v29, %v11418_v1  ;;  %v11624_v16 = vadd.f32 %v11623_v39, %v11622_v4  ;;  %v11202_v46 = vld [vmem:[%s18927_s3 + $0x148] sm:$0xff]  ;;  %v11205_v29 = vld [vmem:[%s18927_s3 + $0x160] sm:$0xff] }
 0xac3   :  { %v11261_v13 = vsub.f32 %v11133_v35, %v11197_v20  ;;  %v11134_v52 = vadd.f32 %v18521_v30, %v10918_v9  ;;  %v11423_v43 = vsel %vm39_vm1, %v11325_v57, 0.0  ;;  %v11627_v40 = vsel %vm39_vm1, %v11529_v11, 0.0 }
 0xac4   :  { %v11264_v19 = vsub.f32 %v11136_v32, %v11200_v7  ;;  %v11422_v14 = vadd.f32 %v11421_v21, %v11420_v17  ;;  %v11626_v59 = vadd.f32 %v11625_v44, %v11624_v16  ;;  %v11328_v58 = vmul.f32 %v11263_v53, %v11263_v53  ;;  %v11207_v21 = vld [vmem:[%s18927_s3 + $0x170] sm:$0xff] }
 0xac5   :  { %v11326_v63 = vmul.f32 %v11261_v13, %v11261_v13  ;;  %v11530_v60 = vand.u32 2147483647, %v11261_v13  ;;  %v11532_v51 = vand.u32 2147483647, %v11263_v53  ;;  %v11262_v0 = vsub.f32 %v11134_v52, %v11198_v25 }
 0xac6   :  { %v11424_v42 = vadd.f32 %v11423_v43, %v11422_v14  ;;  %v11628_v47 = vadd.f32 %v11627_v40, %v11626_v59  ;;  %v11329_v31 = vmul.f32 %v11264_v19, %v11264_v19  ;;  %v11533_v49 = vand.u32 2147483647, %v11264_v19 }
 0xac7   :  { %v14212_v3 = vpop.f32.mrb[40].mxu1  ;;  %v11425_v27 = vsel %vm39_vm1, %v11326_v63, 0.0  ;;  %v11629_v15 = vsel %vm39_vm1, %v11530_v60, 0.0  ;;  %v11327_v36 = vmul.f32 %v11262_v0, %v11262_v0  ;;  %v11531_v50 = vand.u32 2147483647, %v11262_v0 }
 0xac8   :  { %v10931_v6 = vpop.f32.mrb[41].mxu1  ;;  %v11139_v12 = vadd.f32 %v14212_v3, %v18521_v30  ;;  %v11426_v23 = vadd.f32 %v11425_v27, %v11424_v42  ;;  %v11630_v37 = vadd.f32 %v11629_v15, %v11628_v47  ;;  %v11429_v24 = vsel %vm39_vm1, %v11328_v58, 0.0  ;;  %v11208_v58 = vld [vmem:[%s18927_s3 + $0x178] sm:$0xff] }
 0xac9   :  { %v14213_v8 = vpop.f32.mrb[42].mxu1  ;;  %v11137_v5 = vadd.f32 %v18521_v30, %v10931_v6  ;;  %v11427_v10 = vsel %vm39_vm1, %v11327_v36, 0.0  ;;  %v11631_v34 = vsel %vm39_vm1, %v11531_v50, 0.0  ;;  %v11633_v26 = vsel %vm39_vm1, %v11532_v51, 0.0 }
 0xaca   :  { %v11140_v2 = vadd.f32 %v14213_v8, %v18521_v30  ;;  %v10934_v28 = vpop.f32.mrb[43].mxu1  ;;  %v11267_v62 = vsub.f32 %v11139_v12, %v11203_v18  ;;  %v11428_v48 = vadd.f32 %v11427_v10, %v11426_v23  ;;  %v11632_v22 = vadd.f32 %v11631_v34, %v11630_v37  ;;  %v11206_v8 = vld [vmem:[%s18927_s3 + $0x168] sm:$0xff]  ;;  %v11211_v10 = vld [vmem:[%s18927_s3 + $0x190] sm:$0xff]  ;;  %v11209_v34 = vld [vmem:[%s18927_s3 + $0x180] sm:$0xff] }
 0xacb   :  { %v11265_v38 = vsub.f32 %v11137_v5, %v11201_v55  ;;  %v11138_v45 = vadd.f32 %v18521_v30, %v10934_v28  ;;  %v11431_v57 = vsel %vm39_vm1, %v11329_v31, 0.0  ;;  %v11635_v35 = vsel %vm39_vm1, %v11533_v49, 0.0 }
 0xacc   :  { %v11268_v56 = vsub.f32 %v11140_v2, %v11204_v41  ;;  %v11430_v11 = vadd.f32 %v11429_v24, %v11428_v48  ;;  %v11634_v61 = vadd.f32 %v11633_v26, %v11632_v22  ;;  %v11332_v33 = vmul.f32 %v11267_v62, %v11267_v62 }
 0xacd   :  { %v11330_v54 = vmul.f32 %v11265_v38, %v11265_v38  ;;  %v11534_v20 = vand.u32 2147483647, %v11265_v38  ;;  %v11536_v32 = vand.u32 2147483647, %v11267_v62  ;;  %v11266_v13 = vsub.f32 %v11138_v45, %v11202_v46 }
 0xace   :  { %v11432_v52 = vadd.f32 %v11431_v57, %v11430_v11  ;;  %v11636_v17 = vadd.f32 %v11635_v35, %v11634_v61  ;;  %v11333_v16 = vmul.f32 %v11268_v56, %v11268_v56  ;;  %v11537_v25 = vand.u32 2147483647, %v11268_v56 }
 0xacf   :  { %v14216_v9 = vpop.f32.mrb[44].mxu1  ;;  %v11433_v4 = vsel %vm39_vm1, %v11330_v54, 0.0  ;;  %v11637_v53 = vsel %vm39_vm1, %v11534_v20, 0.0  ;;  %v11331_v44 = vmul.f32 %v11266_v13, %v11266_v13  ;;  %v11535_v43 = vand.u32 2147483647, %v11266_v13  ;;  %v11212_v20 = vld [vmem:[%s18927_s3 + $0x198] sm:$0xff] }
 0xad0   :  { %v10947_v1 = vpop.f32.mrb[45].mxu1  ;;  %v11143_v7 = vadd.f32 %v14216_v9, %v18521_v30  ;;  %v11434_v19 = vadd.f32 %v11433_v4, %v11432_v52  ;;  %v11638_v3 = vadd.f32 %v11637_v53, %v11636_v17  ;;  %v11437_v51 = vsel %vm39_vm1, %v11332_v33, 0.0 }
 0xad1   :  { %v14217_v39 = vpop.f32.mrb[46].mxu1  ;;  %v11141_v63 = vadd.f32 %v18521_v30, %v10947_v1  ;;  %v11435_v6 = vsel %vm39_vm1, %v11331_v44, 0.0  ;;  %v11639_v27 = vsel %vm39_vm1, %v11535_v43, 0.0  ;;  %v11641_v42 = vsel %vm39_vm1, %v11536_v32, 0.0 }
 0xad2   :  { %v10950_v60 = vpop.f32.mrb[47].mxu1  ;;  %v11144_v40 = vadd.f32 %v14217_v39, %v18521_v30  ;;  %v11271_v14 = vsub.f32 %v11143_v7, %v11207_v21  ;;  %v11436_v0 = vadd.f32 %v11435_v6, %v11434_v19  ;;  %v11640_v12 = vadd.f32 %v11639_v27, %v11638_v3  ;;  %v11210_v39 = vld [vmem:[%s18927_s3 + $0x188] sm:$0xff]  ;;  %v11213_v6 = vld [vmem:[%s18927_s3 + $0x1a0] sm:$0xff] }
 0xad3   :  { %v11269_v59 = vsub.f32 %v11141_v63, %v11205_v29  ;;  %v11142_v15 = vadd.f32 %v18521_v30, %v10950_v60  ;;  %v11439_v47 = vsel %vm39_vm1, %v11333_v16, 0.0  ;;  %v11643_v5 = vsel %vm39_vm1, %v11537_v25, 0.0 }
 0xad4   :  { %v11272_v2 = vsub.f32 %v11144_v40, %v11208_v58  ;;  %v11438_v28 = vadd.f32 %v11437_v51, %v11436_v0  ;;  %v11642_v31 = vadd.f32 %v11641_v42, %v11640_v12  ;;  %v11336_v49 = vmul.f32 %v11271_v14, %v11271_v14  ;;  %v11215_v51 = vld [vmem:[%s18927_s3 + $0x1b0] sm:$0xff] }
 0xad5   :  { %v11334_v18 = vmul.f32 %v11269_v59, %v11269_v59  ;;  %v11538_v55 = vand.u32 2147483647, %v11269_v59  ;;  %v11540_v36 = vand.u32 2147483647, %v11271_v14  ;;  %v11270_v62 = vsub.f32 %v11142_v15, %v11206_v8 }
 0xad6   :  { %v11440_v45 = vadd.f32 %v11439_v47, %v11438_v28  ;;  %v11644_v48 = vadd.f32 %v11643_v5, %v11642_v31  ;;  %v11337_v24 = vmul.f32 %v11272_v2, %v11272_v2  ;;  %v11541_v26 = vand.u32 2147483647, %v11272_v2  ;;  %v18840_v5 = vld [vmem:[%s18931_s7] ss:$0 sm:$0xff] }
 0xad7   :  { %v14220_v41 = vpop.f32.mrb[48].mxu1  ;;  %v11441_v23 = vsel %vm39_vm1, %v11334_v18, 0.0  ;;  %v11645_v37 = vsel %vm39_vm1, %v11538_v55, 0.0  ;;  %v11335_v57 = vmul.f32 %v11270_v62, %v11270_v62  ;;  %v11539_v35 = vand.u32 2147483647, %v11270_v62 }
 0xad8   :  { %v10963_v50 = vpop.f32.mrb[49].mxu1  ;;  %v11147_v38 = vadd.f32 %v14220_v41, %v18521_v30  ;;  %v11442_v9 = vadd.f32 %v11441_v23, %v11440_v45  ;;  %v11646_v11 = vadd.f32 %v11645_v37, %v11644_v48  ;;  %v11445_v52 = vsel %vm39_vm1, %v11336_v49, 0.0 }
 0xad9   :  { %v14221_v56 = vpop.f32.mrb[50].mxu1  ;;  %v11145_v22 = vadd.f32 %v18521_v30, %v10963_v50  ;;  %v11443_v32 = vsel %vm39_vm1, %v11335_v57, 0.0  ;;  %v11647_v1 = vsel %vm39_vm1, %v11539_v35, 0.0  ;;  %v11649_v17 = vsel %vm39_vm1, %v11540_v36, 0.0  ;;  %v11216_v36 = vld [vmem:[%s18927_s3 + $0x1b8] sm:$0xff] }
 0xada   :  { %v11148_v54 = vadd.f32 %v14221_v56, %v18521_v30  ;;  %v10966_v46 = vpop.f32.mrb[51].mxu1  ;;  %v11275_v61 = vsub.f32 %v11147_v38, %v11211_v10  ;;  %v11444_v13 = vadd.f32 %v11443_v32, %v11442_v9  ;;  %v11648_v7 = vadd.f32 %v11647_v1, %v11646_v11  ;;  %v11214_v56 = vld [vmem:[%s18927_s3 + $0x1a8] sm:$0xff]  ;;  %v11219_v32 = vld [vmem:[%s18927_s3 + $0x1d0] sm:$0xff]  ;;  %v11217_v1 = vld [vmem:[%s18927_s3 + $0x1c0] sm:$0xff] }
 0xadb   :  { %v11273_v33 = vsub.f32 %v11145_v22, %v11209_v34  ;;  %v11146_v53 = vadd.f32 %v18521_v30, %v10966_v46  ;;  %v11447_v16 = vsel %vm39_vm1, %v11337_v24, 0.0  ;;  %v11651_v63 = vsel %vm39_vm1, %v11541_v26, 0.0 }
 0xadc   :  { %v11276_v4 = vsub.f32 %v11148_v54, %v11212_v20  ;;  %v11446_v25 = vadd.f32 %v11445_v52, %v11444_v13  ;;  %v11650_v44 = vadd.f32 %v11649_v17, %v11648_v7  ;;  %v11340_v43 = vmul.f32 %v11275_v61, %v11275_v61 }
 0xadd   :  { %v11338_v21 = vmul.f32 %v11273_v33, %v11273_v33  ;;  %v11542_v29 = vand.u32 2147483647, %v11273_v33  ;;  %v11544_v40 = vand.u32 2147483647, %v11275_v61  ;;  %v11274_v59 = vsub.f32 %v11146_v53, %v11210_v39 }
 0xade   :  { %v11448_v15 = vadd.f32 %v11447_v16, %v11446_v25  ;;  %v11652_v0 = vadd.f32 %v11651_v63, %v11650_v44  ;;  %v11341_v12 = vmul.f32 %v11276_v4, %v11276_v4  ;;  %v11545_v8 = vand.u32 2147483647, %v11276_v4 }
 0xadf   :  { %v14224_v60 = vpop.f32.mrb[52].mxu1  ;;  %v11449_v3 = vsel %vm39_vm1, %v11338_v21, 0.0  ;;  %v11653_v14 = vsel %vm39_vm1, %v11542_v29, 0.0  ;;  %v11339_v42 = vmul.f32 %v11274_v59, %v11274_v59  ;;  %v11543_v47 = vand.u32 2147483647, %v11274_v59  ;;  %v11220_v29 = vld [vmem:[%s18927_s3 + $0x1d8] sm:$0xff] }
 0xae0   :  { %v10979_v19 = vpop.f32.mrb[53].mxu1  ;;  %v11151_v58 = vadd.f32 %v14224_v60, %v18521_v30  ;;  %v11450_v41 = vadd.f32 %v11449_v3, %v11448_v15  ;;  %v11654_v28 = vadd.f32 %v11653_v14, %v11652_v0  ;;  %v11657_v45 = vsel %vm39_vm1, %v11544_v40, 0.0 }
 0xae1   :  { %v14225_v27 = vpop.f32.mrb[54].mxu1  ;;  %v11149_v18 = vadd.f32 %v18521_v30, %v10979_v19  ;;  %v11453_v30 = vsel %vm39_vm1, %v11340_v43, 0.0  ;;  %v11451_v50 = vsel %vm39_vm1, %v11339_v42, 0.0  ;;  %v11655_v23 = vsel %vm39_vm1, %v11543_v47, 0.0 }
 0xae2   :  { %v10982_v55 = vpop.f32.mrb[55].mxu1  ;;  %v11152_v2 = vadd.f32 %v18840_v5, %v14225_v27  ;;  %v11279_v31 = vsub.f32 %v11151_v58, %v11215_v51  ;;  %v11452_v62 = vadd.f32 %v11451_v50, %v11450_v41  ;;  %v11656_v38 = vadd.f32 %v11655_v23, %v11654_v28  ;;  %v11218_v27 = vld [vmem:[%s18927_s3 + $0x1c8] sm:$0xff] }
 0xae3   :  { %v11277_v49 = vsub.f32 %v11149_v18, %v11213_v6  ;;  %v11150_v37 = vadd.f32 %v18840_v5, %v10982_v55  ;;  %v11455_v48 = vsel %vm39_vm1, %v11341_v12, 0.0  ;;  %v11659_v22 = vsel %vm39_vm1, %v11545_v8, 0.0 }
 0xae4   :  { %v11280_v54 = vsub.f32 %v11152_v2, %v11216_v36  ;;  %v11454_v46 = vadd.f32 %v11453_v30, %v11452_v62  ;;  %v11658_v24 = vadd.f32 %v11657_v45, %v11656_v38  ;;  %v11344_v26 = vmul.f32 %v11279_v31, %v11279_v31  ;;  %v11221_v30 = vld [vmem:[%s18927_s3 + $0x1e0] sm:$0xff] }
 0xae5   :  { %v11342_v10 = vmul.f32 %v11277_v49, %v11277_v49  ;;  %v11546_v34 = vand.u32 2147483647, %v11277_v49  ;;  %v11548_v57 = vand.u32 2147483647, %v11279_v31  ;;  %v11278_v61 = vsub.f32 %v11150_v37, %v11214_v56 }
 0xae6   :  { %v11456_v53 = vadd.f32 %v11455_v48, %v11454_v46  ;;  %v11660_v13 = vadd.f32 %v11659_v22, %v11658_v24  ;;  %v11345_v52 = vmul.f32 %v11280_v54, %v11280_v54  ;;  %v11549_v17 = vand.u32 2147483647, %v11280_v54 }
 0xae7   :  { %v14228_v20 = vpop.f32.mrb[56].mxu1  ;;  %v11457_v9 = vsel %vm39_vm1, %v11342_v10, 0.0  ;;  %v11661_v11 = vsel %vm39_vm1, %v11546_v34, 0.0  ;;  %v11343_v16 = vmul.f32 %v11278_v61, %v11278_v61  ;;  %v11547_v63 = vand.u32 2147483647, %v11278_v61 }
 0xae8   :  { %v10995_v35 = vpop.f32.mrb[57].mxu1  ;;  %v11155_v33 = vadd.f32 %v18840_v5, %v14228_v20  ;;  %v11458_v60 = vadd.f32 %v11457_v9, %v11456_v53  ;;  %v11662_v25 = vadd.f32 %v11661_v11, %v11660_v13  ;;  %v11461_v15 = vsel %vm39_vm1, %v11344_v26, 0.0  ;;  %v11223_v20 = vld [vmem:[%s18927_s3 + $0x1f0] sm:$0xff]  ;;  %v11222_v26 = vld [vmem:[%s18927_s3 + $0x1e8] sm:$0xff]  ;;  %v11224_v11 = vld [vmem:[%s18927_s3 + $0x1f8] sm:$0xff] }
 0xae9   :  { %v14229_v4 = vpop.f32.mrb[58].mxu1  ;;  %v11153_v7 = vadd.f32 %v18840_v5, %v10995_v35  ;;  %v11459_v40 = vsel %vm39_vm1, %v11343_v16, 0.0  ;;  %v11663_v19 = vsel %vm39_vm1, %v11547_v63, 0.0  ;;  %v11665_v0 = vsel %vm39_vm1, %v11548_v57, 0.0 }
 0xaea   :  { %v11156_v21 = vadd.f32 %v18840_v5, %v14229_v4  ;;  %v10998_v39 = vpop.f32.mrb[59].mxu1  ;;  %v11283_v44 = vsub.f32 %v11155_v33, %v11219_v32  ;;  %v11460_v59 = vadd.f32 %v11459_v40, %v11458_v60  ;;  %v11664_v58 = vadd.f32 %v11663_v19, %v11662_v25 }
 0xaeb   :  { %v11281_v43 = vsub.f32 %v11153_v7, %v11217_v1  ;;  %v11154_v14 = vadd.f32 %v18840_v5, %v10998_v39  ;;  %v11463_v12 = vsel %vm39_vm1, %v11345_v52, 0.0  ;;  %v11667_v18 = vsel %vm39_vm1, %v11549_v17, 0.0 }
 0xaec   :  { %v11284_v3 = vsub.f32 %v11156_v21, %v11220_v29  ;;  %v11462_v8 = vadd.f32 %v11461_v15, %v11460_v59  ;;  %v11666_v42 = vadd.f32 %v11665_v0, %v11664_v58  ;;  %v11348_v47 = vmul.f32 %v11283_v44, %v11283_v44 }
 0xaed   :  { %v11346_v51 = vmul.f32 %v11281_v43, %v11281_v43  ;;  %v11550_v6 = vand.u32 2147483647, %v11281_v43  ;;  %v11552_v2 = vand.u32 2147483647, %v11283_v44  ;;  %v11282_v36 = vsub.f32 %v11154_v14, %v11218_v27 }
 0xaee   :  { %v11349_v49 = vmul.f32 %v11284_v3, %v11284_v3  ;;  %v11464_v23 = vadd.f32 %v11463_v12, %v11462_v8  ;;  %v11668_v37 = vadd.f32 %v11667_v18, %v11666_v42  ;;  %v11553_v62 = vand.u32 2147483647, %v11284_v3 }
 0xaef   :  { %v14232_v55 = vpop.f32.mrb[60].mxu1  ;;  %v11465_v28 = vsel %vm39_vm1, %v11346_v51, 0.0  ;;  %v11669_v31 = vsel %vm39_vm1, %v11550_v6, 0.0  ;;  %v11347_v34 = vmul.f32 %v11282_v36, %v11282_v36  ;;  %v11551_v56 = vand.u32 2147483647, %v11282_v36 }
 0xaf0   :  { %v11011_v41 = vpop.f32.mrb[61].mxu1  ;;  %v11159_v45 = vadd.f32 %v18840_v5, %v14232_v55  ;;  %v11466_v22 = vadd.f32 %v11465_v28, %v11464_v23  ;;  %v11670_v54 = vadd.f32 %v11669_v31, %v11668_v37  ;;  %v11469_v57 = vsel %vm39_vm1, %v11348_v47, 0.0 }
 0xaf1   :  { %v14233_v50 = vpop.f32.mrb[62].mxu1  ;;  %v11157_v38 = vadd.f32 %v18840_v5, %v11011_v41  ;;  %v11467_v35 = vsel %vm39_vm1, %v11347_v34, 0.0  ;;  %v11671_v9 = vsel %vm39_vm1, %v11551_v56, 0.0  ;;  %v11471_v4 = vsel %vm39_vm1, %v11349_v49, 0.0 }
 0xaf2   :  { %v11014_v10 = vpop.f32.mrb[63].mxu1  ;;  %v11160_v24 = vadd.f32 %v18840_v5, %v14233_v50  ;;  %v11468_v61 = vadd.f32 %v11467_v35, %v11466_v22  ;;  %v11672_v33 = vadd.f32 %v11671_v9, %v11670_v54  ;;  %v11287_v53 = vsub.f32 %v11159_v45, %v11223_v20 }
 0xaf3   :  { %v11158_v48 = vadd.f32 %v18840_v5, %v11014_v10  ;;  %v11285_v46 = vsub.f32 %v11157_v38, %v11221_v30  ;;  %v11673_v5 = vsel %vm39_vm1, %v11552_v2, 0.0  ;;  %v11675_v7 = vsel %vm39_vm1, %v11553_v62, 0.0 }
 0xaf4   :  { %v11470_v21 = vadd.f32 %v11469_v57, %v11468_v61  ;;  %v11674_v29 = vadd.f32 %v11673_v5, %v11672_v33  ;;  %v11288_v39 = vsub.f32 %v11160_v24, %v11224_v11  ;;  %v11352_v44 = vmul.f32 %v11287_v53, %v11287_v53 }
 0xaf5   :  { %v11350_v32 = vmul.f32 %v11285_v46, %v11285_v46  ;;  %v11554_v1 = vand.u32 2147483647, %v11285_v46  ;;  %v11286_v13 = vsub.f32 %v11158_v48, %v11222_v26  ;;  %v11556_v43 = vand.u32 2147483647, %v11287_v53 }
 0xaf6   :  { %v11676_v60 = vadd.f32 %v11675_v7, %v11674_v29  ;;  %v11472_v25 = vadd.f32 %v11471_v4, %v11470_v21  ;;  %v11557_v59 = vand.u32 2147483647, %v11288_v39  ;;  %v11353_v58 = vmul.f32 %v11288_v39, %v11288_v39 }
 0xaf7   :  { %v11473_v52 = vsel %vm39_vm1, %v11350_v32, 0.0  ;;  %v11677_v17 = vsel %vm39_vm1, %v11554_v1, 0.0  ;;  %v11351_v16 = vmul.f32 %v11286_v13, %v11286_v13  ;;  %v11555_v63 = vand.u32 2147483647, %v11286_v13 }
 0xaf8   :  { %v11678_v3 = vadd.f32 %v11677_v17, %v11676_v60  ;;  %v11474_v14 = vadd.f32 %v11473_v52, %v11472_v25  ;;  %v11681_v27 = vsel %vm39_vm1, %v11556_v43, 0.0  ;;  %v11477_v15 = vsel %vm39_vm1, %v11352_v44, 0.0 }
 0xaf9   :  { %v11679_v40 = vsel %vm39_vm1, %v11555_v63, 0.0  ;;  %v11475_v19 = vsel %vm39_vm1, %v11351_v16, 0.0  ;;  %v11683_v18 = vsel %vm39_vm1, %v11557_v59, 0.0  ;;  %v11479_v55 = vsel %vm39_vm1, %v11353_v58, 0.0 }
 0xafa   :  { %v11680_v51 = vadd.f32 %v11679_v40, %v11678_v3  ;;  %v11476_v6 = vadd.f32 %v11475_v19, %v11474_v14 }
 0xafc   :  { %v11682_v0 = vadd.f32 %v11681_v27, %v11680_v51  ;;  %v11478_v12 = vadd.f32 %v11477_v15, %v11476_v6 }
 0xafe   :  { %v11684_v8 = vadd.f32 %v11683_v18, %v11682_v0  ;;  %v11480_v42 = vadd.f32 %v11479_v55, %v11478_v12 }
 0xb00   :  { %11685 = vadd.xlane.f32.xlu1 %v11684_v8  ;;  %11481 = vadd.xlane.f32.xlu0 %v11480_v42 }
 0xb8d   :  { %v11686_v47 = vpop.xlane.xlu1 %11685  ;;  %v11482_v2 = vpop.xlane.xlu0 %11481 }
 0xb8e   :  { %v11687_v41 = vrot.slane %v11686_v47, 4  ;;  %v11483_v28 = vrot.slane %v11482_v2, 4 }
 0xb90   :  { %v11688_v31 = vadd.f32 %v11687_v41, %v11686_v47  ;;  %v11484_v49 = vadd.f32 %v11483_v28, %v11482_v2 }
 0xb92   :  { %v11689_v36 = vrot.slane %v11688_v31, 2  ;;  %v11485_v30 = vrot.slane %v11484_v49, 2 }
 0xb94   :  { %v11690_v50 = vadd.f32 %v11689_v36, %v11688_v31  ;;  %v11486_v23 = vadd.f32 %v11485_v30, %v11484_v49 }
 0xb96   :  { %v11487_v37 = vrot.slane %v11486_v23, 1  ;;  %v11691_v62 = vrot.slane %v11690_v50, 1 }
 0xb98   :  { %v11488_v38 = vadd.f32 %v11487_v37, %v11486_v23  ;;  %v11692_v10 = vadd.f32 %v11691_v62, %v11690_v50 }
 0xb9a   :  { %15267 = vpush %v11488_v38 }
 0xb9b   :  { %15269 = vpush %v11692_v10 }
 0xbcb   :  { %s15268_s3 = spop %15267 }
 0xbcc   :  { %s11701_s10 = smul.f32 0.00048828125, %s15268_s3  ;;  %s15270_s0 = spop %15269 }
 0xbcd   :  { %s11705_s1 = smul.f32 0.00048828125, %s15270_s0 }
 0xbce   :  { %11703 = sst [smem:[#allocation5]] %s11701_s10 }
 0xbcf   :  { %11707 = sst [smem:[#allocation5 + $0x1]] %s11705_s1 }
 0xbd0   :  { %15562 = shalt.err (!%p15559_p2)
}
 0xbd1   :  { %s15568_s16 = smov [#allocation5]  }
 0xbd2   :  { %11715 = dma.smem_to_hbm %s15568_s16, 16, %s18932_s8, [#allocation6]  }
 0xbd3   :  { %15563 = dma.done.wait [#allocation6], 16  }
 0xbd4   :  { %15564 = vsyncadd [#allocation6], 4294967280 }
 0xbd5   :  { %11719 = sfence }
 0xbd6   :  { %11720 = vsyncpa [#allocation6], 1 }

</bundles_post_ra>
